<compile_context>
chip_gen: v7x
topology: tpu7x:2x2x1
jax: 0.10.0
libtpu: 0.0.40
codegen_flags: <defaults>
</compile_context>

<pallas_src>
import functools

import jax
import jax.numpy as jnp
from jax.experimental import pallas as pl
from jax.experimental.pallas import tpu as pltpu


# ----------------------------------------------------------------------------
# Fused forward kernel: btile images per grid step, everything stays in VMEM.
# ----------------------------------------------------------------------------
def _fused_kernel(xc_ref, w1_ref, b1_ref, w2_ref, b2_ref,
                  wf1_ref, bf1_ref, wf2_ref, bf2_ref,
                  emb_ref, out_ref,
                  acc1_ref, x2_ref, acc2_ref, wmax_ref, p2_ref,
                  *, W, SP, Lw, Hp, Wp, C1, C2, btile, cdtype):
    f32 = jnp.float32
    Ltot2 = x2_ref.shape[0]          # (btile-1)*SP + L2 rows of conv2 outputs

    # ---- conv1: ONE K=27 GEMM (im2col pre-packed in the wrapper) + bias + ReLU ----
    acc1_ref[...] = jnp.maximum(
        jnp.dot(xc_ref[...], w1_ref[...], preferred_element_type=f32)
        + b1_ref[...], 0.0)

    # ---- conv2 im2col: 9 lane-band copies of shifted conv1 rows -> (Ltot2, 288) ----
    # Band k holds acc1 shifted by tap (i, j); junk rows never feed a valid output
    # and the max shift (2W+2) never escapes an image's SP-row slab.
    for k in range(9):
        i, j = divmod(k, 3)
        x2_ref[:, k * C1:(k + 1) * C1] = (
            acc1_ref[pl.ds(i * W + j, Ltot2), :].astype(cdtype))

    # ---- conv2: ONE K=288 GEMM + bias + ReLU (dominant stage, MXU depth filled) ----
    acc2_ref[...] = jnp.maximum(
        jnp.dot(x2_ref[...], w2_ref[...], preferred_element_type=f32)
        + b2_ref[...], 0.0)

    # ---- 2x2 window-max map (full slab, 3 shifted VPU maxima) ----
    wmax_ref[...] = jnp.maximum(
        jnp.maximum(acc2_ref[pl.ds(0, Lw), :], acc2_ref[pl.ds(1, Lw), :]),
        jnp.maximum(acc2_ref[pl.ds(W, Lw), :], acc2_ref[pl.ds(W + 1, Lw), :]))

    # ---- repack pooled rows lane-dense: p2[b, p*C2 + c] = pooled[b, p, c] ----
    # One strided row gather (stride = per-image slab SP) per pooled position.
    for p in range(Hp * Wp):
        pr, pc = divmod(p, Wp)
        q = 2 * pr * W + 2 * pc
        p2_ref[:, p * C2:(p + 1) * C2] = (
            wmax_ref[pl.ds(q, btile, stride=SP), :].astype(cdtype))

    # ---- fc1: ONE (btile, 2304) x (2304, 128) GEMM; emb is pre-activation ----
    emb = (jnp.dot(p2_ref[...], wf1_ref[...], preferred_element_type=f32)
           + bf1_ref[...])
    emb_ref[...] = emb

    # ---- fc2 on relu(emb); N padded to 128 for a lane-dense store ----
    out_ref[...] = (jnp.dot(jnp.maximum(emb, 0.0).astype(cdtype), wf2_ref[...],
                            preferred_element_type=f32) + bf2_ref[...])


# ----------------------------------------------------------------------------
# Wrapper: layout plumbing only (all math runs inside the Pallas kernel).
# ----------------------------------------------------------------------------
def conv2dnet_forward(x_nchw, params, *, compute_dtype=jnp.float32, btile_max=32):
    f32 = jnp.float32
    cdtype = jnp.dtype(compute_dtype)

    x = jnp.transpose(x_nchw, (0, 2, 3, 1)).astype(f32)       # NCHW -> NHWC
    B, H, W, Cin = x.shape

    Ho1, Wo1 = H - 2, W - 2
    Ho2, Wo2 = Ho1 - 2, Wo1 - 2
    assert Ho2 % 2 == 0 and Wo2 % 2 == 0, "pooling expects even conv2 output"
    Hp, Wp = Ho2 // 2, Wo2 // 2
    L1 = (Ho1 - 1) * W + Wo1            # 222: conv1 flat rows needed per image
    L2 = (Ho2 - 1) * W + Wo2            # 188: conv2 flat rows needed per image
    Lwin = L2 - W - 1                   # 171: window-max rows needed per image
    SP = ((L1 + 7) // 8) * 8            # 224: per-image flat-row stride (8-aligned)

    C1, C2, F1 = 32, 64, 128
    num_classes = params["wf2"].shape[1]
    NP = 128                            # lane-dense padded logits width
    assert num_classes <= NP

    # ---- batch tiling (btile_max is a multiple of 8 so multi-step grids tile) ----
    btile = B if B <= btile_max else btile_max
    Bp = ((B + btile - 1) // btile) * btile
    nsteps = Bp // btile
    if Bp != B:
        x = jnp.concatenate([x, jnp.zeros((Bp - B, H, W, Cin), f32)], axis=0)

    # ---- conv1 im2col in the wrapper (layout plumbing): (Bp*SP, 9*Cin) ----
    x_flat = x.reshape(Bp, H * W, Cin)
    cols = [x_flat[:, i * W + j: i * W + j + L1, :]
            for i in range(3) for j in range(3)]
    x_col = jnp.concatenate(cols, axis=-1)                     # (Bp, L1, 9*Cin)
    x_col = jnp.pad(x_col, ((0, 0), (0, SP - L1), (0, 0)))     # (Bp, SP, 9*Cin)
    x_col = x_col.reshape(Bp * SP, 9 * Cin).astype(cdtype)

    # ---- one-time weight packing (optionally bf16 MXU operands; biases stay f32) ----
    w1c = params["w1"].reshape(9 * Cin, C1).astype(cdtype)     # HWIO -> (27, 32)
    w2c = params["w2"].reshape(9 * C1, C2).astype(cdtype)      # HWIO -> (288, 64)
    b1 = params["b1"].reshape(1, C1).astype(f32)
    b2 = params["b2"].reshape(1, C2).astype(f32)
    # PyTorch .view(B, -1) flattens NCHW: in-index = c*Hp*Wp + p.  The kernel's K
    # layout is p*C2 + c, so permute wf1 rows once here.
    wf1c = (params["wf1"].reshape(C2, Hp * Wp, F1)
            .transpose(1, 0, 2).reshape(Hp * Wp * C2, F1).astype(cdtype))
    bf1 = params["bf1"].reshape(1, F1).astype(f32)
    wf2p = (jnp.zeros((F1, NP), f32).at[:, :num_classes].set(params["wf2"])
            .astype(cdtype))
    bf2p = jnp.zeros((1, NP), f32).at[:, :num_classes].set(params["bf2"])

    Ltot2 = (btile - 1) * SP + L2
    Lw = (btile - 1) * SP + Lwin

    kernel = functools.partial(
        _fused_kernel, W=W, SP=SP, Lw=Lw, Hp=Hp, Wp=Wp,
        C1=C1, C2=C2, btile=btile, cdtype=cdtype)

    flops = 2 * Bp * (L1 * 9 * Cin * C1 + L2 * 9 * C1 * C2
                      + Hp * Wp * C2 * F1 + F1 * NP)
    bytes_accessed = int(
        x_col.size * cdtype.itemsize
        + (w1c.size + w2c.size + wf1c.size + wf2p.size) * cdtype.itemsize
        + 4 * (b1.size + b2.size + bf1.size + bf2p.size)
        + 4 * Bp * (F1 + NP))

    emb, logits = pl.pallas_call(
        kernel,
        grid=(nsteps,),
        out_shape=[jax.ShapeDtypeStruct((Bp, F1), f32),
                   jax.ShapeDtypeStruct((Bp, NP), f32)],
        in_specs=[
            pl.BlockSpec((btile * SP, 9 * Cin), lambda g: (g, 0)),
            pl.BlockSpec((9 * Cin, C1), lambda g: (0, 0)),
            pl.BlockSpec((1, C1), lambda g: (0, 0)),
            pl.BlockSpec((9 * C1, C2), lambda g: (0, 0)),
            pl.BlockSpec((1, C2), lambda g: (0, 0)),
            pl.BlockSpec((Hp * Wp * C2, F1), lambda g: (0, 0)),
            pl.BlockSpec((1, F1), lambda g: (0, 0)),
            pl.BlockSpec((F1, NP), lambda g: (0, 0)),
            pl.BlockSpec((1, NP), lambda g: (0, 0)),
        ],
        out_specs=[
            pl.BlockSpec((btile, F1), lambda g: (g, 0)),
            pl.BlockSpec((btile, NP), lambda g: (g, 0)),
        ],
        scratch_shapes=[
            pltpu.VMEM((btile * SP, C1), f32),          # conv1 output (flat slabs)
            pltpu.VMEM((Ltot2, 9 * C1), cdtype),        # conv2 im2col (K=288)
            pltpu.VMEM((Ltot2, C2), f32),               # conv2 output
            pltpu.VMEM((Lw, C2), f32),                  # 2x2 window-max map
            pltpu.VMEM((btile, Hp * Wp * C2), cdtype),  # pooled, lane-dense K for fc1
        ],
        compiler_params=pltpu.CompilerParams(
            dimension_semantics=("parallel",),          # shard batch tiles across TCs
            vmem_limit_bytes=64 * 1024 * 1024),         # > 16/32 MiB scoped defaults
        cost_estimate=pl.CostEstimate(flops=flops, transcendentals=0,
                                      bytes_accessed=bytes_accessed),
    )(x_col, w1c, b1, w2c, b2, wf1c, bf1, wf2p, bf2p)

    output = logits[:B, :num_classes]
    return output, emb[:B, :]


# ----------------------------------------------------------------------------
# Deterministic parameter init (mirrors torch default U(-1/sqrt(fan_in), +)).
# ----------------------------------------------------------------------------
def init_params(key, num_classes):
    ks = jax.random.split(key, 8)

    def u(k, shape, fan_in):
        bound = 1.0 / float(fan_in) ** 0.5
        return jax.random.uniform(k, shape, jnp.float32, -bound, bound)

    fc1_in = 6 * 6 * 64   # conv_out_shape((16,16)) -> (6,6), 64 channels
    return {
        "w1": u(ks[0], (3, 3, 3, 32), 3 * 3 * 3),      # HWIO
        "b1": u(ks[1], (32,), 3 * 3 * 3),
        "w2": u(ks[2], (3, 3, 32, 64), 3 * 3 * 32),    # HWIO
        "b2": u(ks[3], (64,), 3 * 3 * 32),
        "wf1": u(ks[4], (fc1_in, 128), fc1_in),        # (in, out), NCHW-flatten order
        "bf1": u(ks[5], (128,), fc1_in),
        "wf2": u(ks[6], (128, num_classes), 128),
        "bf2": u(ks[7], (num_classes,), 128),
    }


# ----------------------------------------------------------------------------
# Pure-JAX reference for a numerical cross-check.
# ----------------------------------------------------------------------------
def reference_forward(x_nchw, params):
    dn = ("NHWC", "HWIO", "NHWC")
    hi = jax.lax.Precision.HIGHEST
    x = jnp.transpose(x_nchw, (0, 2, 3, 1)).astype(jnp.float32)
    y = jax.lax.conv_general_dilated(x, params["w1"], (1, 1), "VALID",
                                     dimension_numbers=dn, precision=hi) + params["b1"]
    y = jnp.maximum(y, 0.0)
    y = jax.lax.conv_general_dilated(y, params["w2"], (1, 1), "VALID",
                                     dimension_numbers=dn, precision=hi) + params["b2"]
    y = jnp.maximum(y, 0.0)
    y = jax.lax.reduce_window(y, -jnp.inf, jax.lax.max,
                              (1, 2, 2, 1), (1, 2, 2, 1), "VALID")
    B = y.shape[0]
    flat = jnp.transpose(y, (0, 3, 1, 2)).reshape(B, -1)     # NCHW flatten (torch)
    emb = flat @ params["wf1"] + params["bf1"]
    out = jnp.maximum(emb, 0.0) @ params["wf2"] + params["bf2"]
    return out, emb


if __name__ == "__main__":
    num_classes = 4
    key = jax.random.PRNGKey(0)
    kx, kp = jax.random.split(key)

    # Input matches nn.Conv2d(in_channels=3, ...) and dim=(16, 16): NCHW.
    x = jax.random.normal(kx, (2, 3, 16, 16), dtype=jnp.float32)
    params = init_params(kp, num_classes)

    ref_out, ref_emb = reference_forward(x, params)

    # f32 path (exact-precision check).
    fwd = jax.jit(functools.partial(conv2dnet_forward, compute_dtype=jnp.float32))
    output, emb = fwd(x, params)
    jax.block_until_ready((output, emb))
    assert output.shape == (2, num_classes) and emb.shape == (2, 128)
    err = max(float(jnp.max(jnp.abs(output - ref_out))),
              float(jnp.max(jnp.abs(emb - ref_emb))))
    assert err < 5e-3, f"f32 Pallas vs reference mismatch: {err}"

    # bf16 MXU-operand path (v6e/v7x suggestion); elementwise stages stay f32.
    fwd16 = jax.jit(functools.partial(conv2dnet_forward, compute_dtype=jnp.bfloat16))
    out16, emb16 = fwd16(x, params)
    jax.block_until_ready((out16, emb16))
    scale = 1.0 + max(float(jnp.max(jnp.abs(ref_out))),
                      float(jnp.max(jnp.abs(ref_emb))))
    err16 = max(float(jnp.max(jnp.abs(out16 - ref_out))),
                float(jnp.max(jnp.abs(emb16 - ref_emb))))
    assert err16 < 3e-2 * scale, f"bf16 Pallas vs reference mismatch: {err16}"

    print("KERNEL_OK")
</pallas_src>

<mosaic_0001>
module attributes {stable_mosaic.version = 11 : i64} {
  func.func @_fused_kernel(%arg0: i32, %arg1: memref<448x27xf32, #tpu.memory_space<vmem>>, %arg2: memref<27x32xf32, #tpu.memory_space<vmem>>, %arg3: memref<1x32xf32, #tpu.memory_space<vmem>>, %arg4: memref<288x64xf32, #tpu.memory_space<vmem>>, %arg5: memref<1x64xf32, #tpu.memory_space<vmem>>, %arg6: memref<2304x128xf32, #tpu.memory_space<vmem>>, %arg7: memref<1x128xf32, #tpu.memory_space<vmem>>, %arg8: memref<128x128xf32, #tpu.memory_space<vmem>>, %arg9: memref<1x128xf32, #tpu.memory_space<vmem>>, %arg10: memref<2x128xf32, #tpu.memory_space<vmem>>, %arg11: memref<2x128xf32, #tpu.memory_space<vmem>>, %arg12: memref<448x32xf32, #tpu.memory_space<vmem>>, %arg13: memref<412x288xf32, #tpu.memory_space<vmem>>, %arg14: memref<412x64xf32, #tpu.memory_space<vmem>>, %arg15: memref<395x64xf32, #tpu.memory_space<vmem>>, %arg16: memref<2x2304xf32, #tpu.memory_space<vmem>>) attributes {dimension_semantics = [#tpu.dimension_semantics<parallel>], iteration_bounds = array<i64: 1>, scalar_prefetch = 0 : i64, scratch_operands = 5 : i64, tpu.core_type = #tpu.core_type<tc>, window_params = [{transform_indices = @transform_0, window_bounds = array<i64: 448, 27>}, {pipeline_mode = #tpu.pipeline_mode<synchronous>, transform_indices = @transform_1, window_bounds = array<i64: 27, 32>}, {pipeline_mode = #tpu.pipeline_mode<synchronous>, transform_indices = @transform_2, window_bounds = array<i64: 1, 32>}, {pipeline_mode = #tpu.pipeline_mode<synchronous>, transform_indices = @transform_3, window_bounds = array<i64: 288, 64>}, {pipeline_mode = #tpu.pipeline_mode<synchronous>, transform_indices = @transform_4, window_bounds = array<i64: 1, 64>}, {pipeline_mode = #tpu.pipeline_mode<synchronous>, transform_indices = @transform_5, window_bounds = array<i64: 2304, 128>}, {pipeline_mode = #tpu.pipeline_mode<synchronous>, transform_indices = @transform_6, window_bounds = array<i64: 1, 128>}, {pipeline_mode = #tpu.pipeline_mode<synchronous>, transform_indices = @transform_7, window_bounds = array<i64: 128, 128>}, {pipeline_mode = #tpu.pipeline_mode<synchronous>, transform_indices = @transform_8, window_bounds = array<i64: 1, 128>}, {transform_indices = @transform_9, window_bounds = array<i64: 2, 128>}, {transform_indices = @transform_10, window_bounds = array<i64: 2, 128>}]} {
    %c0 = arith.constant 0 : index
    %c0_0 = arith.constant 0 : index
    %0 = vector.load %arg1[%c0, %c0_0] : memref<448x27xf32, #tpu.memory_space<vmem>>, vector<448x27xf32>
    %c0_1 = arith.constant 0 : index
    %c0_2 = arith.constant 0 : index
    %1 = vector.load %arg2[%c0_1, %c0_2] : memref<27x32xf32, #tpu.memory_space<vmem>>, vector<27x32xf32>
    %cst = arith.constant dense<0.000000e+00> : vector<448x32xf32>
    %2 = tpu.matmul %0, %1, %cst {dimension_numbers = #tpu.dot_dimension_numbers<[1], [0], [0], [1], [0, 0, 1, 1], [], []>} : vector<448x27xf32>, vector<27x32xf32>, vector<448x32xf32> -> vector<448x32xf32>
    %c0_3 = arith.constant 0 : index
    %c0_4 = arith.constant 0 : index
    %3 = vector.load %arg3[%c0_3, %c0_4] : memref<1x32xf32, #tpu.memory_space<vmem>>, vector<1x32xf32>
    %4 = vector.broadcast %3 : vector<1x32xf32> to vector<448x32xf32>
    %5 = arith.addf %2, %4 : vector<448x32xf32>
    %cst_5 = arith.constant 0.000000e+00 : f32
    %6 = vector.broadcast %cst_5 : f32 to vector<448x32xf32>
    %7 = arith.maximumf %5, %6 : vector<448x32xf32>
    %c0_6 = arith.constant 0 : index
    %c0_7 = arith.constant 0 : index
    %8 = vector.load %arg12[%c0_6, %c0_7] : memref<448x32xf32, #tpu.memory_space<vmem>>, vector<448x32xf32>
    tpu.vector_store %arg12[%c0_6, %c0_7], %7 {strides = array<i32>} : memref<448x32xf32, #tpu.memory_space<vmem>>, vector<448x32xf32>,
    %c0_8 = arith.constant 0 : index
    %c0_9 = arith.constant 0 : index
    %9 = vector.load %arg12[%c0_8, %c0_9] : memref<448x32xf32, #tpu.memory_space<vmem>>, vector<412x32xf32>
    %c0_10 = arith.constant 0 : index
    %c0_11 = arith.constant 0 : index
    %10 = vector.load %arg13[%c0_10, %c0_11] : memref<412x288xf32, #tpu.memory_space<vmem>>, vector<412x32xf32>
    tpu.vector_store %arg13[%c0_10, %c0_11], %9 {strides = array<i32>} : memref<412x288xf32, #tpu.memory_space<vmem>>, vector<412x32xf32>,
    %c1 = arith.constant 1 : index
    %c0_12 = arith.constant 0 : index
    %11 = vector.load %arg12[%c1, %c0_12] : memref<448x32xf32, #tpu.memory_space<vmem>>, vector<412x32xf32>
    %c0_13 = arith.constant 0 : index
    %c32 = arith.constant 32 : index
    %12 = vector.load %arg13[%c0_13, %c32] : memref<412x288xf32, #tpu.memory_space<vmem>>, vector<412x32xf32>
    tpu.vector_store %arg13[%c0_13, %c32], %11 {strides = array<i32>} : memref<412x288xf32, #tpu.memory_space<vmem>>, vector<412x32xf32>,
    %c2 = arith.constant 2 : index
    %c0_14 = arith.constant 0 : index
    %13 = vector.load %arg12[%c2, %c0_14] : memref<448x32xf32, #tpu.memory_space<vmem>>, vector<412x32xf32>
    %c0_15 = arith.constant 0 : index
    %c64 = arith.constant 64 : index
    %14 = vector.load %arg13[%c0_15, %c64] : memref<412x288xf32, #tpu.memory_space<vmem>>, vector<412x32xf32>
    tpu.vector_store %arg13[%c0_15, %c64], %13 {strides = array<i32>} : memref<412x288xf32, #tpu.memory_space<vmem>>, vector<412x32xf32>,
    %c16 = arith.constant 16 : index
    %c0_16 = arith.constant 0 : index
    %15 = vector.load %arg12[%c16, %c0_16] : memref<448x32xf32, #tpu.memory_space<vmem>>, vector<412x32xf32>
    %c0_17 = arith.constant 0 : index
    %c96 = arith.constant 96 : index
    %16 = vector.load %arg13[%c0_17, %c96] : memref<412x288xf32, #tpu.memory_space<vmem>>, vector<412x32xf32>
    tpu.vector_store %arg13[%c0_17, %c96], %15 {strides = array<i32>} : memref<412x288xf32, #tpu.memory_space<vmem>>, vector<412x32xf32>,
    %c17 = arith.constant 17 : index
    %c0_18 = arith.constant 0 : index
    %17 = vector.load %arg12[%c17, %c0_18] : memref<448x32xf32, #tpu.memory_space<vmem>>, vector<412x32xf32>
    %c0_19 = arith.constant 0 : index
    %c128 = arith.constant 128 : index
    %18 = vector.load %arg13[%c0_19, %c128] : memref<412x288xf32, #tpu.memory_space<vmem>>, vector<412x32xf32>
    tpu.vector_store %arg13[%c0_19, %c128], %17 {strides = array<i32>} : memref<412x288xf32, #tpu.memory_space<vmem>>, vector<412x32xf32>,
    %c18 = arith.constant 18 : index
    %c0_20 = arith.constant 0 : index
    %19 = vector.load %arg12[%c18, %c0_20] : memref<448x32xf32, #tpu.memory_space<vmem>>, vector<412x32xf32>
    %c0_21 = arith.constant 0 : index
    %c160 = arith.constant 160 : index
    %20 = vector.load %arg13[%c0_21, %c160] : memref<412x288xf32, #tpu.memory_space<vmem>>, vector<412x32xf32>
    tpu.vector_store %arg13[%c0_21, %c160], %19 {strides = array<i32>} : memref<412x288xf32, #tpu.memory_space<vmem>>, vector<412x32xf32>,
    %c32_22 = arith.constant 32 : index
    %c0_23 = arith.constant 0 : index
    %21 = vector.load %arg12[%c32_22, %c0_23] : memref<448x32xf32, #tpu.memory_space<vmem>>, vector<412x32xf32>
    %c0_24 = arith.constant 0 : index
    %c192 = arith.constant 192 : index
    %22 = vector.load %arg13[%c0_24, %c192] : memref<412x288xf32, #tpu.memory_space<vmem>>, vector<412x32xf32>
    tpu.vector_store %arg13[%c0_24, %c192], %21 {strides = array<i32>} : memref<412x288xf32, #tpu.memory_space<vmem>>, vector<412x32xf32>,
    %c33 = arith.constant 33 : index
    %c0_25 = arith.constant 0 : index
    %23 = vector.load %arg12[%c33, %c0_25] : memref<448x32xf32, #tpu.memory_space<vmem>>, vector<412x32xf32>
    %c0_26 = arith.constant 0 : index
    %c224 = arith.constant 224 : index
    %24 = vector.load %arg13[%c0_26, %c224] : memref<412x288xf32, #tpu.memory_space<vmem>>, vector<412x32xf32>
    tpu.vector_store %arg13[%c0_26, %c224], %23 {strides = array<i32>} : memref<412x288xf32, #tpu.memory_space<vmem>>, vector<412x32xf32>,
    %c34 = arith.constant 34 : index
    %c0_27 = arith.constant 0 : index
    %25 = vector.load %arg12[%c34, %c0_27] : memref<448x32xf32, #tpu.memory_space<vmem>>, vector<412x32xf32>
    %c0_28 = arith.constant 0 : index
    %c256 = arith.constant 256 : index
    %26 = vector.load %arg13[%c0_28, %c256] : memref<412x288xf32, #tpu.memory_space<vmem>>, vector<412x32xf32>
    tpu.vector_store %arg13[%c0_28, %c256], %25 {strides = array<i32>} : memref<412x288xf32, #tpu.memory_space<vmem>>, vector<412x32xf32>,
    %c0_29 = arith.constant 0 : index
    %c0_30 = arith.constant 0 : index
    %27 = vector.load %arg13[%c0_29, %c0_30] : memref<412x288xf32, #tpu.memory_space<vmem>>, vector<412x288xf32>
    %c0_31 = arith.constant 0 : index
    %c0_32 = arith.constant 0 : index
    %28 = vector.load %arg4[%c0_31, %c0_32] : memref<288x64xf32, #tpu.memory_space<vmem>>, vector<288x64xf32>
    %cst_33 = arith.constant dense<0.000000e+00> : vector<412x64xf32>
    %29 = tpu.matmul %27, %28, %cst_33 {dimension_numbers = #tpu.dot_dimension_numbers<[1], [0], [0], [1], [0, 0, 1, 1], [], []>} : vector<412x288xf32>, vector<288x64xf32>, vector<412x64xf32> -> vector<412x64xf32>
    %c0_34 = arith.constant 0 : index
    %c0_35 = arith.constant 0 : index
    %30 = vector.load %arg5[%c0_34, %c0_35] : memref<1x64xf32, #tpu.memory_space<vmem>>, vector<1x64xf32>
    %31 = vector.broadcast %30 : vector<1x64xf32> to vector<412x64xf32>
    %32 = arith.addf %29, %31 : vector<412x64xf32>
    %cst_36 = arith.constant 0.000000e+00 : f32
    %33 = vector.broadcast %cst_36 : f32 to vector<412x64xf32>
    %34 = arith.maximumf %32, %33 : vector<412x64xf32>
    %c0_37 = arith.constant 0 : index
    %c0_38 = arith.constant 0 : index
    %35 = vector.load %arg14[%c0_37, %c0_38] : memref<412x64xf32, #tpu.memory_space<vmem>>, vector<412x64xf32>
    tpu.vector_store %arg14[%c0_37, %c0_38], %34 {strides = array<i32>} : memref<412x64xf32, #tpu.memory_space<vmem>>, vector<412x64xf32>,
    %c0_39 = arith.constant 0 : index
    %c0_40 = arith.constant 0 : index
    %36 = vector.load %arg14[%c0_39, %c0_40] : memref<412x64xf32, #tpu.memory_space<vmem>>, vector<395x64xf32>
    %c1_41 = arith.constant 1 : index
    %c0_42 = arith.constant 0 : index
    %37 = vector.load %arg14[%c1_41, %c0_42] : memref<412x64xf32, #tpu.memory_space<vmem>>, vector<395x64xf32>
    %38 = arith.maximumf %36, %37 : vector<395x64xf32>
    %c16_43 = arith.constant 16 : index
    %c0_44 = arith.constant 0 : index
    %39 = vector.load %arg14[%c16_43, %c0_44] : memref<412x64xf32, #tpu.memory_space<vmem>>, vector<395x64xf32>
    %c17_45 = arith.constant 17 : index
    %c0_46 = arith.constant 0 : index
    %40 = vector.load %arg14[%c17_45, %c0_46] : memref<412x64xf32, #tpu.memory_space<vmem>>, vector<395x64xf32>
    %41 = arith.maximumf %39, %40 : vector<395x64xf32>
    %42 = arith.maximumf %38, %41 : vector<395x64xf32>
    %c0_47 = arith.constant 0 : index
    %c0_48 = arith.constant 0 : index
    %43 = vector.load %arg15[%c0_47, %c0_48] : memref<395x64xf32, #tpu.memory_space<vmem>>, vector<395x64xf32>
    tpu.vector_store %arg15[%c0_47, %c0_48], %42 {strides = array<i32>} : memref<395x64xf32, #tpu.memory_space<vmem>>, vector<395x64xf32>,
    %c0_49 = arith.constant 0 : index
    %c0_50 = arith.constant 0 : index
    %44 = tpu.strided_load %arg15[%c0_49, %c0_50] {strides = array<i32: 224, 1>} : memref<395x64xf32, #tpu.memory_space<vmem>>, vector<2x64xf32>
    %c0_51 = arith.constant 0 : index
    %c0_52 = arith.constant 0 : index
    %45 = vector.load %arg16[%c0_51, %c0_52] : memref<2x2304xf32, #tpu.memory_space<vmem>>, vector<2x64xf32>
    tpu.vector_store %arg16[%c0_51, %c0_52], %44 {strides = array<i32>} : memref<2x2304xf32, #tpu.memory_space<vmem>>, vector<2x64xf32>,
    %c2_53 = arith.constant 2 : index
    %c0_54 = arith.constant 0 : index
    %46 = tpu.strided_load %arg15[%c2_53, %c0_54] {strides = array<i32: 224, 1>} : memref<395x64xf32, #tpu.memory_space<vmem>>, vector<2x64xf32>
    %c0_55 = arith.constant 0 : index
    %c64_56 = arith.constant 64 : index
    %47 = vector.load %arg16[%c0_55, %c64_56] : memref<2x2304xf32, #tpu.memory_space<vmem>>, vector<2x64xf32>
    tpu.vector_store %arg16[%c0_55, %c64_56], %46 {strides = array<i32>} : memref<2x2304xf32, #tpu.memory_space<vmem>>, vector<2x64xf32>,
    %c4 = arith.constant 4 : index
    %c0_57 = arith.constant 0 : index
    %48 = tpu.strided_load %arg15[%c4, %c0_57] {strides = array<i32: 224, 1>} : memref<395x64xf32, #tpu.memory_space<vmem>>, vector<2x64xf32>
    %c0_58 = arith.constant 0 : index
    %c128_59 = arith.constant 128 : index
    %49 = vector.load %arg16[%c0_58, %c128_59] : memref<2x2304xf32, #tpu.memory_space<vmem>>, vector<2x64xf32>
    tpu.vector_store %arg16[%c0_58, %c128_59], %48 {strides = array<i32>} : memref<2x2304xf32, #tpu.memory_space<vmem>>, vector<2x64xf32>,
    %c6 = arith.constant 6 : index
    %c0_60 = arith.constant 0 : index
    %50 = tpu.strided_load %arg15[%c6, %c0_60] {strides = array<i32: 224, 1>} : memref<395x64xf32, #tpu.memory_space<vmem>>, vector<2x64xf32>
    %c0_61 = arith.constant 0 : index
    %c192_62 = arith.constant 192 : index
    %51 = vector.load %arg16[%c0_61, %c192_62] : memref<2x2304xf32, #tpu.memory_space<vmem>>, vector<2x64xf32>
    tpu.vector_store %arg16[%c0_61, %c192_62], %50 {strides = array<i32>} : memref<2x2304xf32, #tpu.memory_space<vmem>>, vector<2x64xf32>,
    %c8 = arith.constant 8 : index
    %c0_63 = arith.constant 0 : index
    %52 = tpu.strided_load %arg15[%c8, %c0_63] {strides = array<i32: 224, 1>} : memref<395x64xf32, #tpu.memory_space<vmem>>, vector<2x64xf32>
    %c0_64 = arith.constant 0 : index
    %c256_65 = arith.constant 256 : index
    %53 = vector.load %arg16[%c0_64, %c256_65] : memref<2x2304xf32, #tpu.memory_space<vmem>>, vector<2x64xf32>
    tpu.vector_store %arg16[%c0_64, %c256_65], %52 {strides = array<i32>} : memref<2x2304xf32, #tpu.memory_space<vmem>>, vector<2x64xf32>,
    %c10 = arith.constant 10 : index
    %c0_66 = arith.constant 0 : index
    %54 = tpu.strided_load %arg15[%c10, %c0_66] {strides = array<i32: 224, 1>} : memref<395x64xf32, #tpu.memory_space<vmem>>, vector<2x64xf32>
    %c0_67 = arith.constant 0 : index
    %c320 = arith.constant 320 : index
    %55 = vector.load %arg16[%c0_67, %c320] : memref<2x2304xf32, #tpu.memory_space<vmem>>, vector<2x64xf32>
    tpu.vector_store %arg16[%c0_67, %c320], %54 {strides = array<i32>} : memref<2x2304xf32, #tpu.memory_space<vmem>>, vector<2x64xf32>,
    %c32_68 = arith.constant 32 : index
    %c0_69 = arith.constant 0 : index
    %56 = tpu.strided_load %arg15[%c32_68, %c0_69] {strides = array<i32: 224, 1>} : memref<395x64xf32, #tpu.memory_space<vmem>>, vector<2x64xf32>
    %c0_70 = arith.constant 0 : index
    %c384 = arith.constant 384 : index
    %57 = vector.load %arg16[%c0_70, %c384] : memref<2x2304xf32, #tpu.memory_space<vmem>>, vector<2x64xf32>
    tpu.vector_store %arg16[%c0_70, %c384], %56 {strides = array<i32>} : memref<2x2304xf32, #tpu.memory_space<vmem>>, vector<2x64xf32>,
    %c34_71 = arith.constant 34 : index
    %c0_72 = arith.constant 0 : index
    %58 = tpu.strided_load %arg15[%c34_71, %c0_72] {strides = array<i32: 224, 1>} : memref<395x64xf32, #tpu.memory_space<vmem>>, vector<2x64xf32>
    %c0_73 = arith.constant 0 : index
    %c448 = arith.constant 448 : index
    %59 = vector.load %arg16[%c0_73, %c448] : memref<2x2304xf32, #tpu.memory_space<vmem>>, vector<2x64xf32>
    tpu.vector_store %arg16[%c0_73, %c448], %58 {strides = array<i32>} : memref<2x2304xf32, #tpu.memory_space<vmem>>, vector<2x64xf32>,
    %c36 = arith.constant 36 : index
    %c0_74 = arith.constant 0 : index
    %60 = tpu.strided_load %arg15[%c36, %c0_74] {strides = array<i32: 224, 1>} : memref<395x64xf32, #tpu.memory_space<vmem>>, vector<2x64xf32>
    %c0_75 = arith.constant 0 : index
    %c512 = arith.constant 512 : index
    %61 = vector.load %arg16[%c0_75, %c512] : memref<2x2304xf32, #tpu.memory_space<vmem>>, vector<2x64xf32>
    tpu.vector_store %arg16[%c0_75, %c512], %60 {strides = array<i32>} : memref<2x2304xf32, #tpu.memory_space<vmem>>, vector<2x64xf32>,
    %c38 = arith.constant 38 : index
    %c0_76 = arith.constant 0 : index
    %62 = tpu.strided_load %arg15[%c38, %c0_76] {strides = array<i32: 224, 1>} : memref<395x64xf32, #tpu.memory_space<vmem>>, vector<2x64xf32>
    %c0_77 = arith.constant 0 : index
    %c576 = arith.constant 576 : index
    %63 = vector.load %arg16[%c0_77, %c576] : memref<2x2304xf32, #tpu.memory_space<vmem>>, vector<2x64xf32>
    tpu.vector_store %arg16[%c0_77, %c576], %62 {strides = array<i32>} : memref<2x2304xf32, #tpu.memory_space<vmem>>, vector<2x64xf32>,
    %c40 = arith.constant 40 : index
    %c0_78 = arith.constant 0 : index
    %64 = tpu.strided_load %arg15[%c40, %c0_78] {strides = array<i32: 224, 1>} : memref<395x64xf32, #tpu.memory_space<vmem>>, vector<2x64xf32>
    %c0_79 = arith.constant 0 : index
    %c640 = arith.constant 640 : index
    %65 = vector.load %arg16[%c0_79, %c640] : memref<2x2304xf32, #tpu.memory_space<vmem>>, vector<2x64xf32>
    tpu.vector_store %arg16[%c0_79, %c640], %64 {strides = array<i32>} : memref<2x2304xf32, #tpu.memory_space<vmem>>, vector<2x64xf32>,
    %c42 = arith.constant 42 : index
    %c0_80 = arith.constant 0 : index
    %66 = tpu.strided_load %arg15[%c42, %c0_80] {strides = array<i32: 224, 1>} : memref<395x64xf32, #tpu.memory_space<vmem>>, vector<2x64xf32>
    %c0_81 = arith.constant 0 : index
    %c704 = arith.constant 704 : index
    %67 = vector.load %arg16[%c0_81, %c704] : memref<2x2304xf32, #tpu.memory_space<vmem>>, vector<2x64xf32>
    tpu.vector_store %arg16[%c0_81, %c704], %66 {strides = array<i32>} : memref<2x2304xf32, #tpu.memory_space<vmem>>, vector<2x64xf32>,
    %c64_82 = arith.constant 64 : index
    %c0_83 = arith.constant 0 : index
    %68 = tpu.strided_load %arg15[%c64_82, %c0_83] {strides = array<i32: 224, 1>} : memref<395x64xf32, #tpu.memory_space<vmem>>, vector<2x64xf32>
    %c0_84 = arith.constant 0 : index
    %c768 = arith.constant 768 : index
    %69 = vector.load %arg16[%c0_84, %c768] : memref<2x2304xf32, #tpu.memory_space<vmem>>, vector<2x64xf32>
    tpu.vector_store %arg16[%c0_84, %c768], %68 {strides = array<i32>} : memref<2x2304xf32, #tpu.memory_space<vmem>>, vector<2x64xf32>,
    %c66 = arith.constant 66 : index
    %c0_85 = arith.constant 0 : index
    %70 = tpu.strided_load %arg15[%c66, %c0_85] {strides = array<i32: 224, 1>} : memref<395x64xf32, #tpu.memory_space<vmem>>, vector<2x64xf32>
    %c0_86 = arith.constant 0 : index
    %c832 = arith.constant 832 : index
    %71 = vector.load %arg16[%c0_86, %c832] : memref<2x2304xf32, #tpu.memory_space<vmem>>, vector<2x64xf32>
    tpu.vector_store %arg16[%c0_86, %c832], %70 {strides = array<i32>} : memref<2x2304xf32, #tpu.memory_space<vmem>>, vector<2x64xf32>,
    %c68 = arith.constant 68 : index
    %c0_87 = arith.constant 0 : index
    %72 = tpu.strided_load %arg15[%c68, %c0_87] {strides = array<i32: 224, 1>} : memref<395x64xf32, #tpu.memory_space<vmem>>, vector<2x64xf32>
    %c0_88 = arith.constant 0 : index
    %c896 = arith.constant 896 : index
    %73 = vector.load %arg16[%c0_88, %c896] : memref<2x2304xf32, #tpu.memory_space<vmem>>, vector<2x64xf32>
    tpu.vector_store %arg16[%c0_88, %c896], %72 {strides = array<i32>} : memref<2x2304xf32, #tpu.memory_space<vmem>>, vector<2x64xf32>,
    %c70 = arith.constant 70 : index
    %c0_89 = arith.constant 0 : index
    %74 = tpu.strided_load %arg15[%c70, %c0_89] {strides = array<i32: 224, 1>} : memref<395x64xf32, #tpu.memory_space<vmem>>, vector<2x64xf32>
    %c0_90 = arith.constant 0 : index
    %c960 = arith.constant 960 : index
    %75 = vector.load %arg16[%c0_90, %c960] : memref<2x2304xf32, #tpu.memory_space<vmem>>, vector<2x64xf32>
    tpu.vector_store %arg16[%c0_90, %c960], %74 {strides = array<i32>} : memref<2x2304xf32, #tpu.memory_space<vmem>>, vector<2x64xf32>,
    %c72 = arith.constant 72 : index
    %c0_91 = arith.constant 0 : index
    %76 = tpu.strided_load %arg15[%c72, %c0_91] {strides = array<i32: 224, 1>} : memref<395x64xf32, #tpu.memory_space<vmem>>, vector<2x64xf32>
    %c0_92 = arith.constant 0 : index
    %c1024 = arith.constant 1024 : index
    %77 = vector.load %arg16[%c0_92, %c1024] : memref<2x2304xf32, #tpu.memory_space<vmem>>, vector<2x64xf32>
    tpu.vector_store %arg16[%c0_92, %c1024], %76 {strides = array<i32>} : memref<2x2304xf32, #tpu.memory_space<vmem>>, vector<2x64xf32>,
    %c74 = arith.constant 74 : index
    %c0_93 = arith.constant 0 : index
    %78 = tpu.strided_load %arg15[%c74, %c0_93] {strides = array<i32: 224, 1>} : memref<395x64xf32, #tpu.memory_space<vmem>>, vector<2x64xf32>
    %c0_94 = arith.constant 0 : index
    %c1088 = arith.constant 1088 : index
    %79 = vector.load %arg16[%c0_94, %c1088] : memref<2x2304xf32, #tpu.memory_space<vmem>>, vector<2x64xf32>
    tpu.vector_store %arg16[%c0_94, %c1088], %78 {strides = array<i32>} : memref<2x2304xf32, #tpu.memory_space<vmem>>, vector<2x64xf32>,
    %c96_95 = arith.constant 96 : index
    %c0_96 = arith.constant 0 : index
    %80 = tpu.strided_load %arg15[%c96_95, %c0_96] {strides = array<i32: 224, 1>} : memref<395x64xf32, #tpu.memory_space<vmem>>, vector<2x64xf32>
    %c0_97 = arith.constant 0 : index
    %c1152 = arith.constant 1152 : index
    %81 = vector.load %arg16[%c0_97, %c1152] : memref<2x2304xf32, #tpu.memory_space<vmem>>, vector<2x64xf32>
    tpu.vector_store %arg16[%c0_97, %c1152], %80 {strides = array<i32>} : memref<2x2304xf32, #tpu.memory_space<vmem>>, vector<2x64xf32>,
    %c98 = arith.constant 98 : index
    %c0_98 = arith.constant 0 : index
    %82 = tpu.strided_load %arg15[%c98, %c0_98] {strides = array<i32: 224, 1>} : memref<395x64xf32, #tpu.memory_space<vmem>>, vector<2x64xf32>
    %c0_99 = arith.constant 0 : index
    %c1216 = arith.constant 1216 : index
    %83 = vector.load %arg16[%c0_99, %c1216] : memref<2x2304xf32, #tpu.memory_space<vmem>>, vector<2x64xf32>
    tpu.vector_store %arg16[%c0_99, %c1216], %82 {strides = array<i32>} : memref<2x2304xf32, #tpu.memory_space<vmem>>, vector<2x64xf32>,
    %c100 = arith.constant 100 : index
    %c0_100 = arith.constant 0 : index
    %84 = tpu.strided_load %arg15[%c100, %c0_100] {strides = array<i32: 224, 1>} : memref<395x64xf32, #tpu.memory_space<vmem>>, vector<2x64xf32>
    %c0_101 = arith.constant 0 : index
    %c1280 = arith.constant 1280 : index
    %85 = vector.load %arg16[%c0_101, %c1280] : memref<2x2304xf32, #tpu.memory_space<vmem>>, vector<2x64xf32>
    tpu.vector_store %arg16[%c0_101, %c1280], %84 {strides = array<i32>} : memref<2x2304xf32, #tpu.memory_space<vmem>>, vector<2x64xf32>,
    %c102 = arith.constant 102 : index
    %c0_102 = arith.constant 0 : index
    %86 = tpu.strided_load %arg15[%c102, %c0_102] {strides = array<i32: 224, 1>} : memref<395x64xf32, #tpu.memory_space<vmem>>, vector<2x64xf32>
    %c0_103 = arith.constant 0 : index
    %c1344 = arith.constant 1344 : index
    %87 = vector.load %arg16[%c0_103, %c1344] : memref<2x2304xf32, #tpu.memory_space<vmem>>, vector<2x64xf32>
    tpu.vector_store %arg16[%c0_103, %c1344], %86 {strides = array<i32>} : memref<2x2304xf32, #tpu.memory_space<vmem>>, vector<2x64xf32>,
    %c104 = arith.constant 104 : index
    %c0_104 = arith.constant 0 : index
    %88 = tpu.strided_load %arg15[%c104, %c0_104] {strides = array<i32: 224, 1>} : memref<395x64xf32, #tpu.memory_space<vmem>>, vector<2x64xf32>
    %c0_105 = arith.constant 0 : index
    %c1408 = arith.constant 1408 : index
    %89 = vector.load %arg16[%c0_105, %c1408] : memref<2x2304xf32, #tpu.memory_space<vmem>>, vector<2x64xf32>
    tpu.vector_store %arg16[%c0_105, %c1408], %88 {strides = array<i32>} : memref<2x2304xf32, #tpu.memory_space<vmem>>, vector<2x64xf32>,
    %c106 = arith.constant 106 : index
    %c0_106 = arith.constant 0 : index
    %90 = tpu.strided_load %arg15[%c106, %c0_106] {strides = array<i32: 224, 1>} : memref<395x64xf32, #tpu.memory_space<vmem>>, vector<2x64xf32>
    %c0_107 = arith.constant 0 : index
    %c1472 = arith.constant 1472 : index
    %91 = vector.load %arg16[%c0_107, %c1472] : memref<2x2304xf32, #tpu.memory_space<vmem>>, vector<2x64xf32>
    tpu.vector_store %arg16[%c0_107, %c1472], %90 {strides = array<i32>} : memref<2x2304xf32, #tpu.memory_space<vmem>>, vector<2x64xf32>,
    %c128_108 = arith.constant 128 : index
    %c0_109 = arith.constant 0 : index
    %92 = tpu.strided_load %arg15[%c128_108, %c0_109] {strides = array<i32: 224, 1>} : memref<395x64xf32, #tpu.memory_space<vmem>>, vector<2x64xf32>
    %c0_110 = arith.constant 0 : index
    %c1536 = arith.constant 1536 : index
    %93 = vector.load %arg16[%c0_110, %c1536] : memref<2x2304xf32, #tpu.memory_space<vmem>>, vector<2x64xf32>
    tpu.vector_store %arg16[%c0_110, %c1536], %92 {strides = array<i32>} : memref<2x2304xf32, #tpu.memory_space<vmem>>, vector<2x64xf32>,
    %c130 = arith.constant 130 : index
    %c0_111 = arith.constant 0 : index
    %94 = tpu.strided_load %arg15[%c130, %c0_111] {strides = array<i32: 224, 1>} : memref<395x64xf32, #tpu.memory_space<vmem>>, vector<2x64xf32>
    %c0_112 = arith.constant 0 : index
    %c1600 = arith.constant 1600 : index
    %95 = vector.load %arg16[%c0_112, %c1600] : memref<2x2304xf32, #tpu.memory_space<vmem>>, vector<2x64xf32>
    tpu.vector_store %arg16[%c0_112, %c1600], %94 {strides = array<i32>} : memref<2x2304xf32, #tpu.memory_space<vmem>>, vector<2x64xf32>,
    %c132 = arith.constant 132 : index
    %c0_113 = arith.constant 0 : index
    %96 = tpu.strided_load %arg15[%c132, %c0_113] {strides = array<i32: 224, 1>} : memref<395x64xf32, #tpu.memory_space<vmem>>, vector<2x64xf32>
    %c0_114 = arith.constant 0 : index
    %c1664 = arith.constant 1664 : index
    %97 = vector.load %arg16[%c0_114, %c1664] : memref<2x2304xf32, #tpu.memory_space<vmem>>, vector<2x64xf32>
    tpu.vector_store %arg16[%c0_114, %c1664], %96 {strides = array<i32>} : memref<2x2304xf32, #tpu.memory_space<vmem>>, vector<2x64xf32>,
    %c134 = arith.constant 134 : index
    %c0_115 = arith.constant 0 : index
    %98 = tpu.strided_load %arg15[%c134, %c0_115] {strides = array<i32: 224, 1>} : memref<395x64xf32, #tpu.memory_space<vmem>>, vector<2x64xf32>
    %c0_116 = arith.constant 0 : index
    %c1728 = arith.constant 1728 : index
    %99 = vector.load %arg16[%c0_116, %c1728] : memref<2x2304xf32, #tpu.memory_space<vmem>>, vector<2x64xf32>
    tpu.vector_store %arg16[%c0_116, %c1728], %98 {strides = array<i32>} : memref<2x2304xf32, #tpu.memory_space<vmem>>, vector<2x64xf32>,
    %c136 = arith.constant 136 : index
    %c0_117 = arith.constant 0 : index
    %100 = tpu.strided_load %arg15[%c136, %c0_117] {strides = array<i32: 224, 1>} : memref<395x64xf32, #tpu.memory_space<vmem>>, vector<2x64xf32>
    %c0_118 = arith.constant 0 : index
    %c1792 = arith.constant 1792 : index
    %101 = vector.load %arg16[%c0_118, %c1792] : memref<2x2304xf32, #tpu.memory_space<vmem>>, vector<2x64xf32>
    tpu.vector_store %arg16[%c0_118, %c1792], %100 {strides = array<i32>} : memref<2x2304xf32, #tpu.memory_space<vmem>>, vector<2x64xf32>,
    %c138 = arith.constant 138 : index
    %c0_119 = arith.constant 0 : index
    %102 = tpu.strided_load %arg15[%c138, %c0_119] {strides = array<i32: 224, 1>} : memref<395x64xf32, #tpu.memory_space<vmem>>, vector<2x64xf32>
    %c0_120 = arith.constant 0 : index
    %c1856 = arith.constant 1856 : index
    %103 = vector.load %arg16[%c0_120, %c1856] : memref<2x2304xf32, #tpu.memory_space<vmem>>, vector<2x64xf32>
    tpu.vector_store %arg16[%c0_120, %c1856], %102 {strides = array<i32>} : memref<2x2304xf32, #tpu.memory_space<vmem>>, vector<2x64xf32>,
    %c160_121 = arith.constant 160 : index
    %c0_122 = arith.constant 0 : index
    %104 = tpu.strided_load %arg15[%c160_121, %c0_122] {strides = array<i32: 224, 1>} : memref<395x64xf32, #tpu.memory_space<vmem>>, vector<2x64xf32>
    %c0_123 = arith.constant 0 : index
    %c1920 = arith.constant 1920 : index
    %105 = vector.load %arg16[%c0_123, %c1920] : memref<2x2304xf32, #tpu.memory_space<vmem>>, vector<2x64xf32>
    tpu.vector_store %arg16[%c0_123, %c1920], %104 {strides = array<i32>} : memref<2x2304xf32, #tpu.memory_space<vmem>>, vector<2x64xf32>,
    %c162 = arith.constant 162 : index
    %c0_124 = arith.constant 0 : index
    %106 = tpu.strided_load %arg15[%c162, %c0_124] {strides = array<i32: 224, 1>} : memref<395x64xf32, #tpu.memory_space<vmem>>, vector<2x64xf32>
    %c0_125 = arith.constant 0 : index
    %c1984 = arith.constant 1984 : index
    %107 = vector.load %arg16[%c0_125, %c1984] : memref<2x2304xf32, #tpu.memory_space<vmem>>, vector<2x64xf32>
    tpu.vector_store %arg16[%c0_125, %c1984], %106 {strides = array<i32>} : memref<2x2304xf32, #tpu.memory_space<vmem>>, vector<2x64xf32>,
    %c164 = arith.constant 164 : index
    %c0_126 = arith.constant 0 : index
    %108 = tpu.strided_load %arg15[%c164, %c0_126] {strides = array<i32: 224, 1>} : memref<395x64xf32, #tpu.memory_space<vmem>>, vector<2x64xf32>
    %c0_127 = arith.constant 0 : index
    %c2048 = arith.constant 2048 : index
    %109 = vector.load %arg16[%c0_127, %c2048] : memref<2x2304xf32, #tpu.memory_space<vmem>>, vector<2x64xf32>
    tpu.vector_store %arg16[%c0_127, %c2048], %108 {strides = array<i32>} : memref<2x2304xf32, #tpu.memory_space<vmem>>, vector<2x64xf32>,
    %c166 = arith.constant 166 : index
    %c0_128 = arith.constant 0 : index
    %110 = tpu.strided_load %arg15[%c166, %c0_128] {strides = array<i32: 224, 1>} : memref<395x64xf32, #tpu.memory_space<vmem>>, vector<2x64xf32>
    %c0_129 = arith.constant 0 : index
    %c2112 = arith.constant 2112 : index
    %111 = vector.load %arg16[%c0_129, %c2112] : memref<2x2304xf32, #tpu.memory_space<vmem>>, vector<2x64xf32>
    tpu.vector_store %arg16[%c0_129, %c2112], %110 {strides = array<i32>} : memref<2x2304xf32, #tpu.memory_space<vmem>>, vector<2x64xf32>,
    %c168 = arith.constant 168 : index
    %c0_130 = arith.constant 0 : index
    %112 = tpu.strided_load %arg15[%c168, %c0_130] {strides = array<i32: 224, 1>} : memref<395x64xf32, #tpu.memory_space<vmem>>, vector<2x64xf32>
    %c0_131 = arith.constant 0 : index
    %c2176 = arith.constant 2176 : index
    %113 = vector.load %arg16[%c0_131, %c2176] : memref<2x2304xf32, #tpu.memory_space<vmem>>, vector<2x64xf32>
    tpu.vector_store %arg16[%c0_131, %c2176], %112 {strides = array<i32>} : memref<2x2304xf32, #tpu.memory_space<vmem>>, vector<2x64xf32>,
    %c170 = arith.constant 170 : index
    %c0_132 = arith.constant 0 : index
    %114 = tpu.strided_load %arg15[%c170, %c0_132] {strides = array<i32: 224, 1>} : memref<395x64xf32, #tpu.memory_space<vmem>>, vector<2x64xf32>
    %c0_133 = arith.constant 0 : index
    %c2240 = arith.constant 2240 : index
    %115 = vector.load %arg16[%c0_133, %c2240] : memref<2x2304xf32, #tpu.memory_space<vmem>>, vector<2x64xf32>
    tpu.vector_store %arg16[%c0_133, %c2240], %114 {strides = array<i32>} : memref<2x2304xf32, #tpu.memory_space<vmem>>, vector<2x64xf32>,
    %c0_134 = arith.constant 0 : index
    %c0_135 = arith.constant 0 : index
    %116 = vector.load %arg16[%c0_134, %c0_135] : memref<2x2304xf32, #tpu.memory_space<vmem>>, vector<2x2304xf32>
    %c0_136 = arith.constant 0 : index
    %c0_137 = arith.constant 0 : index
    %117 = vector.load %arg6[%c0_136, %c0_137] : memref<2304x128xf32, #tpu.memory_space<vmem>>, vector<2304x128xf32>
    %cst_138 = arith.constant dense<0.000000e+00> : vector<2x128xf32>
    %118 = tpu.matmul %116, %117, %cst_138 {dimension_numbers = #tpu.dot_dimension_numbers<[1], [0], [0], [1], [0, 0, 1, 1], [], []>} : vector<2x2304xf32>, vector<2304x128xf32>, vector<2x128xf32> -> vector<2x128xf32>
    %c0_139 = arith.constant 0 : index
    %c0_140 = arith.constant 0 : index
    %119 = vector.load %arg7[%c0_139, %c0_140] : memref<1x128xf32, #tpu.memory_space<vmem>>, vector<1x128xf32>
    %120 = vector.broadcast %119 : vector<1x128xf32> to vector<2x128xf32>
    %121 = arith.addf %118, %120 : vector<2x128xf32>
    %c0_141 = arith.constant 0 : index
    %c0_142 = arith.constant 0 : index
    %122 = vector.load %arg10[%c0_141, %c0_142] : memref<2x128xf32, #tpu.memory_space<vmem>>, vector<2x128xf32>
    tpu.vector_store %arg10[%c0_141, %c0_142], %121 {strides = array<i32>} : memref<2x128xf32, #tpu.memory_space<vmem>>, vector<2x128xf32>,
    %cst_143 = arith.constant 0.000000e+00 : f32
    %123 = vector.broadcast %cst_143 : f32 to vector<2x128xf32>
    %124 = arith.maximumf %121, %123 : vector<2x128xf32>
    %c0_144 = arith.constant 0 : index
    %c0_145 = arith.constant 0 : index
    %125 = vector.load %arg8[%c0_144, %c0_145] : memref<128x128xf32, #tpu.memory_space<vmem>>, vector<128x128xf32>
    %cst_146 = arith.constant dense<0.000000e+00> : vector<2x128xf32>
    %126 = tpu.matmul %124, %125, %cst_146 {dimension_numbers = #tpu.dot_dimension_numbers<[1], [0], [0], [1], [0, 0, 1, 1], [], []>} : vector<2x128xf32>, vector<128x128xf32>, vector<2x128xf32> -> vector<2x128xf32>
    %c0_147 = arith.constant 0 : index
    %c0_148 = arith.constant 0 : index
    %127 = vector.load %arg9[%c0_147, %c0_148] : memref<1x128xf32, #tpu.memory_space<vmem>>, vector<1x128xf32>
    %128 = vector.broadcast %127 : vector<1x128xf32> to vector<2x128xf32>
    %129 = arith.addf %126, %128 : vector<2x128xf32>
    %c0_149 = arith.constant 0 : index
    %c0_150 = arith.constant 0 : index
    %130 = vector.load %arg11[%c0_149, %c0_150] : memref<2x128xf32, #tpu.memory_space<vmem>>, vector<2x128xf32>
    tpu.vector_store %arg11[%c0_149, %c0_150], %129 {strides = array<i32>} : memref<2x128xf32, #tpu.memory_space<vmem>>, vector<2x128xf32>,
    return
  }
  func.func @transform_0(%arg0: i32) -> (i32, i32) {
    %c0_i32 = arith.constant 0 : i32
    %c0_i32_0 = arith.constant 0 : i32
    return %arg0, %c0_i32 : i32, i32
  }
  func.func @transform_1(%arg0: i32) -> (i32, i32) {
    %c0_i32 = arith.constant 0 : i32
    %c0_i32_0 = arith.constant 0 : i32
    %c0_i32_1 = arith.constant 0 : i32
    return %c0_i32, %c0_i32_0 : i32, i32
  }
  func.func @transform_2(%arg0: i32) -> (i32, i32) {
    %c0_i32 = arith.constant 0 : i32
    %c0_i32_0 = arith.constant 0 : i32
    %c0_i32_1 = arith.constant 0 : i32
    return %c0_i32, %c0_i32_0 : i32, i32
  }
  func.func @transform_3(%arg0: i32) -> (i32, i32) {
    %c0_i32 = arith.constant 0 : i32
    %c0_i32_0 = arith.constant 0 : i32
    %c0_i32_1 = arith.constant 0 : i32
    return %c0_i32, %c0_i32_0 : i32, i32
  }
  func.func @transform_4(%arg0: i32) -> (i32, i32) {
    %c0_i32 = arith.constant 0 : i32
    %c0_i32_0 = arith.constant 0 : i32
    %c0_i32_1 = arith.constant 0 : i32
    return %c0_i32, %c0_i32_0 : i32, i32
  }
  func.func @transform_5(%arg0: i32) -> (i32, i32) {
    %c0_i32 = arith.constant 0 : i32
    %c0_i32_0 = arith.constant 0 : i32
    %c0_i32_1 = arith.constant 0 : i32
    return %c0_i32, %c0_i32_0 : i32, i32
  }
  func.func @transform_6(%arg0: i32) -> (i32, i32) {
    %c0_i32 = arith.constant 0 : i32
    %c0_i32_0 = arith.constant 0 : i32
    %c0_i32_1 = arith.constant 0 : i32
    return %c0_i32, %c0_i32_0 : i32, i32
  }
  func.func @transform_7(%arg0: i32) -> (i32, i32) {
    %c0_i32 = arith.constant 0 : i32
    %c0_i32_0 = arith.constant 0 : i32
    %c0_i32_1 = arith.constant 0 : i32
    return %c0_i32, %c0_i32_0 : i32, i32
  }
  func.func @transform_8(%arg0: i32) -> (i32, i32) {
    %c0_i32 = arith.constant 0 : i32
    %c0_i32_0 = arith.constant 0 : i32
    %c0_i32_1 = arith.constant 0 : i32
    return %c0_i32, %c0_i32_0 : i32, i32
  }
  func.func @transform_9(%arg0: i32) -> (i32, i32) {
    %c0_i32 = arith.constant 0 : i32
    %c0_i32_0 = arith.constant 0 : i32
    return %arg0, %c0_i32 : i32, i32
  }
  func.func @transform_10(%arg0: i32) -> (i32, i32) {
    %c0_i32 = arith.constant 0 : i32
    %c0_i32_0 = arith.constant 0 : i32
    return %arg0, %c0_i32 : i32, i32
  }
}

</mosaic_0001>

<bundles_post_ra>
// kernel: conv2dnet_forward.1
= control target key start
LH: loop header
LB: loop body
LE: loop exit
PB: predicated region body
PF: predicated region fallthrough
CT: control target
= control target key end

     0   :  { %16 = vsyncpa [#allocation8], 0  ;;  %s9807_s0 = inlined_call_operand.hbm [shape: f32[448,27], index: 0, kind: input, shape index: {}]   ;;  %s9808_s1 = inlined_call_operand.hbm [shape: f32[27,32], index: 1, kind: input, shape index: {}]   ;;  %s9809_s2 = inlined_call_operand.hbm [shape: f32[1,32], index: 2, kind: input, shape index: {}]   ;;  %s9810_s3 = inlined_call_operand.hbm [shape: f32[288,64], index: 3, kind: input, shape index: {}]   ;;  %s9811_s4 = inlined_call_operand.hbm [shape: f32[1,64], index: 4, kind: input, shape index: {}]   ;;  %s9812_s5 = inlined_call_operand.hbm [shape: f32[2304,128], index: 5, kind: input, shape index: {}]   ;;  %s9813_s6 = inlined_call_operand.hbm [shape: f32[1,128], index: 6, kind: input, shape index: {}]   ;;  %s9814_s7 = inlined_call_operand.hbm [shape: f32[128,128], index: 7, kind: input, shape index: {}]   ;;  %s9815_s8 = inlined_call_operand.hbm [shape: f32[1,128], index: 8, kind: input, shape index: {}]   ;;  %s9816_s9 = inlined_call_operand.hbm [shape: f32[2,128], index: 9, kind: output, shape index: {0}]   ;;  %s9817_s10 = inlined_call_operand.hbm [shape: f32[2,128], index: 10, kind: output, shape index: {1}]  }
   0x1   :  { %17 = vsyncpa [#allocation11], 0 }
   0x2   :  { %18 = vsyncpa [#allocation14], 0 }
   0x3   :  { %19 = vsyncpa [#allocation17], 0 }
   0x4   :  { %20 = vsyncpa [#allocation20], 0 }
   0x5   :  { %21 = vsyncpa [#allocation9], 0 }
   0x6   :  { %22 = vsyncpa [#allocation24], 0  ;;  %s7385_s13 = smov [#allocation10]   ;;  %s7386_s15 = smov [#allocation13]  }
   0x7   :  { %s40_s14 = sshll.u32 %s7385_s13, 4  ;;  %s62_s16 = sshll.u32 %s7386_s15, 4  ;;  %s41_s14 = int_to_ptr.vmem [resolvable:$true] %s40_s14  ;;  %s7461_s16 = int_to_ptr.vmem [resolvable:$true] %s62_s16 }
   0x8   :  { %s7129_s19 = scalar_lea.hbm %s9808_s1, 512 }
   0x9   :  { %p7130_p0 = scmp.ne.s32.totalorder %s9808_s1, %s7129_s19  ;;  %p7133_p1 = scmp.lt.u32.totalorder %s7129_s19, %s9808_s1 }
   0xb   :  { %p7135_p2 = pnand %p7133_p1, %p7130_p0 }
   0xd   :  { %7138 = shalt.err (!%p7135_p2)
}
   0xe   :  { %s7139_s24 = scalar_lea.vmem %s41_s14, 512  ;;  %p7144_p4 = scmp.lt.s32.totalorder %s41_s14, %s41_s14 }
   0xf   :  { %p7140_p3 = scmp.ne.s32.totalorder %s41_s14, %s7139_s24  ;;  %p7145_p5 = scmp.lt.s32.totalorder %s7139_s24, %s7139_s24 }
  0x11   :  { %p7146_p6 = por %p7145_p5, %p7144_p4 }
  0x13   :  { %p7147_p7 = pnand %p7146_p6, %p7140_p3 }
  0x15   :  { %7150 = shalt.err (!%p7147_p7)
}
  0x16   :  { %s7387_s25 = smov 128   ;;  %s7388_s26 = smov 8  }
  0x17   :  { %46 = dma.hbm_to_vmem [thread:$0]  %s9808_s1, 512, %s41_s14, [#allocation11], %s7387_s25, %s7387_s25, %s7388_s26  }
  0x18   :  { %s7151_s11 = scalar_lea.hbm %s9810_s3, 4608 }
  0x19   :  { %p7152_p8 = scmp.ne.s32.totalorder %s9810_s3, %s7151_s11  ;;  %p7155_p9 = scmp.lt.u32.totalorder %s7151_s11, %s9810_s3 }
  0x1b   :  { %p7157_p10 = pnand %p7155_p9, %p7152_p8 }
  0x1d   :  { %7160 = shalt.err (!%p7157_p10)
}
  0x1e   :  { %s7161_s18 = scalar_lea.vmem %s7461_s16, 4608  ;;  %p7166_p12 = scmp.lt.s32.totalorder %s7461_s16, %s7461_s16 }
  0x1f   :  { %p7162_p11 = scmp.ne.s32.totalorder %s7461_s16, %s7161_s18  ;;  %p7167_p13 = scmp.lt.s32.totalorder %s7161_s18, %s7161_s18 }
  0x21   :  { %p7168_p0 = por %p7167_p13, %p7166_p12 }
  0x23   :  { %p7169_p1 = pnand %p7168_p0, %p7162_p11 }
  0x25   :  { %7172 = shalt.err (!%p7169_p1)
}
  0x26   :  { %68 = dma.hbm_to_vmem [thread:$0]  %s9810_s3, 4608, %s7461_s16, [#allocation14], %s7387_s25, %s7387_s25, %s7388_s26  }
  0x27   :  { %s7389_s19 = smov [#allocation16]   ;;  %s7390_s21 = smov [#allocation19]  }
  0x28   :  { %s84_s20 = sshll.u32 %s7389_s19, 4  ;;  %s106_s22 = sshll.u32 %s7390_s21, 4  ;;  %s85_s20 = int_to_ptr.vmem [resolvable:$true] %s84_s20  ;;  %s7498_s22 = int_to_ptr.vmem [resolvable:$true] %s106_s22 }
  0x29   :  { %s7173_s27 = scalar_lea.hbm %s9812_s5, 36864 }
  0x2a   :  { %p7174_p2 = scmp.ne.s32.totalorder %s9812_s5, %s7173_s27  ;;  %p7177_p3 = scmp.lt.u32.totalorder %s7173_s27, %s9812_s5 }
  0x2c   :  { %p7179_p4 = pnand %p7177_p3, %p7174_p2 }
  0x2e   :  { %7182 = shalt.err (!%p7179_p4)
}
  0x2f   :  { %s7183_s3 = scalar_lea.vmem %s85_s20, 36864  ;;  %p7188_p6 = scmp.lt.s32.totalorder %s85_s20, %s85_s20 }
  0x30   :  { %p7184_p5 = scmp.ne.s32.totalorder %s85_s20, %s7183_s3  ;;  %p7189_p7 = scmp.lt.s32.totalorder %s7183_s3, %s7183_s3 }
  0x32   :  { %p7190_p8 = por %p7189_p7, %p7188_p6 }
  0x34   :  { %p7191_p9 = pnand %p7190_p8, %p7184_p5 }
  0x36   :  { %7194 = shalt.err (!%p7191_p9)
}
  0x37   :  { %90 = dma.hbm_to_vmem [thread:$0]  %s9812_s5, 36864, %s85_s20, [#allocation17], %s7387_s25, %s7387_s25, %s7388_s26  }
  0x38   :  { %s7195_s17 = scalar_lea.hbm %s9814_s7, 2048 }
  0x39   :  { %p7196_p10 = scmp.ne.s32.totalorder %s9814_s7, %s7195_s17  ;;  %p7199_p11 = scmp.lt.u32.totalorder %s7195_s17, %s9814_s7 }
  0x3b   :  { %p7201_p12 = pnand %p7199_p11, %p7196_p10 }
  0x3d   :  { %7204 = shalt.err (!%p7201_p12)
}
  0x3e   :  { %s7205_s21 = scalar_lea.vmem %s7498_s22, 2048  ;;  %p7210_p0 = scmp.lt.s32.totalorder %s7498_s22, %s7498_s22 }
  0x3f   :  { %p7206_p13 = scmp.ne.s32.totalorder %s7498_s22, %s7205_s21  ;;  %p7211_p1 = scmp.lt.s32.totalorder %s7205_s21, %s7205_s21 }
  0x41   :  { %p7212_p2 = por %p7211_p1, %p7210_p0 }
  0x43   :  { %p7213_p3 = pnand %p7212_p2, %p7206_p13 }
  0x45   :  { %7216 = shalt.err (!%p7213_p3)
}
  0x46   :  { %112 = dma.hbm_to_vmem [thread:$0]  %s9814_s7, 2048, %s7498_s22, [#allocation20], %s7387_s25, %s7387_s25, %s7388_s26  }
  0x47   :  { %s7391_s23 = smov [#allocation7]   ;;  %s7392_s27 = smov [#allocation12]  }
  0x48   :  { %s28_s24 = sshll.u32 %s7391_s23, 4  ;;  %s53_s28 = sshll.u32 %s7392_s27, 4  ;;  %s29_s24 = int_to_ptr.vmem [resolvable:$true] %s28_s24  ;;  %s54_s28 = int_to_ptr.vmem [resolvable:$true] %s53_s28 }
  0x49   :  { %s7217_s11 = scalar_lea.hbm %s9807_s0, 7168 }
  0x4a   :  { %p7218_p4 = scmp.ne.s32.totalorder %s9807_s0, %s7217_s11  ;;  %p7221_p5 = scmp.lt.u32.totalorder %s7217_s11, %s9807_s0 }
  0x4c   :  { %p7223_p6 = pnand %p7221_p5, %p7218_p4 }
  0x4e   :  { %7226 = shalt.err (!%p7223_p6)
}
  0x4f   :  { %s7227_s7 = scalar_lea.vmem %s29_s24, 7168  ;;  %p7232_p8 = scmp.lt.s32.totalorder %s29_s24, %s29_s24 }
  0x50   :  { %p7228_p7 = scmp.ne.s32.totalorder %s29_s24, %s7227_s7  ;;  %p7233_p9 = scmp.lt.s32.totalorder %s7227_s7, %s7227_s7 }
  0x52   :  { %p7234_p10 = por %p7233_p9, %p7232_p8 }
  0x54   :  { %p7235_p11 = pnand %p7234_p10, %p7228_p7 }
  0x56   :  { %7238 = shalt.err (!%p7235_p11)
}
  0x57   :  { %34 = dma.hbm_to_vmem [thread:$0]  %s9807_s0, 7168, %s29_s24, [#allocation8], %s7387_s25, %s7387_s25, %s7388_s26  }
  0x58   :  { %s7239_s1 = scalar_lea.hbm %s9809_s2, 16 }
  0x59   :  { %p7240_p12 = scmp.ne.s32.totalorder %s9809_s2, %s7239_s1  ;;  %p7243_p13 = scmp.lt.u32.totalorder %s7239_s1, %s9809_s2 }
  0x5b   :  { %p7245_p0 = pnand %p7243_p13, %p7240_p12 }
  0x5d   :  { %7248 = shalt.err (!%p7245_p0)
}
  0x5e   :  { %s7249_s20 = scalar_lea.vmem %s54_s28, 16  ;;  %s7253_s23 = scalar_lea.vmem %s54_s28, 32 }
  0x5f   :  { %p7250_p1 = scmp.ne.s32.totalorder %s54_s28, %s7249_s20  ;;  %p7254_p2 = scmp.lt.s32.totalorder %s54_s28, %s54_s28 }
  0x60   :  { %p7255_p3 = scmp.lt.s32.totalorder %s7253_s23, %s7249_s20 }
  0x62   :  { %p7256_p4 = por %p7255_p3, %p7254_p2 }
  0x64   :  { %p7257_p5 = pnand %p7256_p4, %p7250_p1 }
  0x66   :  { %7260 = shalt.err (!%p7257_p5)
}
  0x67   :  { %56 = dma.hbm_to_vmem [thread:$0]  %s9809_s2, 16, %s54_s28, [#allocation11]  }
  0x68   :  { %s7393_s26 = smov [#allocation15]   ;;  %s7394_s27 = smov [#allocation18]  }
  0x69   :  { %s75_s24 = sshll.u32 %s7393_s26, 4  ;;  %s97_s29 = sshll.u32 %s7394_s27, 4  ;;  %s76_s24 = int_to_ptr.vmem [resolvable:$true] %s75_s24  ;;  %s98_s29 = int_to_ptr.vmem [resolvable:$true] %s97_s29 }
  0x6a   :  { %s7261_s3 = scalar_lea.hbm %s9811_s4, 16 }
  0x6b   :  { %p7262_p6 = scmp.ne.s32.totalorder %s9811_s4, %s7261_s3  ;;  %p7265_p7 = scmp.lt.u32.totalorder %s7261_s3, %s9811_s4 }
  0x6d   :  { %p7267_p8 = pnand %p7265_p7, %p7262_p6 }
  0x6f   :  { %7270 = shalt.err (!%p7267_p8)
}
  0x70   :  { %s7271_s2 = scalar_lea.vmem %s76_s24, 16  ;;  %s7275_s28 = scalar_lea.vmem %s76_s24, 32 }
  0x71   :  { %p7272_p9 = scmp.ne.s32.totalorder %s76_s24, %s7271_s2  ;;  %p7276_p10 = scmp.lt.s32.totalorder %s76_s24, %s76_s24 }
  0x72   :  { %p7277_p11 = scmp.lt.s32.totalorder %s7275_s28, %s7271_s2 }
  0x74   :  { %p7278_p12 = por %p7277_p11, %p7276_p10 }
  0x76   :  { %p7279_p13 = pnand %p7278_p12, %p7272_p9 }
  0x78   :  { %7282 = shalt.err (!%p7279_p13)
}
  0x79   :  { %78 = dma.hbm_to_vmem [thread:$0]  %s9811_s4, 16, %s76_s24, [#allocation14]  }
  0x7a   :  { %s7283_s1 = scalar_lea.hbm %s9813_s6, 16 }
  0x7b   :  { %p7284_p0 = scmp.ne.s32.totalorder %s9813_s6, %s7283_s1  ;;  %p7287_p1 = scmp.lt.u32.totalorder %s7283_s1, %s9813_s6 }
  0x7d   :  { %p7289_p2 = pnand %p7287_p1, %p7284_p0 }
  0x7f   :  { %7292 = shalt.err (!%p7289_p2)
}
  0x80   :  { %s7293_s20 = scalar_lea.vmem %s98_s29, 16  ;;  %s7297_s23 = scalar_lea.vmem %s98_s29, 32 }
  0x81   :  { %p7294_p3 = scmp.ne.s32.totalorder %s98_s29, %s7293_s20  ;;  %p7298_p4 = scmp.lt.s32.totalorder %s98_s29, %s98_s29 }
  0x82   :  { %p7299_p5 = scmp.lt.s32.totalorder %s7297_s23, %s7293_s20 }
  0x84   :  { %p7300_p6 = por %p7299_p5, %p7298_p4 }
  0x86   :  { %p7301_p7 = pnand %p7300_p6, %p7294_p3 }
  0x88   :  { %7304 = shalt.err (!%p7301_p7)
}
  0x89   :  { %100 = dma.hbm_to_vmem [thread:$0]  %s9813_s6, 16, %s98_s29, [#allocation17]  }
  0x8a   :  { %s7395_s25 = smov [#allocation21]   ;;  %s7305_s30 = scalar_lea.hbm %s9815_s8, 16 }
  0x8b   :  { %s119_s26 = sshll.u32 %s7395_s25, 4  ;;  %p7306_p8 = scmp.ne.s32.totalorder %s9815_s8, %s7305_s30  ;;  %s120_s26 = int_to_ptr.vmem [resolvable:$true] %s119_s26 }
  0x8c   :  { %p7309_p9 = scmp.lt.u32.totalorder %s7305_s30, %s9815_s8 }
  0x8e   :  { %p7311_p10 = pnand %p7309_p9, %p7306_p8 }
  0x90   :  { %7314 = shalt.err (!%p7311_p10)
}
  0x91   :  { %s7315_s13 = scalar_lea.vmem %s120_s26, 16  ;;  %s7319_s6 = scalar_lea.vmem %s120_s26, 32 }
  0x92   :  { %p7316_p11 = scmp.ne.s32.totalorder %s120_s26, %s7315_s13  ;;  %p7320_p12 = scmp.lt.s32.totalorder %s120_s26, %s120_s26 }
  0x93   :  { %p7321_p13 = scmp.lt.s32.totalorder %s7319_s6, %s7315_s13 }
  0x95   :  { %p7322_p0 = por %p7321_p13, %p7320_p12 }
  0x97   :  { %p7323_p1 = pnand %p7322_p0, %p7316_p11 }
  0x99   :  { %7326 = shalt.err (!%p7323_p1)
}
  0x9a   :  { %122 = dma.hbm_to_vmem [thread:$0]  %s9815_s8, 16, %s120_s26, [#allocation20]  }
  0x9b   :  { %7371 = dma.done.wait [#allocation8], 7168  }
  0x9c   :  { %7372 = vsyncadd [#allocation8], 4294960128 }
  0x9d   :  { %7373 = dma.done.wait [#allocation11], 528  }
  0x9e   :  { %7374 = vsyncadd [#allocation11], 4294966768 }
  0x9f   :  { %7375 = dma.done.wait [#allocation14], 4624  }
  0xa0   :  { %7376 = vsyncadd [#allocation14], 4294962672 }
  0xa1   :  { %7377 = dma.done.wait [#allocation17], 36880  }
  0xa2   :  { %7378 = vsyncadd [#allocation17], 4294930416 }
  0xa3   :  { %7379 = dma.done.wait [#allocation20], 2064  }
  0xa4   :  { %7380 = vsyncadd [#allocation20], 4294965232  ;;  %vm386_vm0 = vcmask 1042432   ;;  %vm217_vm1 = vcmask 220160   ;;  %v206_v0 = vld [vmem:[#allocation10] sm:$0xff]  ;;  %v207_v1 = vld [vmem:[#allocation10 + $0x8] sm:$0xff] }
  0xa5   :  { %v208_v2 = vld [vmem:[#allocation10 + $0x10] sm:$0xff]  ;;  %v6722_v3 = vpack.c.bf16 %v207_v1, %v206_v0  ;;  %v209_v4 = vld [vmem:[#allocation10 + $0x18] sm:$0x7]  ;;  %v150_v5 = vld [vmem:[#allocation7] sm:$0xff]  ;;  %vm7396_vm2 = vmmov 1   ;;  %vm791_vm4 = vcmask 261120  }
  0xa6   :  { %v6726_v6 = vpack.c.bf16 %v209_v4, %v208_v2  ;;  %vm6727_vm3 = vmpackc.low %vm386_vm0, %vm7396_vm2  ;;  %6517 = vmatprep.mubr.msk.f32.mxu0 %vm217_vm1, %v150_v5  ;;  %v151_v7 = vld [vmem:[#allocation7 + $0x8] sm:$0xff]  ;;  %v152_v8 = vld [vmem:[#allocation7 + $0x10] sm:$0xff]  ;;  %s7398_s8 = smov 64   ;;  %s7399_s2 = smov 32   ;;  %vm1213_vm5 = vcmask 523520   ;;  %vm1527_vm6 = vcmask 785920  }
  0xa7   :  { %6723 = vmatprep.subr.bf16.mxu0 %v6722_v3  ;;  %v153_v9 = vld [vmem:[#allocation7 + $0x18] sm:$0xff]  ;;  %v154_v10 = vld [vmem:[#allocation7 + $0x20] sm:$0xff]  ;;  %v155_v11 = vld [vmem:[#allocation7 + $0x28] sm:$0xff]  ;;  %s7400_s28 = smov 96   ;;  %vm1841_vm7 = vcmask 1048320   ;;  %vm4096_vm8 = vcmask 523264  }
  0xa8   :  { %6725 = vmatpush3.bf16.msra.mxu0 %v6722_v3  ;;  %v156_v12 = vld [vmem:[#allocation7 + $0x30] sm:$0xff]  ;;  %v157_v13 = vld [vmem:[#allocation7 + $0x38] sm:$0xff]  ;;  %v158_v14 = vld [vmem:[#allocation7 + $0x40] sm:$0xff]  ;;  %vm951_vm9 = vcmask 257024   ;;  %vm1265_vm10 = vcmask 519424   ;;  %vm1579_vm11 = vcmask 781824  }
  0xa9   :  { %6728 = vmatprep.subr.msk.bf16.mxu0 %vm6727_vm3, %v6726_v6  ;;  %v159_v15 = vld [vmem:[#allocation7 + $0x48] sm:$0xff]  ;;  %v160_v16 = vld [vmem:[#allocation7 + $0x50] sm:$0xff]  ;;  %v161_v17 = vld [vmem:[#allocation7 + $0x58] sm:$0xff]  ;;  %vm1893_vm12 = vcmask 1044224   ;;  %vm4413_vm13 = vcmask 517120   ;;  %vm4430_vm14 = vcmask 1041920  }
  0xaa   :  { %v162_v18 = vld [vmem:[#allocation7 + $0x60] sm:$0xff]  ;;  %v163_v19 = vld [vmem:[#allocation7 + $0x68] sm:$0xff]  ;;  %v164_v20 = vld [vmem:[#allocation7 + $0x70] sm:$0xff]  ;;  %vm4148_vm15 = vcmask 519168   ;;  %vm4408_vm0 = vcmask 518144   ;;  %s7404_s22 = smov [#allocation22]  }
  0xab   :  { %v165_v21 = vld [vmem:[#allocation7 + $0x78] sm:$0xff]  ;;  %v166_v22 = vld [vmem:[#allocation7 + $0x80] sm:$0xff]  ;;  %v167_v23 = vld [vmem:[#allocation7 + $0x88] sm:$0xff]  ;;  %s5920_s15 = sshll.u32 %s7404_s22, 4  ;;  %s5921_s15 = int_to_ptr.vmem [resolvable:$true] %s5920_s15 }
  0xac   :  { %6731 = vmatpush3.bf16.msk.msra.mxu0 %vm6727_vm3, %v6726_v6  ;;  %v168_v24 = vld [vmem:[#allocation7 + $0x90] sm:$0xff]  ;;  %v169_v25 = vld [vmem:[#allocation7 + $0x98] sm:$0xff]  ;;  %v170_v26 = vld [vmem:[#allocation7 + $0xa0] sm:$0xff]  ;;  %s7327_s17 = scalar_lea.vmem %s5921_s15, 32  ;;  %p7332_p3 = scmp.lt.s32.totalorder %s5921_s15, %s5921_s15 }
  0xad   :  { %v171_v27 = vld [vmem:[#allocation7 + $0xa8] sm:$0xff]  ;;  %v172_v28 = vld [vmem:[#allocation7 + $0xb0] sm:$0xff]  ;;  %v173_v29 = vld [vmem:[#allocation7 + $0xb8] sm:$0xff]  ;;  %p7328_p2 = scmp.ne.s32.totalorder %s5921_s15, %s7327_s17  ;;  %p7333_p4 = scmp.lt.s32.totalorder %s7327_s17, %s7327_s17 }
  0xae   :  { %v174_v30 = vld [vmem:[#allocation7 + $0xc0] sm:$0xff]  ;;  %v175_v31 = vld [vmem:[#allocation7 + $0xc8] sm:$0xff]  ;;  %v176_v32 = vld [vmem:[#allocation7 + $0xd0] sm:$0xff] }
  0xaf   :  { %6518 = vmatmul.mubr.msk.f32.vlgmr.msra.gmra.mrb[0].mxu0 %vm217_vm1, %v151_v7  ;;  %v177_v33 = vld [vmem:[#allocation7 + $0xd8] sm:$0xff]  ;;  %v178_v34 = vld [vmem:[#allocation7 + $0xe0] sm:$0xff]  ;;  %v179_v35 = vld [vmem:[#allocation7 + $0xe8] sm:$0xff]  ;;  %v7397_v7 = vmov 0.0|0.0   ;;  %p7334_p5 = por %p7333_p4, %p7332_p3 }
  0xb0   :  { %6520 = vmatprep.mubr.msk.f32.mxu0 %vm217_vm1, %v152_v8  ;;  %v180_v36 = vld [vmem:[#allocation7 + $0xf0] sm:$0xff]  ;;  %v181_v37 = vld [vmem:[#allocation7 + $0xf8] sm:$0xff]  ;;  %v182_v38 = vld [vmem:[#allocation7 + $0x100] sm:$0xff]  ;;  %6732 = vmatprep.subr.bf16.mxu1 %v7397_v7 }
  0xb1   :  { %v183_v39 = vld [vmem:[#allocation7 + $0x108] sm:$0xff]  ;;  %v184_v40 = vld [vmem:[#allocation7 + $0x110] sm:$0xff]  ;;  %v185_v41 = vld [vmem:[#allocation7 + $0x118] sm:$0xff]  ;;  %p7335_p6 = pnand %p7334_p5, %p7328_p2 }
  0xb2   :  { %v186_v42 = vld [vmem:[#allocation7 + $0x120] sm:$0xff]  ;;  %v187_v43 = vld [vmem:[#allocation7 + $0x128] sm:$0xff]  ;;  %v188_v44 = vld [vmem:[#allocation7 + $0x130] sm:$0xff] }
  0xb3   :  { %6521 = vmatmul.mubr.msk.f32.gmra.mrb[2].mxu0 %vm217_vm1, %v153_v9  ;;  %v189_v45 = vld [vmem:[#allocation7 + $0x138] sm:$0xff]  ;;  %v190_v46 = vld [vmem:[#allocation7 + $0x140] sm:$0xff]  ;;  %v191_v47 = vld [vmem:[#allocation7 + $0x148] sm:$0xff] }
  0xb4   :  { %6523 = vmatprep.mubr.msk.f32.mxu0 %vm217_vm1, %v154_v10  ;;  %v192_v48 = vld [vmem:[#allocation7 + $0x150] sm:$0xff]  ;;  %v193_v49 = vld [vmem:[#allocation7 + $0x158] sm:$0xff]  ;;  %v194_v50 = vld [vmem:[#allocation7 + $0x160] sm:$0xff] }
  0xb5   :  { %v195_v51 = vld [vmem:[#allocation7 + $0x168] sm:$0xff]  ;;  %v196_v52 = vld [vmem:[#allocation7 + $0x170] sm:$0xff]  ;;  %v197_v53 = vld [vmem:[#allocation7 + $0x178] sm:$0xff] }
  0xb6   :  { %v198_v54 = vld [vmem:[#allocation7 + $0x180] sm:$0xff]  ;;  %v199_v55 = vld [vmem:[#allocation7 + $0x188] sm:$0xff]  ;;  %v200_v56 = vld [vmem:[#allocation7 + $0x190] sm:$0xff] }
  0xb7   :  { %6524 = vmatmul.mubr.msk.f32.gmra.mrb[4].mxu0 %vm217_vm1, %v155_v11  ;;  %v201_v57 = vld [vmem:[#allocation7 + $0x198] sm:$0xff]  ;;  %v202_v58 = vld [vmem:[#allocation7 + $0x1a0] sm:$0xff]  ;;  %v3228_v60 = vld [vmem:[#allocation13 + $0x108] sm:$0xff] }
  0xb8   :  { %6526 = vmatprep.mubr.msk.f32.mxu0 %vm217_vm1, %v156_v12  ;;  %v3227_v59 = vld [vmem:[#allocation13 + $0x100] sm:$0xff]  ;;  %v204_v63 = vld [vmem:[#allocation7 + $0x1b0] sm:$0xff]  ;;  %v3230_v1 = vld [vmem:[#allocation13 + $0x118] sm:$0xff] }
  0xb9   :  { %v203_v61 = vld [vmem:[#allocation7 + $0x1a8] sm:$0xff]  ;;  %v6780_v62 = vpack.c.bf16 %v3228_v60, %v3227_v59  ;;  %v3229_v0 = vld [vmem:[#allocation13 + $0x110] sm:$0xff]  ;;  %v3198_v9 = vld [vmem:[#allocation13 + $0x18] sm:$0xff] }
  0xba   :  { %v205_v2 = vld [vmem:[#allocation7 + $0x1b8] sm:$0xff]  ;;  %v6784_v3 = vpack.c.bf16 %v3230_v1, %v3229_v0  ;;  %v3195_v4 = vld [vmem:[#allocation13] sm:$0xff]  ;;  %v3196_v5 = vld [vmem:[#allocation13 + $0x8] sm:$0xff] }
  0xbb   :  { %6527 = vmatmul.mubr.msk.f32.gmra.mrb[6].mxu0 %vm217_vm1, %v157_v13  ;;  %6781 = vmatprep.subr.bf16.mxu0 %v6780_v62  ;;  %v6733_v6 = vpack.c.bf16 %v3196_v5, %v3195_v4  ;;  %v3197_v8 = vld [vmem:[#allocation13 + $0x10] sm:$0xff]  ;;  %v3199_v11 = vld [vmem:[#allocation13 + $0x20] sm:$0xff]  ;;  %v3200_v12 = vld [vmem:[#allocation13 + $0x28] sm:$0xff] }
  0xbc   :  { %6529 = vmatprep.mubr.msk.f32.mxu0 %vm217_vm1, %v158_v14  ;;  %6783 = vmatpush3.bf16.msra.mxu0 %v6780_v62  ;;  %v6736_v10 = vpack.c.bf16 %v3198_v9, %v3197_v8  ;;  %v6739_v13 = vpack.c.bf16 %v3200_v12, %v3199_v11  ;;  %v3201_v14 = vld [vmem:[#allocation13 + $0x30] sm:$0xff]  ;;  %v3214_v60 = vld [vmem:[#allocation13 + $0x98] sm:$0xff]  ;;  %v3215_v9 = vld [vmem:[#allocation13 + $0xa0] sm:$0xff] }
  0xbd   :  { %6785 = vmatprep.subr.bf16.mxu0 %v6784_v3  ;;  %6734 = vmatpush1.bf16.msra.mxu1 %v6733_v6  ;;  %v3213_v59 = vld [vmem:[#allocation13 + $0x90] sm:$0xff]  ;;  %v3216_v11 = vld [vmem:[#allocation13 + $0xa8] sm:$0xff] }
  0xbe   :  { %6735 = vmatprep.subr.bf16.mxu1 %v7397_v7  ;;  %v6760_v62 = vpack.c.bf16 %v3214_v60, %v3213_v59  ;;  %v3222_v59 = vld [vmem:[#allocation13 + $0xd8] sm:$0xff] }
  0xbf   :  { %6530 = vmatmul.mubr.msk.f32.gmra.mrb[8].mxu0 %vm217_vm1, %v159_v15  ;;  %v3202_v15 = vld [vmem:[#allocation13 + $0x38] sm:$0xff] }
  0xc0   :  { %6532 = vmatprep.mubr.msk.f32.mxu0 %vm217_vm1, %v160_v16  ;;  %6787 = vmatpush3.bf16.msra.mxu0 %v6784_v3  ;;  %v6742_v16 = vpack.c.bf16 %v3202_v15, %v3201_v14  ;;  %v6763_v15 = vpack.c.bf16 %v3216_v11, %v3215_v9 }
  0xc1   :  { %6737 = vmatpush1.bf16.msra.mxu1 %v6736_v10 }
  0xc2   :  { %6738 = vmatprep.subr.bf16.mxu1 %v7397_v7 }
  0xc3   :  { %6533 = vmatmul.mubr.msk.f32.gmra.mrb[10].mxu0 %vm217_vm1, %v161_v17  ;;  %v3203_v17 = vld [vmem:[#allocation13 + $0x40] sm:$0xff] }
  0xc4   :  { %6535 = vmatprep.mubr.msk.f32.mxu0 %vm217_vm1, %v162_v18  ;;  %v3204_v18 = vld [vmem:[#allocation13 + $0x48] sm:$0xff] }
  0xc5   :  { %6740 = vmatpush1.bf16.msra.mxu1 %v6739_v13 }
  0xc6   :  { %6741 = vmatprep.subr.bf16.mxu1 %v7397_v7 }
  0xc7   :  { %6536 = vmatmul.mubr.msk.f32.gmra.mrb[12].mxu0 %vm217_vm1, %v163_v19  ;;  %v6745_v19 = vpack.c.bf16 %v3204_v18, %v3203_v17 }
  0xc8   :  { %6538 = vmatprep.mubr.msk.f32.mxu0 %vm217_vm1, %v164_v20  ;;  %v7659_v20 = vld [vmem:[#allocation12] ss:$0 sm:$0xff] }
  0xc9   :  { %6743 = vmatpush1.bf16.msra.mxu1 %v6742_v16 }
  0xca   :  { %6744 = vmatprep.subr.bf16.mxu1 %v7397_v7 }
  0xcb   :  { %6539 = vmatmul.mubr.msk.f32.gmra.mrb[14].mxu0 %vm217_vm1, %v165_v21  ;;  %v3205_v21 = vld [vmem:[#allocation13 + $0x50] sm:$0xff] }
  0xcc   :  { %6541 = vmatprep.mubr.msk.f32.mxu0 %vm217_vm1, %v166_v22  ;;  %v3206_v22 = vld [vmem:[#allocation13 + $0x58] sm:$0xff] }
  0xcd   :  { %6746 = vmatpush1.bf16.msra.mxu1 %v6745_v19 }
  0xce   :  { %6747 = vmatprep.subr.bf16.mxu1 %v7397_v7 }
  0xcf   :  { %6542 = vmatmul.mubr.msk.f32.gmra.mrb[16].mxu0 %vm217_vm1, %v167_v23  ;;  %v6748_v23 = vpack.c.bf16 %v3206_v22, %v3205_v21 }
  0xd0   :  { %6544 = vmatprep.mubr.msk.f32.mxu0 %vm217_vm1, %v168_v24 }
  0xd1   :  { %6749 = vmatpush1.bf16.msra.mxu1 %v6748_v23 }
  0xd2   :  { %6750 = vmatprep.subr.bf16.mxu1 %v7397_v7 }
  0xd3   :  { %6545 = vmatmul.mubr.msk.f32.gmra.mrb[18].mxu0 %vm217_vm1, %v169_v25 }
  0xd4   :  { %6547 = vmatprep.mubr.msk.f32.mxu0 %vm217_vm1, %v170_v26 }
  0xd7   :  { %6548 = vmatmul.mubr.msk.f32.gmra.mrb[20].mxu0 %vm217_vm1, %v171_v27 }
  0xd8   :  { %6550 = vmatprep.mubr.msk.f32.mxu0 %vm217_vm1, %v172_v28  ;;  %v3207_v28 = vld [vmem:[#allocation13 + $0x60] sm:$0xff] }
  0xdb   :  { %6551 = vmatmul.mubr.msk.f32.gmra.mrb[22].mxu0 %vm217_vm1, %v173_v29  ;;  %v3208_v29 = vld [vmem:[#allocation13 + $0x68] sm:$0xff] }
  0xdc   :  { %6553 = vmatprep.mubr.msk.f32.mxu0 %vm217_vm1, %v174_v30 }
  0xdf   :  { %6554 = vmatmul.mubr.msk.f32.gmra.mrb[24].mxu0 %vm217_vm1, %v175_v31  ;;  %v6751_v31 = vpack.c.bf16 %v3208_v29, %v3207_v28 }
  0xe0   :  { %6556 = vmatprep.mubr.msk.f32.mxu0 %vm217_vm1, %v176_v32 }
  0xe1   :  { %6752 = vmatpush1.bf16.msra.mxu1 %v6751_v31 }
  0xe2   :  { %6753 = vmatprep.subr.bf16.mxu1 %v7397_v7 }
  0xe3   :  { %6557 = vmatmul.mubr.msk.f32.gmra.mrb[26].mxu0 %vm217_vm1, %v177_v33 }
  0xe4   :  { %6559 = vmatprep.mubr.msk.f32.mxu0 %vm217_vm1, %v178_v34 }
  0xe7   :  { %6560 = vmatmul.mubr.msk.f32.gmra.mrb[28].mxu0 %vm217_vm1, %v179_v35 }
  0xe8   :  { %6562 = vmatprep.mubr.msk.f32.mxu0 %vm217_vm1, %v180_v36 }
  0xeb   :  { %6563 = vmatmul.mubr.msk.f32.gmra.mrb[30].mxu0 %vm217_vm1, %v181_v37  ;;  %v3209_v37 = vld [vmem:[#allocation13 + $0x70] sm:$0xff] }
  0xec   :  { %6565 = vmatprep.mubr.msk.f32.mxu0 %vm217_vm1, %v182_v38  ;;  %v3210_v38 = vld [vmem:[#allocation13 + $0x78] sm:$0xff] }
  0xef   :  { %6566 = vmatmul.mubr.msk.f32.gmra.mrb[32].mxu0 %vm217_vm1, %v183_v39 }
  0xf0   :  { %6568 = vmatprep.mubr.msk.f32.mxu0 %vm217_vm1, %v184_v40  ;;  %v6754_v40 = vpack.c.bf16 %v3210_v38, %v3209_v37 }
  0xf2   :  { %6755 = vmatpush1.bf16.msra.mxu1 %v6754_v40  ;;  %v3219_v40 = vld [vmem:[#allocation13 + $0xc0] sm:$0xff] }
  0xf3   :  { %6569 = vmatmul.mubr.msk.f32.gmra.mrb[34].mxu0 %vm217_vm1, %v185_v41  ;;  %6756 = vmatprep.subr.bf16.mxu1 %v7397_v7 }
  0xf4   :  { %6571 = vmatprep.mubr.msk.f32.mxu0 %vm217_vm1, %v186_v42 }
  0xf7   :  { %6572 = vmatmul.mubr.msk.f32.gmra.mrb[36].mxu0 %vm217_vm1, %v187_v43 }
  0xf8   :  { %6574 = vmatprep.mubr.msk.f32.mxu0 %vm217_vm1, %v188_v44 }
  0xfb   :  { %6575 = vmatmul.mubr.msk.f32.gmra.mrb[38].mxu0 %vm217_vm1, %v189_v45 }
  0xfc   :  { %6577 = vmatprep.mubr.msk.f32.mxu0 %vm217_vm1, %v190_v46  ;;  %v3211_v46 = vld [vmem:[#allocation13 + $0x80] sm:$0xff] }
  0xff   :  { %6578 = vmatmul.mubr.msk.f32.gmra.mrb[40].mxu0 %vm217_vm1, %v191_v47  ;;  %v3212_v47 = vld [vmem:[#allocation13 + $0x88] sm:$0xff] }
 0x100   :  { %6580 = vmatprep.mubr.msk.f32.mxu0 %vm217_vm1, %v192_v48 }
 0x103   :  { %6581 = vmatmul.mubr.msk.f32.gmra.mrb[42].mxu0 %vm217_vm1, %v193_v49  ;;  %v6757_v49 = vpack.c.bf16 %v3212_v47, %v3211_v46 }
 0x104   :  { %6583 = vmatprep.mubr.msk.f32.mxu0 %vm217_vm1, %v194_v50 }
 0x105   :  { %6758 = vmatpush1.bf16.msra.mxu1 %v6757_v49 }
 0x106   :  { %6759 = vmatprep.subr.bf16.mxu1 %v7397_v7 }
 0x107   :  { %6584 = vmatmul.mubr.msk.f32.gmra.mrb[44].mxu0 %vm217_vm1, %v195_v51 }
 0x108   :  { %6586 = vmatprep.mubr.msk.f32.mxu0 %vm217_vm1, %v196_v52 }
 0x109   :  { %6761 = vmatpush1.bf16.msra.mxu1 %v6760_v62 }
 0x10a   :  { %6762 = vmatprep.subr.bf16.mxu1 %v7397_v7 }
 0x10b   :  { %6587 = vmatmul.mubr.msk.f32.gmra.mrb[46].mxu0 %vm217_vm1, %v197_v53 }
 0x10c   :  { %6589 = vmatprep.mubr.msk.f32.mxu0 %vm217_vm1, %v198_v54 }
 0x10d   :  { %6764 = vmatpush1.bf16.msra.mxu1 %v6763_v15  ;;  %v3224_v15 = vld [vmem:[#allocation13 + $0xe8] sm:$0xff] }
 0x10e   :  { %6765 = vmatprep.subr.bf16.mxu1 %v7397_v7 }
 0x10f   :  { %6590 = vmatmul.mubr.msk.f32.gmra.mrb[48].mxu0 %vm217_vm1, %v199_v55 }
 0x110   :  { %6592 = vmatprep.mubr.msk.f32.mxu0 %vm217_vm1, %v200_v56 }
 0x113   :  { %6593 = vmatmul.mubr.msk.f32.gmra.mrb[50].mxu0 %vm217_vm1, %v201_v57 }
 0x114   :  { %6595 = vmatprep.mubr.msk.f32.mxu0 %vm217_vm1, %v202_v58 }
 0x117   :  { %6596 = vmatmul.mubr.msk.f32.gmra.mrb[52].mxu0 %vm217_vm1, %v203_v61 }
 0x118   :  { %6598 = vmatprep.mubr.msk.f32.mxu0 %vm217_vm1, %v204_v63 }
 0x11b   :  { %6599 = vmatmul.mubr.msk.f32.gmra.mrb[54].mxu0 %vm217_vm1, %v205_v2  ;;  %vm7402_vm1 = vmmov 0  }
 0x182   :  { %v6519_v24 = vpop.f32.mrb[0].mxu0 }
 0x183   :  { %v462_v25 = vadd.f32 %v6519_v24, %v7659_v20  ;;  %v456_v26 = vpop.f32.mrb[1].mxu0  ;;  %v3217_v24 = vld [vmem:[#allocation13 + $0xb0] sm:$0xff] }
 0x184   :  { %v457_v27 = vadd.f32 %v7659_v20, %v456_v26  ;;  %v3218_v26 = vld [vmem:[#allocation13 + $0xb8] sm:$0xff] }
 0x185   :  { %v736_v30 = vmax.f32 %v462_v25, 0.0 }
 0x186   :  { %v735_v32 = vmax.f32 %v457_v27, 0.0  ;;  %v6522_v33 = vpop.f32.mrb[2].mxu0 }
 0x187   :  { %793 = vst.msk [vmem:[#allocation2 + $0x8] sm:$0xff] %vm791_vm4, %v736_v30  ;;  %v472_v34 = vadd.f32 %v6522_v33, %v7659_v20  ;;  %v466_v35 = vpop.f32.mrb[3].mxu0  ;;  %v6766_v30 = vpack.c.bf16 %v3218_v26, %v3217_v24 }
 0x188   :  { %792 = vst.msk [vmem:[#allocation2] sm:$0xff] %vm791_vm4, %v735_v32  ;;  %v467_v36 = vadd.f32 %v7659_v20, %v466_v35 }
 0x189   :  { %v738_v39 = vmax.f32 %v472_v34, 0.0  ;;  %6767 = vmatpush1.bf16.msra.mxu1 %v6766_v30 }
 0x18a   :  { %v737_v41 = vmax.f32 %v467_v36, 0.0  ;;  %v6525_v42 = vpop.f32.mrb[4].mxu0  ;;  %6768 = vmatprep.subr.bf16.mxu1 %v7397_v7 }
 0x18b   :  { %795 = vst.msk [vmem:[#allocation2 + $0x18] sm:$0xff] %vm791_vm4, %v738_v39  ;;  %v482_v43 = vadd.f32 %v6525_v42, %v7659_v20  ;;  %v476_v44 = vpop.f32.mrb[5].mxu0  ;;  %v3220_v42 = vld [vmem:[#allocation13 + $0xc8] sm:$0xff] }
 0x18c   :  { %794 = vst.msk [vmem:[#allocation2 + $0x10] sm:$0xff] %vm791_vm4, %v737_v41  ;;  %v477_v45 = vadd.f32 %v7659_v20, %v476_v44  ;;  %v6769_v46 = vpack.c.bf16 %v3220_v42, %v3219_v40  ;;  %v3226_v40 = vld [vmem:[#allocation13 + $0xf8] sm:$0xff] }
 0x18d   :  { %v740_v48 = vmax.f32 %v482_v43, 0.0 }
 0x18e   :  { %v739_v50 = vmax.f32 %v477_v45, 0.0  ;;  %v6528_v51 = vpop.f32.mrb[6].mxu0  ;;  %v849_v52 = vld [vmem:[#allocation2 + $0x8] sm:$0xff]  ;;  %6770 = vmatpush1.bf16.msra.mxu1 %v6769_v46 }
 0x18f   :  { %797 = vst.msk [vmem:[#allocation2 + $0x28] sm:$0xff] %vm791_vm4, %v740_v48  ;;  %v492_v53 = vadd.f32 %v6528_v51, %v7659_v20  ;;  %v486_v54 = vpop.f32.mrb[7].mxu0  ;;  %v1267_v55 = vld [vmem:[#allocation2 + $0x2] sm:$0xff]  ;;  %901 = vst.msk [vmem:[#allocation3 + $0x18] sm:$0xff] %vm791_vm4, %v849_v52  ;;  %6771 = vmatprep.subr.bf16.mxu1 %v7397_v7 }
 0x190   :  { %v953_v56 = vld [vmem:[#allocation2 + $0x1] sm:$0xff]  ;;  %796 = vst.msk [vmem:[#allocation2 + $0x20] sm:$0xff] %vm791_vm4, %v739_v50  ;;  %v487_v58 = vadd.f32 %v7659_v20, %v486_v54  ;;  %1371 = vrot.lane.b32.xlu1 %v1267_v55, %s7398_s8 }
 0x191   :  { %v848_v57 = vld [vmem:[#allocation2] sm:$0xff]  ;;  %1057 = vrot.lane.b32.xlu0 %v953_v56, %s7399_s2  ;;  %v742_v61 = vmax.f32 %v492_v53, 0.0 }
 0x192   :  { %900 = vst.msk [vmem:[#allocation3] sm:$0xff] %vm791_vm4, %v848_v57  ;;  %v741_v63 = vmax.f32 %v487_v58, 0.0  ;;  %v1582_v0 = vld [vmem:[#allocation2 + $0x18] sm:$0xff]  ;;  %v6531_v1 = vpop.f32.mrb[8].mxu0  ;;  %v3221_v58 = vld [vmem:[#allocation13 + $0xd0] sm:$0xff] }
 0x193   :  { %799 = vst.msk [vmem:[#allocation2 + $0x38] sm:$0xff] %vm791_vm4, %v742_v61  ;;  %v7685_v2 = vld [vmem:[#allocation2 + $0x12] sm:$0xff]  ;;  %v502_v4 = vadd.f32 %v6531_v1, %v7659_v20  ;;  %v496_v5 = vpop.f32.mrb[9].mxu0  ;;  %903 = vst.msk [vmem:[#allocation3 + $0x48] sm:$0xff] %vm791_vm4, %v1582_v0  ;;  %v954_v27 = vld [vmem:[#allocation2 + $0x9] sm:$0xff] }
 0x194   :  { %v1581_v3 = vld [vmem:[#allocation2 + $0x10] sm:$0xff]  ;;  %798 = vst.msk [vmem:[#allocation2 + $0x30] sm:$0xff] %vm791_vm4, %v741_v63  ;;  %1687 = vrot.lane.b32.xlu1 %v1582_v0, %s7400_s28  ;;  %v497_v6 = vadd.f32 %v7659_v20, %v496_v5  ;;  %v6772_v63 = vpack.c.bf16 %v3222_v59, %v3221_v58 }
 0x195   :  { %2103 = vrot.lane.b32.xlu0 %v7685_v2, %s7399_s2  ;;  %v7694_v8 = vld [vmem:[#allocation2 + $0x11] sm:$0xff]  ;;  %902 = vst.msk [vmem:[#allocation3 + $0x30] sm:$0xff] %vm791_vm4, %v1581_v3  ;;  %v744_v10 = vmax.f32 %v502_v4, 0.0 }
 0x196   :  { %1947 = vst.msk [vmem:[#allocation3 + $0x8] sm:$0xff] %vm791_vm4, %v7694_v8  ;;  %v7700_v12 = vld [vmem:[#allocation2 + $0x28] sm:$0xff]  ;;  %v743_v13 = vmax.f32 %v497_v6, 0.0  ;;  %v6534_v14 = vpop.f32.mrb[10].mxu0  ;;  %6773 = vmatpush1.bf16.msra.mxu1 %v6772_v63 }
 0x197   :  { %v7702_v16 = vld [vmem:[#allocation2 + $0x22] sm:$0xff]  ;;  %801 = vst.msk [vmem:[#allocation2 + $0x48] sm:$0xff] %vm791_vm4, %v744_v10  ;;  %v512_v18 = vadd.f32 %v6534_v14, %v7659_v20  ;;  %v506_v19 = vpop.f32.mrb[11].mxu0  ;;  %905 = vst.msk [vmem:[#allocation3 + $0x78] sm:$0xff] %vm791_vm4, %v7700_v12  ;;  %v7719_v23 = vld [vmem:[#allocation2 + $0x19] sm:$0xff]  ;;  %6774 = vmatprep.subr.bf16.mxu1 %v7397_v7 }
 0x198   :  { %v7705_v17 = vld [vmem:[#allocation2 + $0x21] sm:$0xff]  ;;  %2987 = vst.msk [vmem:[#allocation3 + $0x10] sm:$0xff] %vm791_vm4, %v7702_v16  ;;  %1685 = vrot.lane.b32.xlu1 %v1581_v3, %s7400_s28  ;;  %800 = vst.msk [vmem:[#allocation2 + $0x40] sm:$0xff] %vm791_vm4, %v743_v13  ;;  %v507_v22 = vadd.f32 %v7659_v20, %v506_v19  ;;  %v1268_v43 = vld [vmem:[#allocation2 + $0xa] sm:$0xff] }
 0x199   :  { %2417 = vrot.lane.b32.xlu0 %v7700_v12, %s7398_s8  ;;  %v7716_v21 = vld [vmem:[#allocation2 + $0x20] sm:$0xff]  ;;  %1949 = vst.msk [vmem:[#allocation3 + $0x38] sm:$0xff] %vm791_vm4, %v7705_v17  ;;  %v746_v25 = vmax.f32 %v512_v18, 0.0  ;;  %1948 = vst.msk [vmem:[#allocation3 + $0x20] sm:$0xff] %vm791_vm4, %v7719_v23  ;;  %v3223_v14 = vld [vmem:[#allocation13 + $0xe0] sm:$0xff] }
 0x19a   :  { %904 = vst.msk [vmem:[#allocation3 + $0x60] sm:$0xff] %vm791_vm4, %v7716_v21  ;;  %v745_v28 = vmax.f32 %v507_v22, 0.0  ;;  %v6537_v29 = vpop.f32.mrb[12].mxu0  ;;  %v855_v31 = vld [vmem:[#allocation2 + $0x38] sm:$0xff]  ;;  %v6775_v24 = vpack.c.bf16 %v3224_v15, %v3223_v14 }
 0x19b   :  { %v7728_v32 = vld [vmem:[#allocation2 + $0x2a] sm:$0xff]  ;;  %v7730_v33 = vld [vmem:[#allocation2 + $0x32] sm:$0xff]  ;;  %803 = vst.msk [vmem:[#allocation2 + $0x58] sm:$0xff] %vm791_vm4, %v746_v25  ;;  %v522_v35 = vadd.f32 %v6537_v29, %v7659_v20  ;;  %v516_v36 = vpop.f32.mrb[13].mxu0  ;;  %907 = vst.msk [vmem:[#allocation3 + $0xa8] sm:$0xff] %vm791_vm4, %v855_v31 }
 0x19c   :  { %v7732_v34 = vld [vmem:[#allocation2 + $0x29] sm:$0xff]  ;;  %2988 = vst.msk [vmem:[#allocation3 + $0x28] sm:$0xff] %vm791_vm4, %v7728_v32  ;;  %2989 = vst.msk [vmem:[#allocation3 + $0x40] sm:$0xff] %vm791_vm4, %v7730_v33  ;;  %1059 = vrot.lane.b32.xlu1 %v954_v27, %s7399_s2  ;;  %v7747_v38 = vld [vmem:[#allocation2 + $0x31] sm:$0xff]  ;;  %v517_v39 = vadd.f32 %v7659_v20, %v516_v36  ;;  %6776 = vmatpush1.bf16.msra.mxu1 %v6775_v24 }
 0x19d   :  { %2727 = vrot.lane.b32.xlu0 %v7705_v17, %s7400_s28  ;;  %v7744_v37 = vld [vmem:[#allocation2 + $0x30] sm:$0xff]  ;;  %802 = vst.msk [vmem:[#allocation2 + $0x50] sm:$0xff] %vm791_vm4, %v745_v28  ;;  %1950 = vst.msk [vmem:[#allocation3 + $0x50] sm:$0xff] %vm791_vm4, %v7732_v34  ;;  %v748_v41 = vmax.f32 %v522_v35, 0.0  ;;  %v7770_v53 = vld [vmem:[#allocation2 + $0x1a] sm:$0xff]  ;;  %6777 = vmatprep.subr.bf16.mxu1 %v7397_v7 }
 0x19e   :  { %1951 = vst.msk [vmem:[#allocation3 + $0x68] sm:$0xff] %vm791_vm4, %v7747_v38  ;;  %906 = vst.msk [vmem:[#allocation3 + $0x90] sm:$0xff] %vm791_vm4, %v7744_v37  ;;  %v747_v44 = vmax.f32 %v517_v39, 0.0  ;;  %v6540_v45 = vpop.f32.mrb[14].mxu0  ;;  %v857_v47 = vld [vmem:[#allocation2 + $0x48] sm:$0xff]  ;;  %v7811_v18 = vld [vmem:[#allocation2 + $0x38] sm:$0xff] }
 0x19f   :  { %v7757_v48 = vld [vmem:[#allocation2 + $0x3a] sm:$0xff]  ;;  %v7759_v49 = vld [vmem:[#allocation2 + $0x42] sm:$0xff]  ;;  %v3041_v50 = vld [vmem:[#allocation3 + $0x10] sm:$0xff]  ;;  %805 = vst.msk [vmem:[#allocation2 + $0x68] sm:$0xff] %vm791_vm4, %v748_v41  ;;  %v532_v51 = vadd.f32 %v6540_v45, %v7659_v20  ;;  %v526_v52 = vpop.f32.mrb[15].mxu0 }
 0x1a0   :  { %909 = vst.msk [vmem:[#allocation3 + $0xd8] sm:$0xff] %vm791_vm4, %v857_v47  ;;  %2990 = vst.msk [vmem:[#allocation3 + $0x58] sm:$0xff] %vm791_vm4, %v7757_v48  ;;  %6609 = vmatprep.mubr.msk.f32.mxu0 %vm791_vm4, %v3041_v50  ;;  %1373 = vrot.lane.b32.xlu1 %v1268_v43, %s7398_s8  ;;  %v7772_v54 = vld [vmem:[#allocation2 + $0x39] sm:$0xff]  ;;  %v7775_v55 = vld [vmem:[#allocation2 + $0x41] sm:$0xff]  ;;  %v527_v56 = vadd.f32 %v7659_v20, %v526_v52 }
 0x1a1   :  { %2991 = vst.msk [vmem:[#allocation3 + $0x70] sm:$0xff] %vm791_vm4, %v7759_v49  ;;  %804 = vst.msk [vmem:[#allocation2 + $0x60] sm:$0xff] %vm791_vm4, %v747_v44  ;;  %2105 = vrot.lane.b32.xlu0 %v7770_v53, %s7399_s2  ;;  %v750_v57 = vmax.f32 %v532_v51, 0.0  ;;  %v856_v60 = vld [vmem:[#allocation2 + $0x40] sm:$0xff] }
 0x1a2   :  { %1952 = vst.msk [vmem:[#allocation3 + $0x80] sm:$0xff] %vm791_vm4, %v7772_v54  ;;  %1953 = vst.msk [vmem:[#allocation3 + $0x98] sm:$0xff] %vm791_vm4, %v7775_v55  ;;  %v749_v61 = vmax.f32 %v527_v56, 0.0  ;;  %v6543_v62 = vpop.f32.mrb[16].mxu0  ;;  %v859_v0 = vld [vmem:[#allocation2 + $0x58] sm:$0xff]  ;;  %v3225_v39 = vld [vmem:[#allocation13 + $0xf0] sm:$0xff] }
 0x1a3   :  { %908 = vst.msk [vmem:[#allocation3 + $0xc0] sm:$0xff] %vm791_vm4, %v856_v60  ;;  %v3044_v1 = vld [vmem:[#allocation3 + $0x28] sm:$0xff]  ;;  %v3047_v3 = vld [vmem:[#allocation3 + $0x40] sm:$0xff]  ;;  %807 = vst.msk [vmem:[#allocation2 + $0x78] sm:$0xff] %vm791_vm4, %v750_v57  ;;  %v542_v5 = vadd.f32 %v6543_v62, %v7659_v20  ;;  %v536_v6 = vpop.f32.mrb[17].mxu0  ;;  %v6778_v43 = vpack.c.bf16 %v3226_v40, %v3225_v39 }
 0x1a4   :  { %v7786_v4 = vld [vmem:[#allocation2 + $0x4a] sm:$0xff]  ;;  %911 = vst.msk [vmem:[#allocation3 + $0x108] sm:$0xff] %vm791_vm4, %v859_v0  ;;  %6610 = vmatmul.mubr.msk.f32.vlgmr.msra.gmra.mrb[56].mxu0 %vm791_vm4, %v3044_v1  ;;  %1061 = vrot.lane.b32.xlu1 %v7694_v8, %s7399_s2  ;;  %v7794_v9 = vld [vmem:[#allocation2 + $0x52] sm:$0xff]  ;;  %806 = vst.msk [vmem:[#allocation2 + $0x70] sm:$0xff] %vm791_vm4, %v749_v61  ;;  %v537_v11 = vadd.f32 %v7659_v20, %v536_v6 }
 0x1a5   :  { %2992 = vst.msk [vmem:[#allocation3 + $0x88] sm:$0xff] %vm791_vm4, %v7786_v4  ;;  %v7798_v10 = vld [vmem:[#allocation2 + $0x49] sm:$0xff]  ;;  %2107 = vrot.lane.b32.xlu0 %v7702_v16, %s7399_s2  ;;  %6612 = vmatprep.mubr.msk.f32.mxu0 %vm791_vm4, %v3047_v3  ;;  %2993 = vst.msk [vmem:[#allocation3 + $0xa0] sm:$0xff] %vm791_vm4, %v7794_v9  ;;  %v7807_v8 = vld [vmem:[#allocation2 + $0x51] sm:$0xff]  ;;  %v752_v13 = vmax.f32 %v542_v5, 0.0 }
 0x1a6   :  { %1954 = vst.msk [vmem:[#allocation3 + $0xb0] sm:$0xff] %vm791_vm4, %v7798_v10  ;;  %v751_v19 = vmax.f32 %v537_v11, 0.0  ;;  %v6546_v22 = vpop.f32.mrb[18].mxu0  ;;  %1955 = vst.msk [vmem:[#allocation3 + $0xc8] sm:$0xff] %vm791_vm4, %v7807_v8  ;;  %v858_v25 = vld [vmem:[#allocation2 + $0x50] sm:$0xff]  ;;  %v861_v26 = vld [vmem:[#allocation2 + $0x68] sm:$0xff]  ;;  %6779 = vmatpush1.bf16.msra.mxu1 %v6778_v43 }
 0x1a7   :  { %v3050_v27 = vld [vmem:[#allocation3 + $0x58] sm:$0xff]  ;;  %809 = vst.msk [vmem:[#allocation2 + $0x88] sm:$0xff] %vm791_vm4, %v752_v13  ;;  %v552_v30 = vadd.f32 %v6546_v22, %v7659_v20  ;;  %v546_v31 = vpop.f32.mrb[19].mxu0  ;;  %910 = vst.msk [vmem:[#allocation3 + $0xf0] sm:$0xff] %vm791_vm4, %v858_v25  ;;  %v7920_v40 = vld [vmem:[#allocation2 + $0x48] sm:$0xff] }
 0x1a8   :  { %v3053_v28 = vld [vmem:[#allocation3 + $0x70] sm:$0xff]  ;;  %v7815_v29 = vld [vmem:[#allocation2 + $0x5a] sm:$0xff]  ;;  %913 = vst.msk [vmem:[#allocation3 + $0x138] sm:$0xff] %vm791_vm4, %v861_v26  ;;  %1375 = vrot.lane.b32.xlu1 %v7685_v2, %s7398_s8  ;;  %6613 = vmatmul.mubr.msk.f32.gmra.mrb[58].mxu0 %vm791_vm4, %v3050_v27  ;;  %v7825_v35 = vld [vmem:[#allocation2 + $0x62] sm:$0xff]  ;;  %v547_v36 = vadd.f32 %v7659_v20, %v546_v31 }
 0x1a9   :  { %2994 = vst.msk [vmem:[#allocation3 + $0xb8] sm:$0xff] %vm791_vm4, %v7815_v29  ;;  %808 = vst.msk [vmem:[#allocation2 + $0x80] sm:$0xff] %vm791_vm4, %v751_v19  ;;  %2421 = vrot.lane.b32.xlu0 %v7811_v18, %s7398_s8  ;;  %6615 = vmatprep.mubr.msk.f32.mxu0 %vm791_vm4, %v3053_v28  ;;  %v754_v2 = vmax.f32 %v552_v30, 0.0  ;;  %v1904_v44 = vld [vmem:[#allocation2 + $0x59] sm:$0xff]  ;;  %v1905_v45 = vld [vmem:[#allocation2 + $0x61] sm:$0xff] }
 0x1aa   :  { %2995 = vst.msk [vmem:[#allocation3 + $0xd0] sm:$0xff] %vm791_vm4, %v7825_v35  ;;  %v753_v41 = vmax.f32 %v547_v36, 0.0  ;;  %v6549_v42 = vpop.f32.mrb[20].mxu0  ;;  %1956 = vst.msk [vmem:[#allocation3 + $0xe0] sm:$0xff] %vm791_vm4, %v1904_v44  ;;  %v860_v61 = vld [vmem:[#allocation2 + $0x60] sm:$0xff]  ;;  %v863_v11 = vld [vmem:[#allocation2 + $0x78] sm:$0xff] }
 0x1ab   :  { %v7836_v47 = vld [vmem:[#allocation2 + $0x6a] sm:$0xff]  ;;  %v7838_v50 = vld [vmem:[#allocation2 + $0x72] sm:$0xff]  ;;  %811 = vst.msk [vmem:[#allocation2 + $0x98] sm:$0xff] %vm791_vm4, %v754_v2  ;;  %v562_v51 = vadd.f32 %v6549_v42, %v7659_v20  ;;  %v556_v52 = vpop.f32.mrb[21].mxu0  ;;  %1957 = vst.msk [vmem:[#allocation3 + $0xf8] sm:$0xff] %vm791_vm4, %v1905_v45 }
 0x1ac   :  { %v3056_v46 = vld [vmem:[#allocation3 + $0x88] sm:$0xff]  ;;  %1691 = vrot.lane.b32.xlu1 %v7700_v12, %s7400_s28  ;;  %v3059_v56 = vld [vmem:[#allocation3 + $0xa0] sm:$0xff]  ;;  %2996 = vst.msk [vmem:[#allocation3 + $0xe8] sm:$0xff] %vm791_vm4, %v7836_v47  ;;  %2997 = vst.msk [vmem:[#allocation3 + $0x100] sm:$0xff] %vm791_vm4, %v7838_v50  ;;  %v557_v57 = vadd.f32 %v7659_v20, %v556_v52 }
 0x1ad   :  { %6616 = vmatmul.mubr.msk.f32.gmra.mrb[60].mxu0 %vm791_vm4, %v3056_v46  ;;  %810 = vst.msk [vmem:[#allocation2 + $0x90] sm:$0xff] %vm791_vm4, %v753_v41  ;;  %2729 = vrot.lane.b32.xlu0 %v7732_v34, %s7400_s28  ;;  %v756_v58 = vmax.f32 %v562_v51, 0.0  ;;  %v1906_v12 = vld [vmem:[#allocation2 + $0x69] sm:$0xff]  ;;  %v1907_v59 = vld [vmem:[#allocation2 + $0x71] sm:$0xff]  ;;  %912 = vst.msk [vmem:[#allocation3 + $0x120] sm:$0xff] %vm791_vm4, %v860_v61 }
 0x1ae   :  { %6618 = vmatprep.mubr.msk.f32.mxu0 %vm791_vm4, %v3059_v56  ;;  %v755_v60 = vmax.f32 %v557_v57, 0.0  ;;  %1958 = vst.msk [vmem:[#allocation3 + $0x110] sm:$0xff] %vm791_vm4, %v1906_v12  ;;  %1959 = vst.msk [vmem:[#allocation3 + $0x128] sm:$0xff] %vm791_vm4, %v1907_v59  ;;  %v862_v62 = vld [vmem:[#allocation2 + $0x70] sm:$0xff]  ;;  %v865_v14 = vld [vmem:[#allocation2 + $0x88] sm:$0xff] }
 0x1af   :  { %813 = vst.msk [vmem:[#allocation2 + $0xa8] sm:$0xff] %vm791_vm4, %v756_v58  ;;  %914 = vst.msk [vmem:[#allocation3 + $0x150] sm:$0xff] %vm791_vm4, %v862_v62  ;;  %v7972_v57 = vld [vmem:[#allocation2 + $0x58] sm:$0xff] }
 0x1b0   :  { %v3062_v63 = vld [vmem:[#allocation3 + $0xb8] sm:$0xff]  ;;  %v7861_v1 = vld [vmem:[#allocation2 + $0x82] sm:$0xff]  ;;  %2415 = vrot.lane.b32.xlu1 %v7716_v21, %s7398_s8  ;;  %812 = vst.msk [vmem:[#allocation2 + $0xa0] sm:$0xff] %vm791_vm4, %v755_v60  ;;  %915 = vst.msk [vmem:[#allocation3 + $0x168] sm:$0xff] %vm791_vm4, %v863_v11 }
 0x1b1   :  { %v7859_v0 = vld [vmem:[#allocation2 + $0x7a] sm:$0xff]  ;;  %6619 = vmatmul.mubr.msk.f32.gmra.mrb[62].mxu0 %vm791_vm4, %v3062_v63  ;;  %v3065_v3 = vld [vmem:[#allocation3 + $0xd0] sm:$0xff]  ;;  %2999 = vst.msk [vmem:[#allocation3 + $0x130] sm:$0xff] %vm791_vm4, %v7861_v1  ;;  %2419 = vrot.lane.b32.xlu0 %v7744_v37, %s7398_s8  ;;  %917 = vst.msk [vmem:[#allocation3 + $0x198] sm:$0xff] %vm791_vm4, %v865_v14 }
 0x1b2   :  { %2998 = vst.msk [vmem:[#allocation3 + $0x118] sm:$0xff] %vm791_vm4, %v7859_v0  ;;  %6621 = vmatprep.mubr.msk.f32.mxu0 %vm791_vm4, %v3065_v3  ;;  %v1908_v5 = vld [vmem:[#allocation2 + $0x79] sm:$0xff]  ;;  %v1909_v6 = vld [vmem:[#allocation2 + $0x81] sm:$0xff] }
 0x1b3   :  { %1960 = vst.msk [vmem:[#allocation3 + $0x140] sm:$0xff] %vm791_vm4, %v1908_v5  ;;  %1961 = vst.msk [vmem:[#allocation3 + $0x158] sm:$0xff] %vm791_vm4, %v1909_v6  ;;  %v864_v13 = vld [vmem:[#allocation2 + $0x80] sm:$0xff]  ;;  %v3068_v15 = vld [vmem:[#allocation3 + $0xe8] sm:$0xff] }
 0x1b4   :  { %v3071_v19 = vld [vmem:[#allocation3 + $0x100] sm:$0xff]  ;;  %v7879_v22 = vld [vmem:[#allocation2 + $0x8a] sm:$0xff]  ;;  %916 = vst.msk [vmem:[#allocation3 + $0x180] sm:$0xff] %vm791_vm4, %v864_v13  ;;  %1689 = vrot.lane.b32.xlu1 %v7716_v21, %s7400_s28  ;;  %v7887_v24 = vld [vmem:[#allocation2 + $0x92] sm:$0xff] }
 0x1b5   :  { %6622 = vmatmul.mubr.msk.f32.gmra.mrb[64].mxu0 %vm791_vm4, %v3068_v15  ;;  %3000 = vst.msk [vmem:[#allocation3 + $0x148] sm:$0xff] %vm791_vm4, %v7879_v22  ;;  %v1910_v25 = vld [vmem:[#allocation2 + $0x89] sm:$0xff]  ;;  %2731 = vrot.lane.b32.xlu0 %v7747_v38, %s7400_s28  ;;  %3001 = vst.msk [vmem:[#allocation3 + $0x160] sm:$0xff] %vm791_vm4, %v7887_v24  ;;  %v1911_v30 = vld [vmem:[#allocation2 + $0x91] sm:$0xff] }
 0x1b6   :  { %6624 = vmatprep.mubr.msk.f32.mxu0 %vm791_vm4, %v3071_v19  ;;  %1962 = vst.msk [vmem:[#allocation3 + $0x170] sm:$0xff] %vm791_vm4, %v1910_v25  ;;  %1963 = vst.msk [vmem:[#allocation3 + $0x188] sm:$0xff] %vm791_vm4, %v1911_v30  ;;  %v867_v36 = vld [vmem:[#allocation2 + $0x98] sm:$0xff]  ;;  %v869_v56 = vld [vmem:[#allocation2 + $0xa8] sm:$0xff] }
 0x1b7   :  { %v7897_v27 = vld [vmem:[#allocation2 + $0x9a] sm:$0xff]  ;;  %v7902_v28 = vld [vmem:[#allocation2 + $0xa2] sm:$0xff]  ;;  %919 = vst.msk [vmem:[#allocation3 + $0x1c8] sm:$0xff] %vm791_vm4, %v867_v36  ;;  %921 = vst.msk [vmem:[#allocation3 + $0x1f8] sm:$0xff] %vm791_vm4, %v869_v56 }
 0x1b8   :  { %v3077_v21 = vld [vmem:[#allocation3 + $0x130] sm:$0xff]  ;;  %1063 = vrot.lane.b32.xlu1 %v7719_v23, %s7399_s2  ;;  %3002 = vst.msk [vmem:[#allocation3 + $0x178] sm:$0xff] %vm791_vm4, %v7897_v27  ;;  %3003 = vst.msk [vmem:[#allocation3 + $0x190] sm:$0xff] %vm791_vm4, %v7902_v28  ;;  %v1912_v31 = vld [vmem:[#allocation2 + $0x99] sm:$0xff] }
 0x1b9   :  { %v3074_v26 = vld [vmem:[#allocation3 + $0x118] sm:$0xff]  ;;  %2109 = vrot.lane.b32.xlu0 %v7728_v32, %s7399_s2  ;;  %v866_v23 = vld [vmem:[#allocation2 + $0x90] sm:$0xff]  ;;  %1964 = vst.msk [vmem:[#allocation3 + $0x1a0] sm:$0xff] %vm791_vm4, %v1912_v31  ;;  %v868_v52 = vld [vmem:[#allocation2 + $0xa0] sm:$0xff] }
 0x1ba   :  { %6625 = vmatmul.mubr.msk.f32.gmra.mrb[66].mxu0 %vm791_vm4, %v3074_v26  ;;  %918 = vst.msk [vmem:[#allocation3 + $0x1b0] sm:$0xff] %vm791_vm4, %v866_v23  ;;  %920 = vst.msk [vmem:[#allocation3 + $0x1e0] sm:$0xff] %vm791_vm4, %v868_v52  ;;  %v7996_v30 = vld [vmem:[#allocation2 + $0x50] sm:$0xff] }
 0x1bb   :  { %6627 = vmatprep.mubr.msk.f32.mxu0 %vm791_vm4, %v3077_v21 }
 0x1bc   :  { %v3080_v2 = vld [vmem:[#allocation3 + $0x148] sm:$0xff]  ;;  %1377 = vrot.lane.b32.xlu1 %v7770_v53, %s7398_s8  ;;  %v3083_v39 = vld [vmem:[#allocation3 + $0x160] sm:$0xff]  ;;  %v6552_v53 = vpop.f32.mrb[22].mxu0 }
 0x1bd   :  { %2111 = vrot.lane.b32.xlu0 %v7730_v33, %s7399_s2  ;;  %v572_v42 = vadd.f32 %v6552_v53, %v7659_v20  ;;  %v566_v43 = vpop.f32.mrb[23].mxu0 }
 0x1be   :  { %6628 = vmatmul.mubr.msk.f32.gmra.mrb[68].mxu0 %vm791_vm4, %v3080_v2  ;;  %v567_v44 = vadd.f32 %v7659_v20, %v566_v43  ;;  %v6555_v12 = vpop.f32.mrb[24].mxu0 }
 0x1bf   :  { %6630 = vmatprep.mubr.msk.f32.mxu0 %vm791_vm4, %v3083_v39  ;;  %v3086_v41 = vld [vmem:[#allocation3 + $0x178] sm:$0xff]  ;;  %v758_v45 = vmax.f32 %v572_v42, 0.0  ;;  %v576_v59 = vpop.f32.mrb[25].mxu0 }
 0x1c0   :  { %1065 = vrot.lane.b32.xlu1 %v7705_v17, %s7399_s2  ;;  %v757_v46 = vmax.f32 %v567_v44, 0.0  ;;  %v7938_v17 = vld [vmem:[#allocation2 + $0x40] sm:$0xff]  ;;  %v577_v60 = vadd.f32 %v7659_v20, %v576_v59  ;;  %v6558_v61 = vpop.f32.mrb[26].mxu0 }
 0x1c1   :  { %2425 = vrot.lane.b32.xlu0 %v7920_v40, %s7398_s8  ;;  %815 = vst.msk [vmem:[#allocation2 + $0xb8] sm:$0xff] %vm791_vm4, %v758_v45  ;;  %v592_v63 = vadd.f32 %v6558_v61, %v7659_v20  ;;  %v586_v3 = vpop.f32.mrb[27].mxu0 }
 0x1c2   :  { %6631 = vmatmul.mubr.msk.f32.gmra.mrb[70].mxu0 %vm791_vm4, %v3086_v41  ;;  %814 = vst.msk [vmem:[#allocation2 + $0xb0] sm:$0xff] %vm791_vm4, %v757_v46  ;;  %v587_v5 = vadd.f32 %v7659_v20, %v586_v3  ;;  %v6561_v6 = vpop.f32.mrb[28].mxu0 }
 0x1c3   :  { %v762_v11 = vmax.f32 %v592_v63, 0.0  ;;  %v602_v13 = vadd.f32 %v6561_v6, %v7659_v20  ;;  %v596_v14 = vpop.f32.mrb[29].mxu0 }
 0x1c4   :  { %1379 = vrot.lane.b32.xlu1 %v7702_v16, %s7398_s8  ;;  %v761_v15 = vmax.f32 %v587_v5, 0.0  ;;  %v597_v19 = vadd.f32 %v7659_v20, %v596_v14  ;;  %v6564_v25 = vpop.f32.mrb[30].mxu0 }
 0x1c5   :  { %2733 = vrot.lane.b32.xlu0 %v7772_v54, %s7400_s28  ;;  %819 = vst.msk [vmem:[#allocation2 + $0xd8] sm:$0xff] %vm791_vm4, %v762_v11  ;;  %v612_v26 = vadd.f32 %v6564_v25, %v7659_v20  ;;  %v606_v21 = vpop.f32.mrb[31].mxu0 }
 0x1c6   :  { %818 = vst.msk [vmem:[#allocation2 + $0xd0] sm:$0xff] %vm791_vm4, %v761_v15  ;;  %v763_v31 = vmax.f32 %v597_v19, 0.0  ;;  %v607_v23 = vadd.f32 %v7659_v20, %v606_v21  ;;  %v6567_v36 = vpop.f32.mrb[32].mxu0 }
 0x1c7   :  { %v766_v2 = vmax.f32 %v612_v26, 0.0  ;;  %v622_v39 = vadd.f32 %v6567_v36, %v7659_v20  ;;  %v616_v41 = vpop.f32.mrb[33].mxu0 }
 0x1c8   :  { %1695 = vrot.lane.b32.xlu1 %v7811_v18, %s7400_s28  ;;  %v7956_v18 = vld [vmem:[#allocation2 + $0xa1] sm:$0xff]  ;;  %820 = vst.msk [vmem:[#allocation2 + $0xe0] sm:$0xff] %vm791_vm4, %v763_v31  ;;  %v617_v53 = vadd.f32 %v7659_v20, %v616_v41  ;;  %v6570_v42 = vpop.f32.mrb[34].mxu0 }
 0x1c9   :  { %2423 = vrot.lane.b32.xlu0 %v7938_v17, %s7398_s8  ;;  %v7946_v16 = vld [vmem:[#allocation2 + $0xaa] sm:$0xff]  ;;  %v7948_v51 = vld [vmem:[#allocation2 + $0xb2] sm:$0xff]  ;;  %1965 = vst.msk [vmem:[#allocation3 + $0x1b8] sm:$0xff] %vm791_vm4, %v7956_v18  ;;  %823 = vst.msk [vmem:[#allocation2 + $0xf8] sm:$0xff] %vm791_vm4, %v766_v2  ;;  %v768_v43 = vmax.f32 %v622_v39, 0.0  ;;  %v632_v44 = vadd.f32 %v6570_v42, %v7659_v20  ;;  %v626_v45 = vpop.f32.mrb[35].mxu0 }
 0x1ca   :  { %3004 = vst.msk [vmem:[#allocation3 + $0x1a8] sm:$0xff] %vm791_vm4, %v7946_v16  ;;  %3005 = vst.msk [vmem:[#allocation3 + $0x1c0] sm:$0xff] %vm791_vm4, %v7948_v51  ;;  %v767_v46 = vmax.f32 %v617_v53, 0.0  ;;  %v627_v52 = vadd.f32 %v7659_v20, %v626_v45  ;;  %v6573_v56 = vpop.f32.mrb[36].mxu0  ;;  %v8040_v14 = vld [vmem:[#allocation2 + $0xb1] sm:$0xff] }
 0x1cb   :  { %825 = vst.msk [vmem:[#allocation2 + $0x108] sm:$0xff] %vm791_vm4, %v768_v43  ;;  %v636_v59 = vpop.f32.mrb[37].mxu0  ;;  %1967 = vst.msk [vmem:[#allocation3 + $0x1e8] sm:$0xff] %vm791_vm4, %v8040_v14  ;;  %v870_v36 = vld [vmem:[#allocation2 + $0xb0] sm:$0xff]  ;;  %v871_v2 = vld [vmem:[#allocation2 + $0xb8] sm:$0xff] }
 0x1cc   :  { %1693 = vrot.lane.b32.xlu1 %v7744_v37, %s7400_s28  ;;  %v7960_v37 = vld [vmem:[#allocation2 + $0xa9] sm:$0xff]  ;;  %824 = vst.msk [vmem:[#allocation2 + $0x100] sm:$0xff] %vm791_vm4, %v767_v46  ;;  %922 = vst.msk [vmem:[#allocation3 + $0x210] sm:$0xff] %vm791_vm4, %v870_v36 }
 0x1cd   :  { %2735 = vrot.lane.b32.xlu0 %v7775_v55, %s7400_s28  ;;  %1966 = vst.msk [vmem:[#allocation3 + $0x1d0] sm:$0xff] %vm791_vm4, %v7960_v37  ;;  %v8028_v63 = vld [vmem:[#allocation2 + $0xd2] sm:$0xff]  ;;  %923 = vst.msk [vmem:[#allocation3 + $0x228] sm:$0xff] %vm791_vm4, %v871_v2 }
 0x1ce   :  { %v6576_v61 = vpop.f32.mrb[38].mxu0  ;;  %3009 = vst.msk [vmem:[#allocation3 + $0x220] sm:$0xff] %vm791_vm4, %v8028_v63 }
 0x1cf   :  { %v646_v5 = vpop.f32.mrb[39].mxu0  ;;  %v8044_v15 = vld [vmem:[#allocation2 + $0xda] sm:$0xff] }
 0x1d0   :  { %1067 = vrot.lane.b32.xlu1 %v7732_v34, %s7399_s2  ;;  %v3089_v34 = vld [vmem:[#allocation3 + $0x190] sm:$0xff]  ;;  %v647_v11 = vadd.f32 %v7659_v20, %v646_v5  ;;  %3010 = vst.msk [vmem:[#allocation3 + $0x238] sm:$0xff] %vm791_vm4, %v8044_v15 }
 0x1d1   :  { %2113 = vrot.lane.b32.xlu0 %v7757_v48, %s7399_s2  ;;  %6633 = vmatprep.mubr.msk.f32.mxu0 %vm791_vm4, %v3089_v34  ;;  %v3092_v58 = vld [vmem:[#allocation3 + $0x1a8] sm:$0xff] }
 0x1d2   :  { %6634 = vmatmul.mubr.msk.f32.gmra.mrb[72].mxu0 %vm791_vm4, %v3092_v58  ;;  %v773_v21 = vmax.f32 %v647_v11, 0.0 }
 0x1d3   :  { %v2962_v46 = vld [vmem:[#allocation2 + $0xfa] sm:$0xff] }
 0x1d4   :  { %1381 = vrot.lane.b32.xlu1 %v7728_v32, %s7398_s8  ;;  %v582_v32 = vadd.f32 %v6555_v12, %v7659_v20  ;;  %v770_v12 = vmax.f32 %v632_v44, 0.0  ;;  %830 = vst.msk [vmem:[#allocation2 + $0x130] sm:$0xff] %vm791_vm4, %v773_v21  ;;  %3014 = vst.msk [vmem:[#allocation3 + $0x298] sm:$0xff] %vm791_vm4, %v2962_v46 }
 0x1d5   :  { %2115 = vrot.lane.b32.xlu0 %v7759_v49, %s7399_s2 }
 0x1d6   :  { %v760_v62 = vmax.f32 %v582_v32, 0.0  ;;  %v642_v32 = vadd.f32 %v6573_v56, %v7659_v20  ;;  %827 = vst.msk [vmem:[#allocation2 + $0x118] sm:$0xff] %vm791_vm4, %v770_v12 }
 0x1d8   :  { %1069 = vrot.lane.b32.xlu1 %v7747_v38, %s7399_s2  ;;  %v759_v38 = vmax.f32 %v577_v60, 0.0  ;;  %817 = vst.msk [vmem:[#allocation2 + $0xc8] sm:$0xff] %vm791_vm4, %v760_v62  ;;  %v637_v60 = vadd.f32 %v7659_v20, %v636_v59  ;;  %v772_v3 = vmax.f32 %v642_v32, 0.0  ;;  %v3095_v32 = vld [vmem:[#allocation3 + $0x1c0] sm:$0xff]  ;;  %v8079_v59 = vld [vmem:[#allocation2 + $0x68] sm:$0xff] }
 0x1d9   :  { %2429 = vrot.lane.b32.xlu0 %v7972_v57, %s7398_s8  ;;  %6636 = vmatprep.mubr.msk.f32.mxu0 %vm791_vm4, %v3095_v32 }
 0x1da   :  { %816 = vst.msk [vmem:[#allocation2 + $0xc0] sm:$0xff] %vm791_vm4, %v759_v38  ;;  %v652_v38 = vadd.f32 %v6576_v61, %v7659_v20  ;;  %v771_v6 = vmax.f32 %v637_v60, 0.0  ;;  %829 = vst.msk [vmem:[#allocation2 + $0x128] sm:$0xff] %vm791_vm4, %v772_v3 }
 0x1dc   :  { %1383 = vrot.lane.b32.xlu1 %v7730_v33, %s7398_s8  ;;  %v764_v33 = vmax.f32 %v602_v13, 0.0  ;;  %v6579_v13 = vpop.f32.mrb[40].mxu0  ;;  %v774_v19 = vmax.f32 %v652_v38, 0.0  ;;  %828 = vst.msk [vmem:[#allocation2 + $0x120] sm:$0xff] %vm791_vm4, %v771_v6 }
 0x1dd   :  { %2737 = vrot.lane.b32.xlu0 %v7798_v10, %s7400_s28  ;;  %v662_v25 = vadd.f32 %v6579_v13, %v7659_v20 }
 0x1de   :  { %821 = vst.msk [vmem:[#allocation2 + $0xe8] sm:$0xff] %vm791_vm4, %v764_v33  ;;  %v656_v33 = vpop.f32.mrb[41].mxu0  ;;  %831 = vst.msk [vmem:[#allocation2 + $0x138] sm:$0xff] %vm791_vm4, %v774_v19 }
 0x1df   :  { %v8026_v62 = vld [vmem:[#allocation2 + $0xca] sm:$0xff]  ;;  %v657_v31 = vadd.f32 %v7659_v20, %v656_v33 }
 0x1e0   :  { %1699 = vrot.lane.b32.xlu1 %v7920_v40, %s7400_s28  ;;  %v765_v40 = vmax.f32 %v607_v23, 0.0  ;;  %3008 = vst.msk [vmem:[#allocation3 + $0x208] sm:$0xff] %vm791_vm4, %v8026_v62  ;;  %v6582_v23 = vpop.f32.mrb[42].mxu0 }
 0x1e1   :  { %2427 = vrot.lane.b32.xlu0 %v7996_v30, %s7398_s8  ;;  %v8014_v34 = vld [vmem:[#allocation2 + $0xba] sm:$0xff]  ;;  %v8016_v58 = vld [vmem:[#allocation2 + $0xc2] sm:$0xff]  ;;  %v672_v53 = vadd.f32 %v6582_v23, %v7659_v20  ;;  %v666_v42 = vpop.f32.mrb[43].mxu0  ;;  %v775_v43 = vmax.f32 %v657_v31, 0.0 }
 0x1e2   :  { %822 = vst.msk [vmem:[#allocation2 + $0xf0] sm:$0xff] %vm791_vm4, %v765_v40  ;;  %3006 = vst.msk [vmem:[#allocation3 + $0x1d8] sm:$0xff] %vm791_vm4, %v8014_v34  ;;  %v8050_v26 = vld [vmem:[#allocation2 + $0xb9] sm:$0xff]  ;;  %v776_v40 = vmax.f32 %v662_v25, 0.0  ;;  %v667_v44 = vadd.f32 %v7659_v20, %v666_v42  ;;  %v6585_v45 = vpop.f32.mrb[44].mxu0  ;;  %v2968_v42 = vld [vmem:[#allocation2 + $0x12a] sm:$0xff] }
 0x1e3   :  { %3007 = vst.msk [vmem:[#allocation3 + $0x1f0] sm:$0xff] %vm791_vm4, %v8016_v58  ;;  %1968 = vst.msk [vmem:[#allocation3 + $0x200] sm:$0xff] %vm791_vm4, %v8050_v26  ;;  %v778_v56 = vmax.f32 %v672_v53, 0.0  ;;  %v676_v12 = vpop.f32.mrb[45].mxu0  ;;  %v2966_v21 = vld [vmem:[#allocation2 + $0x11a] sm:$0xff]  ;;  %v2967_v31 = vld [vmem:[#allocation2 + $0x122] sm:$0xff] }
 0x1e4   :  { %1697 = vrot.lane.b32.xlu1 %v7938_v17, %s7400_s28  ;;  %v769_v17 = vmax.f32 %v627_v52, 0.0  ;;  %v2963_v52 = vld [vmem:[#allocation2 + $0x102] sm:$0xff]  ;;  %833 = vst.msk [vmem:[#allocation2 + $0x148] sm:$0xff] %vm791_vm4, %v776_v40  ;;  %832 = vst.msk [vmem:[#allocation2 + $0x140] sm:$0xff] %vm791_vm4, %v775_v43  ;;  %v677_v60 = vadd.f32 %v7659_v20, %v676_v12  ;;  %v6588_v61 = vpop.f32.mrb[46].mxu0 }
 0x1e5   :  { %2739 = vrot.lane.b32.xlu0 %v7807_v8, %s7400_s28  ;;  %3015 = vst.msk [vmem:[#allocation3 + $0x2b0] sm:$0xff] %vm791_vm4, %v2963_v52  ;;  %835 = vst.msk [vmem:[#allocation2 + $0x158] sm:$0xff] %vm791_vm4, %v778_v56  ;;  %v692_v6 = vadd.f32 %v6588_v61, %v7659_v20  ;;  %v686_v11 = vpop.f32.mrb[47].mxu0  ;;  %v2969_v43 = vld [vmem:[#allocation2 + $0x132] sm:$0xff] }
 0x1e6   :  { %826 = vst.msk [vmem:[#allocation2 + $0x110] sm:$0xff] %vm791_vm4, %v769_v17  ;;  %v777_v17 = vmax.f32 %v667_v44, 0.0  ;;  %v779_v19 = vmax.f32 %v677_v60, 0.0  ;;  %v687_v25 = vadd.f32 %v7659_v20, %v686_v11  ;;  %v6591_v33 = vpop.f32.mrb[48].mxu0  ;;  %3018 = vst.msk [vmem:[#allocation3 + $0x2f8] sm:$0xff] %vm791_vm4, %v2966_v21 }
 0x1e7   :  { %v702_v23 = vadd.f32 %v6591_v33, %v7659_v20  ;;  %v696_v36 = vpop.f32.mrb[49].mxu0  ;;  %3019 = vst.msk [vmem:[#allocation3 + $0x310] sm:$0xff] %vm791_vm4, %v2967_v31  ;;  %3020 = vst.msk [vmem:[#allocation3 + $0x328] sm:$0xff] %vm791_vm4, %v2968_v42 }
 0x1e8   :  { %1071 = vrot.lane.b32.xlu1 %v7772_v54, %s7399_s2  ;;  %v8046_v54 = vld [vmem:[#allocation2 + $0xe2] sm:$0xff]  ;;  %834 = vst.msk [vmem:[#allocation2 + $0x150] sm:$0xff] %vm791_vm4, %v777_v17  ;;  %836 = vst.msk [vmem:[#allocation2 + $0x160] sm:$0xff] %vm791_vm4, %v779_v19  ;;  %v781_v2 = vmax.f32 %v687_v25, 0.0  ;;  %v6594_v53 = vpop.f32.mrb[50].mxu0 }
 0x1e9   :  { %2117 = vrot.lane.b32.xlu0 %v7786_v4, %s7399_s2  ;;  %3011 = vst.msk [vmem:[#allocation3 + $0x250] sm:$0xff] %vm791_vm4, %v8046_v54  ;;  %v8062_v39 = vld [vmem:[#allocation2 + $0xea] sm:$0xff]  ;;  %v2961_v41 = vld [vmem:[#allocation2 + $0xf2] sm:$0xff]  ;;  %v784_v44 = vmax.f32 %v702_v23, 0.0  ;;  %v706_v46 = vpop.f32.mrb[51].mxu0  ;;  %3021 = vst.msk [vmem:[#allocation3 + $0x340] sm:$0xff] %vm791_vm4, %v2969_v43 }
 0x1ea   :  { %3012 = vst.msk [vmem:[#allocation3 + $0x268] sm:$0xff] %vm791_vm4, %v8062_v39  ;;  %3013 = vst.msk [vmem:[#allocation3 + $0x280] sm:$0xff] %vm791_vm4, %v2961_v41  ;;  %v3098_v13 = vld [vmem:[#allocation3 + $0x1d8] sm:$0xff]  ;;  %v7125_v41 = vld [vmem:[#allocation12] ss:$0 sm:$0xff] }
 0x1eb   :  { %6637 = vmatmul.mubr.msk.f32.gmra.mrb[74].mxu0 %vm791_vm4, %v3098_v13  ;;  %v697_v40 = vadd.f32 %v7125_v41, %v696_v36  ;;  %838 = vst.msk [vmem:[#allocation2 + $0x170] sm:$0xff] %vm791_vm4, %v781_v2  ;;  %v707_v56 = vadd.f32 %v7125_v41, %v706_v46  ;;  %v2970_v12 = vld [vmem:[#allocation2 + $0x13a] sm:$0xff]  ;;  %v2971_v32 = vld [vmem:[#allocation2 + $0x142] sm:$0xff]  ;;  %841 = vst.msk [vmem:[#allocation2 + $0x188] sm:$0xff] %vm791_vm4, %v784_v44 }
 0x1ec   :  { %1385 = vrot.lane.b32.xlu1 %v7757_v48, %s7398_s8  ;;  %v682_v48 = vadd.f32 %v6585_v45, %v7659_v20  ;;  %v712_v45 = vadd.f32 %v7125_v41, %v6594_v53  ;;  %v8105_v20 = vld [vmem:[#allocation2 + $0x59] sm:$0xff]  ;;  %3022 = vst.msk [vmem:[#allocation3 + $0x358] sm:$0xff] %vm791_vm4, %v2970_v12  ;;  %3023 = vst.msk [vmem:[#allocation3 + $0x370] sm:$0xff] %vm791_vm4, %v2971_v32  ;;  %v8148_v44 = vld [vmem:[#allocation2 + $0xc1] sm:$0xff] }
 0x1ed   :  { %2119 = vrot.lane.b32.xlu0 %v7794_v9, %s7399_s2  ;;  %v2964_v3 = vld [vmem:[#allocation2 + $0x10a] sm:$0xff]  ;;  %v2965_v38 = vld [vmem:[#allocation2 + $0x112] sm:$0xff]  ;;  %v783_v52 = vmax.f32 %v697_v40, 0.0  ;;  %v785_v61 = vmax.f32 %v707_v56, 0.0  ;;  %v8119_v25 = vld [vmem:[#allocation2 + $0x60] sm:$0xff]  ;;  %1969 = vst.msk [vmem:[#allocation3 + $0x218] sm:$0xff] %vm791_vm4, %v8148_v44 }
 0x1ee   :  { %v780_v5 = vmax.f32 %v682_v48, 0.0  ;;  %3016 = vst.msk [vmem:[#allocation3 + $0x2c8] sm:$0xff] %vm791_vm4, %v2964_v3  ;;  %3017 = vst.msk [vmem:[#allocation3 + $0x2e0] sm:$0xff] %vm791_vm4, %v2965_v38  ;;  %v6597_v48 = vpop.f32.mrb[52].mxu0  ;;  %v786_v17 = vmax.f32 %v712_v45, 0.0 }
 0x1ef   :  { %v716_v60 = vpop.f32.mrb[53].mxu0  ;;  %840 = vst.msk [vmem:[#allocation2 + $0x180] sm:$0xff] %vm791_vm4, %v783_v52  ;;  %842 = vst.msk [vmem:[#allocation2 + $0x190] sm:$0xff] %vm791_vm4, %v785_v61  ;;  %v2974_v31 = vld [vmem:[#allocation2 + $0x15a] sm:$0xff]  ;;  %v8152_v52 = vld [vmem:[#allocation2 + $0xc9] sm:$0xff] }
 0x1f0   :  { %1073 = vrot.lane.b32.xlu1 %v7775_v55, %s7399_s2  ;;  %837 = vst.msk [vmem:[#allocation2 + $0x168] sm:$0xff] %vm791_vm4, %v780_v5  ;;  %v782_v55 = vmax.f32 %v692_v6, 0.0  ;;  %v717_v3 = vadd.f32 %v7125_v41, %v716_v60  ;;  %v6600_v38 = vpop.f32.mrb[54].mxu0  ;;  %v2972_v5 = vld [vmem:[#allocation2 + $0x14a] sm:$0xff]  ;;  %v2973_v6 = vld [vmem:[#allocation2 + $0x152] sm:$0xff]  ;;  %843 = vst.msk [vmem:[#allocation2 + $0x198] sm:$0xff] %vm791_vm4, %v786_v17 }
 0x1f1   :  { %2433 = vrot.lane.b32.xlu0 %v8079_v59, %s7398_s8  ;;  %v732_v13 = vadd.f32 %v7125_v41, %v6600_v38  ;;  %v726_v19 = vpop.f32.mrb[55].mxu0  ;;  %3024 = vst.msk [vmem:[#allocation3 + $0x388] sm:$0xff] %vm791_vm4, %v2972_v5  ;;  %3025 = vst.msk [vmem:[#allocation3 + $0x3a0] sm:$0xff] %vm791_vm4, %v2973_v6  ;;  %v3101_v17 = vld [vmem:[#allocation3 + $0x1f0] sm:$0xff]  ;;  %v8171_v61 = vld [vmem:[#allocation2 + $0x78] sm:$0xff] }
 0x1f2   :  { %839 = vst.msk [vmem:[#allocation2 + $0x178] sm:$0xff] %vm791_vm4, %v782_v55  ;;  %v787_v33 = vmax.f32 %v717_v3, 0.0  ;;  %v727_v21 = vadd.f32 %v7125_v41, %v726_v19  ;;  %3026 = vst.msk [vmem:[#allocation3 + $0x3b8] sm:$0xff] %vm791_vm4, %v2974_v31  ;;  %6639 = vmatprep.mubr.msk.f32.mxu0 %vm791_vm4, %v3101_v17  ;;  %v3104_v3 = vld [vmem:[#allocation3 + $0x208] sm:$0xff]  ;;  %v874_v31 = vld [vmem:[#allocation2 + $0xd0] sm:$0xff] }
 0x1f3   :  { %v790_v23 = vmax.f32 %v732_v13, 0.0  ;;  %1970 = vst.msk [vmem:[#allocation3 + $0x230] sm:$0xff] %vm791_vm4, %v8152_v52  ;;  %6640 = vmatmul.mubr.msk.f32.gmra.mrb[76].mxu0 %vm791_vm4, %v3104_v3  ;;  %v8183_v5 = vld [vmem:[#allocation2 + $0x69] sm:$0xff]  ;;  %926 = vst.msk [vmem:[#allocation3 + $0x270] sm:$0xff] %vm791_vm4, %v874_v31 }
 0x1f4   :  { %1387 = vrot.lane.b32.xlu1 %v7759_v49, %s7398_s8  ;;  %v722_v49 = vadd.f32 %v7125_v41, %v6597_v48  ;;  %844 = vst.msk [vmem:[#allocation2 + $0x1a0] sm:$0xff] %vm791_vm4, %v787_v33  ;;  %v8133_v41 = vld [vmem:[#allocation2 + $0x61] sm:$0xff]  ;;  %v8263_v3 = vld [vmem:[#allocation2 + $0xe9] sm:$0xff] }
 0x1f5   :  { %2741 = vrot.lane.b32.xlu0 %v8105_v20, %s7400_s28  ;;  %847 = vst.msk [vmem:[#allocation2 + $0x1b8] sm:$0xff] %vm791_vm4, %v790_v23  ;;  %v873_v48 = vld [vmem:[#allocation2 + $0xc8] sm:$0xff]  ;;  %v875_v23 = vld [vmem:[#allocation2 + $0xd8] sm:$0xff]  ;;  %1974 = vst.msk [vmem:[#allocation3 + $0x290] sm:$0xff] %vm791_vm4, %v8263_v3 }
 0x1f6   :  { %v788_v11 = vmax.f32 %v722_v49, 0.0  ;;  %v2979_v53 = vld [vmem:[#allocation2 + $0x182] sm:$0xff]  ;;  %v2980_v42 = vld [vmem:[#allocation2 + $0x18a] sm:$0xff]  ;;  %925 = vst.msk [vmem:[#allocation3 + $0x258] sm:$0xff] %vm791_vm4, %v873_v48  ;;  %927 = vst.msk [vmem:[#allocation3 + $0x288] sm:$0xff] %vm791_vm4, %v875_v23 }
 0x1f7   :  { %v2975_v55 = vld [vmem:[#allocation2 + $0x162] sm:$0xff]  ;;  %v2976_v36 = vld [vmem:[#allocation2 + $0x16a] sm:$0xff]  ;;  %3031 = vst.msk [vmem:[#allocation3 + $0x430] sm:$0xff] %vm791_vm4, %v2979_v53  ;;  %v2981_v43 = vld [vmem:[#allocation2 + $0x192] sm:$0xff] }
 0x1f8   :  { %1703 = vrot.lane.b32.xlu1 %v7972_v57, %s7400_s28  ;;  %845 = vst.msk [vmem:[#allocation2 + $0x1a8] sm:$0xff] %vm791_vm4, %v788_v11  ;;  %3027 = vst.msk [vmem:[#allocation3 + $0x3d0] sm:$0xff] %vm791_vm4, %v2975_v55  ;;  %v789_v57 = vmax.f32 %v727_v21, 0.0  ;;  %v2321_v11 = vld [vmem:[#allocation2 + $0x70] sm:$0xff]  ;;  %v3110_v53 = vld [vmem:[#allocation3 + $0x238] sm:$0xff] }
 0x1f9   :  { %2431 = vrot.lane.b32.xlu0 %v8119_v25, %s7398_s8  ;;  %v2977_v2 = vld [vmem:[#allocation2 + $0x172] sm:$0xff]  ;;  %3028 = vst.msk [vmem:[#allocation3 + $0x3e8] sm:$0xff] %vm791_vm4, %v2976_v36  ;;  %v2978_v40 = vld [vmem:[#allocation2 + $0x17a] sm:$0xff]  ;;  %3032 = vst.msk [vmem:[#allocation3 + $0x448] sm:$0xff] %vm791_vm4, %v2980_v42 }
 0x1fa   :  { %3029 = vst.msk [vmem:[#allocation3 + $0x400] sm:$0xff] %vm791_vm4, %v2977_v2  ;;  %846 = vst.msk [vmem:[#allocation2 + $0x1b0] sm:$0xff] %vm791_vm4, %v789_v57  ;;  %v8205_v21 = vld [vmem:[#allocation2 + $0xd1] sm:$0xff]  ;;  %v3107_v57 = vld [vmem:[#allocation3 + $0x220] sm:$0xff] }
 0x1fb   :  { %3030 = vst.msk [vmem:[#allocation3 + $0x418] sm:$0xff] %vm791_vm4, %v2978_v40  ;;  %3033 = vst.msk [vmem:[#allocation3 + $0x460] sm:$0xff] %vm791_vm4, %v2981_v43  ;;  %v2982_v45 = vld [vmem:[#allocation2 + $0x19a] sm:$0xff]  ;;  %v8222_v2 = vld [vmem:[#allocation2 + $0x88] sm:$0xff]  ;;  %6642 = vmatprep.mubr.msk.f32.mxu0 %vm791_vm4, %v3107_v57 }
 0x1fc   :  { %1701 = vrot.lane.b32.xlu1 %v7996_v30, %s7400_s28  ;;  %v8146_v30 = vld [vmem:[#allocation2 + $0xc0] sm:$0xff]  ;;  %3034 = vst.msk [vmem:[#allocation3 + $0x478] sm:$0xff] %vm791_vm4, %v2982_v45  ;;  %1971 = vst.msk [vmem:[#allocation3 + $0x248] sm:$0xff] %vm791_vm4, %v8205_v21  ;;  %6643 = vmatmul.mubr.msk.f32.gmra.mrb[78].mxu0 %vm791_vm4, %v3110_v53  ;;  %v8291_v23 = vld [vmem:[#allocation2 + $0x89] sm:$0xff] }
 0x1fd   :  { %2743 = vrot.lane.b32.xlu0 %v8133_v41, %s7400_s28  ;;  %924 = vst.msk [vmem:[#allocation3 + $0x240] sm:$0xff] %vm791_vm4, %v8146_v30  ;;  %v8236_v43 = vld [vmem:[#allocation2 + $0x79] sm:$0xff]  ;;  %v8251_v48 = vld [vmem:[#allocation2 + $0x81] sm:$0xff] }
 0x1ff   :  { %v2983_v46 = vld [vmem:[#allocation2 + $0x1a2] sm:$0xff] }
 0x200   :  { %1075 = vrot.lane.b32.xlu1 %v7798_v10, %s7399_s2  ;;  %3035 = vst.msk [vmem:[#allocation3 + $0x490] sm:$0xff] %vm791_vm4, %v2983_v46  ;;  %v8244_v46 = vld [vmem:[#allocation2 + $0x80] sm:$0xff] }
 0x201   :  { %2121 = vrot.lane.b32.xlu0 %v7815_v29, %s7399_s2  ;;  %v2984_v12 = vld [vmem:[#allocation2 + $0x1aa] sm:$0xff]  ;;  %v2985_v32 = vld [vmem:[#allocation2 + $0x1b2] sm:$0xff] }
 0x202   :  { %v1372_v10 = vpop.permute.xlu1 %1371  ;;  %3036 = vst.msk [vmem:[#allocation3 + $0x4a8] sm:$0xff] %vm791_vm4, %v2984_v12  ;;  %3037 = vst.msk [vmem:[#allocation3 + $0x4c0] sm:$0xff] %vm791_vm4, %v2985_v32 }
 0x203   :  { %v1058_v56 = vpop.permute.xlu0 %1057 }
 0x204   :  { %1214 = vst.msk [vmem:[#allocation3] sm:$0xff] %vm1213_vm5, %v1058_v56  ;;  %1389 = vrot.lane.b32.xlu1 %v7786_v4, %s7398_s8 }
 0x205   :  { %1528 = vst.msk [vmem:[#allocation3] sm:$0xff] %vm1527_vm6, %v1372_v10  ;;  %2123 = vrot.lane.b32.xlu0 %v7825_v35, %s7399_s2 }
 0x206   :  { %v1688_v49 = vpop.permute.xlu1 %1687 }
 0x207   :  { %v2104_v60 = vpop.permute.xlu0 %2103 }
 0x208   :  { %2259 = vst.msk [vmem:[#allocation3 + $0x8] sm:$0xff] %vm1213_vm5, %v2104_v60  ;;  %1077 = vrot.lane.b32.xlu1 %v7807_v8, %s7399_s2  ;;  %v8257_v60 = vld [vmem:[#allocation2 + $0xe1] sm:$0xff] }
 0x209   :  { %2437 = vrot.lane.b32.xlu0 %v8171_v61, %s7398_s8  ;;  %1973 = vst.msk [vmem:[#allocation3 + $0x278] sm:$0xff] %vm791_vm4, %v8257_v60 }
 0x20a   :  { %v1686_v4 = vpop.permute.xlu1 %1685 }
 0x20b   :  { %v2418_v38 = vpop.permute.xlu0 %2417  ;;  %1842 = vst.msk [vmem:[#allocation3] sm:$0xff] %vm1841_vm7, %v1686_v4 }
 0x20c   :  { %1391 = vrot.lane.b32.xlu1 %v7794_v9, %s7398_s8  ;;  %v8196_v9 = vld [vmem:[#allocation2 + $0x71] sm:$0xff] }
 0x20d   :  { %2745 = vrot.lane.b32.xlu0 %v8183_v5, %s7400_s28 }
 0x20e   :  { %v1060_v6 = vpop.permute.xlu1 %1059 }
 0x20f   :  { %v2728_v8 = vpop.permute.xlu0 %2727  ;;  %1215 = vst.msk [vmem:[#allocation3 + $0x18] sm:$0xff] %vm1213_vm5, %v1060_v6  ;;  %v877_v6 = vld [vmem:[#allocation2 + $0xe8] sm:$0xff] }
 0x210   :  { %1707 = vrot.lane.b32.xlu1 %v8079_v59, %s7400_s28  ;;  %929 = vst.msk [vmem:[#allocation3 + $0x2b8] sm:$0xff] %vm791_vm4, %v877_v6 }
 0x211   :  { %2435 = vrot.lane.b32.xlu0 %v2321_v11, %s7398_s8 }
 0x212   :  { %v1374_v13 = vpop.permute.xlu1 %1373  ;;  %v3039_v12 = vld [vmem:[#allocation3] sm:$0xff] }
 0x213   :  { %1529 = vst.msk [vmem:[#allocation3 + $0x18] sm:$0xff] %vm1527_vm6, %v1374_v13  ;;  %v2106_v19 = vpop.permute.xlu0 %2105  ;;  %v3113_v13 = vld [vmem:[#allocation3 + $0x250] sm:$0xff] }
 0x214   :  { %1843 = vst.msk [vmem:[#allocation3 + $0x18] sm:$0xff] %vm1841_vm7, %v1688_v49  ;;  %1705 = vrot.lane.b32.xlu1 %v8119_v25, %s7400_s28  ;;  %v8209_v25 = vld [vmem:[#allocation2 + $0xd9] sm:$0xff]  ;;  %6645 = vmatprep.mubr.msk.f32.mxu0 %vm791_vm4, %v3113_v13 }
 0x215   :  { %2260 = vst.msk [vmem:[#allocation3 + $0x20] sm:$0xff] %vm1213_vm5, %v2106_v19  ;;  %2747 = vrot.lane.b32.xlu0 %v8196_v9, %s7400_s28  ;;  %v3116_v19 = vld [vmem:[#allocation3 + $0x268] sm:$0xff] }
 0x216   :  { %2572 = vst.msk [vmem:[#allocation3 + $0x20] sm:$0xff] %vm1527_vm6, %v2418_v38  ;;  %v1062_v59 = vpop.permute.xlu1 %1061  ;;  %v876_v38 = vld [vmem:[#allocation2 + $0xe0] sm:$0xff]  ;;  %6646 = vmatmul.mubr.msk.f32.gmra.mrb[80].mxu0 %vm791_vm4, %v3116_v19 }
 0x217   :  { %1216 = vst.msk [vmem:[#allocation3 + $0x30] sm:$0xff] %vm1213_vm5, %v1062_v59  ;;  %v2108_v33 = vpop.permute.xlu0 %2107 }
 0x218   :  { %2261 = vst.msk [vmem:[#allocation3 + $0x38] sm:$0xff] %vm1213_vm5, %v2108_v33  ;;  %1079 = vrot.lane.b32.xlu1 %v8105_v20, %s7399_s2  ;;  %v8278_v33 = vld [vmem:[#allocation2 + $0x98] sm:$0xff] }
 0x219   :  { %2125 = vrot.lane.b32.xlu0 %v7836_v47, %s7399_s2  ;;  %1972 = vst.msk [vmem:[#allocation3 + $0x260] sm:$0xff] %vm791_vm4, %v8209_v25  ;;  %928 = vst.msk [vmem:[#allocation3 + $0x2a0] sm:$0xff] %vm791_vm4, %v876_v38 }
 0x21a   :  { %v1376_v55 = vpop.permute.xlu1 %1375 }
 0x21b   :  { %1530 = vst.msk [vmem:[#allocation3 + $0x30] sm:$0xff] %vm1527_vm6, %v1376_v55  ;;  %v2422_v20 = vpop.permute.xlu0 %2421 }
 0x21c   :  { %1393 = vrot.lane.b32.xlu1 %v7815_v29, %s7398_s8 }
 0x21d   :  { %2127 = vrot.lane.b32.xlu0 %v7838_v50, %s7399_s2 }
 0x21e   :  { %v1692_v36 = vpop.permute.xlu1 %1691 }
 0x21f   :  { %v2730_v40 = vpop.permute.xlu0 %2729 }
 0x220   :  { %2884 = vst.msk [vmem:[#allocation3 + $0x20] sm:$0xff] %vm1841_vm7, %v2730_v40  ;;  %1081 = vrot.lane.b32.xlu1 %v8133_v41, %s7399_s2 }
 0x221   :  { %2441 = vrot.lane.b32.xlu0 %v8222_v2, %s7398_s8 }
 0x222   :  { %v2416_v29 = vpop.permute.xlu1 %2415 }
 0x223   :  { %2571 = vst.msk [vmem:[#allocation3 + $0x8] sm:$0xff] %vm1527_vm6, %v2416_v29  ;;  %v2420_v42 = vpop.permute.xlu0 %2419  ;;  %v8304_v29 = vld [vmem:[#allocation2 + $0xf1] sm:$0xff] }
 0x224   :  { %2883 = vst.msk [vmem:[#allocation3 + $0x8] sm:$0xff] %vm1841_vm7, %v2728_v8  ;;  %1395 = vrot.lane.b32.xlu1 %v7825_v35, %s7398_s8 }
 0x225   :  { %2573 = vst.msk [vmem:[#allocation3 + $0x38] sm:$0xff] %vm1527_vm6, %v2420_v42  ;;  %2749 = vrot.lane.b32.xlu0 %v8236_v43, %s7400_s28  ;;  %v8309_v42 = vld [vmem:[#allocation2 + $0x91] sm:$0xff] }
 0x226   :  { %v1690_v41 = vpop.permute.xlu1 %1689  ;;  %1975 = vst.msk [vmem:[#allocation3 + $0x2a8] sm:$0xff] %vm791_vm4, %v8304_v29 }
 0x227   :  { %1844 = vst.msk [vmem:[#allocation3 + $0x30] sm:$0xff] %vm1841_vm7, %v1690_v41  ;;  %v2732_v45 = vpop.permute.xlu0 %2731  ;;  %v3043_v32 = vld [vmem:[#allocation3 + $0x20] sm:$0xff]  ;;  %v878_v41 = vld [vmem:[#allocation2 + $0xf0] sm:$0xff] }
 0x228   :  { %2885 = vst.msk [vmem:[#allocation3 + $0x38] sm:$0xff] %vm1841_vm7, %v2732_v45  ;;  %1711 = vrot.lane.b32.xlu1 %v8171_v61, %s7400_s28  ;;  %v3042_v61 = vld [vmem:[#allocation3 + $0x18] sm:$0xff] }
 0x229   :  { %2439 = vrot.lane.b32.xlu0 %v8244_v46, %s7398_s8  ;;  %v879_v45 = vld [vmem:[#allocation2 + $0xf8] sm:$0xff]  ;;  %930 = vst.msk [vmem:[#allocation3 + $0x2d0] sm:$0xff] %vm791_vm4, %v878_v41 }
 0x22a   :  { %v1064_v35 = vpop.permute.xlu1 %1063  ;;  %931 = vst.msk [vmem:[#allocation3 + $0x2e8] sm:$0xff] %vm791_vm4, %v879_v45  ;;  %v8390_v41 = vld [vmem:[#allocation2 + $0xb8] sm:$0xff] }
 0x22b   :  { %1217 = vst.msk [vmem:[#allocation3 + $0x48] sm:$0xff] %vm1213_vm5, %v1064_v35  ;;  %v2110_v10 = vpop.permute.xlu0 %2109  ;;  %v3040_v56 = vld [vmem:[#allocation3 + $0x8] sm:$0xff] }
 0x22c   :  { %2262 = vst.msk [vmem:[#allocation3 + $0x50] sm:$0xff] %vm1213_vm5, %v2110_v10  ;;  %1709 = vrot.lane.b32.xlu1 %v2321_v11, %s7400_s28  ;;  %3458 = vmatprep.mubr.f32.mxu1 %v3040_v56 }
 0x22d   :  { %2574 = vst.msk [vmem:[#allocation3 + $0x50] sm:$0xff] %vm1527_vm6, %v2422_v20  ;;  %2751 = vrot.lane.b32.xlu0 %v8251_v48, %s7400_s28  ;;  %3459 = vmatmul.mubr.f32.vlgmr.msra.gmra.mrb[0].mxu1 %v3039_v12  ;;  %v3119_v12 = vld [vmem:[#allocation3 + $0x280] sm:$0xff] }
 0x22e   :  { %v1378_v17 = vpop.permute.xlu1 %1377  ;;  %3463 = vmatprep.mubr.f32.mxu1 %v3043_v32  ;;  %v3045_v11 = vld [vmem:[#allocation3 + $0x30] sm:$0xff]  ;;  %v3122_v32 = vld [vmem:[#allocation3 + $0x298] sm:$0xff]  ;;  %6648 = vmatprep.mubr.msk.f32.mxu0 %vm791_vm4, %v3119_v12 }
 0x22f   :  { %1531 = vst.msk [vmem:[#allocation3 + $0x48] sm:$0xff] %vm1527_vm6, %v1378_v17  ;;  %v2112_v49 = vpop.permute.xlu0 %2111  ;;  %v3046_v4 = vld [vmem:[#allocation3 + $0x38] sm:$0xff]  ;;  %6649 = vmatmul.mubr.msk.f32.gmra.mrb[82].mxu0 %vm791_vm4, %v3122_v32 }
 0x230   :  { %1845 = vst.msk [vmem:[#allocation3 + $0x48] sm:$0xff] %vm1841_vm7, %v1692_v36  ;;  %1083 = vrot.lane.b32.xlu1 %v8183_v5, %s7399_s2  ;;  %v8299_v36 = vld [vmem:[#allocation2 + $0x90] sm:$0xff] }
 0x231   :  { %2263 = vst.msk [vmem:[#allocation3 + $0x68] sm:$0xff] %vm1213_vm5, %v2112_v49  ;;  %2129 = vrot.lane.b32.xlu0 %v7859_v0, %s7399_s2  ;;  %3464 = vmatmul.mubr.f32.gmra.mrb[2].mxu1 %v3042_v61  ;;  %v8336_v61 = vld [vmem:[#allocation2 + $0xa8] sm:$0xff] }
 0x232   :  { %v1066_v8 = vpop.permute.xlu1 %1065  ;;  %3468 = vmatprep.mubr.f32.mxu1 %v3046_v4 }
 0x233   :  { %1218 = vst.msk [vmem:[#allocation3 + $0x60] sm:$0xff] %vm1213_vm5, %v1066_v8  ;;  %v2426_v5 = vpop.permute.xlu0 %2425 }
 0x234   :  { %1397 = vrot.lane.b32.xlu1 %v7836_v47, %s7398_s8 }
 0x235   :  { %2131 = vrot.lane.b32.xlu0 %v7861_v1, %s7399_s2  ;;  %3469 = vmatmul.mubr.f32.gmra.mrb[4].mxu1 %v3045_v11  ;;  %v8355_v11 = vld [vmem:[#allocation2 + $0xa0] sm:$0xff] }
 0x236   :  { %v1380_v59 = vpop.permute.xlu1 %1379 }
 0x237   :  { %1532 = vst.msk [vmem:[#allocation3 + $0x60] sm:$0xff] %vm1527_vm6, %v1380_v59  ;;  %v2734_v31 = vpop.permute.xlu0 %2733  ;;  %v3048_v40 = vld [vmem:[#allocation3 + $0x48] sm:$0xff] }
 0x238   :  { %2886 = vst.msk [vmem:[#allocation3 + $0x50] sm:$0xff] %vm1841_vm7, %v2734_v31  ;;  %1085 = vrot.lane.b32.xlu1 %v8196_v9, %s7399_s2  ;;  %v8360_v59 = vld [vmem:[#allocation2 + $0x101] sm:$0xff]  ;;  %v8365_v31 = vld [vmem:[#allocation2 + $0x109] sm:$0xff] }
 0x239   :  { %2445 = vrot.lane.b32.xlu0 %v8278_v33, %s7398_s8  ;;  %1977 = vst.msk [vmem:[#allocation3 + $0x2d8] sm:$0xff] %vm791_vm4, %v8360_v59  ;;  %1978 = vst.msk [vmem:[#allocation3 + $0x2f0] sm:$0xff] %vm791_vm4, %v8365_v31 }
 0x23a   :  { %v1696_v47 = vpop.permute.xlu1 %1695 }
 0x23b   :  { %v2424_v55 = vpop.permute.xlu0 %2423 }
 0x23c   :  { %2575 = vst.msk [vmem:[#allocation3 + $0x68] sm:$0xff] %vm1527_vm6, %v2424_v55  ;;  %1399 = vrot.lane.b32.xlu1 %v7838_v50, %s7398_s8 }
 0x23d   :  { %2753 = vrot.lane.b32.xlu0 %v8291_v23, %s7400_s28 }
 0x23e   :  { %v1694_v20 = vpop.permute.xlu1 %1693 }
 0x23f   :  { %1846 = vst.msk [vmem:[#allocation3 + $0x60] sm:$0xff] %vm1841_vm7, %v1694_v20  ;;  %v2736_v57 = vpop.permute.xlu0 %2735  ;;  %v3049_v9 = vld [vmem:[#allocation3 + $0x50] sm:$0xff] }
 0x240   :  { %2887 = vst.msk [vmem:[#allocation3 + $0x68] sm:$0xff] %vm1841_vm7, %v2736_v57  ;;  %3473 = vmatprep.mubr.f32.mxu1 %v3049_v9  ;;  %1715 = vrot.lane.b32.xlu1 %v8222_v2, %s7400_s28  ;;  %v8311_v2 = vld [vmem:[#allocation2 + $0xf9] sm:$0xff] }
 0x241   :  { %2443 = vrot.lane.b32.xlu0 %v8299_v36, %s7398_s8  ;;  %3474 = vmatmul.mubr.f32.gmra.mrb[6].mxu1 %v3048_v40  ;;  %1976 = vst.msk [vmem:[#allocation3 + $0x2c0] sm:$0xff] %vm791_vm4, %v8311_v2  ;;  %v3128_v40 = vld [vmem:[#allocation3 + $0x2c8] sm:$0xff] }
 0x242   :  { %v1068_v50 = vpop.permute.xlu1 %1067 }
 0x243   :  { %1219 = vst.msk [vmem:[#allocation3 + $0x78] sm:$0xff] %vm1213_vm5, %v1068_v50  ;;  %v2114_v53 = vpop.permute.xlu0 %2113 }
 0x244   :  { %2264 = vst.msk [vmem:[#allocation3 + $0x80] sm:$0xff] %vm1213_vm5, %v2114_v53  ;;  %1713 = vrot.lane.b32.xlu1 %v8244_v46, %s7400_s28 }
 0x245   :  { %2576 = vst.msk [vmem:[#allocation3 + $0x80] sm:$0xff] %vm1527_vm6, %v2426_v5  ;;  %2755 = vrot.lane.b32.xlu0 %v8309_v42, %s7400_s28 }
 0x246   :  { %v1382_v35 = vpop.permute.xlu1 %1381  ;;  %v3051_v10 = vld [vmem:[#allocation3 + $0x60] sm:$0xff] }
 0x247   :  { %1533 = vst.msk [vmem:[#allocation3 + $0x78] sm:$0xff] %vm1527_vm6, %v1382_v35  ;;  %v2116_v46 = vpop.permute.xlu0 %2115  ;;  %v3052_v56 = vld [vmem:[#allocation3 + $0x68] sm:$0xff] }
 0x248   :  { %1847 = vst.msk [vmem:[#allocation3 + $0x78] sm:$0xff] %vm1841_vm7, %v1696_v47  ;;  %3478 = vmatprep.mubr.f32.mxu1 %v3052_v56  ;;  %1087 = vrot.lane.b32.xlu1 %v8236_v43, %s7399_s2  ;;  %v881_v47 = vld [vmem:[#allocation2 + $0x108] sm:$0xff] }
 0x249   :  { %2265 = vst.msk [vmem:[#allocation3 + $0x98] sm:$0xff] %vm1213_vm5, %v2116_v46  ;;  %2133 = vrot.lane.b32.xlu0 %v7879_v22, %s7399_s2  ;;  %3479 = vmatmul.mubr.f32.gmra.mrb[8].mxu1 %v3051_v10 }
 0x24a   :  { %v1070_v17 = vpop.permute.xlu1 %1069  ;;  %933 = vst.msk [vmem:[#allocation3 + $0x318] sm:$0xff] %vm791_vm4, %v881_v47 }
 0x24b   :  { %1220 = vst.msk [vmem:[#allocation3 + $0x90] sm:$0xff] %vm1213_vm5, %v1070_v17  ;;  %v2430_v49 = vpop.permute.xlu0 %2429  ;;  %v8415_v17 = vld [vmem:[#allocation2 + $0x119] sm:$0xff] }
 0x24c   :  { %1401 = vrot.lane.b32.xlu1 %v7859_v0, %s7398_s8  ;;  %v8347_v0 = vld [vmem:[#allocation2 + $0x99] sm:$0xff]  ;;  %1980 = vst.msk [vmem:[#allocation3 + $0x320] sm:$0xff] %vm791_vm4, %v8415_v17 }
 0x24d   :  { %2135 = vrot.lane.b32.xlu0 %v7887_v24, %s7399_s2 }
 0x24e   :  { %v1384_v43 = vpop.permute.xlu1 %1383 }
 0x24f   :  { %1534 = vst.msk [vmem:[#allocation3 + $0x90] sm:$0xff] %vm1527_vm6, %v1384_v43  ;;  %v2738_v4 = vpop.permute.xlu0 %2737  ;;  %v3054_v13 = vld [vmem:[#allocation3 + $0x78] sm:$0xff]  ;;  %v882_v43 = vld [vmem:[#allocation2 + $0x110] sm:$0xff] }
 0x250   :  { %2888 = vst.msk [vmem:[#allocation3 + $0x80] sm:$0xff] %vm1841_vm7, %v2738_v4  ;;  %1089 = vrot.lane.b32.xlu1 %v8251_v48, %s7399_s2 }
 0x251   :  { %2449 = vrot.lane.b32.xlu0 %v8336_v61, %s7398_s8  ;;  %934 = vst.msk [vmem:[#allocation3 + $0x330] sm:$0xff] %vm791_vm4, %v882_v43 }
 0x252   :  { %v1700_v38 = vpop.permute.xlu1 %1699 }
 0x253   :  { %v2428_v6 = vpop.permute.xlu0 %2427 }
 0x254   :  { %2577 = vst.msk [vmem:[#allocation3 + $0x98] sm:$0xff] %vm1527_vm6, %v2428_v6  ;;  %1403 = vrot.lane.b32.xlu1 %v7861_v1, %s7398_s8 }
 0x255   :  { %2757 = vrot.lane.b32.xlu0 %v8347_v0, %s7400_s28 }
 0x256   :  { %v1698_v8 = vpop.permute.xlu1 %1697 }
 0x257   :  { %1848 = vst.msk [vmem:[#allocation3 + $0x90] sm:$0xff] %vm1841_vm7, %v1698_v8  ;;  %v2740_v5 = vpop.permute.xlu0 %2739  ;;  %v3055_v48 = vld [vmem:[#allocation3 + $0x80] sm:$0xff] }
 0x258   :  { %2889 = vst.msk [vmem:[#allocation3 + $0x98] sm:$0xff] %vm1841_vm7, %v2740_v5  ;;  %3483 = vmatprep.mubr.f32.mxu1 %v3055_v48  ;;  %1719 = vrot.lane.b32.xlu1 %v8278_v33, %s7400_s28  ;;  %v880_v33 = vld [vmem:[#allocation2 + $0x100] sm:$0xff] }
 0x259   :  { %2447 = vrot.lane.b32.xlu0 %v8355_v11, %s7398_s8  ;;  %3484 = vmatmul.mubr.f32.gmra.mrb[10].mxu1 %v3054_v13  ;;  %932 = vst.msk [vmem:[#allocation3 + $0x300] sm:$0xff] %vm791_vm4, %v880_v33  ;;  %v3134_v13 = vld [vmem:[#allocation3 + $0x2f8] sm:$0xff] }
 0x25a   :  { %v1072_v1 = vpop.permute.xlu1 %1071 }
 0x25b   :  { %1221 = vst.msk [vmem:[#allocation3 + $0xa8] sm:$0xff] %vm1213_vm5, %v1072_v1  ;;  %v2118_v19 = vpop.permute.xlu0 %2117 }
 0x25c   :  { %2266 = vst.msk [vmem:[#allocation3 + $0xb0] sm:$0xff] %vm1213_vm5, %v2118_v19  ;;  %1717 = vrot.lane.b32.xlu1 %v8299_v36, %s7400_s28  ;;  %v3125_v36 = vld [vmem:[#allocation3 + $0x2b0] sm:$0xff] }
 0x25d   :  { %2578 = vst.msk [vmem:[#allocation3 + $0xb0] sm:$0xff] %vm1527_vm6, %v2430_v49  ;;  %2759 = vrot.lane.b32.xlu0 %v7956_v18, %s7400_s28  ;;  %6651 = vmatprep.mubr.msk.f32.mxu0 %vm791_vm4, %v3125_v36  ;;  %v1927_v49 = vld [vmem:[#allocation2 + $0x111] sm:$0xff] }
 0x25e   :  { %v1386_v55 = vpop.permute.xlu1 %1385  ;;  %v3057_v20 = vld [vmem:[#allocation3 + $0x90] sm:$0xff]  ;;  %6652 = vmatmul.mubr.msk.f32.gmra.mrb[84].mxu0 %vm791_vm4, %v3128_v40  ;;  %1979 = vst.msk [vmem:[#allocation3 + $0x308] sm:$0xff] %vm791_vm4, %v1927_v49 }
 0x25f   :  { %1535 = vst.msk [vmem:[#allocation3 + $0xa8] sm:$0xff] %vm1527_vm6, %v1386_v55  ;;  %v2120_v57 = vpop.permute.xlu0 %2119  ;;  %v3058_v9 = vld [vmem:[#allocation3 + $0x98] sm:$0xff]  ;;  %v8447_v55 = vld [vmem:[#allocation2 + $0xc8] sm:$0xff] }
 0x260   :  { %1849 = vst.msk [vmem:[#allocation3 + $0xa8] sm:$0xff] %vm1841_vm7, %v1700_v38  ;;  %3488 = vmatprep.mubr.f32.mxu1 %v3058_v9  ;;  %1091 = vrot.lane.b32.xlu1 %v8291_v23, %s7399_s2 }
 0x261   :  { %2267 = vst.msk [vmem:[#allocation3 + $0xc8] sm:$0xff] %vm1213_vm5, %v2120_v57  ;;  %2137 = vrot.lane.b32.xlu0 %v7897_v27, %s7399_s2  ;;  %3489 = vmatmul.mubr.f32.gmra.mrb[12].mxu1 %v3057_v20 }
 0x262   :  { %v1074_v50 = vpop.permute.xlu1 %1073 }
 0x263   :  { %1222 = vst.msk [vmem:[#allocation3 + $0xc0] sm:$0xff] %vm1213_vm5, %v1074_v50  ;;  %v2434_v53 = vpop.permute.xlu0 %2433 }
 0x264   :  { %1405 = vrot.lane.b32.xlu1 %v7879_v22, %s7398_s8 }
 0x265   :  { %2139 = vrot.lane.b32.xlu0 %v7902_v28, %s7399_s2 }
 0x266   :  { %v1388_v23 = vpop.permute.xlu1 %1387 }
 0x267   :  { %1536 = vst.msk [vmem:[#allocation3 + $0xc0] sm:$0xff] %vm1527_vm6, %v1388_v23  ;;  %v2742_v45 = vpop.permute.xlu0 %2741  ;;  %v3060_v12 = vld [vmem:[#allocation3 + $0xa8] sm:$0xff] }
 0x268   :  { %2890 = vst.msk [vmem:[#allocation3 + $0xb0] sm:$0xff] %vm1841_vm7, %v2742_v45  ;;  %1093 = vrot.lane.b32.xlu1 %v8309_v42, %s7399_s2  ;;  %v8407_v42 = vld [vmem:[#allocation2 + $0xb0] sm:$0xff] }
 0x269   :  { %2453 = vrot.lane.b32.xlu0 %v8390_v41, %s7398_s8 }
 0x26a   :  { %v1704_v35 = vpop.permute.xlu1 %1703 }
 0x26b   :  { %v2432_v10 = vpop.permute.xlu0 %2431 }
 0x26c   :  { %2579 = vst.msk [vmem:[#allocation3 + $0xc8] sm:$0xff] %vm1527_vm6, %v2432_v10  ;;  %1407 = vrot.lane.b32.xlu1 %v7887_v24, %s7398_s8 }
 0x26d   :  { %2761 = vrot.lane.b32.xlu0 %v7960_v37, %s7400_s28 }
 0x26e   :  { %v1702_v22 = vpop.permute.xlu1 %1701 }
 0x26f   :  { %1850 = vst.msk [vmem:[#allocation3 + $0xc0] sm:$0xff] %vm1841_vm7, %v1702_v22  ;;  %v2744_v46 = vpop.permute.xlu0 %2743  ;;  %v3061_v56 = vld [vmem:[#allocation3 + $0xb0] sm:$0xff] }
 0x270   :  { %2891 = vst.msk [vmem:[#allocation3 + $0xc8] sm:$0xff] %vm1841_vm7, %v2744_v46  ;;  %3493 = vmatprep.mubr.f32.mxu1 %v3061_v56  ;;  %1723 = vrot.lane.b32.xlu1 %v8336_v61, %s7400_s28  ;;  %v883_v61 = vld [vmem:[#allocation2 + $0x118] sm:$0xff]  ;;  %v8481_v56 = vld [vmem:[#allocation2 + $0x121] sm:$0xff] }
 0x271   :  { %2451 = vrot.lane.b32.xlu0 %v8407_v42, %s7398_s8  ;;  %3494 = vmatmul.mubr.f32.gmra.mrb[14].mxu1 %v3060_v12  ;;  %935 = vst.msk [vmem:[#allocation3 + $0x348] sm:$0xff] %vm791_vm4, %v883_v61  ;;  %v8488_v12 = vld [vmem:[#allocation2 + $0x129] sm:$0xff]  ;;  %1981 = vst.msk [vmem:[#allocation3 + $0x338] sm:$0xff] %vm791_vm4, %v8481_v56 }
 0x272   :  { %v1076_v24 = vpop.permute.xlu1 %1075  ;;  %1982 = vst.msk [vmem:[#allocation3 + $0x350] sm:$0xff] %vm791_vm4, %v8488_v12 }
 0x273   :  { %1223 = vst.msk [vmem:[#allocation3 + $0xd8] sm:$0xff] %vm1213_vm5, %v1076_v24  ;;  %v2122_v32 = vpop.permute.xlu0 %2121  ;;  %v884_v24 = vld [vmem:[#allocation2 + $0x120] sm:$0xff] }
 0x274   :  { %2268 = vst.msk [vmem:[#allocation3 + $0xe0] sm:$0xff] %vm1213_vm5, %v2122_v32  ;;  %1721 = vrot.lane.b32.xlu1 %v8355_v11, %s7400_s28  ;;  %v3131_v11 = vld [vmem:[#allocation3 + $0x2e0] sm:$0xff]  ;;  %v885_v32 = vld [vmem:[#allocation2 + $0x128] sm:$0xff] }
 0x275   :  { %2580 = vst.msk [vmem:[#allocation3 + $0xe0] sm:$0xff] %vm1527_vm6, %v2434_v53  ;;  %2763 = vrot.lane.b32.xlu0 %v8040_v14, %s7400_s28  ;;  %6654 = vmatprep.mubr.msk.f32.mxu0 %vm791_vm4, %v3131_v11  ;;  %v3140_v11 = vld [vmem:[#allocation3 + $0x328] sm:$0xff] }
 0x276   :  { %v1390_v4 = vpop.permute.xlu1 %1389  ;;  %v3063_v38 = vld [vmem:[#allocation3 + $0xc0] sm:$0xff]  ;;  %6655 = vmatmul.mubr.msk.f32.gmra.mrb[86].mxu0 %vm791_vm4, %v3134_v13  ;;  %936 = vst.msk [vmem:[#allocation3 + $0x360] sm:$0xff] %vm791_vm4, %v884_v24  ;;  %937 = vst.msk [vmem:[#allocation3 + $0x378] sm:$0xff] %vm791_vm4, %v885_v32  ;;  %v887_v24 = vld [vmem:[#allocation2 + $0x138] sm:$0xff] }
 0x277   :  { %1537 = vst.msk [vmem:[#allocation3 + $0xd8] sm:$0xff] %vm1527_vm6, %v1390_v4  ;;  %v2124_v6 = vpop.permute.xlu0 %2123  ;;  %v3064_v8 = vld [vmem:[#allocation3 + $0xc8] sm:$0xff]  ;;  %v8426_v5 = vpop.f32.mrb[56].mxu0 }
 0x278   :  { %1851 = vst.msk [vmem:[#allocation3 + $0xd8] sm:$0xff] %vm1841_vm7, %v1704_v35  ;;  %3498 = vmatprep.mubr.f32.mxu1 %v3064_v8  ;;  %v8430_v48 = vpop.f32.mrb[57].mxu0  ;;  %1095 = vrot.lane.b32.xlu1 %v8347_v0, %s7399_s2 }
 0x279   :  { %2269 = vst.msk [vmem:[#allocation3 + $0xf8] sm:$0xff] %vm1213_vm5, %v2124_v6  ;;  %2141 = vrot.lane.b32.xlu0 %v7946_v16, %s7399_s2  ;;  %3499 = vmatmul.mubr.f32.gmra.mrb[16].mxu1 %v3063_v38  ;;  %v3137_v6 = vld [vmem:[#allocation3 + $0x310] sm:$0xff] }
 0x27a   :  { %v1078_v1 = vpop.permute.xlu1 %1077  ;;  %6657 = vmatprep.mubr.msk.f32.mxu0 %vm791_vm4, %v3137_v6  ;;  %939 = vst.msk [vmem:[#allocation3 + $0x3a8] sm:$0xff] %vm791_vm4, %v887_v24  ;;  %v3146_v6 = vld [vmem:[#allocation3 + $0x358] sm:$0xff] }
 0x27b   :  { %1224 = vst.msk [vmem:[#allocation3 + $0xf0] sm:$0xff] %vm1213_vm5, %v1078_v1  ;;  %v2438_v19 = vpop.permute.xlu0 %2437  ;;  %v8438_v33 = vpop.f32.mrb[58].mxu0  ;;  %6658 = vmatmul.mubr.msk.f32.gmra.mrb[88].mxu0 %vm791_vm4, %v3140_v11 }
 0x27c   :  { %1409 = vrot.lane.b32.xlu1 %v7897_v27, %s7398_s8  ;;  %v8443_v0 = vpop.f32.mrb[59].mxu0 }
 0x27d   :  { %2143 = vrot.lane.b32.xlu0 %v7948_v51, %s7399_s2 }
 0x27e   :  { %v1392_v47 = vpop.permute.xlu1 %1391 }
 0x27f   :  { %1538 = vst.msk [vmem:[#allocation3 + $0xf0] sm:$0xff] %vm1527_vm6, %v1392_v47  ;;  %v2746_v20 = vpop.permute.xlu0 %2745  ;;  %v3066_v35 = vld [vmem:[#allocation3 + $0xd8] sm:$0xff] }
 0x280   :  { %v8450_v57 = vpop.f32.mrb[60].mxu0  ;;  %2892 = vst.msk [vmem:[#allocation3 + $0xe0] sm:$0xff] %vm1841_vm7, %v2746_v20  ;;  %1097 = vrot.lane.b32.xlu1 %v7956_v18, %s7399_s2  ;;  %v8521_v47 = vld [vmem:[#allocation2 + $0xd8] sm:$0xff] }
 0x281   :  { %v8455_v9 = vpop.f32.mrb[61].mxu0  ;;  %2457 = vrot.lane.b32.xlu0 %v8447_v55, %s7398_s8 }
 0x282   :  { %v1708_v27 = vpop.permute.xlu1 %1707 }
 0x283   :  { %v2436_v36 = vpop.permute.xlu0 %2435 }
 0x284   :  { %v8459_v40 = vpop.f32.mrb[62].mxu0  ;;  %2581 = vst.msk [vmem:[#allocation3 + $0xf8] sm:$0xff] %vm1527_vm6, %v2436_v36  ;;  %1411 = vrot.lane.b32.xlu1 %v7902_v28, %s7398_s8 }
 0x285   :  { %v8464_v50 = vpop.f32.mrb[63].mxu0  ;;  %2765 = vrot.lane.b32.xlu0 %v8050_v26, %s7400_s28 }
 0x286   :  { %v1706_v18 = vpop.permute.xlu1 %1705 }
 0x287   :  { %1852 = vst.msk [vmem:[#allocation3 + $0xf0] sm:$0xff] %vm1841_vm7, %v1706_v18  ;;  %v2748_v53 = vpop.permute.xlu0 %2747  ;;  %v3067_v23 = vld [vmem:[#allocation3 + $0xe0] sm:$0xff] }
 0x288   :  { %v8469_v45 = vpop.f32.mrb[64].mxu0  ;;  %2893 = vst.msk [vmem:[#allocation3 + $0xf8] sm:$0xff] %vm1841_vm7, %v2748_v53  ;;  %3503 = vmatprep.mubr.f32.mxu1 %v3067_v23  ;;  %1727 = vrot.lane.b32.xlu1 %v8390_v41, %s7400_s28 }
 0x289   :  { %v8474_v28 = vpop.f32.mrb[65].mxu0  ;;  %2455 = vrot.lane.b32.xlu0 %v8146_v30, %s7398_s8  ;;  %3504 = vmatmul.mubr.f32.gmra.mrb[18].mxu1 %v3066_v35 }
 0x28a   :  { %v1080_v10 = vpop.permute.xlu1 %1079 }
 0x28b   :  { %1225 = vst.msk [vmem:[#allocation3 + $0x108] sm:$0xff] %vm1213_vm5, %v1080_v10  ;;  %v2126_v22 = vpop.permute.xlu0 %2125  ;;  %v8540_v10 = vld [vmem:[#allocation2 + $0x131] sm:$0xff] }
 0x28c   :  { %2270 = vst.msk [vmem:[#allocation3 + $0x110] sm:$0xff] %vm1213_vm5, %v2126_v22  ;;  %1725 = vrot.lane.b32.xlu1 %v8407_v42, %s7400_s28  ;;  %v8545_v22 = vld [vmem:[#allocation2 + $0x139] sm:$0xff] }
 0x28d   :  { %v8479_v46 = vpop.f32.mrb[66].mxu0  ;;  %2582 = vst.msk [vmem:[#allocation3 + $0x110] sm:$0xff] %vm1527_vm6, %v2438_v19  ;;  %2767 = vrot.lane.b32.xlu0 %v8148_v44, %s7400_s28 }
 0x28e   :  { %v8486_v41 = vpop.f32.mrb[67].mxu0  ;;  %v1394_v49 = vpop.permute.xlu1 %1393  ;;  %v3069_v43 = vld [vmem:[#allocation3 + $0xf0] sm:$0xff]  ;;  %1983 = vst.msk [vmem:[#allocation3 + $0x368] sm:$0xff] %vm791_vm4, %v8540_v10  ;;  %1984 = vst.msk [vmem:[#allocation3 + $0x380] sm:$0xff] %vm791_vm4, %v8545_v22 }
 0x28f   :  { %1539 = vst.msk [vmem:[#allocation3 + $0x108] sm:$0xff] %vm1527_vm6, %v1394_v49  ;;  %v2128_v42 = vpop.permute.xlu0 %2127  ;;  %v3070_v61 = vld [vmem:[#allocation3 + $0xf8] sm:$0xff] }
 0x290   :  { %1853 = vst.msk [vmem:[#allocation3 + $0x108] sm:$0xff] %vm1841_vm7, %v1708_v27  ;;  %3508 = vmatprep.mubr.f32.mxu1 %v3070_v61  ;;  %1099 = vrot.lane.b32.xlu1 %v7960_v37, %s7399_s2 }
 0x291   :  { %v8500_v4 = vpop.f32.mrb[68].mxu0  ;;  %2271 = vst.msk [vmem:[#allocation3 + $0x128] sm:$0xff] %vm1213_vm5, %v2128_v42  ;;  %2145 = vrot.lane.b32.xlu0 %v8014_v34, %s7399_s2  ;;  %3509 = vmatmul.mubr.f32.gmra.mrb[20].mxu1 %v3069_v43  ;;  %v3143_v42 = vld [vmem:[#allocation3 + $0x340] sm:$0xff] }
 0x292   :  { %v8506_v38 = vpop.f32.mrb[69].mxu0  ;;  %v1082_v8 = vpop.permute.xlu1 %1081  ;;  %6660 = vmatprep.mubr.msk.f32.mxu0 %vm791_vm4, %v3143_v42 }
 0x293   :  { %1226 = vst.msk [vmem:[#allocation3 + $0x120] sm:$0xff] %vm1213_vm5, %v1082_v8  ;;  %v2442_v13 = vpop.permute.xlu0 %2441  ;;  %6661 = vmatmul.mubr.msk.f32.gmra.mrb[90].mxu0 %vm791_vm4, %v3146_v6 }
 0x294   :  { %1413 = vrot.lane.b32.xlu1 %v7946_v16, %s7398_s8 }
 0x295   :  { %v8512_v1 = vpop.f32.mrb[70].mxu0  ;;  %2147 = vrot.lane.b32.xlu0 %v8016_v58, %s7399_s2 }
 0x296   :  { %v8517_v37 = vpop.f32.mrb[71].mxu0  ;;  %v1396_v19 = vpop.permute.xlu1 %1395 }
 0x297   :  { %1540 = vst.msk [vmem:[#allocation3 + $0x120] sm:$0xff] %vm1527_vm6, %v1396_v19  ;;  %v2750_v20 = vpop.permute.xlu0 %2749  ;;  %v3072_v23 = vld [vmem:[#allocation3 + $0x108] sm:$0xff] }
 0x298   :  { %2894 = vst.msk [vmem:[#allocation3 + $0x110] sm:$0xff] %vm1841_vm7, %v2750_v20  ;;  %1101 = vrot.lane.b32.xlu1 %v8040_v14, %s7399_s2  ;;  %v2333_v14 = vld [vmem:[#allocation2 + $0xd0] sm:$0xff] }
 0x299   :  { %2461 = vrot.lane.b32.xlu0 %v8521_v47, %s7398_s8 }
 0x29a   :  { %v1712_v16 = vpop.permute.xlu1 %1711 }
 0x29b   :  { %v2440_v27 = vpop.permute.xlu0 %2439 }
 0x29c   :  { %2583 = vst.msk [vmem:[#allocation3 + $0x128] sm:$0xff] %vm1527_vm6, %v2440_v27  ;;  %1415 = vrot.lane.b32.xlu1 %v7948_v51, %s7398_s8 }
 0x29d   :  { %2769 = vrot.lane.b32.xlu0 %v8152_v52, %s7400_s28 }
 0x29e   :  { %v1710_v36 = vpop.permute.xlu1 %1709 }
 0x29f   :  { %1854 = vst.msk [vmem:[#allocation3 + $0x120] sm:$0xff] %vm1841_vm7, %v1710_v36  ;;  %v2752_v18 = vpop.permute.xlu0 %2751  ;;  %v3073_v53 = vld [vmem:[#allocation3 + $0x110] sm:$0xff] }
 0x2a0   :  { %2895 = vst.msk [vmem:[#allocation3 + $0x128] sm:$0xff] %vm1841_vm7, %v2752_v18  ;;  %3513 = vmatprep.mubr.f32.mxu1 %v3073_v53  ;;  %1731 = vrot.lane.b32.xlu1 %v8447_v55, %s7400_s28  ;;  %v886_v55 = vld [vmem:[#allocation2 + $0x130] sm:$0xff] }
 0x2a1   :  { %2459 = vrot.lane.b32.xlu0 %v2333_v14, %s7398_s8  ;;  %3514 = vmatmul.mubr.f32.gmra.mrb[22].mxu1 %v3072_v23  ;;  %938 = vst.msk [vmem:[#allocation3 + $0x390] sm:$0xff] %vm791_vm4, %v886_v55  ;;  %v8593_v23 = vld [vmem:[#allocation2 + $0x141] sm:$0xff] }
 0x2a2   :  { %v1084_v51 = vpop.permute.xlu1 %1083  ;;  %1985 = vst.msk [vmem:[#allocation3 + $0x398] sm:$0xff] %vm791_vm4, %v8593_v23 }
 0x2a3   :  { %1227 = vst.msk [vmem:[#allocation3 + $0x138] sm:$0xff] %vm1213_vm5, %v1084_v51  ;;  %v2130_v35 = vpop.permute.xlu0 %2129  ;;  %v8598_v51 = vld [vmem:[#allocation2 + $0x149] sm:$0xff] }
 0x2a4   :  { %2272 = vst.msk [vmem:[#allocation3 + $0x140] sm:$0xff] %vm1213_vm5, %v2130_v35  ;;  %1729 = vrot.lane.b32.xlu1 %v8146_v30, %s7400_s28  ;;  %v889_v35 = vld [vmem:[#allocation2 + $0x148] sm:$0xff] }
 0x2a5   :  { %2584 = vst.msk [vmem:[#allocation3 + $0x140] sm:$0xff] %vm1527_vm6, %v2442_v13  ;;  %2771 = vrot.lane.b32.xlu0 %v8205_v21, %s7400_s28  ;;  %v8565_v11 = vpop.f32.mrb[72].mxu0 }
 0x2a6   :  { %v1398_v32 = vpop.permute.xlu1 %1397  ;;  %v3075_v49 = vld [vmem:[#allocation3 + $0x120] sm:$0xff]  ;;  %1986 = vst.msk [vmem:[#allocation3 + $0x3b0] sm:$0xff] %vm791_vm4, %v8598_v51  ;;  %941 = vst.msk [vmem:[#allocation3 + $0x3d8] sm:$0xff] %vm791_vm4, %v889_v35 }
 0x2a7   :  { %1541 = vst.msk [vmem:[#allocation3 + $0x138] sm:$0xff] %vm1527_vm6, %v1398_v32  ;;  %v2132_v30 = vpop.permute.xlu0 %2131  ;;  %v3076_v43 = vld [vmem:[#allocation3 + $0x128] sm:$0xff]  ;;  %v1294_v35 = vld [vmem:[#allocation2 + $0xda] sm:$0xff] }
 0x2a8   :  { %1855 = vst.msk [vmem:[#allocation3 + $0x138] sm:$0xff] %vm1841_vm7, %v1712_v16  ;;  %3518 = vmatprep.mubr.f32.mxu1 %v3076_v43  ;;  %1103 = vrot.lane.b32.xlu1 %v8050_v26, %s7399_s2  ;;  %v8570_v26 = vpop.f32.mrb[73].mxu0  ;;  %v3152_v43 = vld [vmem:[#allocation3 + $0x388] sm:$0xff] }
 0x2a9   :  { %2273 = vst.msk [vmem:[#allocation3 + $0x158] sm:$0xff] %vm1213_vm5, %v2132_v30  ;;  %2149 = vrot.lane.b32.xlu0 %v8026_v62, %s7399_s2  ;;  %3519 = vmatmul.mubr.f32.gmra.mrb[24].mxu1 %v3075_v49  ;;  %v3149_v49 = vld [vmem:[#allocation3 + $0x370] sm:$0xff] }
 0x2aa   :  { %v1086_v61 = vpop.permute.xlu1 %1085  ;;  %6663 = vmatprep.mubr.msk.f32.mxu0 %vm791_vm4, %v3149_v49 }
 0x2ab   :  { %1228 = vst.msk [vmem:[#allocation3 + $0x150] sm:$0xff] %vm1213_vm5, %v1086_v61  ;;  %v2446_v8 = vpop.permute.xlu0 %2445  ;;  %6664 = vmatmul.mubr.msk.f32.gmra.mrb[92].mxu0 %vm791_vm4, %v3152_v43 }
 0x2ac   :  { %1417 = vrot.lane.b32.xlu1 %v8014_v34, %s7398_s8  ;;  %v8583_v34 = vld [vmem:[#allocation2 + $0xe0] sm:$0xff] }
 0x2ad   :  { %2151 = vrot.lane.b32.xlu0 %v8028_v63, %s7399_s2 }
 0x2ae   :  { %v1400_v13 = vpop.permute.xlu1 %1399 }
 0x2af   :  { %1542 = vst.msk [vmem:[#allocation3 + $0x150] sm:$0xff] %vm1527_vm6, %v1400_v13  ;;  %v2754_v19 = vpop.permute.xlu0 %2753  ;;  %v3078_v18 = vld [vmem:[#allocation3 + $0x138] sm:$0xff] }
 0x2b0   :  { %2896 = vst.msk [vmem:[#allocation3 + $0x140] sm:$0xff] %vm1841_vm7, %v2754_v19  ;;  %1105 = vrot.lane.b32.xlu1 %v8148_v44, %s7399_s2 }
 0x2b1   :  { %2773 = vrot.lane.b32.xlu0 %v8209_v25, %s7400_s28 }
 0x2b2   :  { %v1716_v20 = vpop.permute.xlu1 %1715 }
 0x2b3   :  { %v2444_v16 = vpop.permute.xlu0 %2443 }
 0x2b4   :  { %2585 = vst.msk [vmem:[#allocation3 + $0x158] sm:$0xff] %vm1527_vm6, %v2444_v16  ;;  %1419 = vrot.lane.b32.xlu1 %v8016_v58, %s7398_s8 }
 0x2b5   :  { %2463 = vrot.lane.b32.xlu0 %v8583_v34, %s7398_s8 }
 0x2b6   :  { %v1714_v27 = vpop.permute.xlu1 %1713 }
 0x2b7   :  { %1856 = vst.msk [vmem:[#allocation3 + $0x150] sm:$0xff] %vm1841_vm7, %v1714_v27  ;;  %v2756_v36 = vpop.permute.xlu0 %2755  ;;  %v3079_v44 = vld [vmem:[#allocation3 + $0x140] sm:$0xff] }
 0x2b8   :  { %2897 = vst.msk [vmem:[#allocation3 + $0x158] sm:$0xff] %vm1841_vm7, %v2756_v36  ;;  %3523 = vmatprep.mubr.f32.mxu1 %v3079_v44  ;;  %1733 = vrot.lane.b32.xlu1 %v2333_v14, %s7400_s28  ;;  %v888_v14 = vld [vmem:[#allocation2 + $0x140] sm:$0xff]  ;;  %v8649_v36 = vld [vmem:[#allocation2 + $0x151] sm:$0xff] }
 0x2b9   :  { %2775 = vrot.lane.b32.xlu0 %v8257_v60, %s7400_s28  ;;  %3524 = vmatmul.mubr.f32.gmra.mrb[26].mxu1 %v3078_v18  ;;  %940 = vst.msk [vmem:[#allocation3 + $0x3c0] sm:$0xff] %vm791_vm4, %v888_v14  ;;  %v8654_v44 = vld [vmem:[#allocation2 + $0x159] sm:$0xff]  ;;  %1987 = vst.msk [vmem:[#allocation3 + $0x3c8] sm:$0xff] %vm791_vm4, %v8649_v36 }
 0x2ba   :  { %v1088_v58 = vpop.permute.xlu1 %1087  ;;  %1988 = vst.msk [vmem:[#allocation3 + $0x3e0] sm:$0xff] %vm791_vm4, %v8654_v44  ;;  %v891_v18 = vld [vmem:[#allocation2 + $0x158] sm:$0xff] }
 0x2bb   :  { %1229 = vst.msk [vmem:[#allocation3 + $0x168] sm:$0xff] %vm1213_vm5, %v1088_v58  ;;  %v2134_v53 = vpop.permute.xlu0 %2133 }
 0x2bc   :  { %2274 = vst.msk [vmem:[#allocation3 + $0x170] sm:$0xff] %vm1213_vm5, %v2134_v53  ;;  %1107 = vrot.lane.b32.xlu1 %v8152_v52, %s7399_s2 }
 0x2bd   :  { %2586 = vst.msk [vmem:[#allocation3 + $0x170] sm:$0xff] %vm1527_vm6, %v2446_v8  ;;  %2153 = vrot.lane.b32.xlu0 %v8044_v15, %s7399_s2  ;;  %v8614_v15 = vld [vmem:[#allocation2 + $0xe8] sm:$0xff] }
 0x2be   :  { %v1402_v55 = vpop.permute.xlu1 %1401  ;;  %v3081_v24 = vld [vmem:[#allocation3 + $0x150] sm:$0xff]  ;;  %v8620_v61 = vpop.f32.mrb[74].mxu0  ;;  %943 = vst.msk [vmem:[#allocation3 + $0x408] sm:$0xff] %vm791_vm4, %v891_v18 }
 0x2bf   :  { %1543 = vst.msk [vmem:[#allocation3 + $0x168] sm:$0xff] %vm1527_vm6, %v1402_v55  ;;  %v2136_v52 = vpop.permute.xlu0 %2135  ;;  %v3082_v32 = vld [vmem:[#allocation3 + $0x158] sm:$0xff]  ;;  %v3155_v55 = vld [vmem:[#allocation3 + $0x3a0] sm:$0xff]  ;;  %v8712_v18 = vld [vmem:[#allocation2 + $0x169] sm:$0xff] }
 0x2c0   :  { %1857 = vst.msk [vmem:[#allocation3 + $0x168] sm:$0xff] %vm1841_vm7, %v1716_v20  ;;  %3528 = vmatprep.mubr.f32.mxu1 %v3082_v32  ;;  %1421 = vrot.lane.b32.xlu1 %v8026_v62, %s7398_s8  ;;  %v8625_v62 = vpop.f32.mrb[75].mxu0 }
 0x2c1   :  { %2275 = vst.msk [vmem:[#allocation3 + $0x188] sm:$0xff] %vm1213_vm5, %v2136_v52  ;;  %2465 = vrot.lane.b32.xlu0 %v8614_v15, %s7398_s8  ;;  %3529 = vmatmul.mubr.f32.gmra.mrb[28].mxu1 %v3081_v24  ;;  %v3158_v52 = vld [vmem:[#allocation3 + $0x3b8] sm:$0xff] }
 0x2c2   :  { %v1090_v30 = vpop.permute.xlu1 %1089  ;;  %6666 = vmatprep.mubr.msk.f32.mxu0 %vm791_vm4, %v3155_v55  ;;  %1990 = vst.msk [vmem:[#allocation3 + $0x410] sm:$0xff] %vm791_vm4, %v8712_v18  ;;  %v8727_v55 = vld [vmem:[#allocation2 + $0x108] sm:$0xff] }
 0x2c3   :  { %1230 = vst.msk [vmem:[#allocation3 + $0x180] sm:$0xff] %vm1213_vm5, %v1090_v30  ;;  %v2450_v42 = vpop.permute.xlu0 %2449  ;;  %6667 = vmatmul.mubr.msk.f32.gmra.mrb[94].mxu0 %vm791_vm4, %v3158_v52 }
 0x2c4   :  { %1735 = vrot.lane.b32.xlu1 %v8521_v47, %s7400_s28  ;;  %v8638_v47 = vld [vmem:[#allocation2 + $0xf0] sm:$0xff] }
 0x2c5   :  { %2777 = vrot.lane.b32.xlu0 %v8263_v3, %s7400_s28 }
 0x2c6   :  { %v1404_v6 = vpop.permute.xlu1 %1403  ;;  %v8675_v49 = vpop.f32.mrb[76].mxu0 }
 0x2c7   :  { %1544 = vst.msk [vmem:[#allocation3 + $0x180] sm:$0xff] %vm1527_vm6, %v1404_v6  ;;  %v2758_v8 = vpop.permute.xlu0 %2757  ;;  %v8680_v30 = vpop.f32.mrb[77].mxu0  ;;  %v8688_v6 = vld [vmem:[#allocation2 + $0xf2] sm:$0xff] }
 0x2c8   :  { %2898 = vst.msk [vmem:[#allocation3 + $0x170] sm:$0xff] %vm1841_vm7, %v2758_v8  ;;  %1109 = vrot.lane.b32.xlu1 %v8205_v21, %s7399_s2 }
 0x2c9   :  { %2155 = vrot.lane.b32.xlu0 %v8046_v54, %s7399_s2  ;;  %v3084_v54 = vld [vmem:[#allocation3 + $0x168] sm:$0xff] }
 0x2ca   :  { %v1720_v13 = vpop.permute.xlu1 %1719 }
 0x2cb   :  { %v2448_v19 = vpop.permute.xlu0 %2447 }
 0x2cc   :  { %2587 = vst.msk [vmem:[#allocation3 + $0x188] sm:$0xff] %vm1527_vm6, %v2448_v19  ;;  %1423 = vrot.lane.b32.xlu1 %v8028_v63, %s7398_s8  ;;  %v8694_v19 = vld [vmem:[#allocation2 + $0x100] sm:$0xff] }
 0x2cd   :  { %2467 = vrot.lane.b32.xlu0 %v8638_v47, %s7398_s8 }
 0x2ce   :  { %v1718_v20 = vpop.permute.xlu1 %1717 }
 0x2cf   :  { %1858 = vst.msk [vmem:[#allocation3 + $0x180] sm:$0xff] %vm1841_vm7, %v1718_v20  ;;  %v2760_v16 = vpop.permute.xlu0 %2759  ;;  %v3085_v21 = vld [vmem:[#allocation3 + $0x170] sm:$0xff] }
 0x2d0   :  { %2899 = vst.msk [vmem:[#allocation3 + $0x188] sm:$0xff] %vm1841_vm7, %v2760_v16  ;;  %3533 = vmatprep.mubr.f32.mxu1 %v3085_v21  ;;  %1737 = vrot.lane.b32.xlu1 %v8583_v34, %s7400_s28  ;;  %v890_v34 = vld [vmem:[#allocation2 + $0x150] sm:$0xff] }
 0x2d1   :  { %2779 = vrot.lane.b32.xlu0 %v8304_v29, %s7400_s28  ;;  %3534 = vmatmul.mubr.f32.gmra.mrb[30].mxu1 %v3084_v54  ;;  %942 = vst.msk [vmem:[#allocation3 + $0x3f0] sm:$0xff] %vm791_vm4, %v890_v34  ;;  %v8710_v34 = vld [vmem:[#allocation2 + $0xfa] sm:$0xff] }
 0x2d2   :  { %v1092_v63 = vpop.permute.xlu1 %1091 }
 0x2d3   :  { %1231 = vst.msk [vmem:[#allocation3 + $0x198] sm:$0xff] %vm1213_vm5, %v1092_v63  ;;  %v2138_v27 = vpop.permute.xlu0 %2137 }
 0x2d4   :  { %2276 = vst.msk [vmem:[#allocation3 + $0x1a0] sm:$0xff] %vm1213_vm5, %v2138_v27  ;;  %1111 = vrot.lane.b32.xlu1 %v8209_v25, %s7399_s2  ;;  %v8705_v27 = vld [vmem:[#allocation2 + $0x161] sm:$0xff] }
 0x2d5   :  { %2588 = vst.msk [vmem:[#allocation3 + $0x1a0] sm:$0xff] %vm1527_vm6, %v2450_v42  ;;  %2157 = vrot.lane.b32.xlu0 %v8062_v39, %s7399_s2  ;;  %v8669_v39 = vld [vmem:[#allocation2 + $0xf8] sm:$0xff] }
 0x2d6   :  { %v1406_v58 = vpop.permute.xlu1 %1405  ;;  %v3087_v53 = vld [vmem:[#allocation3 + $0x180] sm:$0xff]  ;;  %1989 = vst.msk [vmem:[#allocation3 + $0x3f8] sm:$0xff] %vm791_vm4, %v8705_v27 }
 0x2d7   :  { %1545 = vst.msk [vmem:[#allocation3 + $0x198] sm:$0xff] %vm1527_vm6, %v1406_v58  ;;  %v2140_v25 = vpop.permute.xlu0 %2139  ;;  %v3088_v14 = vld [vmem:[#allocation3 + $0x188] sm:$0xff] }
 0x2d8   :  { %1859 = vst.msk [vmem:[#allocation3 + $0x198] sm:$0xff] %vm1841_vm7, %v1720_v13  ;;  %3538 = vmatprep.mubr.f32.mxu1 %v3088_v14  ;;  %1425 = vrot.lane.b32.xlu1 %v1294_v35, %s7398_s8  ;;  %v1295_v13 = vld [vmem:[#allocation2 + $0xe2] sm:$0xff]  ;;  %v1296_v35 = vld [vmem:[#allocation2 + $0xea] sm:$0xff] }
 0x2d9   :  { %2277 = vst.msk [vmem:[#allocation3 + $0x1b8] sm:$0xff] %vm1213_vm5, %v2140_v25  ;;  %2469 = vrot.lane.b32.xlu0 %v8669_v39, %s7398_s8  ;;  %3539 = vmatmul.mubr.f32.gmra.mrb[32].mxu1 %v3087_v53  ;;  %v893_v58 = vld [vmem:[#allocation2 + $0x168] sm:$0xff] }
 0x2da   :  { %v1094_v24 = vpop.permute.xlu1 %1093  ;;  %945 = vst.msk [vmem:[#allocation3 + $0x438] sm:$0xff] %vm791_vm4, %v893_v58 }
 0x2db   :  { %1232 = vst.msk [vmem:[#allocation3 + $0x1b0] sm:$0xff] %vm1213_vm5, %v1094_v24  ;;  %v2454_v32 = vpop.permute.xlu0 %2453  ;;  %v3161_v24 = vld [vmem:[#allocation3 + $0x3d0] sm:$0xff] }
 0x2dc   :  { %1739 = vrot.lane.b32.xlu1 %v8614_v15, %s7400_s28  ;;  %6669 = vmatprep.mubr.msk.f32.mxu0 %vm791_vm4, %v3161_v24  ;;  %v8770_v24 = vld [vmem:[#allocation2 + $0x171] sm:$0xff] }
 0x2dd   :  { %2781 = vrot.lane.b32.xlu0 %v8311_v2, %s7400_s28  ;;  %1991 = vst.msk [vmem:[#allocation3 + $0x428] sm:$0xff] %vm791_vm4, %v8770_v24 }
 0x2de   :  { %v1408_v43 = vpop.permute.xlu1 %1407 }
 0x2df   :  { %1546 = vst.msk [vmem:[#allocation3 + $0x1b0] sm:$0xff] %vm1527_vm6, %v1408_v43  ;;  %v2762_v42 = vpop.permute.xlu0 %2761  ;;  %v3090_v21 = vld [vmem:[#allocation3 + $0x198] sm:$0xff] }
 0x2e0   :  { %2900 = vst.msk [vmem:[#allocation3 + $0x1a0] sm:$0xff] %vm1841_vm7, %v2762_v42  ;;  %1113 = vrot.lane.b32.xlu1 %v8257_v60, %s7399_s2  ;;  %v8733_v42 = vpop.f32.mrb[78].mxu0 }
 0x2e1   :  { %2159 = vrot.lane.b32.xlu0 %v8688_v6, %s7399_s2 }
 0x2e2   :  { %v1724_v15 = vpop.permute.xlu1 %1723 }
 0x2e3   :  { %v2452_v8 = vpop.permute.xlu0 %2451 }
 0x2e4   :  { %2589 = vst.msk [vmem:[#allocation3 + $0x1b8] sm:$0xff] %vm1527_vm6, %v2452_v8  ;;  %1427 = vrot.lane.b32.xlu1 %v1295_v13, %s7398_s8 }
 0x2e5   :  { %2471 = vrot.lane.b32.xlu0 %v8694_v19, %s7398_s8 }
 0x2e6   :  { %v1722_v20 = vpop.permute.xlu1 %1721 }
 0x2e7   :  { %1860 = vst.msk [vmem:[#allocation3 + $0x1b0] sm:$0xff] %vm1841_vm7, %v1722_v20  ;;  %v2764_v60 = vpop.permute.xlu0 %2763  ;;  %v3091_v16 = vld [vmem:[#allocation3 + $0x1a0] sm:$0xff] }
 0x2e8   :  { %2901 = vst.msk [vmem:[#allocation3 + $0x1b8] sm:$0xff] %vm1841_vm7, %v2764_v60  ;;  %3543 = vmatprep.mubr.f32.mxu1 %v3091_v16  ;;  %1741 = vrot.lane.b32.xlu1 %v8638_v47, %s7400_s28  ;;  %v892_v47 = vld [vmem:[#allocation2 + $0x160] sm:$0xff]  ;;  %v8753_v16 = vld [vmem:[#allocation2 + $0x110] sm:$0xff] }
 0x2e9   :  { %2783 = vrot.lane.b32.xlu0 %v8360_v59, %s7400_s28  ;;  %3544 = vmatmul.mubr.f32.gmra.mrb[34].mxu1 %v3090_v21  ;;  %944 = vst.msk [vmem:[#allocation3 + $0x420] sm:$0xff] %vm791_vm4, %v892_v47  ;;  %v8746_v20 = vld [vmem:[#allocation2 + $0x102] sm:$0xff]  ;;  %v8763_v47 = vld [vmem:[#allocation2 + $0x111] sm:$0xff] }
 0x2ea   :  { %v1096_v54 = vpop.permute.xlu1 %1095 }
 0x2eb   :  { %1233 = vst.msk [vmem:[#allocation3 + $0x1c8] sm:$0xff] %vm1213_vm5, %v1096_v54  ;;  %v2142_v63 = vpop.permute.xlu0 %2141  ;;  %v8757_v54 = vld [vmem:[#allocation15] ss:$0 sm:$0xff] }
 0x2ec   :  { %2278 = vst.msk [vmem:[#allocation3 + $0x1d0] sm:$0xff] %vm1213_vm5, %v2142_v63  ;;  %1115 = vrot.lane.b32.xlu1 %v8263_v3, %s7399_s2 }
 0x2ed   :  { %2590 = vst.msk [vmem:[#allocation3 + $0x1d0] sm:$0xff] %vm1527_vm6, %v2454_v32  ;;  %2161 = vrot.lane.b32.xlu0 %v8710_v34, %s7399_s2  ;;  %v3164_v32 = vld [vmem:[#allocation3 + $0x3e8] sm:$0xff] }
 0x2ee   :  { %v1410_v53 = vpop.permute.xlu1 %1409  ;;  %v3093_v25 = vld [vmem:[#allocation3 + $0x1b0] sm:$0xff]  ;;  %6670 = vmatmul.mubr.msk.f32.gmra.mrb[96].mxu0 %vm791_vm4, %v3164_v32  ;;  %v8777_v32 = vld [vmem:[#allocation2 + $0x179] sm:$0xff] }
 0x2ef   :  { %1547 = vst.msk [vmem:[#allocation3 + $0x1c8] sm:$0xff] %vm1527_vm6, %v1410_v53  ;;  %v2144_v3 = vpop.permute.xlu0 %2143  ;;  %v3094_v14 = vld [vmem:[#allocation3 + $0x1b8] sm:$0xff] }
 0x2f0   :  { %1861 = vst.msk [vmem:[#allocation3 + $0x1c8] sm:$0xff] %vm1841_vm7, %v1724_v15  ;;  %3548 = vmatprep.mubr.f32.mxu1 %v3094_v14  ;;  %1429 = vrot.lane.b32.xlu1 %v1296_v35, %s7398_s8  ;;  %v8738_v15 = vpop.f32.mrb[79].mxu0 }
 0x2f1   :  { %2279 = vst.msk [vmem:[#allocation3 + $0x1e8] sm:$0xff] %vm1213_vm5, %v2144_v3  ;;  %2473 = vrot.lane.b32.xlu0 %v8727_v55, %s7398_s8  ;;  %3549 = vmatmul.mubr.f32.gmra.mrb[36].mxu1 %v3093_v25 }
 0x2f2   :  { %v1098_v52 = vpop.permute.xlu1 %1097  ;;  %1992 = vst.msk [vmem:[#allocation3 + $0x440] sm:$0xff] %vm791_vm4, %v8777_v32 }
 0x2f3   :  { %1234 = vst.msk [vmem:[#allocation3 + $0x1e0] sm:$0xff] %vm1213_vm5, %v1098_v52  ;;  %v2458_v43 = vpop.permute.xlu0 %2457 }
 0x2f4   :  { %1743 = vrot.lane.b32.xlu1 %v8669_v39, %s7400_s28 }
 0x2f5   :  { %2785 = vrot.lane.b32.xlu0 %v8365_v31, %s7400_s28 }
 0x2f6   :  { %v1412_v8 = vpop.permute.xlu1 %1411 }
 0x2f7   :  { %1548 = vst.msk [vmem:[#allocation3 + $0x1e0] sm:$0xff] %vm1527_vm6, %v1412_v8  ;;  %v2766_v13 = vpop.permute.xlu0 %2765  ;;  %v3096_v58 = vld [vmem:[#allocation3 + $0x1c8] sm:$0xff] }
 0x2f8   :  { %2902 = vst.msk [vmem:[#allocation3 + $0x1d0] sm:$0xff] %vm1841_vm7, %v2766_v13  ;;  %1117 = vrot.lane.b32.xlu1 %v8304_v29, %s7399_s2 }
 0x2f9   :  { %2163 = vrot.lane.b32.xlu0 %v8746_v20, %s7399_s2 }
 0x2fa   :  { %v1728_v39 = vpop.permute.xlu1 %1727 }
 0x2fb   :  { %v2456_v60 = vpop.permute.xlu0 %2455 }
 0x2fc   :  { %2591 = vst.msk [vmem:[#allocation3 + $0x1e8] sm:$0xff] %vm1527_vm6, %v2456_v60  ;;  %1431 = vrot.lane.b32.xlu1 %v8688_v6, %s7398_s8  ;;  %v895_v60 = vld [vmem:[#allocation2 + $0x178] sm:$0xff] }
 0x2fd   :  { %2475 = vrot.lane.b32.xlu0 %v8753_v16, %s7398_s8  ;;  %947 = vst.msk [vmem:[#allocation3 + $0x468] sm:$0xff] %vm791_vm4, %v895_v60  ;;  %v8819_v60 = vld [vmem:[#allocation2 + $0x112] sm:$0xff] }
 0x2fe   :  { %v1726_v21 = vpop.permute.xlu1 %1725 }
 0x2ff   :  { %1862 = vst.msk [vmem:[#allocation3 + $0x1e0] sm:$0xff] %vm1841_vm7, %v1726_v21  ;;  %v2768_v29 = vpop.permute.xlu0 %2767  ;;  %v3097_v63 = vld [vmem:[#allocation3 + $0x1d0] sm:$0xff] }
 0x300   :  { %2903 = vst.msk [vmem:[#allocation3 + $0x1e8] sm:$0xff] %vm1841_vm7, %v2768_v29  ;;  %3553 = vmatprep.mubr.f32.mxu1 %v3097_v63  ;;  %1745 = vrot.lane.b32.xlu1 %v8694_v19, %s7400_s28  ;;  %v3460_v6 = vpop.f32.mrb[0].mxu1  ;;  %v8775_v19 = vld [vmem:[#allocation2 + $0x10a] sm:$0xff] }
 0x301   :  { %2787 = vrot.lane.b32.xlu0 %v8763_v47, %s7400_s28  ;;  %v3461_v53 = vadd.f32 %v8757_v54, %v3460_v6  ;;  %3554 = vmatmul.mubr.f32.gmra.mrb[38].mxu1 %v3096_v58  ;;  %v3462_v25 = vpop.f32.mrb[1].mxu1  ;;  %v8796_v58 = vld [vmem:[#allocation2 + $0x118] sm:$0xff] }
 0x302   :  { %v1100_v3 = vpop.permute.xlu1 %1099 }
 0x303   :  { %v3786_v14 = vadd.f32 %v8430_v48, %v3461_v53  ;;  %1235 = vst.msk [vmem:[#allocation3 + $0x1f8] sm:$0xff] %vm1213_vm5, %v1100_v3  ;;  %v2146_v35 = vpop.permute.xlu0 %2145 }
 0x304   :  { %2280 = vst.msk [vmem:[#allocation3 + $0x200] sm:$0xff] %vm1213_vm5, %v2146_v35  ;;  %1119 = vrot.lane.b32.xlu1 %v8311_v2, %s7399_s2  ;;  %v3465_v52 = vpop.f32.mrb[2].mxu1  ;;  %v894_v2 = vld [vmem:[#allocation2 + $0x170] sm:$0xff] }
 0x305   :  { %v4044_v48 = vmax.f32 %v3786_v14, 0.0  ;;  %2592 = vst.msk [vmem:[#allocation3 + $0x200] sm:$0xff] %vm1527_vm6, %v2458_v43  ;;  %2165 = vrot.lane.b32.xlu0 %v8775_v19, %s7399_s2  ;;  %v3466_v8 = vadd.f32 %v8757_v54, %v3465_v52  ;;  %v3467_v13 = vpop.f32.mrb[3].mxu1  ;;  %v3167_v14 = vld [vmem:[#allocation3 + $0x400] sm:$0xff]  ;;  %v3170_v52 = vld [vmem:[#allocation3 + $0x418] sm:$0xff] }
 0x306   :  { %v1414_v21 = vpop.permute.xlu1 %1413  ;;  %v3099_v29 = vld [vmem:[#allocation3 + $0x1e0] sm:$0xff]  ;;  %946 = vst.msk [vmem:[#allocation3 + $0x450] sm:$0xff] %vm791_vm4, %v894_v2  ;;  %6672 = vmatprep.mubr.msk.f32.mxu0 %vm791_vm4, %v3167_v14 }
 0x307   :  { %4097 = vst.msk [vmem:[#allocation4] sm:$0xff] %vm4096_vm8, %v4044_v48  ;;  %v3791_v43 = vadd.f32 %v8426_v5, %v3466_v8  ;;  %v2148_v63 = vpop.permute.xlu0 %2147  ;;  %v3100_v6 = vld [vmem:[#allocation3 + $0x1e8] sm:$0xff]  ;;  %6673 = vmatmul.mubr.msk.f32.gmra.mrb[98].mxu0 %vm791_vm4, %v3170_v52 }
 0x308   :  { %1549 = vst.msk [vmem:[#allocation3 + $0x1f8] sm:$0xff] %vm1527_vm6, %v1414_v21  ;;  %3558 = vmatprep.mubr.f32.mxu1 %v3100_v6  ;;  %1433 = vrot.lane.b32.xlu1 %v8710_v34, %s7398_s8  ;;  %v3470_v53 = vpop.f32.mrb[4].mxu1  ;;  %v8842_v52 = vld [vmem:[#allocation2 + $0x188] sm:$0xff] }
 0x309   :  { %1863 = vst.msk [vmem:[#allocation3 + $0x1f8] sm:$0xff] %vm1841_vm7, %v1728_v39  ;;  %v4045_v25 = vmax.f32 %v3791_v43, 0.0  ;;  %2477 = vrot.lane.b32.xlu0 %v8796_v58, %s7398_s8  ;;  %v3471_v5 = vadd.f32 %v8757_v54, %v3470_v53  ;;  %3559 = vmatmul.mubr.f32.gmra.mrb[40].mxu1 %v3099_v29  ;;  %v3472_v3 = vpop.f32.mrb[5].mxu1  ;;  %v8801_v39 = vpop.f32.mrb[80].mxu0  ;;  %v8826_v43 = vld [vmem:[#allocation2 + $0x120] sm:$0xff] }
 0x30a   :  { %2281 = vst.msk [vmem:[#allocation3 + $0x218] sm:$0xff] %vm1213_vm5, %v2148_v63  ;;  %v1102_v35 = vpop.permute.xlu1 %1101  ;;  %v8807_v8 = vpop.f32.mrb[81].mxu0 }
 0x30b   :  { %4098 = vst.msk [vmem:[#allocation4 + $0x8] sm:$0xff] %vm4096_vm8, %v4045_v25  ;;  %v3796_v34 = vadd.f32 %v8443_v0, %v3471_v5  ;;  %v2462_v48 = vpop.permute.xlu0 %2461 }
 0x30c   :  { %1236 = vst.msk [vmem:[#allocation3 + $0x210] sm:$0xff] %vm1213_vm5, %v1102_v35  ;;  %1747 = vrot.lane.b32.xlu1 %v8727_v55, %s7400_s28  ;;  %v8840_v35 = vld [vmem:[#allocation2 + $0x181] sm:$0xff] }
 0x30d   :  { %v4046_v13 = vmax.f32 %v3796_v34, 0.0  ;;  %2789 = vrot.lane.b32.xlu0 %v8415_v17, %s7400_s28  ;;  %1993 = vst.msk [vmem:[#allocation3 + $0x458] sm:$0xff] %vm791_vm4, %v8840_v35  ;;  %949 = vst.msk [vmem:[#allocation3 + $0x498] sm:$0xff] %vm791_vm4, %v8842_v52 }
 0x30e   :  { %v1416_v2 = vpop.permute.xlu1 %1415 }
 0x30f   :  { %4099 = vst.msk [vmem:[#allocation4 + $0x10] sm:$0xff] %vm4096_vm8, %v4046_v13  ;;  %v2770_v0 = vpop.permute.xlu0 %2769  ;;  %v8849_v13 = vld [vmem:[#allocation2 + $0x189] sm:$0xff] }
 0x310   :  { %1550 = vst.msk [vmem:[#allocation3 + $0x210] sm:$0xff] %vm1527_vm6, %v1416_v2  ;;  %1121 = vrot.lane.b32.xlu1 %v8360_v59, %s7399_s2 }
 0x311   :  { %2904 = vst.msk [vmem:[#allocation3 + $0x200] sm:$0xff] %vm1841_vm7, %v2770_v0  ;;  %2167 = vrot.lane.b32.xlu0 %v8819_v60, %s7399_s2 }
 0x312   :  { %v1732_v55 = vpop.permute.xlu1 %1731  ;;  %1994 = vst.msk [vmem:[#allocation3 + $0x470] sm:$0xff] %vm791_vm4, %v8849_v13 }
 0x313   :  { %v2460_v21 = vpop.permute.xlu0 %2459 }
 0x314   :  { %2593 = vst.msk [vmem:[#allocation3 + $0x218] sm:$0xff] %vm1527_vm6, %v2460_v21  ;;  %v3475_v29 = vpop.f32.mrb[6].mxu1  ;;  %1435 = vrot.lane.b32.xlu1 %v8746_v20, %s7398_s8  ;;  %v3102_v20 = vld [vmem:[#allocation3 + $0x1f8] sm:$0xff] }
 0x315   :  { %v3476_v63 = vadd.f32 %v8757_v54, %v3475_v29  ;;  %2479 = vrot.lane.b32.xlu0 %v8826_v43, %s7398_s8  ;;  %v3477_v59 = vpop.f32.mrb[7].mxu1 }
 0x316   :  { %v1730_v6 = vpop.permute.xlu1 %1729 }
 0x317   :  { %v3801_v53 = vadd.f32 %v8438_v33, %v3476_v63  ;;  %1864 = vst.msk [vmem:[#allocation3 + $0x210] sm:$0xff] %vm1841_vm7, %v1730_v6  ;;  %v2772_v25 = vpop.permute.xlu0 %2771  ;;  %v8861_v63 = vpop.f32.mrb[82].mxu0 }
 0x318   :  { %v3103_v5 = vld [vmem:[#allocation3 + $0x200] sm:$0xff]  ;;  %2905 = vst.msk [vmem:[#allocation3 + $0x218] sm:$0xff] %vm1841_vm7, %v2772_v25  ;;  %1749 = vrot.lane.b32.xlu1 %v8753_v16, %s7400_s28 }
 0x319   :  { %3563 = vmatprep.mubr.f32.mxu1 %v3103_v5  ;;  %v4047_v3 = vmax.f32 %v3801_v53, 0.0  ;;  %2791 = vrot.lane.b32.xlu0 %v8481_v56, %s7400_s28  ;;  %v8847_v16 = vld [vmem:[#allocation2 + $0x11a] sm:$0xff]  ;;  %v8866_v53 = vpop.f32.mrb[83].mxu0  ;;  %v8872_v5 = vld [vmem:[#allocation2 + $0x128] sm:$0xff] }
 0x31a   :  { %3564 = vmatmul.mubr.f32.gmra.mrb[42].mxu1 %v3102_v20  ;;  %v1104_v14 = vpop.permute.xlu1 %1103  ;;  %v4200_v25 = vld [vmem:[#allocation4 + $0x1] sm:$0xff] }
 0x31b   :  { %4100 = vst.msk [vmem:[#allocation4 + $0x18] sm:$0xff] %vm4096_vm8, %v4047_v3  ;;  %v2150_v33 = vpop.permute.xlu0 %2149  ;;  %v4150_v20 = vld [vmem:[#allocation4] sm:$0xff] }
 0x31c   :  { %1237 = vst.msk [vmem:[#allocation3 + $0x228] sm:$0xff] %vm1213_vm5, %v1104_v14  ;;  %2282 = vst.msk [vmem:[#allocation3 + $0x230] sm:$0xff] %vm1213_vm5, %v2150_v33  ;;  %v3480_v34 = vpop.f32.mrb[8].mxu1  ;;  %1123 = vrot.lane.b32.xlu1 %v8365_v31, %s7399_s2  ;;  %v896_v31 = vld [vmem:[#allocation2 + $0x180] sm:$0xff]  ;;  %v4152_v14 = vld [vmem:[#allocation4 + $0x10] sm:$0xff] }
 0x31d   :  { %2594 = vst.msk [vmem:[#allocation3 + $0x230] sm:$0xff] %vm1527_vm6, %v2462_v48  ;;  %v3481_v2 = vadd.f32 %v8757_v54, %v3480_v34  ;;  %2169 = vrot.lane.b32.xlu0 %v8847_v16, %s7399_s2  ;;  %v3482_v0 = vpop.f32.mrb[9].mxu1 }
 0x31e   :  { %v1418_v21 = vpop.permute.xlu1 %1417  ;;  %v3105_v29 = vld [vmem:[#allocation3 + $0x210] sm:$0xff]  ;;  %948 = vst.msk [vmem:[#allocation3 + $0x480] sm:$0xff] %vm791_vm4, %v896_v31 }
 0x31f   :  { %v3806_v59 = vadd.f32 %v8455_v9, %v3481_v2  ;;  %1551 = vst.msk [vmem:[#allocation3 + $0x228] sm:$0xff] %vm1527_vm6, %v1418_v21  ;;  %v2152_v48 = vpop.permute.xlu0 %2151  ;;  %v3106_v6 = vld [vmem:[#allocation3 + $0x218] sm:$0xff]  ;;  %v3173_v9 = vld [vmem:[#allocation3 + $0x430] sm:$0xff]  ;;  %v4250_v2 = vmax.f32 %v4150_v20, %v4200_v25 }
 0x320   :  { %1865 = vst.msk [vmem:[#allocation3 + $0x228] sm:$0xff] %vm1841_vm7, %v1732_v55  ;;  %3568 = vmatprep.mubr.f32.mxu1 %v3106_v6  ;;  %1437 = vrot.lane.b32.xlu1 %v8775_v19, %s7398_s8  ;;  %v3176_v55 = vld [vmem:[#allocation3 + $0x448] sm:$0xff] }
 0x321   :  { %2283 = vst.msk [vmem:[#allocation3 + $0x248] sm:$0xff] %vm1213_vm5, %v2152_v48  ;;  %v4048_v3 = vmax.f32 %v3806_v59, 0.0  ;;  %2481 = vrot.lane.b32.xlu0 %v8872_v5, %s7398_s8  ;;  %3569 = vmatmul.mubr.f32.gmra.mrb[44].mxu1 %v3105_v29  ;;  %v4201_v59 = vld [vmem:[#allocation4 + $0x9] sm:$0xff] }
 0x322   :  { %v4202_v33 = vld [vmem:[#allocation4 + $0x11] sm:$0xff]  ;;  %v1106_v34 = vpop.permute.xlu1 %1105  ;;  %6675 = vmatprep.mubr.msk.f32.mxu0 %vm791_vm4, %v3173_v9  ;;  %v8890_v48 = vld [vmem:[#allocation2 + $0x122] sm:$0xff] }
 0x323   :  { %v4252_v0 = vmax.f32 %v4152_v14, %v4202_v33  ;;  %4101 = vst.msk [vmem:[#allocation4 + $0x20] sm:$0xff] %vm4096_vm8, %v4048_v3  ;;  %v2774_v19 = vpop.permute.xlu0 %2773  ;;  %6676 = vmatmul.mubr.msk.f32.gmra.mrb[100].mxu0 %vm791_vm4, %v3176_v55  ;;  %v4153_v6 = vld [vmem:[#allocation4 + $0x18] sm:$0xff] }
 0x324   :  { %1238 = vst.msk [vmem:[#allocation3 + $0x240] sm:$0xff] %vm1213_vm5, %v1106_v34  ;;  %1751 = vrot.lane.b32.xlu1 %v8796_v58, %s7400_s28  ;;  %v4151_v58 = vld [vmem:[#allocation4 + $0x8] sm:$0xff] }
 0x325   :  { %2906 = vst.msk [vmem:[#allocation3 + $0x230] sm:$0xff] %vm1841_vm7, %v2774_v19  ;;  %v4309_v31 = vmax.f32 %v4250_v2, %v4252_v0  ;;  %2793 = vrot.lane.b32.xlu0 %v8488_v12, %s7400_s28  ;;  %v4251_v3 = vmax.f32 %v4151_v58, %v4201_v59 }
 0x326   :  { %v1420_v21 = vpop.permute.xlu1 %1419 }
 0x327   :  { %4359 = vst.msk [vmem:[#allocation5] sm:$0xff] %vm4096_vm8, %v4309_v31  ;;  %v2464_v29 = vpop.permute.xlu0 %2463  ;;  %v3108_v55 = vld [vmem:[#allocation3 + $0x228] sm:$0xff] }
 0x328   :  { %1552 = vst.msk [vmem:[#allocation3 + $0x240] sm:$0xff] %vm1527_vm6, %v1420_v21  ;;  %2595 = vst.msk [vmem:[#allocation3 + $0x248] sm:$0xff] %vm1527_vm6, %v2464_v29  ;;  %1125 = vrot.lane.b32.xlu1 %v8763_v47, %s7399_s2  ;;  %v8898_v47 = vld [vmem:[#allocation2 + $0x130] sm:$0xff] }
 0x329   :  { %2171 = vrot.lane.b32.xlu0 %v8890_v48, %s7399_s2 }
 0x32a   :  { %v4203_v25 = vld [vmem:[#allocation4 + $0x19] sm:$0xff]  ;;  %v1734_v20 = vpop.permute.xlu1 %1733 }
 0x32b   :  { %v4253_v9 = vmax.f32 %v4153_v6, %v4203_v25  ;;  %1866 = vst.msk [vmem:[#allocation3 + $0x240] sm:$0xff] %vm1841_vm7, %v1734_v20  ;;  %v2776_v14 = vpop.permute.xlu0 %2775  ;;  %v8913_v20 = vld [vmem:[#allocation2 + $0x190] sm:$0xff] }
 0x32c   :  { %v3109_v33 = vld [vmem:[#allocation3 + $0x230] sm:$0xff]  ;;  %2907 = vst.msk [vmem:[#allocation3 + $0x248] sm:$0xff] %vm1841_vm7, %v2776_v14  ;;  %v3485_v34 = vpop.f32.mrb[10].mxu1  ;;  %1439 = vrot.lane.b32.xlu1 %v8819_v60, %s7398_s8  ;;  %v2986_v60 = vld [vmem:[#allocation2 + $0x1ba] sm:$0xf] }
 0x32d   :  { %3573 = vmatprep.mubr.f32.mxu1 %v3109_v33  ;;  %v4310_v2 = vmax.f32 %v4251_v3, %v4253_v9  ;;  %v3486_v0 = vadd.f32 %v8757_v54, %v3485_v34  ;;  %2483 = vrot.lane.b32.xlu0 %v8898_v47, %s7398_s8  ;;  %v3487_v19 = vpop.f32.mrb[11].mxu1  ;;  %v8915_v3 = vld [vmem:[#allocation2 + $0x191] sm:$0xff]  ;;  %v8922_v14 = vld [vmem:[#allocation2 + $0x199] sm:$0xff]  ;;  %3038 = vst.msk [vmem:[#allocation3 + $0x4d8] sm:$0xf] %vm951_vm9, %v2986_v60 }
 0x32e   :  { %3574 = vmatmul.mubr.f32.gmra.mrb[46].mxu1 %v3108_v55  ;;  %v1108_v31 = vpop.permute.xlu1 %1107  ;;  %v8920_v9 = vld [vmem:[#allocation2 + $0x12a] sm:$0xff]  ;;  %1995 = vst.msk [vmem:[#allocation3 + $0x488] sm:$0xff] %vm791_vm4, %v8915_v3  ;;  %950 = vst.msk [vmem:[#allocation3 + $0x4b0] sm:$0xff] %vm791_vm4, %v8913_v20  ;;  %v3179_v60 = vld [vmem:[#allocation3 + $0x460] sm:$0xff] }
 0x32f   :  { %4360 = vst.msk [vmem:[#allocation5 + $0x8] sm:$0xff] %vm4096_vm8, %v4310_v2  ;;  %v3811_v21 = vadd.f32 %v8450_v57, %v3486_v0  ;;  %v2154_v29 = vpop.permute.xlu0 %2153  ;;  %v899_v2 = vld [vmem:[#allocation2 + $0x198] sm:$0xf]  ;;  %6678 = vmatprep.mubr.msk.f32.mxu0 %vm791_vm4, %v3179_v60  ;;  %v8981_v60 = vld [vmem:[#allocation2 + $0x140] sm:$0xff] }
 0x330   :  { %1239 = vst.msk [vmem:[#allocation3 + $0x258] sm:$0xff] %vm1213_vm5, %v1108_v31  ;;  %2284 = vst.msk [vmem:[#allocation3 + $0x260] sm:$0xff] %vm1213_vm5, %v2154_v29  ;;  %1753 = vrot.lane.b32.xlu1 %v8826_v43, %s7400_s28 }
 0x331   :  { %v4049_v59 = vmax.f32 %v3811_v21, 0.0  ;;  %2795 = vrot.lane.b32.xlu0 %v8540_v10, %s7400_s28  ;;  %1996 = vst.msk [vmem:[#allocation3 + $0x4a0] sm:$0xff] %vm791_vm4, %v8922_v14  ;;  %v8934_v55 = vpop.f32.mrb[84].mxu0  ;;  %v8944_v21 = vld [vmem:[#allocation2 + $0x138] sm:$0xff] }
 0x332   :  { %v1422_v58 = vpop.permute.xlu1 %1421  ;;  %v3111_v6 = vld [vmem:[#allocation3 + $0x240] sm:$0xff]  ;;  %v8938_v31 = vpop.f32.mrb[85].mxu0  ;;  %952 = vst.msk [vmem:[#allocation3 + $0x4c8] sm:$0xf] %vm951_vm9, %v899_v2 }
 0x333   :  { %4102 = vst.msk [vmem:[#allocation4 + $0x28] sm:$0xff] %vm4096_vm8, %v4049_v59  ;;  %v2466_v57 = vpop.permute.xlu0 %2465  ;;  %v3112_v25 = vld [vmem:[#allocation3 + $0x248] sm:$0xff] }
 0x334   :  { %1553 = vst.msk [vmem:[#allocation3 + $0x258] sm:$0xff] %vm1527_vm6, %v1422_v58  ;;  %2596 = vst.msk [vmem:[#allocation3 + $0x260] sm:$0xff] %vm1527_vm6, %v2466_v57  ;;  %v3490_v43 = vpop.f32.mrb[12].mxu1  ;;  %3578 = vmatprep.mubr.f32.mxu1 %v3112_v25  ;;  %1127 = vrot.lane.b32.xlu1 %v8415_v17, %s7399_s2 }
 0x335   :  { %v3491_v33 = vadd.f32 %v8757_v54, %v3490_v43  ;;  %2173 = vrot.lane.b32.xlu0 %v8920_v9, %s7399_s2  ;;  %v3492_v34 = vpop.f32.mrb[13].mxu1  ;;  %3579 = vmatmul.mubr.f32.gmra.mrb[48].mxu1 %v3111_v6  ;;  %v3182_v6 = vld [vmem:[#allocation3 + $0x478] sm:$0xff] }
 0x336   :  { %v1736_v17 = vpop.permute.xlu1 %1735  ;;  %6679 = vmatmul.mubr.msk.f32.gmra.mrb[102].mxu0 %vm791_vm4, %v3182_v6 }
 0x337   :  { %v3816_v0 = vadd.f32 %v8464_v50, %v3491_v33  ;;  %1867 = vst.msk [vmem:[#allocation3 + $0x258] sm:$0xff] %vm1841_vm7, %v1736_v17  ;;  %v2778_v19 = vpop.permute.xlu0 %2777  ;;  %v8948_v50 = vld [vmem:[#allocation4 + $0x20] sm:$0xff]  ;;  %v8967_v17 = vld [vmem:[#allocation2 + $0x132] sm:$0xff] }
 0x338   :  { %2908 = vst.msk [vmem:[#allocation3 + $0x260] sm:$0xff] %vm1841_vm7, %v2778_v19  ;;  %1441 = vrot.lane.b32.xlu1 %v8847_v16, %s7398_s8 }
 0x339   :  { %v4050_v29 = vmax.f32 %v3816_v0, 0.0  ;;  %2485 = vrot.lane.b32.xlu0 %v8944_v21, %s7398_s8 }
 0x33a   :  { %v8950_v59 = vld [vmem:[#allocation4 + $0x21] sm:$0xff]  ;;  %v1110_v58 = vpop.permute.xlu1 %1109 }
 0x33b   :  { %v4254_v57 = vmax.f32 %v8948_v50, %v8950_v59  ;;  %4103 = vst.msk [vmem:[#allocation4 + $0x30] sm:$0xff] %vm4096_vm8, %v4050_v29  ;;  %v2156_v16 = vpop.permute.xlu0 %2155 }
 0x33c   :  { %1240 = vst.msk [vmem:[#allocation3 + $0x270] sm:$0xff] %vm1213_vm5, %v1110_v58  ;;  %2285 = vst.msk [vmem:[#allocation3 + $0x278] sm:$0xff] %vm1213_vm5, %v2156_v16  ;;  %1755 = vrot.lane.b32.xlu1 %v8872_v5, %s7400_s28  ;;  %v8971_v5 = vld [vmem:[#allocation4 + $0x28] sm:$0xff] }
 0x33d   :  { %2797 = vrot.lane.b32.xlu0 %v8545_v22, %s7400_s28 }
 0x33e   :  { %v1424_v25 = vpop.permute.xlu1 %1423  ;;  %v3114_v43 = vld [vmem:[#allocation3 + $0x258] sm:$0xff] }
 0x33f   :  { %1554 = vst.msk [vmem:[#allocation3 + $0x270] sm:$0xff] %vm1527_vm6, %v1424_v25  ;;  %v2468_v33 = vpop.permute.xlu0 %2467  ;;  %v3115_v34 = vld [vmem:[#allocation3 + $0x260] sm:$0xff] }
 0x340   :  { %2597 = vst.msk [vmem:[#allocation3 + $0x278] sm:$0xff] %vm1527_vm6, %v2468_v33  ;;  %3583 = vmatprep.mubr.f32.mxu1 %v3115_v34  ;;  %1129 = vrot.lane.b32.xlu1 %v8481_v56, %s7399_s2 }
 0x341   :  { %2175 = vrot.lane.b32.xlu0 %v8967_v17, %s7399_s2  ;;  %3584 = vmatmul.mubr.f32.gmra.mrb[50].mxu1 %v3114_v43 }
 0x342   :  { %v8973_v2 = vld [vmem:[#allocation4 + $0x29] sm:$0xff]  ;;  %v1738_v0 = vpop.permute.xlu1 %1737 }
 0x343   :  { %v4255_v19 = vmax.f32 %v8971_v5, %v8973_v2  ;;  %1868 = vst.msk [vmem:[#allocation3 + $0x270] sm:$0xff] %vm1841_vm7, %v1738_v0  ;;  %v2780_v29 = vpop.permute.xlu0 %2779 }
 0x344   :  { %2909 = vst.msk [vmem:[#allocation3 + $0x278] sm:$0xff] %vm1841_vm7, %v2780_v29  ;;  %v3495_v56 = vpop.f32.mrb[14].mxu1  ;;  %1443 = vrot.lane.b32.xlu1 %v8890_v48, %s7398_s8  ;;  %v8995_v29 = vld [vmem:[#allocation2 + $0x1a1] sm:$0xff] }
 0x345   :  { %v3496_v58 = vadd.f32 %v8757_v54, %v3495_v56  ;;  %2487 = vrot.lane.b32.xlu0 %v8981_v60, %s7398_s8  ;;  %v3497_v6 = vpop.f32.mrb[15].mxu1  ;;  %1997 = vst.msk [vmem:[#allocation3 + $0x4b8] sm:$0xff] %vm791_vm4, %v8995_v29 }
 0x346   :  { %v1112_v16 = vpop.permute.xlu1 %1111 }
 0x347   :  { %v3821_v25 = vadd.f32 %v8459_v40, %v3496_v58  ;;  %1241 = vst.msk [vmem:[#allocation3 + $0x288] sm:$0xff] %vm1213_vm5, %v1112_v16  ;;  %v2158_v43 = vpop.permute.xlu0 %2157 }
 0x348   :  { %2286 = vst.msk [vmem:[#allocation3 + $0x290] sm:$0xff] %vm1213_vm5, %v2158_v43  ;;  %1757 = vrot.lane.b32.xlu1 %v8898_v47, %s7400_s28  ;;  %v9000_v47 = vld [vmem:[#allocation2 + $0x13a] sm:$0xff]  ;;  %v1946_v43 = vld [vmem:[#allocation2 + $0x1a9] sm:$0xf] }
 0x349   :  { %v4051_v48 = vmax.f32 %v3821_v25, 0.0  ;;  %2799 = vrot.lane.b32.xlu0 %v8593_v23, %s7400_s28  ;;  %v9007_v25 = vpop.f32.mrb[86].mxu0  ;;  %1998 = vst.msk [vmem:[#allocation3 + $0x4d0] sm:$0xf] %vm951_vm9, %v1946_v43 }
 0x34a   :  { %v1426_v33 = vpop.permute.xlu1 %1425  ;;  %v3117_v34 = vld [vmem:[#allocation3 + $0x270] sm:$0xff] }
 0x34b   :  { %4104 = vst.msk [vmem:[#allocation4 + $0x38] sm:$0xff] %vm4096_vm8, %v4051_v48  ;;  %v2470_v0 = vpop.permute.xlu0 %2469  ;;  %v3118_v40 = vld [vmem:[#allocation3 + $0x278] sm:$0xff] }
 0x34c   :  { %1555 = vst.msk [vmem:[#allocation3 + $0x288] sm:$0xff] %vm1527_vm6, %v1426_v33  ;;  %2598 = vst.msk [vmem:[#allocation3 + $0x290] sm:$0xff] %vm1527_vm6, %v2470_v0  ;;  %v3500_v56 = vpop.f32.mrb[16].mxu1  ;;  %3588 = vmatprep.mubr.f32.mxu1 %v3118_v40  ;;  %1131 = vrot.lane.b32.xlu1 %v8488_v12, %s7399_s2  ;;  %v9011_v33 = vpop.f32.mrb[87].mxu0  ;;  %v9017_v0 = vld [vmem:[#allocation2 + $0x148] sm:$0xff]  ;;  %v3185_v40 = vld [vmem:[#allocation3 + $0x490] sm:$0xff] }
 0x34d   :  { %v3501_v58 = vadd.f32 %v8757_v54, %v3500_v56  ;;  %2177 = vrot.lane.b32.xlu0 %v9000_v47, %s7399_s2  ;;  %v3502_v6 = vpop.f32.mrb[17].mxu1  ;;  %3589 = vmatmul.mubr.f32.gmra.mrb[52].mxu1 %v3117_v34 }
 0x34e   :  { %v1740_v16 = vpop.permute.xlu1 %1739  ;;  %6681 = vmatprep.mubr.msk.f32.mxu0 %vm791_vm4, %v3185_v40  ;;  %v3188_v6 = vld [vmem:[#allocation3 + $0x4a8] sm:$0xff] }
 0x34f   :  { %v3826_v48 = vadd.f32 %v8474_v28, %v3501_v58  ;;  %1869 = vst.msk [vmem:[#allocation3 + $0x288] sm:$0xff] %vm1841_vm7, %v1740_v16  ;;  %v2782_v12 = vpop.permute.xlu0 %2781  ;;  %v4156_v28 = vld [vmem:[#allocation4 + $0x30] sm:$0xff]  ;;  %6682 = vmatmul.mubr.msk.f32.gmra.mrb[104].mxu0 %vm791_vm4, %v3188_v6 }
 0x350   :  { %2910 = vst.msk [vmem:[#allocation3 + $0x290] sm:$0xff] %vm1841_vm7, %v2782_v12  ;;  %1445 = vrot.lane.b32.xlu1 %v8920_v9, %s7398_s8 }
 0x351   :  { %v4052_v34 = vmax.f32 %v3826_v48, 0.0  ;;  %2489 = vrot.lane.b32.xlu0 %v9017_v0, %s7398_s8 }
 0x352   :  { %v4206_v56 = vld [vmem:[#allocation4 + $0x31] sm:$0xff]  ;;  %v1114_v58 = vpop.permute.xlu1 %1113 }
 0x353   :  { %v4256_v16 = vmax.f32 %v4156_v28, %v4206_v56  ;;  %4105 = vst.msk [vmem:[#allocation4 + $0x40] sm:$0xff] %vm4096_vm8, %v4052_v34  ;;  %v2160_v43 = vpop.permute.xlu0 %2159  ;;  %v4157_v50 = vld [vmem:[#allocation4 + $0x38] sm:$0xff] }
 0x354   :  { %1242 = vst.msk [vmem:[#allocation3 + $0x2a0] sm:$0xff] %vm1213_vm5, %v1114_v58  ;;  %2287 = vst.msk [vmem:[#allocation3 + $0x2a8] sm:$0xff] %vm1213_vm5, %v2160_v43  ;;  %1759 = vrot.lane.b32.xlu1 %v8944_v21, %s7400_s28  ;;  %v9038_v21 = vld [vmem:[#allocation2 + $0x142] sm:$0xff] }
 0x355   :  { %v4313_v9 = vmax.f32 %v4254_v57, %v4256_v16  ;;  %2801 = vrot.lane.b32.xlu0 %v8598_v51, %s7400_s28 }
 0x356   :  { %v1428_v48 = vpop.permute.xlu1 %1427  ;;  %v3120_v12 = vld [vmem:[#allocation3 + $0x288] sm:$0xff] }
 0x357   :  { %4363 = vst.msk [vmem:[#allocation5 + $0x20] sm:$0xff] %vm4096_vm8, %v4313_v9  ;;  %v2472_v34 = vpop.permute.xlu0 %2471  ;;  %v3121_v40 = vld [vmem:[#allocation3 + $0x290] sm:$0xff] }
 0x358   :  { %1556 = vst.msk [vmem:[#allocation3 + $0x2a0] sm:$0xff] %vm1527_vm6, %v1428_v48  ;;  %2599 = vst.msk [vmem:[#allocation3 + $0x2a8] sm:$0xff] %vm1527_vm6, %v2472_v34  ;;  %3593 = vmatprep.mubr.f32.mxu1 %v3121_v40  ;;  %1133 = vrot.lane.b32.xlu1 %v8540_v10, %s7399_s2  ;;  %v9046_v10 = vld [vmem:[#allocation2 + $0x150] sm:$0xff] }
 0x359   :  { %2179 = vrot.lane.b32.xlu0 %v9038_v21, %s7399_s2  ;;  %3594 = vmatmul.mubr.f32.gmra.mrb[54].mxu1 %v3120_v12 }
 0x35a   :  { %v4207_v59 = vld [vmem:[#allocation4 + $0x39] sm:$0xff]  ;;  %v1742_v57 = vpop.permute.xlu1 %1741 }
 0x35b   :  { %v4257_v28 = vmax.f32 %v4157_v50, %v4207_v59  ;;  %1870 = vst.msk [vmem:[#allocation3 + $0x2a0] sm:$0xff] %vm1841_vm7, %v1742_v57  ;;  %v2784_v56 = vpop.permute.xlu0 %2783  ;;  %v9072_v57 = vpop.f32.mrb[88].mxu0 }
 0x35c   :  { %2911 = vst.msk [vmem:[#allocation3 + $0x2a8] sm:$0xff] %vm1841_vm7, %v2784_v56  ;;  %v3505_v58 = vpop.f32.mrb[18].mxu1  ;;  %1447 = vrot.lane.b32.xlu1 %v8967_v17, %s7398_s8 }
 0x35d   :  { %v4314_v6 = vmax.f32 %v4255_v19, %v4257_v28  ;;  %v3506_v16 = vadd.f32 %v8757_v54, %v3505_v58  ;;  %2491 = vrot.lane.b32.xlu0 %v9046_v10, %s7398_s8  ;;  %v3507_v43 = vpop.f32.mrb[19].mxu1  ;;  %v9076_v58 = vpop.f32.mrb[89].mxu0 }
 0x35e   :  { %v1116_v9 = vpop.permute.xlu1 %1115  ;;  %v9085_v43 = vld [vmem:[#allocation4 + $0x40] sm:$0xff] }
 0x35f   :  { %4364 = vst.msk [vmem:[#allocation5 + $0x28] sm:$0xff] %vm4096_vm8, %v4314_v6  ;;  %v3831_v48 = vadd.f32 %v8469_v45, %v3506_v16  ;;  %v2162_v17 = vpop.permute.xlu0 %2161  ;;  %v3191_v16 = vld [vmem:[#allocation3 + $0x4c0] sm:$0xff] }
 0x360   :  { %1243 = vst.msk [vmem:[#allocation3 + $0x2b8] sm:$0xff] %vm1213_vm5, %v1116_v9  ;;  %2288 = vst.msk [vmem:[#allocation3 + $0x2c0] sm:$0xff] %vm1213_vm5, %v2162_v17  ;;  %1761 = vrot.lane.b32.xlu1 %v8981_v60, %s7400_s28  ;;  %v9067_v60 = vld [vmem:[#allocation2 + $0x14a] sm:$0xff]  ;;  %6684 = vmatprep.mubr.msk.f32.mxu0 %vm791_vm4, %v3191_v16 }
 0x361   :  { %v4053_v5 = vmax.f32 %v3831_v48, 0.0  ;;  %2803 = vrot.lane.b32.xlu0 %v8649_v36, %s7400_s28  ;;  %v3194_v48 = vld [vmem:[#allocation3 + $0x4d8] sm:$0xf] }
 0x362   :  { %v1430_v2 = vpop.permute.xlu1 %1429  ;;  %v3123_v19 = vld [vmem:[#allocation3 + $0x2a0] sm:$0xff]  ;;  %6685 = vmatmul.mubr.msk.f32.gmra.mrb[106].mxu0 %vm791_vm4, %v3194_v48 }
 0x363   :  { %4106 = vst.msk [vmem:[#allocation4 + $0x48] sm:$0xff] %vm4096_vm8, %v4053_v5  ;;  %v2474_v12 = vpop.permute.xlu0 %2473  ;;  %v3124_v45 = vld [vmem:[#allocation3 + $0x2a8] sm:$0xff] }
 0x364   :  { %1557 = vst.msk [vmem:[#allocation3 + $0x2b8] sm:$0xff] %vm1527_vm6, %v1430_v2  ;;  %2600 = vst.msk [vmem:[#allocation3 + $0x2c0] sm:$0xff] %vm1527_vm6, %v2474_v12  ;;  %v3510_v34 = vpop.f32.mrb[20].mxu1  ;;  %3598 = vmatprep.mubr.f32.mxu1 %v3124_v45  ;;  %1135 = vrot.lane.b32.xlu1 %v8545_v22, %s7399_s2  ;;  %v9081_v22 = vld [vmem:[#allocation2 + $0x158] sm:$0xff] }
 0x365   :  { %v3511_v40 = vadd.f32 %v8757_v54, %v3510_v34  ;;  %2181 = vrot.lane.b32.xlu0 %v9067_v60, %s7399_s2  ;;  %v3512_v50 = vpop.f32.mrb[21].mxu1  ;;  %3599 = vmatmul.mubr.f32.gmra.mrb[56].mxu1 %v3123_v19  ;;  %v9104_v45 = vld [vmem:[#allocation2 + $0x152] sm:$0xff] }
 0x366   :  { %v1744_v59 = vpop.permute.xlu1 %1743 }
 0x367   :  { %v3836_v28 = vadd.f32 %v8486_v41, %v3511_v40  ;;  %1871 = vst.msk [vmem:[#allocation3 + $0x2b8] sm:$0xff] %vm1841_vm7, %v1744_v59  ;;  %v2786_v56 = vpop.permute.xlu0 %2785 }
 0x368   :  { %2912 = vst.msk [vmem:[#allocation3 + $0x2c0] sm:$0xff] %vm1841_vm7, %v2786_v56  ;;  %1449 = vrot.lane.b32.xlu1 %v9000_v47, %s7398_s8 }
 0x369   :  { %v4054_v6 = vmax.f32 %v3836_v28, 0.0  ;;  %2493 = vrot.lane.b32.xlu0 %v9081_v22, %s7398_s8  ;;  %v9118_v28 = vld [vmem:[#allocation2 + $0x160] sm:$0xff] }
 0x36a   :  { %v9087_v41 = vld [vmem:[#allocation4 + $0x41] sm:$0xff]  ;;  %v1118_v9 = vpop.permute.xlu1 %1117 }
 0x36b   :  { %v4258_v17 = vmax.f32 %v9085_v43, %v9087_v41  ;;  %4107 = vst.msk [vmem:[#allocation4 + $0x50] sm:$0xff] %vm4096_vm8, %v4054_v6  ;;  %v2164_v47 = vpop.permute.xlu0 %2163 }
 0x36c   :  { %1244 = vst.msk [vmem:[#allocation3 + $0x2d0] sm:$0xff] %vm1213_vm5, %v1118_v9  ;;  %2289 = vst.msk [vmem:[#allocation3 + $0x2d8] sm:$0xff] %vm1213_vm5, %v2164_v47  ;;  %1763 = vrot.lane.b32.xlu1 %v9017_v0, %s7400_s28  ;;  %v9108_v0 = vld [vmem:[#allocation4 + $0x48] sm:$0xff] }
 0x36d   :  { %2805 = vrot.lane.b32.xlu0 %v8654_v44, %s7400_s28 }
 0x36e   :  { %v1432_v5 = vpop.permute.xlu1 %1431  ;;  %v3126_v2 = vld [vmem:[#allocation3 + $0x2b8] sm:$0xff] }
 0x36f   :  { %1558 = vst.msk [vmem:[#allocation3 + $0x2d0] sm:$0xff] %vm1527_vm6, %v1432_v5  ;;  %v2476_v19 = vpop.permute.xlu0 %2475  ;;  %v3127_v12 = vld [vmem:[#allocation3 + $0x2c0] sm:$0xff] }
 0x370   :  { %2601 = vst.msk [vmem:[#allocation3 + $0x2d8] sm:$0xff] %vm1527_vm6, %v2476_v19  ;;  %3603 = vmatprep.mubr.f32.mxu1 %v3127_v12  ;;  %1137 = vrot.lane.b32.xlu1 %v8593_v23, %s7399_s2 }
 0x371   :  { %2183 = vrot.lane.b32.xlu0 %v9104_v45, %s7399_s2  ;;  %3604 = vmatmul.mubr.f32.gmra.mrb[58].mxu1 %v3126_v2 }
 0x372   :  { %v9110_v34 = vld [vmem:[#allocation4 + $0x49] sm:$0xff]  ;;  %v1746_v40 = vpop.permute.xlu1 %1745 }
 0x373   :  { %v4259_v50 = vmax.f32 %v9108_v0, %v9110_v34  ;;  %1872 = vst.msk [vmem:[#allocation3 + $0x2d0] sm:$0xff] %vm1841_vm7, %v1746_v40  ;;  %v2788_v59 = vpop.permute.xlu0 %2787 }
 0x374   :  { %2913 = vst.msk [vmem:[#allocation3 + $0x2d8] sm:$0xff] %vm1841_vm7, %v2788_v59  ;;  %v3515_v23 = vpop.f32.mrb[22].mxu1  ;;  %1451 = vrot.lane.b32.xlu1 %v9038_v21, %s7398_s8 }
 0x375   :  { %v3516_v56 = vadd.f32 %v8757_v54, %v3515_v23  ;;  %2495 = vrot.lane.b32.xlu0 %v9118_v28, %s7398_s8  ;;  %v3517_v6 = vpop.f32.mrb[23].mxu1  ;;  %v9140_v23 = vpop.f32.mrb[90].mxu0 }
 0x376   :  { %v1120_v16 = vpop.permute.xlu1 %1119 }
 0x377   :  { %v3841_v9 = vadd.f32 %v8479_v46, %v3516_v56  ;;  %1245 = vst.msk [vmem:[#allocation3 + $0x2e8] sm:$0xff] %vm1213_vm5, %v1120_v16  ;;  %v2166_v48 = vpop.permute.xlu0 %2165  ;;  %v9144_v16 = vpop.f32.mrb[91].mxu0 }
 0x378   :  { %2290 = vst.msk [vmem:[#allocation3 + $0x2f0] sm:$0xff] %vm1213_vm5, %v2166_v48  ;;  %1765 = vrot.lane.b32.xlu1 %v9046_v10, %s7400_s28  ;;  %v9135_v10 = vld [vmem:[#allocation2 + $0x15a] sm:$0xff]  ;;  %v4160_v48 = vld [vmem:[#allocation4 + $0x50] sm:$0xff] }
 0x379   :  { %v4055_v21 = vmax.f32 %v3841_v9, 0.0  ;;  %2807 = vrot.lane.b32.xlu0 %v8705_v27, %s7400_s28 }
 0x37a   :  { %v1434_v47 = vpop.permute.xlu1 %1433  ;;  %v3129_v5 = vld [vmem:[#allocation3 + $0x2d0] sm:$0xff] }
 0x37b   :  { %4108 = vst.msk [vmem:[#allocation4 + $0x58] sm:$0xff] %vm4096_vm8, %v4055_v21  ;;  %v2478_v2 = vpop.permute.xlu0 %2477  ;;  %v3130_v46 = vld [vmem:[#allocation3 + $0x2d8] sm:$0xff] }
 0x37c   :  { %1559 = vst.msk [vmem:[#allocation3 + $0x2e8] sm:$0xff] %vm1527_vm6, %v1434_v47  ;;  %2602 = vst.msk [vmem:[#allocation3 + $0x2f0] sm:$0xff] %vm1527_vm6, %v2478_v2  ;;  %v3520_v19 = vpop.f32.mrb[24].mxu1  ;;  %3608 = vmatprep.mubr.f32.mxu1 %v3130_v46  ;;  %1139 = vrot.lane.b32.xlu1 %v8598_v51, %s7399_s2  ;;  %v9149_v51 = vld [vmem:[#allocation2 + $0x168] sm:$0xff] }
 0x37d   :  { %v3521_v12 = vadd.f32 %v8757_v54, %v3520_v19  ;;  %2185 = vrot.lane.b32.xlu0 %v9135_v10, %s7399_s2  ;;  %v3522_v40 = vpop.f32.mrb[25].mxu1  ;;  %3609 = vmatmul.mubr.f32.gmra.mrb[60].mxu1 %v3129_v5 }
 0x37e   :  { %v1748_v59 = vpop.permute.xlu1 %1747 }
 0x37f   :  { %v3846_v56 = vadd.f32 %v8506_v38, %v3521_v12  ;;  %1873 = vst.msk [vmem:[#allocation3 + $0x2e8] sm:$0xff] %vm1841_vm7, %v1748_v59  ;;  %v2790_v6 = vpop.permute.xlu0 %2789 }
 0x380   :  { %2914 = vst.msk [vmem:[#allocation3 + $0x2f0] sm:$0xff] %vm1841_vm7, %v2790_v6  ;;  %1453 = vrot.lane.b32.xlu1 %v9067_v60, %s7398_s8 }
 0x381   :  { %v4056_v9 = vmax.f32 %v3846_v56, 0.0  ;;  %2497 = vrot.lane.b32.xlu0 %v9149_v51, %s7398_s8 }
 0x382   :  { %v4210_v21 = vld [vmem:[#allocation4 + $0x51] sm:$0xff]  ;;  %v1122_v47 = vpop.permute.xlu1 %1121 }
 0x383   :  { %v4260_v38 = vmax.f32 %v4160_v48, %v4210_v21  ;;  %4109 = vst.msk [vmem:[#allocation4 + $0x60] sm:$0xff] %vm4096_vm8, %v4056_v9  ;;  %v2168_v5 = vpop.permute.xlu0 %2167  ;;  %v4161_v43 = vld [vmem:[#allocation4 + $0x58] sm:$0xff] }
 0x384   :  { %1246 = vst.msk [vmem:[#allocation3 + $0x300] sm:$0xff] %vm1213_vm5, %v1122_v47  ;;  %2291 = vst.msk [vmem:[#allocation3 + $0x308] sm:$0xff] %vm1213_vm5, %v2168_v5  ;;  %1767 = vrot.lane.b32.xlu1 %v9081_v22, %s7400_s28  ;;  %v9168_v22 = vld [vmem:[#allocation2 + $0x162] sm:$0xff]  ;;  %v9199_v5 = vld [vmem:[#allocation15] ss:$0 sm:$0xff] }
 0x385   :  { %v4317_v60 = vmax.f32 %v4258_v17, %v4260_v38  ;;  %2809 = vrot.lane.b32.xlu0 %v8712_v18, %s7400_s28 }
 0x386   :  { %v1436_v2 = vpop.permute.xlu1 %1435  ;;  %v3132_v46 = vld [vmem:[#allocation3 + $0x2e8] sm:$0xff] }
 0x387   :  { %4367 = vst.msk [vmem:[#allocation5 + $0x40] sm:$0xff] %vm4096_vm8, %v4317_v60  ;;  %v2480_v19 = vpop.permute.xlu0 %2479  ;;  %v3133_v12 = vld [vmem:[#allocation3 + $0x2f0] sm:$0xff] }
 0x388   :  { %1560 = vst.msk [vmem:[#allocation3 + $0x300] sm:$0xff] %vm1527_vm6, %v1436_v2  ;;  %2603 = vst.msk [vmem:[#allocation3 + $0x308] sm:$0xff] %vm1527_vm6, %v2480_v19  ;;  %3613 = vmatprep.mubr.f32.mxu1 %v3133_v12  ;;  %1141 = vrot.lane.b32.xlu1 %v8649_v36, %s7399_s2  ;;  %v9176_v36 = vld [vmem:[#allocation2 + $0x170] sm:$0xff]  ;;  %v9204_v19 = vpop.f32.mrb[92].mxu0 }
 0x389   :  { %2187 = vrot.lane.b32.xlu0 %v9168_v22, %s7399_s2  ;;  %3614 = vmatmul.mubr.f32.gmra.mrb[62].mxu1 %v3132_v46 }
 0x38a   :  { %v4211_v41 = vld [vmem:[#allocation4 + $0x59] sm:$0xff]  ;;  %v1750_v17 = vpop.permute.xlu1 %1749 }
 0x38b   :  { %v4261_v40 = vmax.f32 %v4161_v43, %v4211_v41  ;;  %1874 = vst.msk [vmem:[#allocation3 + $0x300] sm:$0xff] %vm1841_vm7, %v1750_v17  ;;  %v2792_v59 = vpop.permute.xlu0 %2791  ;;  %v9213_v41 = vld [vmem:[#allocation2 + $0x178] sm:$0xff] }
 0x38c   :  { %2915 = vst.msk [vmem:[#allocation3 + $0x308] sm:$0xff] %vm1841_vm7, %v2792_v59  ;;  %v3525_v56 = vpop.f32.mrb[26].mxu1  ;;  %1455 = vrot.lane.b32.xlu1 %v9104_v45, %s7398_s8 }
 0x38d   :  { %v4318_v6 = vmax.f32 %v4259_v50, %v4261_v40  ;;  %v3526_v9 = vadd.f32 %v8757_v54, %v3525_v56  ;;  %2499 = vrot.lane.b32.xlu0 %v9176_v36, %s7398_s8  ;;  %v3527_v48 = vpop.f32.mrb[27].mxu1  ;;  %v9217_v40 = vld [vmem:[#allocation4 + $0x60] sm:$0xff] }
 0x38e   :  { %v1124_v21 = vpop.permute.xlu1 %1123 }
 0x38f   :  { %4368 = vst.msk [vmem:[#allocation5 + $0x48] sm:$0xff] %vm4096_vm8, %v4318_v6  ;;  %v3851_v47 = vadd.f32 %v8500_v4, %v3526_v9  ;;  %v2170_v45 = vpop.permute.xlu0 %2169 }
 0x390   :  { %1247 = vst.msk [vmem:[#allocation3 + $0x318] sm:$0xff] %vm1213_vm5, %v1124_v21  ;;  %2292 = vst.msk [vmem:[#allocation3 + $0x320] sm:$0xff] %vm1213_vm5, %v2170_v45  ;;  %1769 = vrot.lane.b32.xlu1 %v9118_v28, %s7400_s28  ;;  %v9197_v28 = vld [vmem:[#allocation2 + $0x16a] sm:$0xff] }
 0x391   :  { %v4057_v0 = vmax.f32 %v3851_v47, 0.0  ;;  %2811 = vrot.lane.b32.xlu0 %v8770_v24, %s7400_s28  ;;  %v9234_v47 = vld [vmem:[#allocation2 + $0x172] sm:$0xff] }
 0x392   :  { %v1438_v54 = vpop.permute.xlu1 %1437  ;;  %v3135_v34 = vld [vmem:[#allocation3 + $0x300] sm:$0xff] }
 0x393   :  { %4110 = vst.msk [vmem:[#allocation4 + $0x68] sm:$0xff] %vm4096_vm8, %v4057_v0  ;;  %v2482_v50 = vpop.permute.xlu0 %2481  ;;  %v3136_v4 = vld [vmem:[#allocation3 + $0x308] sm:$0xff] }
 0x394   :  { %1561 = vst.msk [vmem:[#allocation3 + $0x318] sm:$0xff] %vm1527_vm6, %v1438_v54  ;;  %2604 = vst.msk [vmem:[#allocation3 + $0x320] sm:$0xff] %vm1527_vm6, %v2482_v50  ;;  %v3530_v38 = vpop.f32.mrb[28].mxu1  ;;  %3618 = vmatprep.mubr.f32.mxu1 %v3136_v4  ;;  %1143 = vrot.lane.b32.xlu1 %v8654_v44, %s7399_s2  ;;  %v9208_v44 = vpop.f32.mrb[93].mxu0  ;;  %v9248_v50 = vld [vmem:[#allocation2 + $0x180] sm:$0xff] }
 0x395   :  { %v3531_v60 = vadd.f32 %v9199_v5, %v3530_v38  ;;  %2189 = vrot.lane.b32.xlu0 %v9197_v28, %s7399_s2  ;;  %v3532_v2 = vpop.f32.mrb[29].mxu1  ;;  %3619 = vmatmul.mubr.f32.gmra.mrb[64].mxu1 %v3135_v34 }
 0x396   :  { %v1752_v46 = vpop.permute.xlu1 %1751 }
 0x397   :  { %v3856_v12 = vadd.f32 %v8517_v37, %v3531_v60  ;;  %1875 = vst.msk [vmem:[#allocation3 + $0x318] sm:$0xff] %vm1841_vm7, %v1752_v46  ;;  %v2794_v43 = vpop.permute.xlu0 %2793 }
 0x398   :  { %2916 = vst.msk [vmem:[#allocation3 + $0x320] sm:$0xff] %vm1841_vm7, %v2794_v43  ;;  %1457 = vrot.lane.b32.xlu1 %v9135_v10, %s7398_s8 }
 0x399   :  { %v4058_v17 = vmax.f32 %v3856_v12, 0.0  ;;  %2501 = vrot.lane.b32.xlu0 %v9213_v41, %s7398_s8 }
 0x39a   :  { %v9219_v59 = vld [vmem:[#allocation4 + $0x61] sm:$0xff]  ;;  %v1126_v37 = vpop.permute.xlu1 %1125 }
 0x39b   :  { %v4262_v56 = vmax.f32 %v9217_v40, %v9219_v59  ;;  %4111 = vst.msk [vmem:[#allocation4 + $0x70] sm:$0xff] %vm4096_vm8, %v4058_v17  ;;  %v2172_v6 = vpop.permute.xlu0 %2171 }
 0x39c   :  { %1248 = vst.msk [vmem:[#allocation3 + $0x330] sm:$0xff] %vm1213_vm5, %v1126_v37  ;;  %2293 = vst.msk [vmem:[#allocation3 + $0x338] sm:$0xff] %vm1213_vm5, %v2172_v6  ;;  %1771 = vrot.lane.b32.xlu1 %v9149_v51, %s7400_s28  ;;  %v9238_v51 = vld [vmem:[#allocation4 + $0x68] sm:$0xff] }
 0x39d   :  { %2813 = vrot.lane.b32.xlu0 %v8777_v32, %s7400_s28 }
 0x39e   :  { %v1440_v10 = vpop.permute.xlu1 %1439  ;;  %v3138_v9 = vld [vmem:[#allocation3 + $0x318] sm:$0xff] }
 0x39f   :  { %1562 = vst.msk [vmem:[#allocation3 + $0x330] sm:$0xff] %vm1527_vm6, %v1440_v10  ;;  %v2484_v48 = vpop.permute.xlu0 %2483  ;;  %v3139_v21 = vld [vmem:[#allocation3 + $0x320] sm:$0xff] }
 0x3a0   :  { %2605 = vst.msk [vmem:[#allocation3 + $0x338] sm:$0xff] %vm1527_vm6, %v2484_v48  ;;  %3623 = vmatprep.mubr.f32.mxu1 %v3139_v21  ;;  %1145 = vrot.lane.b32.xlu1 %v8705_v27, %s7399_s2  ;;  %v9270_v48 = vpop.f32.mrb[94].mxu0 }
 0x3a1   :  { %2191 = vrot.lane.b32.xlu0 %v9234_v47, %s7399_s2  ;;  %3624 = vmatmul.mubr.f32.gmra.mrb[66].mxu1 %v3138_v9 }
 0x3a2   :  { %v9240_v45 = vld [vmem:[#allocation4 + $0x69] sm:$0xff]  ;;  %v1754_v0 = vpop.permute.xlu1 %1753 }
 0x3a3   :  { %v4263_v54 = vmax.f32 %v9238_v51, %v9240_v45  ;;  %1876 = vst.msk [vmem:[#allocation3 + $0x330] sm:$0xff] %vm1841_vm7, %v1754_v0  ;;  %v2796_v34 = vpop.permute.xlu0 %2795 }
 0x3a4   :  { %2917 = vst.msk [vmem:[#allocation3 + $0x338] sm:$0xff] %vm1841_vm7, %v2796_v34  ;;  %v3535_v27 = vpop.f32.mrb[30].mxu1  ;;  %1459 = vrot.lane.b32.xlu1 %v9168_v22, %s7398_s8  ;;  %v9274_v34 = vpop.f32.mrb[95].mxu0 }
 0x3a5   :  { %v3536_v4 = vadd.f32 %v9199_v5, %v3535_v27  ;;  %2503 = vrot.lane.b32.xlu0 %v9248_v50, %s7398_s8  ;;  %v3537_v38 = vpop.f32.mrb[31].mxu1  ;;  %v4164_v27 = vld [vmem:[#allocation4 + $0x70] sm:$0xff] }
 0x3a6   :  { %v1128_v60 = vpop.permute.xlu1 %1127 }
 0x3a7   :  { %v3861_v2 = vadd.f32 %v8512_v1, %v3536_v4  ;;  %1249 = vst.msk [vmem:[#allocation3 + $0x348] sm:$0xff] %vm1213_vm5, %v1128_v60  ;;  %v2174_v46 = vpop.permute.xlu0 %2173 }
 0x3a8   :  { %2294 = vst.msk [vmem:[#allocation3 + $0x350] sm:$0xff] %vm1213_vm5, %v2174_v46  ;;  %1773 = vrot.lane.b32.xlu1 %v9176_v36, %s7400_s28  ;;  %v9265_v36 = vld [vmem:[#allocation2 + $0x17a] sm:$0xff] }
 0x3a9   :  { %v4059_v22 = vmax.f32 %v3861_v2, 0.0  ;;  %2815 = vrot.lane.b32.xlu0 %v8840_v35, %s7400_s28 }
 0x3aa   :  { %v1442_v12 = vpop.permute.xlu1 %1441  ;;  %v3141_v43 = vld [vmem:[#allocation3 + $0x330] sm:$0xff] }
 0x3ab   :  { %4112 = vst.msk [vmem:[#allocation4 + $0x78] sm:$0xff] %vm4096_vm8, %v4059_v22  ;;  %v2486_v17 = vpop.permute.xlu0 %2485  ;;  %v3142_v1 = vld [vmem:[#allocation3 + $0x338] sm:$0xff] }
 0x3ac   :  { %1563 = vst.msk [vmem:[#allocation3 + $0x348] sm:$0xff] %vm1527_vm6, %v1442_v12  ;;  %2606 = vst.msk [vmem:[#allocation3 + $0x350] sm:$0xff] %vm1527_vm6, %v2486_v17  ;;  %v3540_v37 = vpop.f32.mrb[32].mxu1  ;;  %3628 = vmatprep.mubr.f32.mxu1 %v3142_v1  ;;  %1147 = vrot.lane.b32.xlu1 %v8712_v18, %s7399_s2 }
 0x3ad   :  { %v3541_v6 = vadd.f32 %v9199_v5, %v3540_v37  ;;  %2193 = vrot.lane.b32.xlu0 %v9265_v36, %s7399_s2  ;;  %v3542_v10 = vpop.f32.mrb[33].mxu1  ;;  %3629 = vmatmul.mubr.f32.gmra.mrb[68].mxu1 %v3141_v43 }
 0x3ae   :  { %v1756_v9 = vpop.permute.xlu1 %1755 }
 0x3af   :  { %v3866_v21 = vadd.f32 %v8570_v26, %v3541_v6  ;;  %1877 = vst.msk [vmem:[#allocation3 + $0x348] sm:$0xff] %vm1841_vm7, %v1756_v9  ;;  %v2798_v0 = vpop.permute.xlu0 %2797 }
 0x3b0   :  { %2918 = vst.msk [vmem:[#allocation3 + $0x350] sm:$0xff] %vm1841_vm7, %v2798_v0  ;;  %1461 = vrot.lane.b32.xlu1 %v9197_v28, %s7398_s8 }
 0x3b1   :  { %v4060_v18 = vmax.f32 %v3866_v21, 0.0  ;;  %2505 = vrot.lane.b32.xlu0 %v8842_v52, %s7398_s8 }
 0x3b2   :  { %v4214_v4 = vld [vmem:[#allocation4 + $0x71] sm:$0xff]  ;;  %v1130_v38 = vpop.permute.xlu1 %1129 }
 0x3b3   :  { %v4264_v60 = vmax.f32 %v4164_v27, %v4214_v4  ;;  %4113 = vst.msk [vmem:[#allocation4 + $0x80] sm:$0xff] %vm4096_vm8, %v4060_v18  ;;  %v2176_v26 = vpop.permute.xlu0 %2175  ;;  %v4165_v40 = vld [vmem:[#allocation4 + $0x78] sm:$0xff] }
 0x3b4   :  { %1250 = vst.msk [vmem:[#allocation3 + $0x360] sm:$0xff] %vm1213_vm5, %v1130_v38  ;;  %2295 = vst.msk [vmem:[#allocation3 + $0x368] sm:$0xff] %vm1213_vm5, %v2176_v26  ;;  %1775 = vrot.lane.b32.xlu1 %v9213_v41, %s7400_s28  ;;  %v9296_v41 = vld [vmem:[#allocation2 + $0x182] sm:$0xff] }
 0x3b5   :  { %v4321_v28 = vmax.f32 %v4262_v56, %v4264_v60  ;;  %2817 = vrot.lane.b32.xlu0 %v8849_v13, %s7400_s28 }
 0x3b6   :  { %v1444_v2 = vpop.permute.xlu1 %1443  ;;  %v3144_v46 = vld [vmem:[#allocation3 + $0x348] sm:$0xff] }
 0x3b7   :  { %4371 = vst.msk [vmem:[#allocation5 + $0x60] sm:$0xff] %vm4096_vm8, %v4321_v28  ;;  %v2488_v22 = vpop.permute.xlu0 %2487  ;;  %v3145_v12 = vld [vmem:[#allocation3 + $0x350] sm:$0xff] }
 0x3b8   :  { %1564 = vst.msk [vmem:[#allocation3 + $0x360] sm:$0xff] %vm1527_vm6, %v1444_v2  ;;  %2607 = vst.msk [vmem:[#allocation3 + $0x368] sm:$0xff] %vm1527_vm6, %v2488_v22  ;;  %3633 = vmatprep.mubr.f32.mxu1 %v3145_v12  ;;  %1149 = vrot.lane.b32.xlu1 %v8770_v24, %s7399_s2 }
 0x3b9   :  { %2195 = vrot.lane.b32.xlu0 %v9296_v41, %s7399_s2  ;;  %3634 = vmatmul.mubr.f32.gmra.mrb[70].mxu1 %v3144_v46 }
 0x3ba   :  { %v4215_v59 = vld [vmem:[#allocation4 + $0x79] sm:$0xff]  ;;  %v1758_v56 = vpop.permute.xlu1 %1757 }
 0x3bb   :  { %v4265_v43 = vmax.f32 %v4165_v40, %v4215_v59  ;;  %1878 = vst.msk [vmem:[#allocation3 + $0x360] sm:$0xff] %vm1841_vm7, %v1758_v56  ;;  %v2800_v17 = vpop.permute.xlu0 %2799  ;;  %v9341_v46 = vld [vmem:[#allocation4 + $0x80] sm:$0xff] }
 0x3bc   :  { %2919 = vst.msk [vmem:[#allocation3 + $0x368] sm:$0xff] %vm1841_vm7, %v2800_v17  ;;  %v3545_v1 = vpop.f32.mrb[34].mxu1  ;;  %1463 = vrot.lane.b32.xlu1 %v9234_v47, %s7398_s8  ;;  %v9358_v17 = vld [vmem:[#allocation2 + $0x192] sm:$0xff] }
 0x3bd   :  { %v4322_v24 = vmax.f32 %v4263_v54, %v4265_v43  ;;  %v3546_v37 = vadd.f32 %v9199_v5, %v3545_v1  ;;  %2507 = vrot.lane.b32.xlu0 %v8913_v20, %s7398_s8  ;;  %v3547_v6 = vpop.f32.mrb[35].mxu1 }
 0x3be   :  { %v1132_v10 = vpop.permute.xlu1 %1131  ;;  %v9372_v6 = vld [vmem:[#allocation2 + $0x1a0] sm:$0xff] }
 0x3bf   :  { %4372 = vst.msk [vmem:[#allocation5 + $0x68] sm:$0xff] %vm4096_vm8, %v4322_v24  ;;  %v3871_v9 = vadd.f32 %v8565_v11, %v3546_v37  ;;  %v2178_v21 = vpop.permute.xlu0 %2177 }
 0x3c0   :  { %1251 = vst.msk [vmem:[#allocation3 + $0x378] sm:$0xff] %vm1213_vm5, %v1132_v10  ;;  %2296 = vst.msk [vmem:[#allocation3 + $0x380] sm:$0xff] %vm1213_vm5, %v2178_v21  ;;  %1777 = vrot.lane.b32.xlu1 %v9248_v50, %s7400_s28  ;;  %v9323_v50 = vld [vmem:[#allocation2 + $0x18a] sm:$0xff] }
 0x3c1   :  { %v4061_v47 = vmax.f32 %v3871_v9, 0.0  ;;  %2819 = vrot.lane.b32.xlu0 %v8915_v3, %s7400_s28  ;;  %v9328_v38 = vpop.f32.mrb[96].mxu0 }
 0x3c2   :  { %v1446_v51 = vpop.permute.xlu1 %1445  ;;  %v3147_v45 = vld [vmem:[#allocation3 + $0x360] sm:$0xff]  ;;  %v9332_v28 = vpop.f32.mrb[97].mxu0 }
 0x3c3   :  { %4114 = vst.msk [vmem:[#allocation4 + $0x88] sm:$0xff] %vm4096_vm8, %v4061_v47  ;;  %v2490_v54 = vpop.permute.xlu0 %2489  ;;  %v3148_v11 = vld [vmem:[#allocation3 + $0x368] sm:$0xff] }
 0x3c4   :  { %1565 = vst.msk [vmem:[#allocation3 + $0x378] sm:$0xff] %vm1527_vm6, %v1446_v51  ;;  %2608 = vst.msk [vmem:[#allocation3 + $0x380] sm:$0xff] %vm1527_vm6, %v2490_v54  ;;  %v3550_v0 = vpop.f32.mrb[36].mxu1  ;;  %3638 = vmatprep.mubr.f32.mxu1 %v3148_v11  ;;  %1151 = vrot.lane.b32.xlu1 %v8777_v32, %s7399_s2  ;;  %v9337_v32 = vld [vmem:[#allocation2 + $0x198] sm:$0xff] }
 0x3c5   :  { %v3551_v18 = vadd.f32 %v9199_v5, %v3550_v0  ;;  %2197 = vrot.lane.b32.xlu0 %v9323_v50, %s7399_s2  ;;  %v3552_v27 = vpop.f32.mrb[37].mxu1  ;;  %3639 = vmatmul.mubr.f32.gmra.mrb[72].mxu1 %v3147_v45 }
 0x3c6   :  { %v1760_v4 = vpop.permute.xlu1 %1759 }
 0x3c7   :  { %v3876_v60 = vadd.f32 %v8625_v62, %v3551_v18  ;;  %1879 = vst.msk [vmem:[#allocation3 + $0x378] sm:$0xff] %vm1841_vm7, %v1760_v4  ;;  %v2802_v26 = vpop.permute.xlu0 %2801 }
 0x3c8   :  { %2920 = vst.msk [vmem:[#allocation3 + $0x380] sm:$0xff] %vm1841_vm7, %v2802_v26  ;;  %1465 = vrot.lane.b32.xlu1 %v9265_v36, %s7398_s8 }
 0x3c9   :  { %v4062_v2 = vmax.f32 %v3876_v60, 0.0  ;;  %2509 = vrot.lane.b32.xlu0 %v9337_v32, %s7398_s8 }
 0x3ca   :  { %v9343_v22 = vld [vmem:[#allocation4 + $0x81] sm:$0xff]  ;;  %v1134_v62 = vpop.permute.xlu1 %1133 }
 0x3cb   :  { %v4266_v12 = vmax.f32 %v9341_v46, %v9343_v22  ;;  %4115 = vst.msk [vmem:[#allocation4 + $0x90] sm:$0xff] %vm4096_vm8, %v4062_v2  ;;  %v2180_v40 = vpop.permute.xlu0 %2179 }
 0x3cc   :  { %1252 = vst.msk [vmem:[#allocation3 + $0x390] sm:$0xff] %vm1213_vm5, %v1134_v62  ;;  %2297 = vst.msk [vmem:[#allocation3 + $0x398] sm:$0xff] %vm1213_vm5, %v2180_v40  ;;  %1779 = vrot.lane.b32.xlu1 %v8842_v52, %s7400_s28  ;;  %v9362_v52 = vld [vmem:[#allocation4 + $0x88] sm:$0xff] }
 0x3cd   :  { %2821 = vrot.lane.b32.xlu0 %v8922_v14, %s7400_s28 }
 0x3ce   :  { %v1448_v36 = vpop.permute.xlu1 %1447  ;;  %v3150_v59 = vld [vmem:[#allocation3 + $0x378] sm:$0xff] }
 0x3cf   :  { %1566 = vst.msk [vmem:[#allocation3 + $0x390] sm:$0xff] %vm1527_vm6, %v1448_v36  ;;  %v2492_v56 = vpop.permute.xlu0 %2491  ;;  %v3151_v43 = vld [vmem:[#allocation3 + $0x380] sm:$0xff] }
 0x3d0   :  { %2609 = vst.msk [vmem:[#allocation3 + $0x398] sm:$0xff] %vm1527_vm6, %v2492_v56  ;;  %3643 = vmatprep.mubr.f32.mxu1 %v3151_v43  ;;  %1153 = vrot.lane.b32.xlu1 %v8840_v35, %s7399_s2  ;;  %v2672_v43 = vld [vmem:[#allocation2 + $0x1a9] sm:$0xff] }
 0x3d1   :  { %2199 = vrot.lane.b32.xlu0 %v9358_v17, %s7399_s2  ;;  %3644 = vmatmul.mubr.f32.gmra.mrb[74].mxu1 %v3150_v59 }
 0x3d2   :  { %v9364_v14 = vld [vmem:[#allocation4 + $0x89] sm:$0xff]  ;;  %v1762_v1 = vpop.permute.xlu1 %1761 }
 0x3d3   :  { %v4267_v24 = vmax.f32 %v9362_v52, %v9364_v14  ;;  %1880 = vst.msk [vmem:[#allocation3 + $0x390] sm:$0xff] %vm1841_vm7, %v1762_v1  ;;  %v2804_v37 = vpop.permute.xlu0 %2803  ;;  %v4168_v40 = vld [vmem:[#allocation4 + $0x90] sm:$0xff] }
 0x3d4   :  { %2921 = vst.msk [vmem:[#allocation3 + $0x398] sm:$0xff] %vm1841_vm7, %v2804_v37  ;;  %v3555_v35 = vpop.f32.mrb[38].mxu1  ;;  %1467 = vrot.lane.b32.xlu1 %v9296_v41, %s7398_s8 }
 0x3d5   :  { %v3556_v10 = vadd.f32 %v9199_v5, %v3555_v35  ;;  %2511 = vrot.lane.b32.xlu0 %v9372_v6, %s7398_s8  ;;  %v3557_v9 = vpop.f32.mrb[39].mxu1 }
 0x3d6   :  { %v1136_v21 = vpop.permute.xlu1 %1135 }
 0x3d7   :  { %v3881_v47 = vadd.f32 %v8620_v61, %v3556_v10  ;;  %1253 = vst.msk [vmem:[#allocation3 + $0x3a8] sm:$0xff] %vm1213_vm5, %v1136_v21  ;;  %v2182_v51 = vpop.permute.xlu0 %2181 }
 0x3d8   :  { %2298 = vst.msk [vmem:[#allocation3 + $0x3b0] sm:$0xff] %vm1213_vm5, %v2182_v51  ;;  %1781 = vrot.lane.b32.xlu1 %v8913_v20, %s7400_s28  ;;  %v2048_v20 = vld [vmem:[#allocation2 + $0x19a] sm:$0xff]  ;;  %v2361_v51 = vld [vmem:[#allocation2 + $0x1b0] sm:$0xff] }
 0x3d9   :  { %v4063_v41 = vmax.f32 %v3881_v47, 0.0  ;;  %2823 = vrot.lane.b32.xlu0 %v8995_v29, %s7400_s28 }
 0x3da   :  { %v1450_v45 = vpop.permute.xlu1 %1449  ;;  %v3153_v54 = vld [vmem:[#allocation3 + $0x390] sm:$0xff]  ;;  %v9391_v4 = vpop.f32.mrb[98].mxu0 }
 0x3db   :  { %4116 = vst.msk [vmem:[#allocation4 + $0x98] sm:$0xff] %vm4096_vm8, %v4063_v41  ;;  %v2494_v11 = vpop.permute.xlu0 %2493  ;;  %v3154_v61 = vld [vmem:[#allocation3 + $0x398] sm:$0xff]  ;;  %v9395_v2 = vpop.f32.mrb[99].mxu0 }
 0x3dc   :  { %1567 = vst.msk [vmem:[#allocation3 + $0x3a8] sm:$0xff] %vm1527_vm6, %v1450_v45  ;;  %2610 = vst.msk [vmem:[#allocation3 + $0x3b0] sm:$0xff] %vm1527_vm6, %v2494_v11  ;;  %v3560_v0 = vpop.f32.mrb[40].mxu1  ;;  %3648 = vmatprep.mubr.f32.mxu1 %v3154_v61  ;;  %1155 = vrot.lane.b32.xlu1 %v8849_v13, %s7399_s2  ;;  %v2360_v13 = vld [vmem:[#allocation2 + $0x1a8] sm:$0xff] }
 0x3dd   :  { %v3561_v18 = vadd.f32 %v9199_v5, %v3560_v0  ;;  %2201 = vrot.lane.b32.xlu0 %v2048_v20, %s7399_s2  ;;  %v3562_v29 = vpop.f32.mrb[41].mxu1  ;;  %3649 = vmatmul.mubr.f32.gmra.mrb[76].mxu1 %v3153_v54  ;;  %v1004_v20 = vld [vmem:[#allocation2 + $0x199] sm:$0xf] }
 0x3de   :  { %v1764_v27 = vpop.permute.xlu1 %1763 }
 0x3df   :  { %v3886_v60 = vadd.f32 %v8680_v30, %v3561_v18  ;;  %1881 = vst.msk [vmem:[#allocation3 + $0x3a8] sm:$0xff] %vm1841_vm7, %v1764_v27  ;;  %v2806_v26 = vpop.permute.xlu0 %2805 }
 0x3e0   :  { %2922 = vst.msk [vmem:[#allocation3 + $0x3b0] sm:$0xff] %vm1841_vm7, %v2806_v26  ;;  %1469 = vrot.lane.b32.xlu1 %v9323_v50, %s7398_s8 }
 0x3e1   :  { %v4064_v62 = vmax.f32 %v3886_v60, 0.0  ;;  %2513 = vrot.lane.b32.xlu0 %v2360_v13, %s7398_s8 }
 0x3e2   :  { %v4218_v36 = vld [vmem:[#allocation4 + $0x91] sm:$0xff]  ;;  %v1138_v59 = vpop.permute.xlu1 %1137 }
 0x3e3   :  { %v4268_v56 = vmax.f32 %v4168_v40, %v4218_v36  ;;  %4117 = vst.msk [vmem:[#allocation4 + $0xa0] sm:$0xff] %vm4096_vm8, %v4064_v62  ;;  %v2184_v30 = vpop.permute.xlu0 %2183  ;;  %v4169_v46 = vld [vmem:[#allocation4 + $0x98] sm:$0xff] }
 0x3e4   :  { %1254 = vst.msk [vmem:[#allocation3 + $0x3c0] sm:$0xff] %vm1213_vm5, %v1138_v59  ;;  %2299 = vst.msk [vmem:[#allocation3 + $0x3c8] sm:$0xff] %vm1213_vm5, %v2184_v30  ;;  %1783 = vrot.lane.b32.xlu1 %v9337_v32, %s7400_s28  ;;  %v2049_v32 = vld [vmem:[#allocation2 + $0x1a2] sm:$0xff]  ;;  %v1318_v40 = vld [vmem:[#allocation2 + $0x19a] sm:$0xf] }
 0x3e5   :  { %v4325_v50 = vmax.f32 %v4266_v12, %v4268_v56  ;;  %2825 = vrot.lane.b32.xlu0 %v2672_v43, %s7400_s28  ;;  %v2362_v59 = vld [vmem:[#allocation2 + $0x1b8] sm:$0xf] }
 0x3e6   :  { %v1452_v1 = vpop.permute.xlu1 %1451  ;;  %v3156_v37 = vld [vmem:[#allocation3 + $0x3a8] sm:$0xff] }
 0x3e7   :  { %4375 = vst.msk [vmem:[#allocation5 + $0x80] sm:$0xff] %vm4096_vm8, %v4325_v50  ;;  %v2496_v35 = vpop.permute.xlu0 %2495  ;;  %v3157_v10 = vld [vmem:[#allocation3 + $0x3b0] sm:$0xff] }
 0x3e8   :  { %1568 = vst.msk [vmem:[#allocation3 + $0x3c0] sm:$0xff] %vm1527_vm6, %v1452_v1  ;;  %2611 = vst.msk [vmem:[#allocation3 + $0x3c8] sm:$0xff] %vm1527_vm6, %v2496_v35  ;;  %3653 = vmatprep.mubr.f32.mxu1 %v3157_v10  ;;  %1157 = vrot.lane.b32.xlu1 %v8915_v3, %s7399_s2  ;;  %v2674_v35 = vld [vmem:[#allocation2 + $0x1b9] sm:$0xf] }
 0x3e9   :  { %2203 = vrot.lane.b32.xlu0 %v2049_v32, %s7399_s2  ;;  %3654 = vmatmul.mubr.f32.gmra.mrb[78].mxu1 %v3156_v37  ;;  %v1632_v37 = vld [vmem:[#allocation2 + $0x1a8] sm:$0xf] }
 0x3ea   :  { %v4219_v22 = vld [vmem:[#allocation4 + $0x99] sm:$0xff]  ;;  %v1766_v12 = vpop.permute.xlu1 %1765 }
 0x3eb   :  { %v4269_v9 = vmax.f32 %v4169_v46, %v4219_v22  ;;  %1882 = vst.msk [vmem:[#allocation3 + $0x3c0] sm:$0xff] %vm1841_vm7, %v1766_v12  ;;  %v2808_v21 = vpop.permute.xlu0 %2807  ;;  %v4170_v30 = vld [vmem:[#allocation4 + $0xa0] sm:$0xff] }
 0x3ec   :  { %2923 = vst.msk [vmem:[#allocation3 + $0x3c8] sm:$0xff] %vm1841_vm7, %v2808_v21  ;;  %1471 = vrot.lane.b32.xlu1 %v9358_v17, %s7398_s8  ;;  %v2673_v17 = vld [vmem:[#allocation2 + $0x1b1] sm:$0xff] }
 0x3ed   :  { %v3565_v47 = vpop.f32.mrb[42].mxu1  ;;  %v4326_v3 = vmax.f32 %v4267_v24, %v4269_v9  ;;  %2515 = vrot.lane.b32.xlu0 %v2361_v51, %s7398_s8 }
 0x3ee   :  { %v3566_v41 = vadd.f32 %v9199_v5, %v3565_v47  ;;  %v3567_v45 = vpop.f32.mrb[43].mxu1  ;;  %v1140_v54 = vpop.permute.xlu1 %1139 }
 0x3ef   :  { %4376 = vst.msk [vmem:[#allocation5 + $0x88] sm:$0xff] %vm4096_vm8, %v4326_v3  ;;  %v2186_v61 = vpop.permute.xlu0 %2185 }
 0x3f0   :  { %v3891_v11 = vadd.f32 %v8675_v49, %v3566_v41  ;;  %1255 = vst.msk [vmem:[#allocation3 + $0x3d8] sm:$0xff] %vm1213_vm5, %v1140_v54  ;;  %2300 = vst.msk [vmem:[#allocation3 + $0x3e0] sm:$0xff] %vm1213_vm5, %v2186_v61  ;;  %1785 = vrot.lane.b32.xlu1 %v9372_v6, %s7400_s28  ;;  %v2050_v6 = vld [vmem:[#allocation2 + $0x1aa] sm:$0xf] }
 0x3f1   :  { %2827 = vrot.lane.b32.xlu0 %v2673_v17, %s7400_s28 }
 0x3f2   :  { %v4065_v52 = vmax.f32 %v3891_v11, 0.0  ;;  %v1454_v14 = vpop.permute.xlu1 %1453  ;;  %v3159_v24 = vld [vmem:[#allocation3 + $0x3c0] sm:$0xff] }
 0x3f3   :  { %1569 = vst.msk [vmem:[#allocation3 + $0x3d8] sm:$0xff] %vm1527_vm6, %v1454_v14  ;;  %v2498_v0 = vpop.permute.xlu0 %2497  ;;  %v3160_v49 = vld [vmem:[#allocation3 + $0x3c8] sm:$0xff] }
 0x3f4   :  { %4118 = vst.msk [vmem:[#allocation4 + $0xa8] sm:$0xff] %vm4096_vm8, %v4065_v52  ;;  %v3570_v18 = vpop.f32.mrb[44].mxu1  ;;  %3658 = vmatprep.mubr.f32.mxu1 %v3160_v49  ;;  %1159 = vrot.lane.b32.xlu1 %v1004_v20, %s7399_s2 }
 0x3f5   :  { %2612 = vst.msk [vmem:[#allocation3 + $0x3e0] sm:$0xff] %vm1527_vm6, %v2498_v0  ;;  %v3571_v29 = vadd.f32 %v9199_v5, %v3570_v18  ;;  %2205 = vrot.lane.b32.xlu0 %v2050_v6, %s7399_s2  ;;  %v3572_v27 = vpop.f32.mrb[45].mxu1  ;;  %3659 = vmatmul.mubr.f32.gmra.mrb[80].mxu1 %v3159_v24 }
 0x3f6   :  { %v1768_v60 = vpop.permute.xlu1 %1767  ;;  %v9438_v26 = vpop.f32.mrb[100].mxu0 }
 0x3f7   :  { %v3896_v13 = vadd.f32 %v8738_v15, %v3571_v29  ;;  %1883 = vst.msk [vmem:[#allocation3 + $0x3d8] sm:$0xff] %vm1841_vm7, %v1768_v60  ;;  %v2810_v62 = vpop.permute.xlu0 %2809  ;;  %v9442_v36 = vpop.f32.mrb[101].mxu0 }
 0x3f8   :  { %2924 = vst.msk [vmem:[#allocation3 + $0x3e0] sm:$0xff] %vm1841_vm7, %v2810_v62  ;;  %1473 = vrot.lane.b32.xlu1 %v1318_v40, %s7398_s8 }
 0x3f9   :  { %v4066_v56 = vmax.f32 %v3896_v13, 0.0  ;;  %2517 = vrot.lane.b32.xlu0 %v2362_v59, %s7398_s8 }
 0x3fa   :  { %v1142_v50 = vpop.permute.xlu1 %1141 }
 0x3fb   :  { %v4220_v43 = vld [vmem:[#allocation4 + $0xa1] sm:$0xff]  ;;  %4119 = vst.msk [vmem:[#allocation4 + $0xb0] sm:$0xff] %vm4096_vm8, %v4066_v56  ;;  %v2188_v15 = vpop.permute.xlu0 %2187 }
 0x3fc   :  { %v4270_v1 = vmax.f32 %v4170_v30, %v4220_v43  ;;  %1256 = vst.msk [vmem:[#allocation3 + $0x3f0] sm:$0xff] %vm1213_vm5, %v1142_v50  ;;  %2301 = vst.msk [vmem:[#allocation3 + $0x3f8] sm:$0xff] %vm1213_vm5, %v2188_v15  ;;  %1787 = vrot.lane.b32.xlu1 %v1632_v37, %s7400_s28  ;;  %v4171_v47 = vld [vmem:[#allocation4 + $0xa8] sm:$0xff] }
 0x3fd   :  { %2829 = vrot.lane.b32.xlu0 %v2674_v35, %s7400_s28 }
 0x3fe   :  { %v1456_v10 = vpop.permute.xlu1 %1455  ;;  %v3162_v32 = vld [vmem:[#allocation3 + $0x3d8] sm:$0xff] }
 0x3ff   :  { %1570 = vst.msk [vmem:[#allocation3 + $0x3f0] sm:$0xff] %vm1527_vm6, %v1456_v10  ;;  %v2500_v46 = vpop.permute.xlu0 %2499  ;;  %v3163_v22 = vld [vmem:[#allocation3 + $0x3e0] sm:$0xff] }
 0x400   :  { %2613 = vst.msk [vmem:[#allocation3 + $0x3f8] sm:$0xff] %vm1527_vm6, %v2500_v46  ;;  %3663 = vmatprep.mubr.f32.mxu1 %v3163_v22 }
 0x401   :  { %v3575_v12 = vpop.f32.mrb[46].mxu1  ;;  %3664 = vmatmul.mubr.f32.gmra.mrb[82].mxu1 %v3162_v32 }
 0x402   :  { %v3576_v9 = vadd.f32 %v9199_v5, %v3575_v12  ;;  %v3577_v21 = vpop.f32.mrb[47].mxu1  ;;  %v4221_v51 = vld [vmem:[#allocation4 + $0xa9] sm:$0xff]  ;;  %v1770_v3 = vpop.permute.xlu1 %1769 }
 0x403   :  { %v4271_v41 = vmax.f32 %v4171_v47, %v4221_v51  ;;  %1884 = vst.msk [vmem:[#allocation3 + $0x3f0] sm:$0xff] %vm1841_vm7, %v1770_v3  ;;  %v2812_v54 = vpop.permute.xlu0 %2811  ;;  %v4172_v29 = vld [vmem:[#allocation4 + $0xb0] sm:$0xff] }
 0x404   :  { %v3901_v45 = vadd.f32 %v8733_v42, %v3576_v9  ;;  %2925 = vst.msk [vmem:[#allocation3 + $0x3f8] sm:$0xff] %vm1841_vm7, %v2812_v54 }
 0x406   :  { %v4067_v11 = vmax.f32 %v3901_v45, 0.0  ;;  %v1144_v61 = vpop.permute.xlu1 %1143 }
 0x407   :  { %1257 = vst.msk [vmem:[#allocation3 + $0x408] sm:$0xff] %vm1213_vm5, %v1144_v61  ;;  %v2190_v17 = vpop.permute.xlu0 %2189 }
 0x408   :  { %4120 = vst.msk [vmem:[#allocation4 + $0xb8] sm:$0xff] %vm4096_vm8, %v4067_v11  ;;  %v3580_v52 = vpop.f32.mrb[48].mxu1 }
 0x409   :  { %2302 = vst.msk [vmem:[#allocation3 + $0x410] sm:$0xff] %vm1213_vm5, %v2190_v17  ;;  %v3581_v14 = vadd.f32 %v9199_v5, %v3580_v52  ;;  %v3582_v24 = vpop.f32.mrb[49].mxu1 }
 0x40a   :  { %v1458_v0 = vpop.permute.xlu1 %1457  ;;  %v3165_v42 = vld [vmem:[#allocation3 + $0x3f0] sm:$0xff] }
 0x40b   :  { %v3906_v49 = vadd.f32 %v8807_v8, %v3581_v14  ;;  %1571 = vst.msk [vmem:[#allocation3 + $0x408] sm:$0xff] %vm1527_vm6, %v1458_v0  ;;  %v2502_v20 = vpop.permute.xlu0 %2501  ;;  %v3166_v18 = vld [vmem:[#allocation3 + $0x3f8] sm:$0xff]  ;;  %v9468_v8 = vpop.f32.mrb[102].mxu0 }
 0x40c   :  { %2614 = vst.msk [vmem:[#allocation3 + $0x410] sm:$0xff] %vm1527_vm6, %v2502_v20  ;;  %3668 = vmatprep.mubr.f32.mxu1 %v3166_v18  ;;  %v9470_v59 = vpop.f32.mrb[103].mxu0 }
 0x40d   :  { %v4068_v6 = vmax.f32 %v3906_v49, 0.0  ;;  %3669 = vmatmul.mubr.f32.gmra.mrb[84].mxu1 %v3165_v42 }
 0x40e   :  { %v1772_v60 = vpop.permute.xlu1 %1771 }
 0x40f   :  { %v4222_v27 = vld [vmem:[#allocation4 + $0xb1] sm:$0xff]  ;;  %4121 = vst.msk [vmem:[#allocation4 + $0xc0] sm:$0xff] %vm4096_vm8, %v4068_v6  ;;  %v2814_v62 = vpop.permute.xlu0 %2813 }
 0x410   :  { %v4272_v13 = vmax.f32 %v4172_v29, %v4222_v27  ;;  %1885 = vst.msk [vmem:[#allocation3 + $0x408] sm:$0xff] %vm1841_vm7, %v1772_v60  ;;  %2926 = vst.msk [vmem:[#allocation3 + $0x410] sm:$0xff] %vm1841_vm7, %v2814_v62  ;;  %v4173_v37 = vld [vmem:[#allocation4 + $0xb8] sm:$0xff] }
 0x412   :  { %v4329_v40 = vmax.f32 %v4270_v1, %v4272_v13  ;;  %v1146_v56 = vpop.permute.xlu1 %1145 }
 0x413   :  { %1258 = vst.msk [vmem:[#allocation3 + $0x420] sm:$0xff] %vm1213_vm5, %v1146_v56  ;;  %v2192_v30 = vpop.permute.xlu0 %2191 }
 0x414   :  { %4379 = vst.msk [vmem:[#allocation5 + $0xa0] sm:$0xff] %vm4096_vm8, %v4329_v40  ;;  %v3585_v43 = vpop.f32.mrb[50].mxu1 }
 0x415   :  { %2303 = vst.msk [vmem:[#allocation3 + $0x428] sm:$0xff] %vm1213_vm5, %v2192_v30  ;;  %v3586_v50 = vadd.f32 %v9199_v5, %v3585_v43  ;;  %v3587_v15 = vpop.f32.mrb[51].mxu1 }
 0x416   :  { %v4223_v35 = vld [vmem:[#allocation4 + $0xb9] sm:$0xff]  ;;  %v1460_v10 = vpop.permute.xlu1 %1459 }
 0x417   :  { %v3168_v32 = vld [vmem:[#allocation3 + $0x408] sm:$0xff]  ;;  %v4273_v46 = vmax.f32 %v4173_v37, %v4223_v35  ;;  %v3911_v1 = vadd.f32 %v8801_v39, %v3586_v50  ;;  %1572 = vst.msk [vmem:[#allocation3 + $0x420] sm:$0xff] %vm1527_vm6, %v1460_v10  ;;  %v2504_v22 = vpop.permute.xlu0 %2503  ;;  %v3169_v12 = vld [vmem:[#allocation3 + $0x410] sm:$0xff] }
 0x418   :  { %2615 = vst.msk [vmem:[#allocation3 + $0x428] sm:$0xff] %vm1527_vm6, %v2504_v22  ;;  %3673 = vmatprep.mubr.f32.mxu1 %v3169_v12 }
 0x419   :  { %v4330_v9 = vmax.f32 %v4271_v41, %v4273_v46  ;;  %v4069_v21 = vmax.f32 %v3911_v1, 0.0  ;;  %3674 = vmatmul.mubr.f32.gmra.mrb[86].mxu1 %v3168_v32 }
 0x41a   :  { %v1774_v47 = vpop.permute.xlu1 %1773 }
 0x41b   :  { %4380 = vst.msk [vmem:[#allocation5 + $0xa8] sm:$0xff] %vm4096_vm8, %v4330_v9  ;;  %4122 = vst.msk [vmem:[#allocation4 + $0xc8] sm:$0xff] %vm4096_vm8, %v4069_v21  ;;  %v2816_v51 = vpop.permute.xlu0 %2815 }
 0x41c   :  { %1886 = vst.msk [vmem:[#allocation3 + $0x420] sm:$0xff] %vm1841_vm7, %v1774_v47  ;;  %2927 = vst.msk [vmem:[#allocation3 + $0x428] sm:$0xff] %vm1841_vm7, %v2816_v51 }
 0x41e   :  { %v1148_v39 = vpop.permute.xlu1 %1147 }
 0x41f   :  { %1259 = vst.msk [vmem:[#allocation3 + $0x438] sm:$0xff] %vm1213_vm5, %v1148_v39  ;;  %v2194_v3 = vpop.permute.xlu0 %2193 }
 0x420   :  { %2304 = vst.msk [vmem:[#allocation3 + $0x440] sm:$0xff] %vm1213_vm5, %v2194_v3  ;;  %v3590_v45 = vpop.f32.mrb[52].mxu1 }
 0x421   :  { %v3591_v41 = vadd.f32 %v9199_v5, %v3590_v45  ;;  %v3592_v54 = vpop.f32.mrb[53].mxu1 }
 0x422   :  { %v1462_v11 = vpop.permute.xlu1 %1461  ;;  %v9492_v49 = vpop.f32.mrb[104].mxu0 }
 0x423   :  { %v3171_v61 = vld [vmem:[#allocation3 + $0x420] sm:$0xff]  ;;  %v3916_v17 = vadd.f32 %v8866_v53, %v3591_v41  ;;  %1573 = vst.msk [vmem:[#allocation3 + $0x438] sm:$0xff] %vm1527_vm6, %v1462_v11  ;;  %v2506_v52 = vpop.permute.xlu0 %2505  ;;  %v3172_v14 = vld [vmem:[#allocation3 + $0x428] sm:$0xff]  ;;  %v9494_v53 = vpop.f32.mrb[105].mxu0 }
 0x424   :  { %2616 = vst.msk [vmem:[#allocation3 + $0x440] sm:$0xff] %vm1527_vm6, %v2506_v52  ;;  %3678 = vmatprep.mubr.f32.mxu1 %v3172_v14 }
 0x425   :  { %v4070_v24 = vmax.f32 %v3916_v17, 0.0  ;;  %3679 = vmatmul.mubr.f32.gmra.mrb[88].mxu1 %v3171_v61 }
 0x426   :  { %v1776_v0 = vpop.permute.xlu1 %1775 }
 0x427   :  { %4123 = vst.msk [vmem:[#allocation4 + $0xd0] sm:$0xff] %vm4096_vm8, %v4070_v24  ;;  %v2818_v42 = vpop.permute.xlu0 %2817 }
 0x428   :  { %1887 = vst.msk [vmem:[#allocation3 + $0x438] sm:$0xff] %vm1841_vm7, %v1776_v0  ;;  %2928 = vst.msk [vmem:[#allocation3 + $0x440] sm:$0xff] %vm1841_vm7, %v2818_v42 }
 0x42a   :  { %v1150_v20 = vpop.permute.xlu1 %1149 }
 0x42b   :  { %1260 = vst.msk [vmem:[#allocation3 + $0x450] sm:$0xff] %vm1213_vm5, %v1150_v20  ;;  %v2196_v18 = vpop.permute.xlu0 %2195 }
 0x42c   :  { %2305 = vst.msk [vmem:[#allocation3 + $0x458] sm:$0xff] %vm1213_vm5, %v2196_v18  ;;  %v3595_v6 = vpop.f32.mrb[54].mxu1  ;;  %v9529_v18 = vld [vmem:[#allocation15] ss:$0 sm:$0xff] }
 0x42d   :  { %v3596_v29 = vadd.f32 %v9199_v5, %v3595_v6  ;;  %v3597_v27 = vpop.f32.mrb[55].mxu1 }
 0x42e   :  { %v1464_v60 = vpop.permute.xlu1 %1463 }
 0x42f   :  { %v3174_v13 = vld [vmem:[#allocation3 + $0x438] sm:$0xff]  ;;  %v3921_v62 = vadd.f32 %v8861_v63, %v3596_v29  ;;  %1574 = vst.msk [vmem:[#allocation3 + $0x450] sm:$0xff] %vm1527_vm6, %v1464_v60  ;;  %v2508_v40 = vpop.permute.xlu0 %2507  ;;  %v3175_v56 = vld [vmem:[#allocation3 + $0x440] sm:$0xff] }
 0x430   :  { %2617 = vst.msk [vmem:[#allocation3 + $0x458] sm:$0xff] %vm1527_vm6, %v2508_v40  ;;  %3683 = vmatprep.mubr.f32.mxu1 %v3175_v56 }
 0x431   :  { %v4071_v30 = vmax.f32 %v3921_v62, 0.0  ;;  %3684 = vmatmul.mubr.f32.gmra.mrb[90].mxu1 %v3174_v13 }
 0x432   :  { %v1778_v43 = vpop.permute.xlu1 %1777 }
 0x433   :  { %4124 = vst.msk [vmem:[#allocation4 + $0xd8] sm:$0xff] %vm4096_vm8, %v4071_v30  ;;  %v2820_v50 = vpop.permute.xlu0 %2819 }
 0x434   :  { %1888 = vst.msk [vmem:[#allocation3 + $0x450] sm:$0xff] %vm1841_vm7, %v1778_v43  ;;  %2929 = vst.msk [vmem:[#allocation3 + $0x458] sm:$0xff] %vm1841_vm7, %v2820_v50 }
 0x435   :  { %v9514_v51 = vpop.f32.mrb[106].mxu0 }
 0x436   :  { %v1152_v15 = vpop.permute.xlu1 %1151 }
 0x437   :  { %1261 = vst.msk [vmem:[#allocation3 + $0x468] sm:$0xff] %vm1213_vm5, %v1152_v15  ;;  %v2198_v63 = vpop.permute.xlu0 %2197 }
 0x438   :  { %2306 = vst.msk [vmem:[#allocation3 + $0x470] sm:$0xff] %vm1213_vm5, %v2198_v63  ;;  %v3600_v37 = vpop.f32.mrb[56].mxu1 }
 0x439   :  { %v3601_v35 = vadd.f32 %v9199_v5, %v3600_v37  ;;  %v3602_v10 = vpop.f32.mrb[57].mxu1 }
 0x43a   :  { %v1466_v32 = vpop.permute.xlu1 %1465 }
 0x43b   :  { %v3177_v46 = vld [vmem:[#allocation3 + $0x450] sm:$0xff]  ;;  %v3926_v1 = vadd.f32 %v8938_v31, %v3601_v35  ;;  %1575 = vst.msk [vmem:[#allocation3 + $0x468] sm:$0xff] %vm1527_vm6, %v1466_v32  ;;  %v2510_v22 = vpop.permute.xlu0 %2509  ;;  %v3178_v12 = vld [vmem:[#allocation3 + $0x458] sm:$0xff]  ;;  %v9516_v31 = vpop.f32.mrb[107].mxu0 }
 0x43c   :  { %2618 = vst.msk [vmem:[#allocation3 + $0x470] sm:$0xff] %vm1527_vm6, %v2510_v22  ;;  %3688 = vmatprep.mubr.f32.mxu1 %v3178_v12 }
 0x43d   :  { %v4072_v9 = vmax.f32 %v3926_v1, 0.0  ;;  %3689 = vmatmul.mubr.f32.gmra.mrb[92].mxu1 %v3177_v46 }
 0x43e   :  { %v1780_v21 = vpop.permute.xlu1 %1779 }
 0x43f   :  { %4125 = vst.msk [vmem:[#allocation4 + $0xe0] sm:$0xff] %vm4096_vm8, %v4072_v9  ;;  %v2822_v47 = vpop.permute.xlu0 %2821 }
 0x440   :  { %1889 = vst.msk [vmem:[#allocation3 + $0x468] sm:$0xff] %vm1841_vm7, %v1780_v21  ;;  %2930 = vst.msk [vmem:[#allocation3 + $0x470] sm:$0xff] %vm1841_vm7, %v2822_v47 }
 0x442   :  { %v1154_v39 = vpop.permute.xlu1 %1153 }
 0x443   :  { %1262 = vst.msk [vmem:[#allocation3 + $0x480] sm:$0xff] %vm1213_vm5, %v1154_v39  ;;  %v2200_v3 = vpop.permute.xlu0 %2199 }
 0x444   :  { %2307 = vst.msk [vmem:[#allocation3 + $0x488] sm:$0xff] %vm1213_vm5, %v2200_v3  ;;  %v3605_v45 = vpop.f32.mrb[58].mxu1 }
 0x445   :  { %v3606_v41 = vadd.f32 %v9199_v5, %v3605_v45  ;;  %v3607_v54 = vpop.f32.mrb[59].mxu1 }
 0x446   :  { %v1468_v11 = vpop.permute.xlu1 %1467  ;;  %v9532_v27 = vld [vmem:[#allocation4 + $0xe0] sm:$0xff] }
 0x447   :  { %v3180_v61 = vld [vmem:[#allocation3 + $0x468] sm:$0xff]  ;;  %v3931_v17 = vadd.f32 %v8934_v55, %v3606_v41  ;;  %1576 = vst.msk [vmem:[#allocation3 + $0x480] sm:$0xff] %vm1527_vm6, %v1468_v11  ;;  %v2512_v52 = vpop.permute.xlu0 %2511  ;;  %v3181_v14 = vld [vmem:[#allocation3 + $0x470] sm:$0xff]  ;;  %v4874_v11 = vld [vmem:[#allocation16 + $0x280] sm:$0xff] }
 0x448   :  { %2619 = vst.msk [vmem:[#allocation3 + $0x488] sm:$0xff] %vm1527_vm6, %v2512_v52  ;;  %3693 = vmatprep.mubr.f32.mxu1 %v3181_v14 }
 0x449   :  { %v4073_v24 = vmax.f32 %v3931_v17, 0.0  ;;  %3694 = vmatmul.mubr.f32.gmra.mrb[94].mxu1 %v3180_v61  ;;  %v4875_v61 = vld [vmem:[#allocation16 + $0x288] sm:$0xff]  ;;  %v4858_v17 = vld [vmem:[#allocation16 + $0x200] sm:$0xff] }
 0x44a   :  { %v1782_v0 = vpop.permute.xlu1 %1781  ;;  %v6852_v14 = vpack.c.bf16 %v4875_v61, %v4874_v11  ;;  %v4410_v11 = vld [vmem:[#allocation5] ss:$224 sm:$0x1] }
 0x44b   :  { %4126 = vst.msk [vmem:[#allocation4 + $0xe8] sm:$0xff] %vm4096_vm8, %v4073_v24  ;;  %v2824_v5 = vpop.permute.xlu0 %2823  ;;  %v4859_v24 = vld [vmem:[#allocation16 + $0x208] sm:$0xff] }
 0x44c   :  { %1890 = vst.msk [vmem:[#allocation3 + $0x480] sm:$0xff] %vm1841_vm7, %v1782_v0  ;;  %2931 = vst.msk [vmem:[#allocation3 + $0x488] sm:$0xff] %vm1841_vm7, %v2824_v5  ;;  %6853 = vmatprep.subr.bf16.mxu1 %v6852_v14 }
 0x44e   :  { %v1156_v42 = vpop.permute.xlu1 %1155 }
 0x44f   :  { %1263 = vst.msk [vmem:[#allocation3 + $0x498] sm:$0xff] %vm1213_vm5, %v1156_v42  ;;  %v2202_v55 = vpop.permute.xlu0 %2201  ;;  %v6854_v42 = vpack.c.bf16 %v4859_v24, %v4858_v17 }
 0x450   :  { %2308 = vst.msk [vmem:[#allocation3 + $0x4a0] sm:$0xff] %vm1213_vm5, %v2202_v55  ;;  %v3610_v20 = vpop.f32.mrb[60].mxu1 }
 0x451   :  { %v3611_v6 = vadd.f32 %v9529_v18, %v3610_v20  ;;  %v3612_v29 = vpop.f32.mrb[61].mxu1  ;;  %6855 = vmatpush3.bf16.msra.mxu1 %v6854_v42 }
 0x452   :  { %v9534_v60 = vld [vmem:[#allocation4 + $0xe1] sm:$0xff]  ;;  %v1470_v13 = vpop.permute.xlu1 %1469 }
 0x453   :  { %v3183_v62 = vld [vmem:[#allocation3 + $0x480] sm:$0xff]  ;;  %v4278_v40 = vmax.f32 %v9532_v27, %v9534_v60  ;;  %v3936_v56 = vadd.f32 %v9011_v33, %v3611_v6  ;;  %1577 = vst.msk [vmem:[#allocation3 + $0x498] sm:$0xff] %vm1527_vm6, %v1470_v13  ;;  %v2514_v30 = vpop.permute.xlu0 %2513  ;;  %v3184_v43 = vld [vmem:[#allocation3 + $0x488] sm:$0xff] }
 0x454   :  { %2620 = vst.msk [vmem:[#allocation3 + $0x4a0] sm:$0xff] %vm1527_vm6, %v2514_v30  ;;  %3698 = vmatprep.mubr.f32.mxu1 %v3184_v43  ;;  %v9547_v46 = vld [vmem:[#allocation4 + $0xe8] sm:$0xff]  ;;  %v4438_v60 = vld [vmem:[#allocation5 + $0x6] ss:$224 sm:$0x1] }
 0x455   :  { %v4074_v50 = vmax.f32 %v3936_v56, 0.0  ;;  %3699 = vmatmul.mubr.f32.gmra.mrb[96].mxu1 %v3183_v62 }
 0x456   :  { %v1784_v15 = vpop.permute.xlu1 %1783 }
 0x457   :  { %4127 = vst.msk [vmem:[#allocation4 + $0xf0] sm:$0xff] %vm4096_vm8, %v4074_v50  ;;  %v2826_v63 = vpop.permute.xlu0 %2825 }
 0x458   :  { %1891 = vst.msk [vmem:[#allocation3 + $0x498] sm:$0xff] %vm1841_vm7, %v1784_v15  ;;  %2932 = vst.msk [vmem:[#allocation3 + $0x4a0] sm:$0xff] %vm1841_vm7, %v2826_v63  ;;  %v7401_v63 = vmov 1983009808  }
 0x45a   :  { %v1158_v37 = vpop.permute.xlu1 %1157 }
 0x45b   :  { %1264 = vst.msk [vmem:[#allocation3 + $0x4b0] sm:$0xff] %vm1213_vm5, %v1158_v37  ;;  %v2204_v33 = vpop.permute.xlu0 %2203  ;;  %v4421_v37 = vunpack.c.l.s4 %v7401_v63 }
 0x45c   :  { %2309 = vst.msk [vmem:[#allocation3 + $0x4b8] sm:$0xff] %vm1213_vm5, %v2204_v33  ;;  %v3615_v35 = vpop.f32.mrb[62].mxu1  ;;  %v4423_v33 = vlaneseq }
 0x45d   :  { %v3616_v10 = vadd.f32 %v9529_v18, %v3615_v35  ;;  %v3617_v32 = vpop.f32.mrb[63].mxu1  ;;  %v4422_v35 = vunpack.c.0.s8 %v4421_v37 }
 0x45e   :  { %v9549_v1 = vld [vmem:[#allocation4 + $0xe9] sm:$0xff]  ;;  %v1472_v22 = vpop.permute.xlu1 %1471 }
 0x45f   :  { %v3186_v12 = vld [vmem:[#allocation3 + $0x498] sm:$0xff]  ;;  %v4279_v9 = vmax.f32 %v9547_v46, %v9549_v1  ;;  %v3941_v21 = vadd.f32 %v9007_v25, %v3616_v10  ;;  %1578 = vst.msk [vmem:[#allocation3 + $0x4b0] sm:$0xff] %vm1527_vm6, %v1472_v22  ;;  %v2516_v47 = vpop.permute.xlu0 %2515  ;;  %v3187_v39 = vld [vmem:[#allocation3 + $0x4a0] sm:$0xff]  ;;  %v4180_v55 = vld [vmem:[#allocation4 + $0xf0] sm:$0xff]  ;;  %v4424_v10 = vshrl.u32 %v4423_v33, 7 }
 0x460   :  { %2621 = vst.msk [vmem:[#allocation3 + $0x4b8] sm:$0xff] %vm1527_vm6, %v2516_v47  ;;  %3703 = vmatprep.mubr.f32.mxu1 %v3187_v39  ;;  %v4416_v39 = vld [vmem:[#allocation5 + $0x2] ss:$224 sm:$0x1]  ;;  %v4876_v46 = vld [vmem:[#allocation16 + $0x290] sm:$0xff]  ;;  %v4877_v1 = vld [vmem:[#allocation16 + $0x298] sm:$0xff] }
 0x461   :  { %v4075_v3 = vmax.f32 %v3941_v21, 0.0  ;;  %3704 = vmatmul.mubr.f32.gmra.mrb[98].mxu1 %v3186_v12  ;;  %v9569_v47 = vsub.s32 %v4422_v35, %v4424_v10  ;;  %v4454_v35 = vld [vmem:[#allocation5 + $0x8] ss:$224 sm:$0x1] }
 0x462   :  { %v1786_v45 = vpop.permute.xlu1 %1785 }
 0x463   :  { %4128 = vst.msk [vmem:[#allocation4 + $0xf8] sm:$0xff] %vm4096_vm8, %v4075_v3  ;;  %v2828_v41 = vpop.permute.xlu0 %2827  ;;  %v4433_v3 = vld [vmem:[#allocation5 + $0x4] ss:$224 sm:$0x1] }
 0x464   :  { %1892 = vst.msk [vmem:[#allocation3 + $0x4b0] sm:$0xff] %vm1841_vm7, %v1786_v45  ;;  %2933 = vst.msk [vmem:[#allocation3 + $0x4b8] sm:$0xff] %vm1841_vm7, %v2828_v41 }
 0x466   :  { %v1160_v54 = vpop.permute.xlu1 %1159 }
 0x467   :  { %1266 = vst.msk [vmem:[#allocation3 + $0x4c8] sm:$0xf] %vm1265_vm10, %v1160_v54  ;;  %v2206_v25 = vpop.permute.xlu0 %2205 }
 0x468   :  { %2310 = vst.msk [vmem:[#allocation3 + $0x4d0] sm:$0xf] %vm1265_vm10, %v2206_v25  ;;  %v3620_v52 = vpop.f32.mrb[64].mxu1 }
 0x469   :  { %v3621_v0 = vadd.f32 %v9529_v18, %v3620_v52  ;;  %v3622_v5 = vpop.f32.mrb[65].mxu1 }
 0x46a   :  { %v4230_v20 = vld [vmem:[#allocation4 + $0xf1] sm:$0xff]  ;;  %v1474_v6 = vpop.permute.xlu1 %1473 }
 0x46b   :  { %v3189_v29 = vld [vmem:[#allocation3 + $0x4b0] sm:$0xff]  ;;  %v4280_v13 = vmax.f32 %v4180_v55, %v4230_v20  ;;  %v3946_v62 = vadd.f32 %v9076_v58, %v3621_v0  ;;  %1580 = vst.msk [vmem:[#allocation3 + $0x4c8] sm:$0xf] %vm1579_vm11, %v1474_v6  ;;  %v2518_v56 = vpop.permute.xlu0 %2517  ;;  %v3190_v30 = vld [vmem:[#allocation3 + $0x4b8] sm:$0xff] }
 0x46c   :  { %2622 = vst.msk [vmem:[#allocation3 + $0x4d0] sm:$0xf] %vm1579_vm11, %v2518_v56  ;;  %3708 = vmatprep.mubr.f32.mxu1 %v3190_v30  ;;  %v4459_v30 = vld [vmem:[#allocation5 + $0xa] ss:$224 sm:$0x1] }
 0x46d   :  { %v4337_v43 = vmax.f32 %v4278_v40, %v4280_v13  ;;  %v4076_v50 = vmax.f32 %v3946_v62, 0.0  ;;  %3709 = vmatmul.mubr.f32.gmra.mrb[100].mxu1 %v3189_v29  ;;  %v4181_v40 = vld [vmem:[#allocation4 + $0xf8] sm:$0xff]  ;;  %v6856_v29 = vpack.c.bf16 %v4877_v1, %v4876_v46  ;;  %v4861_v13 = vld [vmem:[#allocation16 + $0x218] sm:$0xff]  ;;  %v4799_v1 = vld [vmem:[#allocation16 + $0x28] sm:$0xff] }
 0x46e   :  { %v1788_v15 = vpop.permute.xlu1 %1787  ;;  %v4798_v46 = vld [vmem:[#allocation16 + $0x20] sm:$0xff] }
 0x46f   :  { %4387 = vst.msk [vmem:[#allocation5 + $0xe0] sm:$0xff] %vm4096_vm8, %v4337_v43  ;;  %4129 = vst.msk [vmem:[#allocation4 + $0x100] sm:$0xff] %vm4096_vm8, %v4076_v50  ;;  %v2830_v58 = vpop.permute.xlu0 %2829  ;;  %6857 = vmatprep.subr.bf16.mxu1 %v6856_v29  ;;  %v4817_v29 = vld [vmem:[#allocation16 + $0xb8] sm:$0xff] }
 0x470   :  { %1894 = vst.msk [vmem:[#allocation3 + $0x4c8] sm:$0xf] %vm1893_vm12, %v1788_v15  ;;  %2934 = vst.msk [vmem:[#allocation3 + $0x4d0] sm:$0xf] %vm1893_vm12, %v2830_v58 }
 0x474   :  { %v3625_v32 = vpop.f32.mrb[66].mxu1 }
 0x475   :  { %v3626_v22 = vadd.f32 %v9529_v18, %v3625_v32  ;;  %v3627_v27 = vpop.f32.mrb[67].mxu1 }
 0x476   :  { %v4231_v12 = vld [vmem:[#allocation4 + $0xf9] sm:$0xff]  ;;  %v4439_v25 = vld [vmem:[#allocation5 + $0x6] ss:$224 sm:$0x2] }
 0x477   :  { %v3192_v21 = vld [vmem:[#allocation3 + $0x4c8] sm:$0xf]  ;;  %v4281_v45 = vmax.f32 %v4181_v40, %v4231_v12  ;;  %v3951_v41 = vadd.f32 %v9072_v57, %v3626_v22  ;;  %v3193_v54 = vld [vmem:[#allocation3 + $0x4d0] sm:$0xf]  ;;  %v4440_v61 = vor.u32 %v4439_v25, %v4438_v60  ;;  %v9584_v50 = vld [vmem:[#allocation4 + $0x100] sm:$0xff] }
 0x478   :  { %3713 = vmatprep.mubr.f32.mxu1 %v3193_v54  ;;  %v4417_v17 = vld [vmem:[#allocation5 + $0x2] ss:$224 sm:$0x2]  ;;  %v4434_v52 = vld [vmem:[#allocation5 + $0x4] ss:$224 sm:$0x2] }
 0x479   :  { %v4338_v14 = vmax.f32 %v4279_v9, %v4281_v45  ;;  %v4077_v24 = vmax.f32 %v3951_v41, 0.0  ;;  %3714 = vmatmul.mubr.f32.gmra.mrb[102].mxu1 %v3192_v21  ;;  %v4418_v0 = vor.u32 %v4417_v17, %v4416_v39  ;;  %v4435_v5 = vor.u32 %v4434_v52, %v4433_v3  ;;  %v4411_v42 = vld [vmem:[#allocation5] ss:$224 sm:$0x2]  ;;  %v4860_v9 = vld [vmem:[#allocation16 + $0x210] sm:$0xff]  ;;  %v4810_v60 = vld [vmem:[#allocation16 + $0x80] sm:$0xff] }
 0x47a   :  { %v4448_v55 = vrot.slane %v4440_v61, %v9569_v47  ;;  %v4412_v57 = vor.u32 %v4411_v42, %v4410_v11  ;;  %v6858_v43 = vpack.c.bf16 %v4861_v13, %v4860_v9  ;;  %v4811_v40 = vld [vmem:[#allocation16 + $0x88] sm:$0xff]  ;;  %v4794_v21 = vld [vmem:[#allocation16] sm:$0xff]  ;;  %v4812_v11 = vld [vmem:[#allocation16 + $0x90] sm:$0xff]  ;;  %v6798_v9 = vpack.c.bf16 %v4799_v1, %v4798_v46 }
 0x47b   :  { %4388 = vst.msk [vmem:[#allocation5 + $0xe8] sm:$0xff] %vm4096_vm8, %v4338_v14  ;;  %4130 = vst.msk [vmem:[#allocation4 + $0x108] sm:$0xff] %vm4096_vm8, %v4077_v24  ;;  %v4426_v20 = vrot.slane %v4418_v0, %v9569_v47  ;;  %v6788_v12 = vpack.c.bf16 %v4811_v40, %v4810_v60  ;;  %v4795_v39 = vld [vmem:[#allocation16 + $0x8] sm:$0xff]  ;;  %v4813_v52 = vld [vmem:[#allocation16 + $0x98] sm:$0xff] }
 0x47c   :  { %4436 = vst.msk [vmem:[#allocation6 + $0x2] sm:$0x3] %vm4413_vm13, %v4435_v5  ;;  %4449 = vrot.lane.b32.xlu1 %v4448_v55, %s7398_s8  ;;  %4414 = vst.msk [vmem:[#allocation6] sm:$0x3] %vm4413_vm13, %v4412_v57  ;;  %6859 = vmatpush3.bf16.msra.mxu1 %v6858_v43  ;;  %v6790_v3 = vpack.c.bf16 %v4795_v39, %v4794_v21  ;;  %v4796_v14 = vld [vmem:[#allocation16 + $0x10] sm:$0xff]  ;;  %v4797_v24 = vld [vmem:[#allocation16 + $0x18] sm:$0xff]  ;;  %v6792_v0 = vpack.c.bf16 %v4813_v52, %v4812_v11 }
 0x47d   :  { %4427 = vrot.lane.b32.xlu0 %v4426_v20, %s7398_s8  ;;  %6789 = vmatprep.subr.bf16.mxu0 %v6788_v12  ;;  %v6794_v5 = vpack.c.bf16 %v4797_v24, %v4796_v14  ;;  %v4814_v55 = vld [vmem:[#allocation16 + $0xa0] sm:$0xff]  ;;  %v4815_v57 = vld [vmem:[#allocation16 + $0xa8] sm:$0xff]  ;;  %v4820_v52 = vld [vmem:[#allocation16 + $0xd0] sm:$0xff] }
 0x47e   :  { %6791 = vmatpush3.bf16.msra.mxu0 %v6790_v3  ;;  %v6796_v20 = vpack.c.bf16 %v4815_v57, %v4814_v55  ;;  %v4879_v13 = vld [vmem:[#allocation16 + $0x2a8] sm:$0xff]  ;;  %v4818_v40 = vld [vmem:[#allocation16 + $0xc0] sm:$0xff]  ;;  %v4821_v14 = vld [vmem:[#allocation16 + $0xd8] sm:$0xff] }
 0x47f   :  { %6793 = vmatprep.subr.bf16.mxu0 %v6792_v0  ;;  %v4819_v39 = vld [vmem:[#allocation16 + $0xc8] sm:$0xff]  ;;  %v4804_v24 = vld [vmem:[#allocation16 + $0x50] sm:$0xff]  ;;  %v4805_v0 = vld [vmem:[#allocation16 + $0x58] sm:$0xff] }
 0x480   :  { %v3630_v6 = vpop.f32.mrb[68].mxu1  ;;  %v4803_v3 = vld [vmem:[#allocation16 + $0x48] sm:$0xff] }
 0x481   :  { %v3631_v62 = vadd.f32 %v9529_v18, %v3630_v6  ;;  %v3632_v56 = vpop.f32.mrb[69].mxu1  ;;  %v4816_v6 = vld [vmem:[#allocation16 + $0xb0] sm:$0xff]  ;;  %v4823_v55 = vld [vmem:[#allocation16 + $0xe8] sm:$0xff] }
 0x482   :  { %v9586_v15 = vld [vmem:[#allocation4 + $0x101] sm:$0xff]  ;;  %v4460_v63 = vld [vmem:[#allocation5 + $0xa] ss:$224 sm:$0x2]  ;;  %6795 = vmatpush3.bf16.msra.mxu0 %v6794_v5  ;;  %v6800_v56 = vpack.c.bf16 %v4817_v29, %v4816_v6  ;;  %v6810_v5 = vpack.c.bf16 %v4805_v0, %v4804_v24 }
 0x483   :  { %v4282_v37 = vmax.f32 %v9584_v50, %v9586_v15  ;;  %v3956_v33 = vadd.f32 %v9144_v16, %v3631_v62  ;;  %v4461_v58 = vor.u32 %v4460_v63, %v4459_v30  ;;  %v4455_v10 = vld [vmem:[#allocation5 + $0x8] ss:$224 sm:$0x2]  ;;  %6797 = vmatprep.subr.bf16.mxu0 %v6796_v20  ;;  %v4862_v62 = vld [vmem:[#allocation16 + $0x220] sm:$0xff]  ;;  %v4863_v63 = vld [vmem:[#allocation16 + $0x228] sm:$0xff] }
 0x484   :  { %v4456_v32 = vor.u32 %v4455_v10, %v4454_v35  ;;  %v9596_v54 = vld [vmem:[#allocation4 + $0x108] sm:$0xff]  ;;  %v4806_v50 = vld [vmem:[#allocation16 + $0x60] sm:$0xff]  ;;  %v4807_v15 = vld [vmem:[#allocation16 + $0x68] sm:$0xff] }
 0x485   :  { %v4078_v22 = vmax.f32 %v3956_v33, 0.0  ;;  %v4469_v27 = vrot.slane %v4461_v58, %v9569_v47  ;;  %v4800_v33 = vld [vmem:[#allocation16 + $0x30] sm:$0xff]  ;;  %v4801_v58 = vld [vmem:[#allocation16 + $0x38] sm:$0xff]  ;;  %v4480_v20 = vld [vmem:[#allocation5 + $0x22] ss:$224 sm:$0x1]  ;;  %v6814_v46 = vpack.c.bf16 %v4807_v15, %v4806_v50 }
 0x486   :  { %4457 = vst.msk [vmem:[#allocation6 + $0x4] sm:$0x3] %vm4413_vm13, %v4456_v32  ;;  %6799 = vmatpush3.bf16.msra.mxu0 %v6798_v9  ;;  %v6862_v32 = vpack.c.bf16 %v4863_v63, %v4862_v62  ;;  %v4501_v6 = vld [vmem:[#allocation5 + $0x26] ss:$224 sm:$0x1] }
 0x487   :  { %4131 = vst.msk [vmem:[#allocation4 + $0x110] sm:$0xff] %vm4096_vm8, %v4078_v22  ;;  %4470 = vrot.lane.b32.xlu0 %v4469_v27, %s7398_s8  ;;  %6801 = vmatprep.subr.bf16.mxu0 %v6800_v56  ;;  %v6802_v22 = vpack.c.bf16 %v4801_v58, %v4800_v33  ;;  %v4475_v29 = vld [vmem:[#allocation5 + $0x20] ss:$224 sm:$0x1] }
 0x488   :  { %v4496_v56 = vld [vmem:[#allocation5 + $0x24] ss:$224 sm:$0x1] }
 0x48a   :  { %6803 = vmatpush3.bf16.msra.mxu0 %v6802_v22  ;;  %v4824_v22 = vld [vmem:[#allocation16 + $0xf0] sm:$0xff] }
 0x48c   :  { %v3635_v16 = vpop.f32.mrb[70].mxu1 }
 0x48d   :  { %v3636_v45 = vadd.f32 %v9529_v18, %v3635_v16  ;;  %v3637_v41 = vpop.f32.mrb[71].mxu1  ;;  %v4802_v16 = vld [vmem:[#allocation16 + $0x40] sm:$0xff] }
 0x48e   :  { %v9598_v25 = vld [vmem:[#allocation4 + $0x109] sm:$0xff]  ;;  %v6806_v41 = vpack.c.bf16 %v4803_v3, %v4802_v16 }
 0x48f   :  { %v4283_v61 = vmax.f32 %v9596_v54, %v9598_v25  ;;  %v3961_v17 = vadd.f32 %v9140_v23, %v3636_v45  ;;  %v4878_v23 = vld [vmem:[#allocation16 + $0x2a0] sm:$0xff]  ;;  %v4184_v27 = vld [vmem:[#allocation4 + $0x110] sm:$0xff]  ;;  %v6804_v45 = vpack.c.bf16 %v4819_v39, %v4818_v40  ;;  %v4808_v39 = vld [vmem:[#allocation16 + $0x70] sm:$0xff] }
 0x490   :  { %v6860_v43 = vpack.c.bf16 %v4879_v13, %v4878_v23  ;;  %v4809_v16 = vld [vmem:[#allocation16 + $0x78] sm:$0xff] }
 0x491   :  { %v4079_v42 = vmax.f32 %v3961_v17, 0.0  ;;  %6805 = vmatprep.subr.bf16.mxu0 %v6804_v45  ;;  %v6818_v45 = vpack.c.bf16 %v4809_v16, %v4808_v39  ;;  %v4867_v39 = vld [vmem:[#allocation16 + $0x248] sm:$0xff] }
 0x492   :  { %6861 = vmatprep.subr.bf16.mxu1 %v6860_v43  ;;  %6807 = vmatpush3.bf16.msra.mxu0 %v6806_v41  ;;  %v4842_v41 = vld [vmem:[#allocation16 + $0x180] sm:$0xff] }
 0x493   :  { %4132 = vst.msk [vmem:[#allocation4 + $0x118] sm:$0xff] %vm4096_vm8, %v4079_v42  ;;  %6863 = vmatpush3.bf16.msra.mxu1 %v6862_v32  ;;  %v4822_v42 = vld [vmem:[#allocation16 + $0xe0] sm:$0xff] }
 0x494   :  { %v6812_v57 = vpack.c.bf16 %v4823_v55, %v4822_v42  ;;  %v4517_v55 = vld [vmem:[#allocation5 + $0x28] ss:$224 sm:$0x1] }
 0x498   :  { %v3640_v30 = vpop.f32.mrb[72].mxu1 }
 0x499   :  { %v3641_v35 = vadd.f32 %v9529_v18, %v3640_v30  ;;  %v3642_v10 = vpop.f32.mrb[73].mxu1 }
 0x49a   :  { %v4234_v60 = vld [vmem:[#allocation4 + $0x111] sm:$0xff] }
 0x49b   :  { %v4284_v12 = vmax.f32 %v4184_v27, %v4234_v60  ;;  %v3966_v21 = vadd.f32 %v9208_v44, %v3641_v35  ;;  %v6808_v44 = vpack.c.bf16 %v4821_v14, %v4820_v52  ;;  %v4185_v23 = vld [vmem:[#allocation4 + $0x118] sm:$0xff]  ;;  %v4825_v27 = vld [vmem:[#allocation16 + $0xf8] sm:$0xff]  ;;  %v4522_v52 = vld [vmem:[#allocation5 + $0x2a] ss:$224 sm:$0x1] }
 0x49c   :  { %v6816_v3 = vpack.c.bf16 %v4825_v27, %v4824_v22 }
 0x49d   :  { %v4341_v11 = vmax.f32 %v4282_v37, %v4284_v12  ;;  %v4080_v17 = vmax.f32 %v3966_v21, 0.0  ;;  %6809 = vmatprep.subr.bf16.mxu0 %v6808_v44 }
 0x49e   :  { %6811 = vmatpush3.bf16.msra.mxu0 %v6810_v5 }
 0x49f   :  { %4391 = vst.msk [vmem:[#allocation5 + $0x100] sm:$0xff] %vm4096_vm8, %v4341_v11  ;;  %4133 = vst.msk [vmem:[#allocation4 + $0x120] sm:$0xff] %vm4096_vm8, %v4080_v17  ;;  %6813 = vmatprep.subr.bf16.mxu0 %v6812_v57  ;;  %v4843_v11 = vld [vmem:[#allocation16 + $0x188] sm:$0xff] }
 0x4a0   :  { %v6820_v54 = vpack.c.bf16 %v4843_v11, %v4842_v41  ;;  %v4868_v11 = vld [vmem:[#allocation16 + $0x250] sm:$0xff] }
 0x4a2   :  { %6815 = vmatpush3.bf16.msra.mxu0 %v6814_v46  ;;  %v4881_v46 = vld [vmem:[#allocation16 + $0x2b8] sm:$0xff] }
 0x4a3   :  { %6817 = vmatprep.subr.bf16.mxu0 %v6816_v3  ;;  %v4884_v3 = vld [vmem:[#allocation16 + $0x2d0] sm:$0xff] }
 0x4a4   :  { %v3645_v37 = vpop.f32.mrb[74].mxu1 }
 0x4a5   :  { %v3646_v1 = vadd.f32 %v9529_v18, %v3645_v37  ;;  %v3647_v9 = vpop.f32.mrb[75].mxu1 }
 0x4a6   :  { %v4235_v13 = vld [vmem:[#allocation4 + $0x119] sm:$0xff]  ;;  %v4481_v62 = vld [vmem:[#allocation5 + $0x22] ss:$224 sm:$0x2]  ;;  %6819 = vmatpush3.bf16.msra.mxu0 %v6818_v45  ;;  %v4885_v45 = vld [vmem:[#allocation16 + $0x2d8] sm:$0xff] }
 0x4a7   :  { %v4285_v30 = vmax.f32 %v4185_v23, %v4235_v13  ;;  %v3971_v43 = vadd.f32 %v9204_v19, %v3646_v1  ;;  %v4482_v63 = vor.u32 %v4481_v62, %v4480_v20  ;;  %v4502_v33 = vld [vmem:[#allocation5 + $0x26] ss:$224 sm:$0x2]  ;;  %v4476_v58 = vld [vmem:[#allocation5 + $0x20] ss:$224 sm:$0x2]  ;;  %6821 = vmatprep.subr.bf16.mxu0 %v6820_v54  ;;  %v6872_v41 = vpack.c.bf16 %v4885_v45, %v4884_v3 }
 0x4a8   :  { %v4503_v35 = vor.u32 %v4502_v33, %v4501_v6  ;;  %v4477_v10 = vor.u32 %v4476_v58, %v4475_v29  ;;  %v4497_v32 = vld [vmem:[#allocation5 + $0x24] ss:$224 sm:$0x2]  ;;  %v4880_v20 = vld [vmem:[#allocation16 + $0x2b0] sm:$0xff]  ;;  %v4865_v29 = vld [vmem:[#allocation16 + $0x238] sm:$0xff] }
 0x4a9   :  { %v4342_v60 = vmax.f32 %v4283_v61, %v4285_v30  ;;  %v4081_v40 = vmax.f32 %v3971_v43, 0.0  ;;  %v4490_v12 = vrot.slane %v4482_v63, %v9569_v47  ;;  %v4498_v21 = vor.u32 %v4497_v32, %v4496_v56  ;;  %v4186_v14 = vld [vmem:[#allocation4 + $0x120] sm:$0xff]  ;;  %v4864_v1 = vld [vmem:[#allocation16 + $0x230] sm:$0xff]  ;;  %v4869_v54 = vld [vmem:[#allocation16 + $0x258] sm:$0xff] }
 0x4aa   :  { %v4511_v19 = vrot.slane %v4503_v35, %v9569_v47  ;;  %4478 = vst.msk [vmem:[#allocation6 + $0x6] sm:$0x3] %vm4413_vm13, %v4477_v10  ;;  %v6864_v6 = vpack.c.bf16 %v4881_v46, %v4880_v20  ;;  %v6866_v13 = vpack.c.bf16 %v4865_v29, %v4864_v1  ;;  %v4580_v3 = vld [vmem:[#allocation5 + $0x48] ss:$224 sm:$0x1] }
 0x4ab   :  { %4392 = vst.msk [vmem:[#allocation5 + $0x108] sm:$0xff] %vm4096_vm8, %v4342_v60  ;;  %4134 = vst.msk [vmem:[#allocation4 + $0x128] sm:$0xff] %vm4096_vm8, %v4081_v40  ;;  %4491 = vrot.lane.b32.xlu1 %v4490_v12, %s7398_s8  ;;  %v4882_v60 = vld [vmem:[#allocation16 + $0x2c0] sm:$0xff]  ;;  %v4883_v40 = vld [vmem:[#allocation16 + $0x2c8] sm:$0xff] }
 0x4ac   :  { %4499 = vst.msk [vmem:[#allocation6 + $0x8] sm:$0x3] %vm4413_vm13, %v4498_v21  ;;  %4512 = vrot.lane.b32.xlu0 %v4511_v19, %s7398_s8  ;;  %6865 = vmatprep.subr.bf16.mxu1 %v6864_v6  ;;  %v6868_v12 = vpack.c.bf16 %v4883_v40, %v4882_v60  ;;  %v4866_v21 = vld [vmem:[#allocation16 + $0x240] sm:$0xff]  ;;  %v4585_v40 = vld [vmem:[#allocation5 + $0x4a] ss:$224 sm:$0x1] }
 0x4ad   :  { %6867 = vmatpush3.bf16.msra.mxu1 %v6866_v13  ;;  %v6870_v19 = vpack.c.bf16 %v4867_v39, %v4866_v21 }
 0x4ae   :  { %6869 = vmatprep.subr.bf16.mxu1 %v6868_v12 }
 0x4b0   :  { %v3650_v25 = vpop.f32.mrb[76].mxu1 }
 0x4b1   :  { %v3651_v61 = vadd.f32 %v9529_v18, %v3650_v25  ;;  %v3652_v17 = vpop.f32.mrb[77].mxu1  ;;  %6871 = vmatpush3.bf16.msra.mxu1 %v6870_v19  ;;  %v4886_v25 = vld [vmem:[#allocation16 + $0x2e0] sm:$0xff] }
 0x4b2   :  { %v4236_v44 = vld [vmem:[#allocation4 + $0x121] sm:$0xff]  ;;  %v4523_v24 = vld [vmem:[#allocation5 + $0x2a] ss:$224 sm:$0x2]  ;;  %6873 = vmatprep.subr.bf16.mxu1 %v6872_v41 }
 0x4b3   :  { %v4286_v0 = vmax.f32 %v4186_v14, %v4236_v44  ;;  %v3976_v5 = vadd.f32 %v9274_v34, %v3651_v61  ;;  %v4524_v42 = vor.u32 %v4523_v24, %v4522_v52  ;;  %v4518_v57 = vld [vmem:[#allocation5 + $0x28] ss:$224 sm:$0x2]  ;;  %v4887_v61 = vld [vmem:[#allocation16 + $0x2e8] sm:$0xff]  ;;  %v4870_v44 = vld [vmem:[#allocation16 + $0x260] sm:$0xff] }
 0x4b4   :  { %v4519_v50 = vor.u32 %v4518_v57, %v4517_v55  ;;  %v4187_v62 = vld [vmem:[#allocation4 + $0x128] sm:$0xff]  ;;  %v4564_v52 = vld [vmem:[#allocation5 + $0x46] ss:$224 sm:$0x1]  ;;  %v6876_v14 = vpack.c.bf16 %v4887_v61, %v4886_v25 }
 0x4b5   :  { %v4082_v15 = vmax.f32 %v3976_v5, 0.0  ;;  %v4532_v37 = vrot.slane %v4524_v42, %v9569_v47  ;;  %v4871_v24 = vld [vmem:[#allocation16 + $0x268] sm:$0xff] }
 0x4b6   :  { %4520 = vst.msk [vmem:[#allocation6 + $0xa] sm:$0x3] %vm4413_vm13, %v4519_v50  ;;  %v4543_v42 = vld [vmem:[#allocation5 + $0x42] ss:$224 sm:$0x1]  ;;  %v6878_v57 = vpack.c.bf16 %v4871_v24, %v4870_v44 }
 0x4b7   :  { %4135 = vst.msk [vmem:[#allocation4 + $0x130] sm:$0xff] %vm4096_vm8, %v4082_v15  ;;  %4533 = vrot.lane.b32.xlu1 %v4532_v37, %s7398_s8  ;;  %v4559_v55 = vld [vmem:[#allocation5 + $0x44] ss:$224 sm:$0x1] }
 0x4bc   :  { %v3655_v9 = vpop.f32.mrb[78].mxu1 }
 0x4bd   :  { %v3656_v34 = vadd.f32 %v9529_v18, %v3655_v9  ;;  %v3657_v23 = vpop.f32.mrb[79].mxu1 }
 0x4be   :  { %v4237_v56 = vld [vmem:[#allocation4 + $0x129] sm:$0xff]  ;;  %v4538_v23 = vld [vmem:[#allocation5 + $0x40] ss:$224 sm:$0x1] }
 0x4bf   :  { %v4287_v30 = vmax.f32 %v4187_v62, %v4237_v56  ;;  %v3981_v43 = vadd.f32 %v9270_v48, %v3656_v34  ;;  %v4188_v10 = vld [vmem:[#allocation4 + $0x130] sm:$0xff] }
 0x4c1   :  { %v4083_v63 = vmax.f32 %v3981_v43, 0.0 }
 0x4c3   :  { %4136 = vst.msk [vmem:[#allocation4 + $0x138] sm:$0xff] %vm4096_vm8, %v4083_v63 }
 0x4c8   :  { %v3660_v33 = vpop.f32.mrb[80].mxu1 }
 0x4c9   :  { %v3661_v58 = vadd.f32 %v9529_v18, %v3660_v33  ;;  %v3662_v35 = vpop.f32.mrb[81].mxu1  ;;  %v4888_v33 = vld [vmem:[#allocation16 + $0x2f0] sm:$0xff] }
 0x4ca   :  { %v4238_v32 = vld [vmem:[#allocation4 + $0x131] sm:$0xff] }
 0x4cb   :  { %v4288_v22 = vmax.f32 %v4188_v10, %v4238_v32  ;;  %v3986_v27 = vadd.f32 %v9332_v28, %v3661_v58  ;;  %v6874_v28 = vpack.c.bf16 %v4869_v54, %v4868_v11  ;;  %v4189_v50 = vld [vmem:[#allocation4 + $0x138] sm:$0xff]  ;;  %v4889_v58 = vld [vmem:[#allocation16 + $0x2f8] sm:$0xff]  ;;  %v4872_v10 = vld [vmem:[#allocation16 + $0x270] sm:$0xff] }
 0x4cc   :  { %v4873_v32 = vld [vmem:[#allocation16 + $0x278] sm:$0xff] }
 0x4cd   :  { %v4345_v16 = vmax.f32 %v4286_v0, %v4288_v22  ;;  %v4084_v48 = vmax.f32 %v3986_v27, 0.0  ;;  %6875 = vmatpush3.bf16.msra.mxu1 %v6874_v28 }
 0x4ce   :  { %6877 = vmatprep.subr.bf16.mxu1 %v6876_v14 }
 0x4cf   :  { %4395 = vst.msk [vmem:[#allocation5 + $0x120] sm:$0xff] %vm4096_vm8, %v4345_v16  ;;  %4137 = vst.msk [vmem:[#allocation4 + $0x140] sm:$0xff] %vm4096_vm8, %v4084_v48 }
 0x4d1   :  { %6879 = vmatpush3.bf16.msra.mxu1 %v6878_v57 }
 0x4d4   :  { %v3665_v17 = vpop.f32.mrb[82].mxu1 }
 0x4d5   :  { %v3666_v0 = vadd.f32 %v9529_v18, %v3665_v17  ;;  %v3667_v5 = vpop.f32.mrb[83].mxu1 }
 0x4d6   :  { %v4239_v15 = vld [vmem:[#allocation4 + $0x139] sm:$0xff]  ;;  %v4565_v37 = vld [vmem:[#allocation5 + $0x46] ss:$224 sm:$0x2] }
 0x4d7   :  { %v4289_v20 = vmax.f32 %v4189_v50, %v4239_v15  ;;  %v3991_v46 = vadd.f32 %v9328_v38, %v3666_v0  ;;  %v4566_v1 = vor.u32 %v4565_v37, %v4564_v52  ;;  %v4544_v9 = vld [vmem:[#allocation5 + $0x42] ss:$224 sm:$0x2]  ;;  %v4560_v6 = vld [vmem:[#allocation5 + $0x44] ss:$224 sm:$0x2]  ;;  %v6880_v38 = vpack.c.bf16 %v4889_v58, %v4888_v33 }
 0x4d8   :  { %v4545_v29 = vor.u32 %v4544_v9, %v4543_v42  ;;  %v4561_v34 = vor.u32 %v4560_v6, %v4559_v55  ;;  %v4539_v13 = vld [vmem:[#allocation5 + $0x40] ss:$224 sm:$0x2]  ;;  %v4938_v0 = vld [vmem:[#allocation16 + $0x480] sm:$0xff] }
 0x4d9   :  { %v4346_v62 = vmax.f32 %v4287_v30, %v4289_v20  ;;  %v4085_v56 = vmax.f32 %v3991_v46, 0.0  ;;  %v4574_v43 = vrot.slane %v4566_v1, %v9569_v47  ;;  %v4540_v63 = vor.u32 %v4539_v13, %v4538_v23  ;;  %6881 = vmatprep.subr.bf16.mxu1 %v6880_v38  ;;  %v4190_v12 = vld [vmem:[#allocation4 + $0x140] sm:$0xff] }
 0x4da   :  { %v4553_v35 = vrot.slane %v4545_v29, %v9569_v47  ;;  %4562 = vst.msk [vmem:[#allocation6 + $0xe] sm:$0x3] %vm4413_vm13, %v4561_v34  ;;  %v6882_v30 = vpack.c.bf16 %v4873_v32, %v4872_v10  ;;  %v4939_v5 = vld [vmem:[#allocation16 + $0x488] sm:$0xff] }
 0x4db   :  { %4396 = vst.msk [vmem:[#allocation5 + $0x128] sm:$0xff] %vm4096_vm8, %v4346_v62  ;;  %4138 = vst.msk [vmem:[#allocation4 + $0x148] sm:$0xff] %vm4096_vm8, %v4085_v56  ;;  %4575 = vrot.lane.b32.xlu1 %v4574_v43, %s7398_s8  ;;  %v6916_v42 = vpack.c.bf16 %v4939_v5, %v4938_v0  ;;  %v4606_v34 = vld [vmem:[#allocation5 + $0x62] ss:$224 sm:$0x1] }
 0x4dc   :  { %4541 = vst.msk [vmem:[#allocation6 + $0xc] sm:$0x3] %vm4413_vm13, %v4540_v63  ;;  %4554 = vrot.lane.b32.xlu0 %v4553_v35, %s7398_s8  ;;  %6883 = vmatpush3.bf16.msra.mxu1 %v6882_v30  ;;  %v4627_v62 = vld [vmem:[#allocation5 + $0x66] ss:$224 sm:$0x1] }
 0x4dd   :  { %6917 = vmatprep.subr.bf16.mxu1 %v6916_v42  ;;  %v4601_v56 = vld [vmem:[#allocation5 + $0x60] ss:$224 sm:$0x1] }
 0x4e0   :  { %v3670_v22 = vpop.f32.mrb[84].mxu1 }
 0x4e1   :  { %v3671_v27 = vadd.f32 %v9529_v18, %v3670_v22  ;;  %v3672_v60 = vpop.f32.mrb[85].mxu1  ;;  %v4622_v22 = vld [vmem:[#allocation5 + $0x64] ss:$224 sm:$0x1] }
 0x4e2   :  { %v4240_v21 = vld [vmem:[#allocation4 + $0x141] sm:$0xff]  ;;  %v4586_v39 = vld [vmem:[#allocation5 + $0x4a] ss:$224 sm:$0x2] }
 0x4e3   :  { %v4290_v16 = vmax.f32 %v4190_v12, %v4240_v21  ;;  %v3996_v48 = vadd.f32 %v9395_v2, %v3671_v27  ;;  %v4587_v19 = vor.u32 %v4586_v39, %v4585_v40  ;;  %v4581_v45 = vld [vmem:[#allocation5 + $0x48] ss:$224 sm:$0x2] }
 0x4e4   :  { %v4582_v41 = vor.u32 %v4581_v45, %v4580_v3  ;;  %v4191_v17 = vld [vmem:[#allocation4 + $0x148] sm:$0xff] }
 0x4e5   :  { %v4086_v11 = vmax.f32 %v3996_v48, 0.0  ;;  %v4595_v54 = vrot.slane %v4587_v19, %v9569_v47  ;;  %v4648_v19 = vld [vmem:[#allocation5 + $0x6a] ss:$224 sm:$0x1] }
 0x4e6   :  { %4583 = vst.msk [vmem:[#allocation6 + $0x10] sm:$0x3] %vm4413_vm13, %v4582_v41 }
 0x4e7   :  { %4139 = vst.msk [vmem:[#allocation4 + $0x150] sm:$0xff] %vm4096_vm8, %v4086_v11  ;;  %4596 = vrot.lane.b32.xlu0 %v4595_v54, %s7398_s8 }
 0x4ec   :  { %v3675_v28 = vpop.f32.mrb[86].mxu1 }
 0x4ed   :  { %v3676_v25 = vadd.f32 %v9529_v18, %v3675_v28  ;;  %v3677_v61 = vpop.f32.mrb[87].mxu1 }
 0x4ee   :  { %v4241_v2 = vld [vmem:[#allocation4 + $0x149] sm:$0xff]  ;;  %v4450_v52 = vpop.permute.xlu1 %4449 }
 0x4ef   :  { %v4291_v14 = vmax.f32 %v4191_v17, %v4241_v2  ;;  %v4001_v44 = vadd.f32 %v9391_v4, %v3676_v25  ;;  %4452 = vst.msk [vmem:[#allocation6 + $0x2] sm:$0x3] %vm4430_vm14, %v4450_v52  ;;  %v4428_v24 = vpop.permute.xlu0 %4427  ;;  %v4192_v20 = vld [vmem:[#allocation4 + $0x150] sm:$0xff]  ;;  %v4643_v25 = vld [vmem:[#allocation5 + $0x68] ss:$224 sm:$0x1] }
 0x4f0   :  { %4431 = vst.msk [vmem:[#allocation6] sm:$0x3] %vm4430_vm14, %v4428_v24 }
 0x4f1   :  { %v4087_v55 = vmax.f32 %v4001_v44, 0.0 }
 0x4f3   :  { %4140 = vst.msk [vmem:[#allocation4 + $0x158] sm:$0xff] %vm4096_vm8, %v4087_v55 }
 0x4f8   :  { %v3680_v57 = vpop.f32.mrb[88].mxu1 }
 0x4f9   :  { %v3681_v50 = vadd.f32 %v9529_v18, %v3680_v57  ;;  %v3682_v15 = vpop.f32.mrb[89].mxu1  ;;  %v4471_v37 = vpop.permute.xlu0 %4470 }
 0x4fa   :  { %v4242_v46 = vld [vmem:[#allocation4 + $0x151] sm:$0xff]  ;;  %4473 = vst.msk [vmem:[#allocation6 + $0x4] sm:$0x3] %vm4430_vm14, %v4471_v37  ;;  %v4827_v37 = vld [vmem:[#allocation16 + $0x108] sm:$0xff] }
 0x4fb   :  { %v4292_v4 = vmax.f32 %v4192_v20, %v4242_v46  ;;  %v4006_v1 = vadd.f32 %v9442_v36, %v3681_v50  ;;  %v4193_v43 = vld [vmem:[#allocation4 + $0x158] sm:$0xff] }
 0x4fc   :  { %v4826_v15 = vld [vmem:[#allocation16 + $0x100] sm:$0xff] }
 0x4fd   :  { %v4349_v9 = vmax.f32 %v4290_v16, %v4292_v4  ;;  %v4088_v6 = vmax.f32 %v4006_v1, 0.0  ;;  %v4844_v4 = vld [vmem:[#allocation16 + $0x190] sm:$0xff]  ;;  %v4845_v1 = vld [vmem:[#allocation16 + $0x198] sm:$0xff] }
 0x4ff   :  { %4399 = vst.msk [vmem:[#allocation5 + $0x140] sm:$0xff] %vm4096_vm8, %v4349_v9  ;;  %4141 = vst.msk [vmem:[#allocation4 + $0x160] sm:$0xff] %vm4096_vm8, %v4088_v6 }
 0x504   :  { %v3685_v29 = vpop.f32.mrb[90].mxu1 }
 0x505   :  { %v3686_v23 = vadd.f32 %v9529_v18, %v3685_v29  ;;  %v3687_v13 = vpop.f32.mrb[91].mxu1  ;;  %v6822_v29 = vpack.c.bf16 %v4827_v37, %v4826_v15 }
 0x506   :  { %v4243_v63 = vld [vmem:[#allocation4 + $0x159] sm:$0xff]  ;;  %v4607_v33 = vld [vmem:[#allocation5 + $0x62] ss:$224 sm:$0x2] }
 0x507   :  { %v4293_v58 = vmax.f32 %v4193_v43, %v4243_v63  ;;  %v4011_v35 = vadd.f32 %v9438_v26, %v3686_v23  ;;  %v4608_v36 = vor.u32 %v4607_v33, %v4606_v34  ;;  %v4628_v38 = vld [vmem:[#allocation5 + $0x66] ss:$224 sm:$0x2]  ;;  %v4602_v10 = vld [vmem:[#allocation5 + $0x60] ss:$224 sm:$0x2] }
 0x508   :  { %v4629_v32 = vor.u32 %v4628_v38, %v4627_v62  ;;  %v4603_v30 = vor.u32 %v4602_v10, %v4601_v56  ;;  %v4623_v27 = vld [vmem:[#allocation5 + $0x64] ss:$224 sm:$0x2]  ;;  %v6824_v56 = vpack.c.bf16 %v4845_v1, %v4844_v4  ;;  %v4828_v43 = vld [vmem:[#allocation16 + $0x110] sm:$0xff]  ;;  %v4829_v63 = vld [vmem:[#allocation16 + $0x118] sm:$0xff] }
 0x509   :  { %v4350_v60 = vmax.f32 %v4291_v14, %v4293_v58  ;;  %v4089_v40 = vmax.f32 %v4011_v35, 0.0  ;;  %v4616_v12 = vrot.slane %v4608_v36, %v9569_v47  ;;  %v4624_v21 = vor.u32 %v4623_v27, %v4622_v22  ;;  %v4194_v3 = vld [vmem:[#allocation4 + $0x160] sm:$0xff]  ;;  %v4846_v33 = vld [vmem:[#allocation16 + $0x1a0] sm:$0xff] }
 0x50a   :  { %v4637_v39 = vrot.slane %v4629_v32, %v9569_v47  ;;  %4604 = vst.msk [vmem:[#allocation6 + $0x12] sm:$0x3] %vm4413_vm13, %v4603_v30  ;;  %v4847_v38 = vld [vmem:[#allocation16 + $0x1a8] sm:$0xff]  ;;  %v6826_v30 = vpack.c.bf16 %v4829_v63, %v4828_v43  ;;  %v4854_v63 = vld [vmem:[#allocation16 + $0x1e0] sm:$0xff] }
 0x50b   :  { %4400 = vst.msk [vmem:[#allocation5 + $0x148] sm:$0xff] %vm4096_vm8, %v4350_v60  ;;  %4142 = vst.msk [vmem:[#allocation4 + $0x168] sm:$0xff] %vm4096_vm8, %v4089_v40  ;;  %4617 = vrot.lane.b32.xlu1 %v4616_v12, %s7398_s8  ;;  %v6828_v60 = vpack.c.bf16 %v4847_v38, %v4846_v33  ;;  %v4830_v40 = vld [vmem:[#allocation16 + $0x120] sm:$0xff]  ;;  %v4831_v12 = vld [vmem:[#allocation16 + $0x128] sm:$0xff] }
 0x50c   :  { %4625 = vst.msk [vmem:[#allocation6 + $0x14] sm:$0x3] %vm4413_vm13, %v4624_v21  ;;  %4638 = vrot.lane.b32.xlu0 %v4637_v39, %s7398_s8  ;;  %v4848_v21 = vld [vmem:[#allocation16 + $0x1b0] sm:$0xff]  ;;  %v4849_v39 = vld [vmem:[#allocation16 + $0x1b8] sm:$0xff]  ;;  %v4855_v33 = vld [vmem:[#allocation16 + $0x1e8] sm:$0xff] }
 0x510   :  { %v3690_v26 = vpop.f32.mrb[92].mxu1 }
 0x511   :  { %v3691_v16 = vadd.f32 %v9529_v18, %v3690_v26  ;;  %v3692_v48 = vpop.f32.mrb[93].mxu1  ;;  %v6830_v26 = vpack.c.bf16 %v4831_v12, %v4830_v40  ;;  %v4906_v40 = vld [vmem:[#allocation16 + $0x380] sm:$0xff] }
 0x512   :  { %v4244_v45 = vld [vmem:[#allocation4 + $0x161] sm:$0xff]  ;;  %v4649_v41 = vld [vmem:[#allocation5 + $0x6a] ss:$224 sm:$0x2]  ;;  %v4833_v48 = vld [vmem:[#allocation16 + $0x138] sm:$0xff] }
 0x513   :  { %v4294_v11 = vmax.f32 %v4194_v3, %v4244_v45  ;;  %v4016_v54 = vadd.f32 %v9470_v59, %v3691_v16  ;;  %v4650_v28 = vor.u32 %v4649_v41, %v4648_v19  ;;  %v4644_v61 = vld [vmem:[#allocation5 + $0x68] ss:$224 sm:$0x2]  ;;  %v4850_v19 = vld [vmem:[#allocation16 + $0x1c0] sm:$0xff]  ;;  %v4851_v3 = vld [vmem:[#allocation16 + $0x1c8] sm:$0xff] }
 0x514   :  { %v4645_v17 = vor.u32 %v4644_v61, %v4643_v25  ;;  %v9680_v5 = vld [vmem:[#allocation4 + $0x168] sm:$0xff]  ;;  %v6836_v61 = vpack.c.bf16 %v4851_v3, %v4850_v19 }
 0x515   :  { %v4090_v2 = vmax.f32 %v4016_v54, 0.0  ;;  %v4658_v52 = vrot.slane %v4650_v28, %v9569_v47  ;;  %v4832_v16 = vld [vmem:[#allocation16 + $0x130] sm:$0xff]  ;;  %v4834_v54 = vld [vmem:[#allocation16 + $0x140] sm:$0xff] }
 0x516   :  { %4646 = vst.msk [vmem:[#allocation6 + $0x16] sm:$0x3] %vm4413_vm13, %v4645_v17  ;;  %v6834_v41 = vpack.c.bf16 %v4833_v48, %v4832_v16  ;;  %v4669_v17 = vld [vmem:[#allocation5 + $0x82] ss:$224 sm:$0x1] }
 0x517   :  { %4143 = vst.msk [vmem:[#allocation4 + $0x170] sm:$0xff] %vm4096_vm8, %v4090_v2  ;;  %4659 = vrot.lane.b32.xlu1 %v4658_v52, %s7398_s8  ;;  %v4835_v2 = vld [vmem:[#allocation16 + $0x148] sm:$0xff]  ;;  %v4852_v52 = vld [vmem:[#allocation16 + $0x1d0] sm:$0xff] }
 0x518   :  { %v4711_v16 = vld [vmem:[#allocation5 + $0x8a] ss:$224 sm:$0x1] }
 0x51c   :  { %v3695_v14 = vpop.f32.mrb[94].mxu1 }
 0x51d   :  { %v3696_v44 = vadd.f32 %v9529_v18, %v3695_v14  ;;  %v3697_v24 = vpop.f32.mrb[95].mxu1  ;;  %v4492_v0 = vpop.permute.xlu1 %4491  ;;  %v4853_v14 = vld [vmem:[#allocation16 + $0x1d8] sm:$0xff] }
 0x51e   :  { %v9682_v59 = vld [vmem:[#allocation4 + $0x169] sm:$0xff]  ;;  %4494 = vst.msk [vmem:[#allocation6 + $0x6] sm:$0x3] %vm4430_vm14, %v4492_v0  ;;  %v4513_v42 = vpop.permute.xlu0 %4512  ;;  %v6840_v4 = vpack.c.bf16 %v4853_v14, %v4852_v52 }
 0x51f   :  { %v4295_v55 = vmax.f32 %v9680_v5, %v9682_v59  ;;  %v4021_v57 = vadd.f32 %v9468_v8, %v3696_v44  ;;  %4515 = vst.msk [vmem:[#allocation6 + $0x8] sm:$0x3] %vm4430_vm14, %v4513_v42  ;;  %v9694_v8 = vld [vmem:[#allocation15] ss:$0 sm:$0xff]  ;;  %v6844_v59 = vpack.c.bf16 %v4855_v33, %v4854_v63  ;;  %v4898_v33 = vld [vmem:[#allocation16 + $0x340] sm:$0xff] }
 0x520   :  { %v4196_v58 = vld [vmem:[#allocation4 + $0x170] sm:$0xff]  ;;  %v4685_v44 = vld [vmem:[#allocation5 + $0x84] ss:$224 sm:$0x1] }
 0x521   :  { %v4091_v50 = vmax.f32 %v4021_v57, 0.0  ;;  %v4909_v52 = vld [vmem:[#allocation16 + $0x398] sm:$0xff] }
 0x523   :  { %4144 = vst.msk [vmem:[#allocation4 + $0x178] sm:$0xff] %vm4096_vm8, %v4091_v50 }
 0x525   :  { %v4789_v18 = vld [vmem:[#allocation6] sm:$0xff] }
 0x526   :  { %v5101_v20 = vrot.slane %v4789_v18, %v9569_v47  ;;  %v5094_v46 = vcombine.high %v4789_v18, %v4789_v18 }
 0x528   :  { %v3700_v9 = vpop.f32.mrb[96].mxu1  ;;  %v5109_v6 = vcombine.high %v5101_v20, %v5101_v20  ;;  %v9692_v34 = vrot.slane %v5094_v46, %v9569_v47  ;;  %v6838_v46 = vpack.c.bf16 %v4835_v2, %v4834_v54  ;;  %v4908_v2 = vld [vmem:[#allocation16 + $0x390] sm:$0xff] }
 0x529   :  { %v3701_v23 = vadd.f32 %v9694_v8, %v3700_v9  ;;  %v3702_v13 = vpop.f32.mrb[97].mxu1  ;;  %v4534_v62 = vpop.permute.xlu1 %4533  ;;  %v4664_v9 = vld [vmem:[#allocation5 + $0x80] ss:$224 sm:$0x1]  ;;  %v6888_v14 = vpack.c.bf16 %v4909_v52, %v4908_v2 }
 0x52a   :  { %v4246_v35 = vld [vmem:[#allocation4 + $0x171] sm:$0xff]  ;;  %4536 = vst.msk [vmem:[#allocation6 + $0xa] sm:$0x3] %vm4430_vm14, %v4534_v62  ;;  %5252 = vmatprep.mubr.f32.mxu0 %v5109_v6  ;;  %v5110_v36 = vcombine.high %v9692_v34, %v9692_v34  ;;  %v4836_v62 = vld [vmem:[#allocation16 + $0x150] sm:$0xff] }
 0x52b   :  { %v4296_v10 = vmax.f32 %v4196_v58, %v4246_v35  ;;  %v4026_v32 = vadd.f32 %v9494_v53, %v3701_v23  ;;  %5253 = vmatmul.mubr.f32.vlgmr.msra.gmra.mrb[108].mxu0 %v5101_v20  ;;  %v6832_v53 = vpack.c.bf16 %v4849_v39, %v4848_v21  ;;  %v4197_v24 = vld [vmem:[#allocation4 + $0x178] sm:$0xff]  ;;  %v4839_v58 = vld [vmem:[#allocation16 + $0x168] sm:$0xff]  ;;  %v4856_v35 = vld [vmem:[#allocation16 + $0x1f0] sm:$0xff] }
 0x52c   :  { %6823 = vmatpush3.bf16.msra.mxu0 %v6822_v29  ;;  %5322 = vmatprep.mubr.f32.mxu0 %v5110_v36  ;;  %v4857_v36 = vld [vmem:[#allocation16 + $0x1f8] sm:$0xff]  ;;  %v4907_v39 = vld [vmem:[#allocation16 + $0x388] sm:$0xff] }
 0x52d   :  { %v4353_v22 = vmax.f32 %v4294_v11, %v4296_v10  ;;  %v4092_v27 = vmax.f32 %v4026_v32, 0.0  ;;  %6825 = vmatprep.subr.bf16.mxu0 %v6824_v56  ;;  %v4690_v11 = vld [vmem:[#allocation5 + $0x86] ss:$224 sm:$0x1]  ;;  %v6884_v54 = vpack.c.bf16 %v4907_v39, %v4906_v40  ;;  %v4901_v40 = vld [vmem:[#allocation16 + $0x358] sm:$0xff] }
 0x52f   :  { %4403 = vst.msk [vmem:[#allocation5 + $0x160] sm:$0xff] %vm4096_vm8, %v4353_v22  ;;  %4145 = vst.msk [vmem:[#allocation4 + $0x180] sm:$0xff] %vm4096_vm8, %v4092_v27  ;;  %v6848_v22 = vpack.c.bf16 %v4857_v36, %v4856_v35  ;;  %v4840_v27 = vld [vmem:[#allocation16 + $0x170] sm:$0xff] }
 0x530   :  { %6827 = vmatpush3.bf16.msra.mxu0 %v6826_v30 }
 0x531   :  { %6829 = vmatprep.subr.bf16.mxu0 %v6828_v60  ;;  %v4841_v60 = vld [vmem:[#allocation16 + $0x178] sm:$0xff] }
 0x532   :  { %v6850_v3 = vpack.c.bf16 %v4841_v60, %v4840_v27 }
 0x534   :  { %6831 = vmatpush3.bf16.msra.mxu0 %v6830_v26  ;;  %v3705_v45 = vpop.f32.mrb[98].mxu1 }
 0x535   :  { %v3706_v28 = vadd.f32 %v9694_v8, %v3705_v45  ;;  %v3707_v25 = vpop.f32.mrb[99].mxu1  ;;  %6833 = vmatprep.subr.bf16.mxu0 %v6832_v53  ;;  %v4706_v45 = vld [vmem:[#allocation5 + $0x88] ss:$224 sm:$0x1] }
 0x536   :  { %v4247_v0 = vld [vmem:[#allocation4 + $0x179] sm:$0xff]  ;;  %v4691_v42 = vld [vmem:[#allocation5 + $0x86] ss:$224 sm:$0x2] }
 0x537   :  { %v4297_v57 = vmax.f32 %v4197_v24, %v4247_v0  ;;  %v4031_v50 = vadd.f32 %v9492_v49, %v3706_v28  ;;  %v4692_v18 = vor.u32 %v4691_v42, %v4690_v11  ;;  %v4670_v15 = vld [vmem:[#allocation5 + $0x82] ss:$224 sm:$0x2]  ;;  %v4686_v37 = vld [vmem:[#allocation5 + $0x84] ss:$224 sm:$0x2] }
 0x538   :  { %6835 = vmatpush3.bf16.msra.mxu0 %v6834_v41  ;;  %v4671_v20 = vor.u32 %v4670_v15, %v4669_v17  ;;  %v4687_v1 = vor.u32 %v4686_v37, %v4685_v44  ;;  %v4665_v6 = vld [vmem:[#allocation5 + $0x80] ss:$224 sm:$0x2]  ;;  %v4837_v49 = vld [vmem:[#allocation16 + $0x158] sm:$0xff]  ;;  %v4890_v28 = vld [vmem:[#allocation16 + $0x300] sm:$0xff] }
 0x539   :  { %v4354_v29 = vmax.f32 %v4295_v55, %v4297_v57  ;;  %v4093_v23 = vmax.f32 %v4031_v50, 0.0  ;;  %6837 = vmatprep.subr.bf16.mxu0 %v6836_v61  ;;  %v4700_v13 = vrot.slane %v4692_v18, %v9569_v47  ;;  %v4666_v56 = vor.u32 %v4665_v6, %v4664_v9  ;;  %v4838_v55 = vld [vmem:[#allocation16 + $0x160] sm:$0xff]  ;;  %v9717_v12 = vld [vmem:[#allocation4 + $0x180] sm:$0xff]  ;;  %v4892_v44 = vld [vmem:[#allocation16 + $0x310] sm:$0xff] }
 0x53a   :  { %v4679_v43 = vrot.slane %v4671_v20, %v9569_v47  ;;  %4688 = vst.msk [vmem:[#allocation6 + $0x1a] sm:$0x3] %vm4413_vm13, %v4687_v1  ;;  %v6842_v5 = vpack.c.bf16 %v4837_v49, %v4836_v62  ;;  %v6846_v10 = vpack.c.bf16 %v4839_v58, %v4838_v55  ;;  %v4891_v25 = vld [vmem:[#allocation16 + $0x308] sm:$0xff]  ;;  %v4893_v24 = vld [vmem:[#allocation16 + $0x318] sm:$0xff]  ;;  %v4910_v0 = vld [vmem:[#allocation16 + $0x3a0] sm:$0xff] }
 0x53b   :  { %4404 = vst.msk [vmem:[#allocation5 + $0x168] sm:$0xff] %vm4096_vm8, %v4354_v29  ;;  %4146 = vst.msk [vmem:[#allocation4 + $0x188] sm:$0xff] %vm4096_vm8, %v4093_v23  ;;  %4701 = vrot.lane.b32.xlu1 %v4700_v13, %s7398_s8  ;;  %v4911_v42 = vld [vmem:[#allocation16 + $0x3a8] sm:$0xff]  ;;  %v6890_v50 = vpack.c.bf16 %v4893_v24, %v4892_v44  ;;  %v4912_v1 = vld [vmem:[#allocation16 + $0x3b0] sm:$0xff] }
 0x53c   :  { %4667 = vst.msk [vmem:[#allocation6 + $0x18] sm:$0x3] %vm4413_vm13, %v4666_v56  ;;  %4680 = vrot.lane.b32.xlu0 %v4679_v43, %s7398_s8  ;;  %6839 = vmatpush3.bf16.msra.mxu0 %v6838_v46  ;;  %v6892_v20 = vpack.c.bf16 %v4911_v42, %v4910_v0  ;;  %v4894_v46 = vld [vmem:[#allocation16 + $0x320] sm:$0xff]  ;;  %v4913_v6 = vld [vmem:[#allocation16 + $0x3b8] sm:$0xff]  ;;  %v4896_v13 = vld [vmem:[#allocation16 + $0x330] sm:$0xff] }
 0x53d   :  { %6841 = vmatprep.subr.bf16.mxu0 %v6840_v4  ;;  %v4895_v4 = vld [vmem:[#allocation16 + $0x328] sm:$0xff]  ;;  %v4897_v62 = vld [vmem:[#allocation16 + $0x338] sm:$0xff]  ;;  %v4914_v49 = vld [vmem:[#allocation16 + $0x3c0] sm:$0xff] }
 0x53e   :  { %v4915_v56 = vld [vmem:[#allocation16 + $0x3c8] sm:$0xff]  ;;  %v6898_v43 = vpack.c.bf16 %v4897_v62, %v4896_v13  ;;  %v4917_v55 = vld [vmem:[#allocation16 + $0x3d8] sm:$0xff]  ;;  %v4922_v58 = vld [vmem:[#allocation16 + $0x400] sm:$0xff] }
 0x53f   :  { %v6900_v63 = vpack.c.bf16 %v4915_v56, %v4914_v49  ;;  %v4942_v24 = vld [vmem:[#allocation16 + $0x4a0] sm:$0xff]  ;;  %v4943_v0 = vld [vmem:[#allocation16 + $0x4a8] sm:$0xff] }
 0x540   :  { %6843 = vmatpush3.bf16.msra.mxu0 %v6842_v5  ;;  %v3710_v38 = vpop.f32.mrb[100].mxu1  ;;  %v4899_v5 = vld [vmem:[#allocation16 + $0x348] sm:$0xff]  ;;  %v9744_v13 = vld [vmem:[#allocation16 + $0x500] sm:$0xff] }
 0x541   :  { %v3711_v32 = vadd.f32 %v9694_v8, %v3710_v38  ;;  %v3712_v30 = vpop.f32.mrb[101].mxu1  ;;  %6845 = vmatprep.subr.bf16.mxu0 %v6844_v59  ;;  %v4900_v38 = vld [vmem:[#allocation16 + $0x350] sm:$0xff]  ;;  %v6902_v60 = vpack.c.bf16 %v4899_v5, %v4898_v33  ;;  %v4955_v49 = vld [vmem:[#allocation16 + $0x508] sm:$0xff] }
 0x542   :  { %v9719_v21 = vld [vmem:[#allocation4 + $0x181] sm:$0xff]  ;;  %v4712_v48 = vld [vmem:[#allocation5 + $0x8a] ss:$224 sm:$0x2]  ;;  %v4941_v30 = vld [vmem:[#allocation16 + $0x498] sm:$0xff]  ;;  %v6906_v44 = vpack.c.bf16 %v4901_v40, %v4900_v38 }
 0x543   :  { %v4298_v26 = vmax.f32 %v9717_v12, %v9719_v21  ;;  %v4036_v53 = vadd.f32 %v9516_v31, %v3711_v32  ;;  %v4713_v19 = vor.u32 %v4712_v48, %v4711_v16  ;;  %v4707_v41 = vld [vmem:[#allocation5 + $0x88] ss:$224 sm:$0x2]  ;;  %v6886_v31 = vpack.c.bf16 %v4891_v25, %v4890_v28  ;;  %v4249_v27 = vld [vmem:[#allocation4 + $0x189] sm:$0x7]  ;;  %v4947_v38 = vld [vmem:[#allocation16 + $0x4c8] sm:$0xff] }
 0x544   :  { %6847 = vmatpush3.bf16.msra.mxu0 %v6846_v10  ;;  %v4708_v61 = vor.u32 %v4707_v41, %v4706_v45  ;;  %v4923_v10 = vld [vmem:[#allocation16 + $0x408] sm:$0xff]  ;;  %v4940_v32 = vld [vmem:[#allocation16 + $0x490] sm:$0xff] }
 0x545   :  { %v4094_v11 = vmax.f32 %v4036_v53, 0.0  ;;  %6849 = vmatprep.subr.bf16.mxu0 %v6848_v22  ;;  %v4721_v17 = vrot.slane %v4713_v19, %v9569_v47  ;;  %v4199_v22 = vld [vmem:[#allocation4 + $0x188] sm:$0x7]  ;;  %v4919_v45 = vld [vmem:[#allocation16 + $0x3e8] sm:$0xff]  ;;  %v6918_v28 = vpack.c.bf16 %v4923_v10, %v4922_v58  ;;  %v6920_v25 = vpack.c.bf16 %v4941_v30, %v4940_v32  ;;  %v4946_v58 = vld [vmem:[#allocation16 + $0x4c0] sm:$0xff] }
 0x546   :  { %4709 = vst.msk [vmem:[#allocation6 + $0x1c] sm:$0x3] %vm4413_vm13, %v4708_v61  ;;  %v4299_v61 = vmax.f32 %v4199_v22, %v4249_v27  ;;  %v4944_v21 = vld [vmem:[#allocation16 + $0x4b0] sm:$0xff]  ;;  %v4732_v5 = vld [vmem:[#allocation5 + $0xa2] ss:$224 sm:$0x1] }
 0x547   :  { %4147 = vst.msk [vmem:[#allocation4 + $0x190] sm:$0xff] %vm4096_vm8, %v4094_v11  ;;  %4722 = vrot.lane.b32.xlu0 %v4721_v17, %s7398_s8  ;;  %v4930_v10 = vld [vmem:[#allocation16 + $0x440] sm:$0xff]  ;;  %v4931_v32 = vld [vmem:[#allocation16 + $0x448] sm:$0xff]  ;;  %v4948_v40 = vld [vmem:[#allocation16 + $0x4d0] sm:$0xff] }
 0x548   :  { %6851 = vmatpush3.bf16.msra.mxu0 %v6850_v3  ;;  %v4918_v3 = vld [vmem:[#allocation16 + $0x3e0] sm:$0xff]  ;;  %v4727_v30 = vld [vmem:[#allocation5 + $0xa0] ss:$224 sm:$0x1] }
 0x549   :  { %6885 = vmatprep.subr.bf16.mxu0 %v6884_v54 }
 0x54b   :  { %5323 = vmatmul.mubr.f32.vlgmr.msra.gmra.mrb[110].mxu0 %v9692_v34  ;;  %v6894_v34 = vpack.c.bf16 %v4895_v4, %v4894_v46  ;;  %v6924_v4 = vpack.c.bf16 %v4943_v0, %v4942_v24 }
 0x54c   :  { %6887 = vmatpush3.bf16.msra.mxu0 %v6886_v31  ;;  %v3715_v57 = vpop.f32.mrb[102].mxu1  ;;  %v4924_v31 = vld [vmem:[#allocation16 + $0x410] sm:$0xff] }
 0x54d   :  { %v3716_v18 = vadd.f32 %v9694_v8, %v3715_v57  ;;  %v3717_v15 = vpop.f32.mrb[103].mxu1  ;;  %v4576_v37 = vpop.permute.xlu1 %4575  ;;  %6889 = vmatprep.subr.bf16.mxu0 %v6888_v14  ;;  %v6896_v8 = vpack.c.bf16 %v4913_v6, %v4912_v1  ;;  %v4925_v14 = vld [vmem:[#allocation16 + $0x418] sm:$0xff]  ;;  %v4926_v1 = vld [vmem:[#allocation16 + $0x420] sm:$0xff] }
 0x54e   :  { %4578 = vst.msk [vmem:[#allocation6 + $0xe] sm:$0x3] %vm4430_vm14, %v4576_v37  ;;  %v4555_v9 = vpop.permute.xlu0 %4554  ;;  %v4301_v39 = vld [vmem:[#allocation4 + $0x190] sm:$0xff]  ;;  %v4903_v15 = vld [vmem:[#allocation16 + $0x368] sm:$0xff]  ;;  %v4920_v37 = vld [vmem:[#allocation16 + $0x3f0] sm:$0xff]  ;;  %v6922_v46 = vpack.c.bf16 %v4925_v14, %v4924_v31 }
 0x54f   :  { %v4041_v29 = vadd.f32 %v9514_v51, %v3716_v18  ;;  %4557 = vst.msk [vmem:[#allocation6 + $0xc] sm:$0x3] %vm4430_vm14, %v4555_v9  ;;  %v4916_v51 = vld [vmem:[#allocation16 + $0x3d0] sm:$0xff]  ;;  %v4902_v18 = vld [vmem:[#allocation16 + $0x360] sm:$0xff]  ;;  %v4927_v9 = vld [vmem:[#allocation16 + $0x428] sm:$0xff] }
 0x550   :  { %6891 = vmatpush3.bf16.msra.mxu0 %v6890_v50  ;;  %v6904_v19 = vpack.c.bf16 %v4917_v55, %v4916_v51  ;;  %v6908_v50 = vpack.c.bf16 %v4919_v45, %v4918_v3  ;;  %v6910_v12 = vpack.c.bf16 %v4903_v15, %v4902_v18  ;;  %v6926_v62 = vpack.c.bf16 %v4927_v9, %v4926_v1  ;;  %v4753_v51 = vld [vmem:[#allocation5 + $0xa6] ss:$224 sm:$0x1]  ;;  %v4973_v55 = vld [vmem:[#allocation16 + $0x598] sm:$0xff]  ;;  %v4956_v14 = vld [vmem:[#allocation16 + $0x510] sm:$0xff] }
 0x551   :  { %v4095_v23 = vmax.f32 %v4041_v29, 0.0  ;;  %6893 = vmatprep.subr.bf16.mxu0 %v6892_v20  ;;  %v4921_v20 = vld [vmem:[#allocation16 + $0x3f8] sm:$0xff]  ;;  %v4904_v29 = vld [vmem:[#allocation16 + $0x370] sm:$0xff] }
 0x552   :  { %v6912_v6 = vpack.c.bf16 %v4921_v20, %v4920_v37  ;;  %v4932_v15 = vld [vmem:[#allocation16 + $0x450] sm:$0xff]  ;;  %v4933_v37 = vld [vmem:[#allocation16 + $0x458] sm:$0xff] }
 0x553   :  { %4149 = vst.msk [vmem:[#allocation4 + $0x198] sm:$0xf] %vm4148_vm15, %v4095_v23  ;;  %v4970_v23 = vld [vmem:[#allocation16 + $0x580] sm:$0xff] }
 0x554   :  { %6895 = vmatpush3.bf16.msra.mxu0 %v6894_v34  ;;  %v4905_v34 = vld [vmem:[#allocation16 + $0x378] sm:$0xff] }
 0x555   :  { %6897 = vmatprep.subr.bf16.mxu0 %v6896_v8  ;;  %v4971_v8 = vld [vmem:[#allocation16 + $0x588] sm:$0xff]  ;;  %v6914_v33 = vpack.c.bf16 %v4905_v34, %v4904_v29  ;;  %v4934_v34 = vld [vmem:[#allocation16 + $0x460] sm:$0xff] }
 0x556   :  { %v4790_v59 = vld [vmem:[#allocation6 + $0x8] sm:$0xff] }
 0x557   :  { %v5118_v35 = vrot.slane %v4790_v59, %v9569_v47  ;;  %v5111_v36 = vcombine.high %v4790_v59, %v4790_v59  ;;  %v4972_v59 = vld [vmem:[#allocation16 + $0x590] sm:$0xff] }
 0x558   :  { %6899 = vmatpush3.bf16.msra.mxu0 %v6898_v43  ;;  %v4928_v43 = vld [vmem:[#allocation16 + $0x430] sm:$0xff] }
 0x559   :  { %v4597_v53 = vpop.permute.xlu0 %4596  ;;  %v5126_v16 = vcombine.high %v5118_v35, %v5118_v35  ;;  %6901 = vmatprep.subr.bf16.mxu0 %v6900_v63  ;;  %v9735_v48 = vrot.slane %v5111_v36, %v9569_v47  ;;  %v4929_v63 = vld [vmem:[#allocation16 + $0x438] sm:$0xff]  ;;  %v6948_v36 = vpack.c.bf16 %v4971_v8, %v4970_v23  ;;  %v4935_v23 = vld [vmem:[#allocation16 + $0x468] sm:$0xff] }
 0x55a   :  { %v4302_v41 = vld [vmem:[#allocation4 + $0x198] sm:$0x7]  ;;  %4599 = vst.msk [vmem:[#allocation6 + $0x10] sm:$0x3] %vm4430_vm14, %v4597_v53 }
 0x55b   :  { %v4304_v11 = vld [vmem:[#allocation4 + $0x191] sm:$0xff]  ;;  %v4305_v54 = vld [vmem:[#allocation4 + $0x199] sm:$0x7]  ;;  %5392 = vmatprep.mubr.f32.mxu1 %v5126_v16  ;;  %v5127_v52 = vcombine.high %v9735_v48, %v9735_v48  ;;  %v4748_v53 = vld [vmem:[#allocation5 + $0xa4] ss:$224 sm:$0x1] }
 0x55c   :  { %v4307_v17 = vmax.f32 %v4301_v39, %v4304_v11  ;;  %v4308_v2 = vmax.f32 %v4302_v41, %v4305_v54  ;;  %5393 = vmatmul.mubr.f32.vlgmr.msra.gmra.mrb[104].mxu1 %v5118_v35  ;;  %6903 = vmatpush3.bf16.msra.mxu0 %v6902_v60  ;;  %v4774_v35 = vld [vmem:[#allocation5 + $0xaa] ss:$224 sm:$0x1]  ;;  %v6930_v60 = vpack.c.bf16 %v4929_v63, %v4928_v43  ;;  %v4949_v39 = vld [vmem:[#allocation16 + $0x4d8] sm:$0xff]  ;;  %v4978_v63 = vld [vmem:[#allocation16 + $0x5c0] sm:$0xff] }
 0x55d   :  { %5462 = vmatprep.mubr.f32.mxu0 %v5127_v52  ;;  %6905 = vmatprep.subr.bf16.mxu0 %v6904_v19  ;;  %v4769_v16 = vld [vmem:[#allocation5 + $0xa8] ss:$224 sm:$0x1]  ;;  %v6950_v41 = vpack.c.bf16 %v4955_v49, %v9744_v13  ;;  %v6936_v18 = vpack.c.bf16 %v4949_v39, %v4948_v40  ;;  %v4961_v43 = vld [vmem:[#allocation16 + $0x538] sm:$0xff] }
 0x55e   :  { %v4357_v42 = vmax.f32 %v4298_v26, %v4307_v17  ;;  %v4358_v57 = vmax.f32 %v4299_v61, %v4308_v2  ;;  %6919 = vmatpush3.bf16.msra.mxu1 %v6918_v28  ;;  %v4945_v26 = vld [vmem:[#allocation16 + $0x4b8] sm:$0xff]  ;;  %v6952_v28 = vpack.c.bf16 %v4973_v55, %v4972_v59  ;;  %v4952_v13 = vld [vmem:[#allocation16 + $0x4f0] sm:$0xff] }
 0x55f   :  { %6921 = vmatprep.subr.bf16.mxu1 %v6920_v25  ;;  %v6928_v56 = vpack.c.bf16 %v4945_v26, %v4944_v21  ;;  %v6932_v25 = vpack.c.bf16 %v4947_v38, %v4946_v58  ;;  %v4976_v21 = vld [vmem:[#allocation16 + $0x5b0] sm:$0xff]  ;;  %v4977_v26 = vld [vmem:[#allocation16 + $0x5b8] sm:$0xff] }
 0x560   :  { %4407 = vst.msk [vmem:[#allocation5 + $0x180] sm:$0xff] %vm4096_vm8, %v4357_v42  ;;  %6907 = vmatpush3.bf16.msra.mxu0 %v6906_v44  ;;  %v4957_v44 = vld [vmem:[#allocation16 + $0x518] sm:$0xff]  ;;  %v4974_v42 = vld [vmem:[#allocation16 + $0x5a0] sm:$0xff]  ;;  %v6960_v49 = vpack.c.bf16 %v4977_v26, %v4976_v21  ;;  %v4936_v59 = vld [vmem:[#allocation16 + $0x470] sm:$0xff] }
 0x561   :  { %4409 = vst.msk [vmem:[#allocation5 + $0x188] sm:$0x7] %vm4408_vm0, %v4358_v57  ;;  %6909 = vmatprep.subr.bf16.mxu0 %v6908_v50  ;;  %v4975_v57 = vld [vmem:[#allocation16 + $0x5a8] sm:$0xff]  ;;  %v6934_v50 = vpack.c.bf16 %v4931_v32, %v4930_v10  ;;  %v6954_v20 = vpack.c.bf16 %v4957_v44, %v4956_v14  ;;  %v4937_v55 = vld [vmem:[#allocation16 + $0x478] sm:$0xff]  ;;  %v4962_v10 = vld [vmem:[#allocation16 + $0x540] sm:$0xff] }
 0x562   :  { %6923 = vmatpush3.bf16.msra.mxu1 %v6922_v46  ;;  %v4950_v46 = vld [vmem:[#allocation16 + $0x4e0] sm:$0xff]  ;;  %v6956_v9 = vpack.c.bf16 %v4975_v57, %v4974_v42  ;;  %v4963_v32 = vld [vmem:[#allocation16 + $0x548] sm:$0xff]  ;;  %v4969_v14 = vld [vmem:[#allocation16 + $0x578] sm:$0xff] }
 0x563   :  { %6925 = vmatprep.subr.bf16.mxu1 %v6924_v4  ;;  %v4951_v4 = vld [vmem:[#allocation16 + $0x4e8] sm:$0xff]  ;;  %v6966_v40 = vpack.c.bf16 %v4963_v32, %v4962_v10  ;;  %v5034_v44 = vld [vmem:[#allocation16 + $0x780] sm:$0xff]  ;;  %v5036_v26 = vld [vmem:[#allocation16 + $0x790] sm:$0xff] }
 0x564   :  { %6911 = vmatpush3.bf16.msra.mxu0 %v6910_v12  ;;  %v4959_v12 = vld [vmem:[#allocation16 + $0x528] sm:$0xff]  ;;  %v6940_v29 = vpack.c.bf16 %v4951_v4, %v4950_v46  ;;  %v5004_v46 = vld [vmem:[#allocation16 + $0x690] sm:$0xff]  ;;  %v5005_v4 = vld [vmem:[#allocation16 + $0x698] sm:$0xff] }
 0x565   :  { %6913 = vmatprep.subr.bf16.mxu0 %v6912_v6  ;;  %v6938_v6 = vpack.c.bf16 %v4933_v37, %v4932_v15  ;;  %v4987_v15 = vld [vmem:[#allocation16 + $0x608] sm:$0xff]  ;;  %v5022_v32 = vld [vmem:[#allocation16 + $0x720] sm:$0xff] }
 0x566   :  { %6927 = vmatpush3.bf16.msra.mxu1 %v6926_v62  ;;  %v4953_v62 = vld [vmem:[#allocation16 + $0x4f8] sm:$0xff] }
 0x567   :  { %v4733_v22 = vld [vmem:[#allocation5 + $0xa2] ss:$224 sm:$0x2]  ;;  %v4754_v27 = vld [vmem:[#allocation5 + $0xa6] ss:$224 sm:$0x2]  ;;  %6929 = vmatprep.subr.bf16.mxu1 %v6928_v56 }
 0x568   :  { %v4734_v19 = vor.u32 %v4733_v22, %v4732_v5  ;;  %v4755_v3 = vor.u32 %v4754_v27, %v4753_v51  ;;  %v4775_v45 = vld [vmem:[#allocation5 + $0xaa] ss:$224 sm:$0x2]  ;;  %v4728_v11 = vld [vmem:[#allocation5 + $0xa0] ss:$224 sm:$0x2]  ;;  %6915 = vmatpush3.bf16.msra.mxu0 %v6914_v33  ;;  %v6942_v5 = vpack.c.bf16 %v4935_v23, %v4934_v34  ;;  %v6944_v51 = vpack.c.bf16 %v4953_v62, %v4952_v13 }
 0x569   :  { %v4776_v54 = vor.u32 %v4775_v45, %v4774_v35  ;;  %v4729_v61 = vor.u32 %v4728_v11, %v4727_v30  ;;  %v4749_v17 = vld [vmem:[#allocation5 + $0xa4] ss:$224 sm:$0x2]  ;;  %v4770_v2 = vld [vmem:[#allocation5 + $0xa8] ss:$224 sm:$0x2]  ;;  %6949 = vmatprep.subr.bf16.mxu0 %v6948_v36  ;;  %v6946_v27 = vpack.c.bf16 %v4937_v55, %v4936_v59 }
 0x56a   :  { %v4742_v52 = vrot.slane %v4734_v19, %v9569_v47  ;;  %v4763_v31 = vrot.slane %v4755_v3, %v9569_v47  ;;  %v4750_v24 = vor.u32 %v4749_v17, %v4748_v53  ;;  %v4771_v0 = vor.u32 %v4770_v2, %v4769_v16  ;;  %6931 = vmatpush3.bf16.msra.mxu1 %v6930_v60  ;;  %v4960_v56 = vld [vmem:[#allocation16 + $0x530] sm:$0xff]  ;;  %v4979_v33 = vld [vmem:[#allocation16 + $0x5c8] sm:$0xff]  ;;  %v5002_v35 = vld [vmem:[#allocation16 + $0x680] sm:$0xff] }
 0x56b   :  { %4730 = vst.msk [vmem:[#allocation6 + $0x1e] sm:$0x3] %vm4413_vm13, %v4729_v61  ;;  %5463 = vmatmul.mubr.f32.vlgmr.msra.gmra.mrb[112].mxu0 %v9735_v48  ;;  %v4784_v1 = vrot.slane %v4776_v54, %v9569_v47  ;;  %v4958_v48 = vld [vmem:[#allocation16 + $0x520] sm:$0xff]  ;;  %6933 = vmatprep.subr.bf16.mxu1 %v6932_v25  ;;  %v6962_v58 = vpack.c.bf16 %v4961_v43, %v4960_v56  ;;  %v5003_v36 = vld [vmem:[#allocation16 + $0x688] sm:$0xff]  ;;  %v4980_v30 = vld [vmem:[#allocation16 + $0x5d0] sm:$0xff] }
 0x56c   :  { %4743 = vrot.lane.b32.xlu1 %v4742_v52, %s7398_s8  ;;  %4751 = vst.msk [vmem:[#allocation6 + $0x20] sm:$0x3] %vm4413_vm13, %v4750_v24  ;;  %4772 = vst.msk [vmem:[#allocation6 + $0x22] sm:$0x3] %vm4413_vm13, %v4771_v0  ;;  %4764 = vrot.lane.b32.xlu0 %v4763_v31, %s7398_s8  ;;  %v6958_v8 = vpack.c.bf16 %v4959_v12, %v4958_v48  ;;  %v6964_v38 = vpack.c.bf16 %v4979_v33, %v4978_v63  ;;  %v4981_v22 = vld [vmem:[#allocation16 + $0x5d8] sm:$0xff]  ;;  %v4964_v53 = vld [vmem:[#allocation16 + $0x550] sm:$0xff] }
 0x56d   :  { %6951 = vmatpush3.bf16.msra.mxu0 %v6950_v41  ;;  %v6980_v60 = vpack.c.bf16 %v5003_v36, %v5002_v35  ;;  %v6968_v39 = vpack.c.bf16 %v4981_v22, %v4980_v30  ;;  %v4965_v16 = vld [vmem:[#allocation16 + $0x558] sm:$0xff]  ;;  %v4982_v19 = vld [vmem:[#allocation16 + $0x5e0] sm:$0xff]  ;;  %v4983_v3 = vld [vmem:[#allocation16 + $0x5e8] sm:$0xff] }
 0x56e   :  { %6953 = vmatprep.subr.bf16.mxu0 %v6952_v28  ;;  %6935 = vmatpush3.bf16.msra.mxu1 %v6934_v50  ;;  %v6970_v45 = vpack.c.bf16 %v4965_v16, %v4964_v53  ;;  %v6972_v11 = vpack.c.bf16 %v4983_v3, %v4982_v19  ;;  %v4966_v54 = vld [vmem:[#allocation16 + $0x560] sm:$0xff]  ;;  %v4967_v28 = vld [vmem:[#allocation16 + $0x568] sm:$0xff]  ;;  %v4984_v61 = vld [vmem:[#allocation16 + $0x5f0] sm:$0xff] }
 0x56f   :  { %6937 = vmatprep.subr.bf16.mxu1 %v6936_v18  ;;  %v4985_v17 = vld [vmem:[#allocation16 + $0x5f8] sm:$0xff]  ;;  %v6974_v2 = vpack.c.bf16 %v4967_v28, %v4966_v54  ;;  %v4968_v31 = vld [vmem:[#allocation16 + $0x570] sm:$0xff]  ;;  %v5035_v24 = vld [vmem:[#allocation16 + $0x788] sm:$0xff] }
 0x570   :  { %4785 = vrot.lane.b32.xlu1 %v4784_v1, %s7398_s8  ;;  %v6976_v52 = vpack.c.bf16 %v4985_v17, %v4984_v61  ;;  %v6978_v0 = vpack.c.bf16 %v4969_v14, %v4968_v31  ;;  %v7012_v42 = vpack.c.bf16 %v5035_v24, %v5034_v44  ;;  %v4986_v18 = vld [vmem:[#allocation16 + $0x600] sm:$0xff]  ;;  %v4988_v34 = vld [vmem:[#allocation16 + $0x610] sm:$0xff]  ;;  %v4989_v23 = vld [vmem:[#allocation16 + $0x618] sm:$0xff] }
 0x571   :  { %6955 = vmatpush3.bf16.msra.mxu0 %v6954_v20  ;;  %v5018_v1 = vld [vmem:[#allocation16 + $0x700] sm:$0xff]  ;;  %v6982_v21 = vpack.c.bf16 %v4987_v15, %v4986_v18  ;;  %v5020_v43 = vld [vmem:[#allocation16 + $0x710] sm:$0xff]  ;;  %v5021_v63 = vld [vmem:[#allocation16 + $0x718] sm:$0xff]  ;;  %v6986_v33 = vpack.c.bf16 %v4989_v23, %v4988_v34 }
 0x572   :  { %6957 = vmatprep.subr.bf16.mxu0 %v6956_v9  ;;  %6939 = vmatpush3.bf16.msra.mxu1 %v6938_v6  ;;  %v5019_v9 = vld [vmem:[#allocation16 + $0x708] sm:$0xff]  ;;  %v5037_v6 = vld [vmem:[#allocation16 + $0x798] sm:$0xff]  ;;  %v5006_v62 = vld [vmem:[#allocation16 + $0x6a0] sm:$0xff]  ;;  %v7018_v35 = vpack.c.bf16 %v5021_v63, %v5020_v43 }
 0x573   :  { %6941 = vmatprep.subr.bf16.mxu1 %v6940_v29  ;;  %v6984_v29 = vpack.c.bf16 %v5005_v4, %v5004_v46  ;;  %v7014_v13 = vpack.c.bf16 %v5019_v9, %v5018_v1  ;;  %v7016_v56 = vpack.c.bf16 %v5037_v6, %v5036_v26  ;;  %v4990_v55 = vld [vmem:[#allocation16 + $0x620] sm:$0xff]  ;;  %v5008_v36 = vld [vmem:[#allocation16 + $0x6b0] sm:$0xff]  ;;  %v5023_v30 = vld [vmem:[#allocation16 + $0x728] sm:$0xff] }
 0x574   :  { %v4993_v53 = vld [vmem:[#allocation16 + $0x638] sm:$0xff]  ;;  %v7022_v16 = vpack.c.bf16 %v5023_v30, %v5022_v32  ;;  %v5010_v19 = vld [vmem:[#allocation16 + $0x6c0] sm:$0xff]  ;;  %v5011_v3 = vld [vmem:[#allocation16 + $0x6c8] sm:$0xff] }
 0x575   :  { %6959 = vmatpush3.bf16.msra.mxu0 %v6958_v8  ;;  %v5042_v28 = vld [vmem:[#allocation16 + $0x7c0] sm:$0xff]  ;;  %v6996_v61 = vpack.c.bf16 %v5011_v3, %v5010_v19  ;;  %v5012_v31 = vld [vmem:[#allocation16 + $0x6d0] sm:$0xff]  ;;  %v5013_v14 = vld [vmem:[#allocation16 + $0x6d8] sm:$0xff] }
 0x576   :  { %6961 = vmatprep.subr.bf16.mxu0 %v6960_v49  ;;  %6943 = vmatpush3.bf16.msra.mxu1 %v6942_v5  ;;  %v5007_v49 = vld [vmem:[#allocation16 + $0x6a8] sm:$0xff]  ;;  %v5038_v5 = vld [vmem:[#allocation16 + $0x7a0] sm:$0xff]  ;;  %v7000_v18 = vpack.c.bf16 %v5013_v14, %v5012_v31  ;;  %v4996_v15 = vld [vmem:[#allocation16 + $0x650] sm:$0xff] }
 0x577   :  { %6945 = vmatprep.subr.bf16.mxu1 %v6944_v51  ;;  %v5039_v51 = vld [vmem:[#allocation16 + $0x7a8] sm:$0xff]  ;;  %v6988_v59 = vpack.c.bf16 %v5007_v49, %v5006_v62  ;;  %v4994_v17 = vld [vmem:[#allocation16 + $0x640] sm:$0xff]  ;;  %v5028_v9 = vld [vmem:[#allocation16 + $0x750] sm:$0xff] }
 0x578   :  { %v7020_v10 = vpack.c.bf16 %v5039_v51, %v5038_v5  ;;  %v5026_v24 = vld [vmem:[#allocation16 + $0x740] sm:$0xff]  ;;  %v5015_v4 = vld [vmem:[#allocation16 + $0x6e8] sm:$0xff]  ;;  %v5048_v63 = vld [vmem:[#allocation16 + $0x7f0] sm:$0xff] }
 0x579   :  { %6963 = vmatpush3.bf16.msra.mxu0 %v6962_v58  ;;  %v4991_v58 = vld [vmem:[#allocation16 + $0x628] sm:$0xff]  ;;  %v5014_v46 = vld [vmem:[#allocation16 + $0x6e0] sm:$0xff]  ;;  %v5032_v32 = vld [vmem:[#allocation16 + $0x770] sm:$0xff] }
 0x57a   :  { %6965 = vmatprep.subr.bf16.mxu0 %v6964_v38  ;;  %6947 = vmatpush3.bf16.msra.mxu1 %v6946_v27  ;;  %v5009_v38 = vld [vmem:[#allocation16 + $0x6b8] sm:$0xff]  ;;  %v6990_v22 = vpack.c.bf16 %v4991_v58, %v4990_v55  ;;  %v5040_v27 = vld [vmem:[#allocation16 + $0x7b0] sm:$0xff]  ;;  %v5047_v26 = vld [vmem:[#allocation16 + $0x7e8] sm:$0xff]  ;;  %v7004_v6 = vpack.c.bf16 %v5015_v4, %v5014_v46 }
 0x57b   :  { %6981 = vmatprep.subr.bf16.mxu1 %v6980_v60  ;;  %v5041_v60 = vld [vmem:[#allocation16 + $0x7b8] sm:$0xff]  ;;  %v4999_v34 = vld [vmem:[#allocation16 + $0x668] sm:$0xff]  ;;  %v5030_v49 = vld [vmem:[#allocation16 + $0x760] sm:$0xff] }
 0x57c   :  { %v5001_v55 = vld [vmem:[#allocation16 + $0x678] sm:$0xff]  ;;  %v5050_v3 = vld [vmem:[#allocation16 + $0x800] sm:$0xff]  ;;  %v5056_v4 = vld [vmem:[#allocation16 + $0x830] sm:$0xff] }
 0x57d   :  { %6967 = vmatpush3.bf16.msra.mxu0 %v6966_v40  ;;  %v4618_v41 = vpop.permute.xlu1 %4617  ;;  %v6992_v40 = vpack.c.bf16 %v5009_v38, %v5008_v36  ;;  %v5066_v36 = vld [vmem:[#allocation16 + $0x880] sm:$0xff]  ;;  %v5067_v38 = vld [vmem:[#allocation16 + $0x888] sm:$0xff]  ;;  %v5033_v30 = vld [vmem:[#allocation16 + $0x778] sm:$0xff] }
 0x57e   :  { %6969 = vmatprep.subr.bf16.mxu0 %v6968_v39  ;;  %4620 = vst.msk [vmem:[#allocation6 + $0x12] sm:$0x3] %vm4430_vm14, %v4618_v41  ;;  %v4639_v25 = vpop.permute.xlu0 %4638  ;;  %v4992_v39 = vld [vmem:[#allocation16 + $0x630] sm:$0xff]  ;;  %v5053_v31 = vld [vmem:[#allocation16 + $0x818] sm:$0xff] }
 0x57f   :  { %4641 = vst.msk [vmem:[#allocation6 + $0x14] sm:$0x3] %vm4430_vm14, %v4639_v25  ;;  %v5024_v41 = vld [vmem:[#allocation16 + $0x730] sm:$0xff]  ;;  %v6994_v54 = vpack.c.bf16 %v4993_v53, %v4992_v39  ;;  %v5043_v25 = vld [vmem:[#allocation16 + $0x7c8] sm:$0xff] }
 0x580   :  { %v7028_v44 = vpack.c.bf16 %v5043_v25, %v5042_v28  ;;  %v5069_v28 = vld [vmem:[#allocation16 + $0x898] sm:$0xff] }
 0x581   :  { %6971 = vmatpush3.bf16.msra.mxu0 %v6970_v45  ;;  %v7024_v45 = vpack.c.bf16 %v5041_v60, %v5040_v27  ;;  %v7044_v27 = vpack.c.bf16 %v5067_v38, %v5066_v36  ;;  %v7042_v60 = vpack.c.bf16 %v5033_v30, %v5032_v32  ;;  %v5065_v32 = vld [vmem:[#allocation16 + $0x878] sm:$0xff] }
 0x582   :  { %6973 = vmatprep.subr.bf16.mxu0 %v6972_v11  ;;  %v5025_v11 = vld [vmem:[#allocation16 + $0x738] sm:$0xff] }
 0x585   :  { %6975 = vmatpush3.bf16.msra.mxu0 %v6974_v2  ;;  %v4995_v2 = vld [vmem:[#allocation16 + $0x648] sm:$0xff] }
 0x586   :  { %6977 = vmatprep.subr.bf16.mxu0 %v6976_v52  ;;  %v7026_v52 = vpack.c.bf16 %v5025_v11, %v5024_v41 }
 0x589   :  { %6979 = vmatpush3.bf16.msra.mxu0 %v6978_v0  ;;  %v4660_v57 = vpop.permute.xlu1 %4659  ;;  %v5027_v0 = vld [vmem:[#allocation16 + $0x748] sm:$0xff] }
 0x58a   :  { %7013 = vmatprep.subr.bf16.mxu0 %v7012_v42  ;;  %4662 = vst.msk [vmem:[#allocation6 + $0x16] sm:$0x3] %vm4430_vm14, %v4660_v57  ;;  %v6998_v42 = vpack.c.bf16 %v4995_v2, %v4994_v17  ;;  %v5044_v57 = vld [vmem:[#allocation16 + $0x7d0] sm:$0xff] }
 0x591   :  { %v4791_v50 = vld [vmem:[#allocation6 + $0x10] sm:$0xff] }
 0x592   :  { %v5135_v37 = vrot.slane %v4791_v50, %v9569_v47  ;;  %v5128_v20 = vcombine.high %v4791_v50, %v4791_v50  ;;  %v5045_v50 = vld [vmem:[#allocation16 + $0x7d8] sm:$0xff] }
 0x593   :  { %v7032_v1 = vpack.c.bf16 %v5045_v50, %v5044_v57 }
 0x594   :  { %v5143_v48 = vcombine.high %v5135_v37, %v5135_v37  ;;  %v5142_v12 = vrot.slane %v5128_v20, %v9569_v47  ;;  %v7030_v20 = vpack.c.bf16 %v5027_v0, %v5026_v24  ;;  %v5070_v0 = vld [vmem:[#allocation16 + $0x8a0] sm:$0xff] }
 0x596   :  { %5532 = vmatprep.mubr.f32.mxu1 %v5143_v48  ;;  %v5144_v8 = vcombine.high %v5142_v12, %v5142_v12  ;;  %v5029_v48 = vld [vmem:[#allocation16 + $0x758] sm:$0xff] }
 0x597   :  { %5533 = vmatmul.mubr.f32.vlgmr.msra.gmra.mrb[106].mxu1 %v5135_v37  ;;  %v4997_v37 = vld [vmem:[#allocation16 + $0x658] sm:$0xff]  ;;  %v7034_v23 = vpack.c.bf16 %v5029_v48, %v5028_v9  ;;  %v5074_v9 = vld [vmem:[#allocation16 + $0x8c0] sm:$0xff]  ;;  %v5075_v48 = vld [vmem:[#allocation16 + $0x8c8] sm:$0xff] }
 0x598   :  { %5602 = vmatprep.mubr.f32.mxu0 %v5144_v8  ;;  %6983 = vmatpush3.bf16.msra.mxu1 %v6982_v21  ;;  %v5046_v21 = vld [vmem:[#allocation16 + $0x7e0] sm:$0xff]  ;;  %v5016_v8 = vld [vmem:[#allocation16 + $0x6f0] sm:$0xff] }
 0x599   :  { %5603 = vmatmul.mubr.f32.vlgmr.msra.gmra.mrb[114].mxu0 %v5142_v12  ;;  %6985 = vmatprep.subr.bf16.mxu1 %v6984_v29  ;;  %v7002_v12 = vpack.c.bf16 %v4997_v37, %v4996_v15  ;;  %v4998_v29 = vld [vmem:[#allocation16 + $0x660] sm:$0xff]  ;;  %v7036_v62 = vpack.c.bf16 %v5047_v26, %v5046_v21  ;;  %v5072_v15 = vld [vmem:[#allocation16 + $0x8b0] sm:$0xff]  ;;  %v5073_v37 = vld [vmem:[#allocation16 + $0x8b8] sm:$0xff]  ;;  %v7060_v21 = vpack.c.bf16 %v5075_v48, %v5074_v9 }
 0x59a   :  { %7015 = vmatpush3.bf16.msra.mxu0 %v7014_v13  ;;  %v5017_v13 = vld [vmem:[#allocation16 + $0x6f8] sm:$0xff]  ;;  %v7006_v43 = vpack.c.bf16 %v4999_v34, %v4998_v29  ;;  %v7056_v46 = vpack.c.bf16 %v5073_v37, %v5072_v15  ;;  %v5058_v26 = vld [vmem:[#allocation16 + $0x840] sm:$0xff]  ;;  %v5076_v29 = vld [vmem:[#allocation16 + $0x8d0] sm:$0xff] }
 0x59b   :  { %7017 = vmatprep.subr.bf16.mxu0 %v7016_v56  ;;  %v5031_v56 = vld [vmem:[#allocation16 + $0x768] sm:$0xff]  ;;  %v7008_v51 = vpack.c.bf16 %v5017_v13, %v5016_v8  ;;  %v5077_v34 = vld [vmem:[#allocation16 + $0x8d8] sm:$0xff]  ;;  %v5060_v13 = vld [vmem:[#allocation16 + $0x850] sm:$0xff] }
 0x59c   :  { %6987 = vmatpush3.bf16.msra.mxu1 %v6986_v33  ;;  %v5049_v33 = vld [vmem:[#allocation16 + $0x7f8] sm:$0xff]  ;;  %v7064_v8 = vpack.c.bf16 %v5077_v34, %v5076_v29 }
 0x59d   :  { %6989 = vmatprep.subr.bf16.mxu1 %v6988_v59  ;;  %v5000_v59 = vld [vmem:[#allocation16 + $0x670] sm:$0xff]  ;;  %v5831_v37 = vld [vmem:[#allocation19 + $0x58] sm:$0xff] }
 0x59e   :  { %7019 = vmatpush3.bf16.msra.mxu0 %v7018_v35  ;;  %v7038_v35 = vpack.c.bf16 %v5031_v56, %v5030_v49  ;;  %v5078_v49 = vld [vmem:[#allocation16 + $0x8e0] sm:$0xff]  ;;  %v5079_v56 = vld [vmem:[#allocation16 + $0x8e8] sm:$0xff]  ;;  %v5830_v15 = vld [vmem:[#allocation19 + $0x50] sm:$0xff] }
 0x59f   :  { %7021 = vmatprep.subr.bf16.mxu0 %v7020_v10  ;;  %v7040_v10 = vpack.c.bf16 %v5049_v33, %v5048_v63  ;;  %v7068_v63 = vpack.c.bf16 %v5079_v56, %v5078_v49  ;;  %v5062_v33 = vld [vmem:[#allocation16 + $0x860] sm:$0xff]  ;;  %v5834_v9 = vld [vmem:[#allocation19 + $0x70] sm:$0xff] }
 0x5a0   :  { %6991 = vmatpush3.bf16.msra.mxu1 %v6990_v22  ;;  %v7010_v22 = vpack.c.bf16 %v5001_v55, %v5000_v59  ;;  %v5080_v59 = vld [vmem:[#allocation16 + $0x8f0] sm:$0xff]  ;;  %v5081_v55 = vld [vmem:[#allocation16 + $0x8f8] sm:$0xff] }
 0x5a1   :  { %6993 = vmatprep.subr.bf16.mxu1 %v6992_v40  ;;  %v7072_v38 = vpack.c.bf16 %v5081_v55, %v5080_v59  ;;  %v5835_v48 = vld [vmem:[#allocation19 + $0x78] sm:$0xff] }
 0x5a2   :  { %7023 = vmatpush3.bf16.msra.mxu0 %v7022_v16 }
 0x5a3   :  { %7025 = vmatprep.subr.bf16.mxu0 %v7024_v45  ;;  %v5051_v45 = vld [vmem:[#allocation16 + $0x808] sm:$0xff] }
 0x5a4   :  { %6995 = vmatpush3.bf16.msra.mxu1 %v6994_v54  ;;  %v5068_v54 = vld [vmem:[#allocation16 + $0x890] sm:$0xff] }
 0x5a5   :  { %6997 = vmatprep.subr.bf16.mxu1 %v6996_v61  ;;  %v7046_v61 = vpack.c.bf16 %v5051_v45, %v5050_v3  ;;  %v7048_v24 = vpack.c.bf16 %v5069_v28, %v5068_v54 }
 0x5a6   :  { %7027 = vmatpush3.bf16.msra.mxu0 %v7026_v52  ;;  %v5052_v52 = vld [vmem:[#allocation16 + $0x810] sm:$0xff] }
 0x5a7   :  { %7029 = vmatprep.subr.bf16.mxu0 %v7028_v44  ;;  %v7050_v57 = vpack.c.bf16 %v5053_v31, %v5052_v52  ;;  %v5823_v31 = vld [vmem:[#allocation19 + $0x18] sm:$0xff] }
 0x5a8   :  { %6999 = vmatpush3.bf16.msra.mxu1 %v6998_v42  ;;  %v5071_v42 = vld [vmem:[#allocation16 + $0x8a8] sm:$0xff] }
 0x5a9   :  { %7001 = vmatprep.subr.bf16.mxu1 %v7000_v18  ;;  %v7052_v50 = vpack.c.bf16 %v5071_v42, %v5070_v0  ;;  %v5055_v18 = vld [vmem:[#allocation16 + $0x828] sm:$0xff]  ;;  %v5826_v0 = vld [vmem:[#allocation19 + $0x30] sm:$0xff]  ;;  %v5827_v42 = vld [vmem:[#allocation19 + $0x38] sm:$0xff] }
 0x5aa   :  { %7031 = vmatpush3.bf16.msra.mxu0 %v7030_v20 }
 0x5ab   :  { %7033 = vmatprep.subr.bf16.mxu0 %v7032_v1  ;;  %v5057_v1 = vld [vmem:[#allocation16 + $0x838] sm:$0xff] }
 0x5ac   :  { %7003 = vmatpush3.bf16.msra.mxu1 %v7002_v12  ;;  %v7058_v12 = vpack.c.bf16 %v5057_v1, %v5056_v4  ;;  %v5833_v4 = vld [vmem:[#allocation19 + $0x68] sm:$0xff] }
 0x5ad   :  { %v4702_v5 = vpop.permute.xlu1 %4701  ;;  %7005 = vmatprep.subr.bf16.mxu1 %v7004_v6  ;;  %v5059_v6 = vld [vmem:[#allocation16 + $0x848] sm:$0xff] }
 0x5ae   :  { %4704 = vst.msk [vmem:[#allocation6 + $0x1a] sm:$0x3] %vm4430_vm14, %v4702_v5  ;;  %v4681_v58 = vpop.permute.xlu0 %4680  ;;  %7035 = vmatpush3.bf16.msra.mxu0 %v7034_v23  ;;  %v7062_v23 = vpack.c.bf16 %v5059_v6, %v5058_v26  ;;  %v5063_v5 = vld [vmem:[#allocation16 + $0x868] sm:$0xff] }
 0x5af   :  { %4683 = vst.msk [vmem:[#allocation6 + $0x18] sm:$0x3] %vm4430_vm14, %v4681_v58  ;;  %7037 = vmatprep.subr.bf16.mxu0 %v7036_v62  ;;  %v5061_v62 = vld [vmem:[#allocation16 + $0x858] sm:$0xff]  ;;  %v7070_v36 = vpack.c.bf16 %v5063_v5, %v5062_v33 }
 0x5b0   :  { %7007 = vmatpush3.bf16.msra.mxu1 %v7006_v43  ;;  %v7066_v43 = vpack.c.bf16 %v5061_v62, %v5060_v13 }
 0x5b1   :  { %7009 = vmatprep.subr.bf16.mxu1 %v7008_v51 }
 0x5b2   :  { %7039 = vmatpush3.bf16.msra.mxu0 %v7038_v35 }
 0x5b3   :  { %7041 = vmatprep.subr.bf16.mxu0 %v7040_v10  ;;  %v5064_v10 = vld [vmem:[#allocation16 + $0x870] sm:$0xff] }
 0x5b4   :  { %7011 = vmatpush3.bf16.msra.mxu1 %v7010_v22  ;;  %v7074_v30 = vpack.c.bf16 %v5065_v32, %v5064_v10  ;;  %v6058_v22 = vld [vmem:[#allocation18] ss:$0 sm:$0xff] }
 0x5b5   :  { %7045 = vmatprep.subr.bf16.mxu1 %v7044_v27 }
 0x5b6   :  { %7043 = vmatpush3.bf16.msra.mxu0 %v7042_v60 }
 0x5b7   :  { %7076 = vmatprep.subr.bf16.mxu0 %v7397_v7 }
 0x5b9   :  { %v4723_v40 = vpop.permute.xlu0 %4722 }
 0x5ba   :  { %4725 = vst.msk [vmem:[#allocation6 + $0x1c] sm:$0x3] %vm4430_vm14, %v4723_v40 }
 0x5de   :  { %v4744_v39 = vpop.permute.xlu1 %4743  ;;  %v4765_v53 = vpop.permute.xlu0 %4764 }
 0x5df   :  { %4746 = vst.msk [vmem:[#allocation6 + $0x1e] sm:$0x3] %vm4430_vm14, %v4744_v39  ;;  %4767 = vst.msk [vmem:[#allocation6 + $0x20] sm:$0x3] %vm4430_vm14, %v4765_v53 }
 0x5e2   :  { %v4786_v16 = vpop.permute.xlu1 %4785 }
 0x5e3   :  { %4788 = vst.msk [vmem:[#allocation6 + $0x22] sm:$0x3] %vm4430_vm14, %v4786_v16 }
 0x5e6   :  { %v4792_v19 = vld [vmem:[#allocation6 + $0x18] sm:$0xff] }
 0x5e7   :  { %v5152_v41 = vrot.slane %v4792_v19, %v9569_v47  ;;  %v5145_v11 = vcombine.high %v4792_v19, %v4792_v19 }
 0x5e9   :  { %v5160_v25 = vcombine.high %v5152_v41, %v5152_v41  ;;  %v5159_v17 = vrot.slane %v5145_v11, %v9569_v47  ;;  %v5054_v47 = vld [vmem:[#allocation16 + $0x820] sm:$0xff] }
 0x5ea   :  { %v9771_v2 = vld.sshfl [vmem:[#allocation6 + $0x20] sm:$0x33 pattern:$0x76325410]  ;;  %v7054_v20 = vpack.c.bf16 %v5055_v18, %v5054_v47  ;;  %v5829_v47 = vld [vmem:[#allocation19 + $0x48] sm:$0xff] }
 0x5eb   :  { %5672 = vmatprep.mubr.f32.mxu1 %v5160_v25  ;;  %v5161_v14 = vcombine.high %v5159_v17, %v5159_v17  ;;  %v5169_v44 = vcombine.high %v9771_v2, %v9771_v2  ;;  %v5820_v25 = vld [vmem:[#allocation19] sm:$0xff] }
 0x5ec   :  { %5673 = vmatmul.mubr.f32.vlgmr.msra.gmra.mrb[108].mxu1 %v5152_v41 }
 0x5ed   :  { %7047 = vmatpush3.bf16.msra.mxu1 %v7046_v61  ;;  %5742 = vmatprep.mubr.f32.mxu0 %v5161_v14  ;;  %v5821_v61 = vld [vmem:[#allocation19 + $0x8] sm:$0xff]  ;;  %v5824_v14 = vld [vmem:[#allocation19 + $0x20] sm:$0xff] }
 0x5ee   :  { %5812 = vmatprep.mubr.f32.mxu1 %v5169_v44  ;;  %5743 = vmatmul.mubr.f32.vlgmr.msra.gmra.mrb[116].mxu0 %v5159_v17  ;;  %v5822_v17 = vld [vmem:[#allocation19 + $0x10] sm:$0xff]  ;;  %v7077_v52 = vpack.c.bf16 %v5821_v61, %v5820_v25  ;;  %v5825_v44 = vld [vmem:[#allocation19 + $0x28] sm:$0xff] }
 0x5ef   :  { %7049 = vmatprep.subr.bf16.mxu1 %v7048_v24  ;;  %v7083_v24 = vpack.c.bf16 %v5825_v44, %v5824_v14 }
 0x5f0   :  { %7078 = vmatpush3.bf16.msra.mxu0 %v7077_v52 }
 0x5f1   :  { %7051 = vmatpush3.bf16.msra.mxu1 %v7050_v57  ;;  %7079 = vmatprep.subr.bf16.mxu0 %v7397_v7  ;;  %v7086_v57 = vpack.c.bf16 %v5827_v42, %v5826_v0 }
 0x5f2   :  { %7053 = vmatprep.subr.bf16.mxu1 %v7052_v50  ;;  %v5828_v50 = vld [vmem:[#allocation19 + $0x40] sm:$0xff] }
 0x5f3   :  { %v7089_v18 = vpack.c.bf16 %v5829_v47, %v5828_v50 }
 0x5f5   :  { %7055 = vmatpush3.bf16.msra.mxu1 %v7054_v20  ;;  %v7092_v20 = vpack.c.bf16 %v5831_v37, %v5830_v15 }
 0x5f6   :  { %7057 = vmatprep.subr.bf16.mxu1 %v7056_v46  ;;  %v5832_v46 = vld [vmem:[#allocation19 + $0x60] sm:$0xff] }
 0x5f7   :  { %v7095_v1 = vpack.c.bf16 %v5833_v4, %v5832_v46 }
 0x5f9   :  { %7059 = vmatpush3.bf16.msra.mxu1 %v7058_v12  ;;  %v7098_v12 = vpack.c.bf16 %v5835_v48, %v5834_v9 }
 0x5fa   :  { %7061 = vmatprep.subr.bf16.mxu1 %v7060_v21  ;;  %v7403_v21 = vmov 0.0  }
 0x5fb   :  { %6719 = vmatprep.mubr.msk.f32.mxu0 %vm7402_vm1, %v7403_v21 }
 0x5fd   :  { %7063 = vmatpush3.bf16.msra.mxu1 %v7062_v23 }
 0x5fe   :  { %7065 = vmatprep.subr.bf16.mxu1 %v7064_v8  ;;  %v6209_v51 = vpop.f32.mrb[108].mxu0 }
 0x5ff   :  { %v6210_v58 = vpop.f32.mrb[109].mxu0 }
 0x600   :  { %v6211_v35 = vadd.f32 %v6210_v58, %v6209_v51 }
 0x601   :  { %7067 = vmatpush3.bf16.msra.mxu1 %v7066_v43 }
 0x602   :  { %7069 = vmatprep.subr.bf16.mxu1 %v7068_v63  ;;  %v5255_v40 = vadd.f32 %v6211_v35, %v6058_v22 }
 0x605   :  { %7071 = vmatpush3.bf16.msra.mxu1 %v7070_v36 }
 0x606   :  { %7073 = vmatprep.subr.bf16.mxu1 %v7072_v38 }
 0x609   :  { %7075 = vmatpush3.bf16.msra.mxu1 %v7074_v30 }
 0x60c   :  { %5813 = vmatmul.mubr.f32.vlgmr.msra.gmra.mrb[110].mxu1 %v9771_v2  ;;  %v7080_v2 = vpack.c.bf16 %v5823_v31, %v5822_v17 }
 0x60e   :  { %7081 = vmatpush3.bf16.msra.mxu0 %v7080_v2 }
 0x60f   :  { %7082 = vmatprep.subr.bf16.mxu0 %v7397_v7 }
 0x612   :  { %7084 = vmatpush3.bf16.msra.mxu0 %v7083_v24 }
 0x613   :  { %7085 = vmatprep.subr.bf16.mxu0 %v7397_v7 }
 0x616   :  { %7087 = vmatpush3.bf16.msra.mxu0 %v7086_v57 }
 0x617   :  { %7088 = vmatprep.subr.bf16.mxu0 %v7397_v7 }
 0x61a   :  { %7090 = vmatpush3.bf16.msra.mxu0 %v7089_v18 }
 0x61b   :  { %7091 = vmatprep.subr.bf16.mxu0 %v7397_v7 }
 0x61e   :  { %v6244_v27 = vpop.f32.mrb[110].mxu0  ;;  %7093 = vmatpush3.bf16.msra.mxu0 %v7092_v20 }
 0x61f   :  { %v6245_v60 = vpop.f32.mrb[111].mxu0  ;;  %7094 = vmatprep.subr.bf16.mxu0 %v7397_v7 }
 0x620   :  { %v6246_v39 = vadd.f32 %v6245_v60, %v6244_v27 }
 0x622   :  { %v5325_v53 = vadd.f32 %v6246_v39, %v5255_v40  ;;  %7096 = vmatpush3.bf16.msra.mxu0 %v7095_v1 }
 0x623   :  { %7097 = vmatprep.subr.bf16.mxu0 %v7397_v7 }
 0x626   :  { %7099 = vmatpush3.bf16.msra.mxu0 %v7098_v12 }
 0x62f   :  { %v6279_v16 = vpop.f32.mrb[104].mxu1 }
 0x630   :  { %v6280_v19 = vpop.f32.mrb[105].mxu1 }
 0x631   :  { %v6281_v3 = vadd.f32 %v6280_v19, %v6279_v16 }
 0x633   :  { %v5395_v45 = vadd.f32 %v6281_v3, %v5325_v53 }
 0x63e   :  { %v6314_v41 = vpop.f32.mrb[112].mxu0 }
 0x63f   :  { %v6315_v11 = vpop.f32.mrb[113].mxu0 }
 0x640   :  { %v6316_v54 = vadd.f32 %v6315_v11, %v6314_v41 }
 0x642   :  { %v5465_v28 = vadd.f32 %v6316_v54, %v5395_v45 }
 0x66a   :  { %v6349_v26 = vpop.f32.mrb[106].mxu1 }
 0x66b   :  { %v6350_v6 = vpop.f32.mrb[107].mxu1 }
 0x66c   :  { %v6351_v29 = vadd.f32 %v6350_v6, %v6349_v26  ;;  %v6384_v34 = vpop.f32.mrb[114].mxu0 }
 0x66d   :  { %v6385_v23 = vpop.f32.mrb[115].mxu0 }
 0x66e   :  { %v5535_v8 = vadd.f32 %v6351_v29, %v5465_v28  ;;  %v6386_v13 = vadd.f32 %v6385_v23, %v6384_v34 }
 0x670   :  { %v5605_v62 = vadd.f32 %v6386_v13, %v5535_v8 }
 0x6bf   :  { %v6419_v49 = vpop.f32.mrb[108].mxu1 }
 0x6c0   :  { %v6420_v56 = vpop.f32.mrb[109].mxu1 }
 0x6c1   :  { %v6421_v43 = vadd.f32 %v6420_v56, %v6419_v49  ;;  %v6454_v63 = vpop.f32.mrb[116].mxu0 }
 0x6c2   :  { %v6455_v7 = vpop.f32.mrb[117].mxu0 }
 0x6c3   :  { %v5675_v33 = vadd.f32 %v6421_v43, %v5605_v62  ;;  %v6456_v5 = vadd.f32 %v6455_v7, %v6454_v63 }
 0x6c5   :  { %v5745_v51 = vadd.f32 %v6456_v5, %v5675_v33 }
 0x6df   :  { %v6489_v59 = vpop.f32.mrb[110].mxu1 }
 0x6e0   :  { %v6490_v55 = vpop.f32.mrb[111].mxu1 }
 0x6e1   :  { %v6491_v58 = vadd.f32 %v6490_v55, %v6489_v59 }
 0x6e3   :  { %v5815_v35 = vadd.f32 %v6491_v58, %v5745_v51 }
 0x6e5   :  { %v5819_v36 = vmax.f32 %v5815_v35, 0.0  ;;  %5818 = vst [vmem:[#allocation22] sm:$0x3] %v5815_v35 }
 0x6e7   :  { %6720 = vmatmul.mubr.f32.vlgmr.msra.gmra.mrb[118].mxu0 %v5819_v36 }
 0x6e8   :  { %7338 = shalt.err (!%p7335_p6)
}
 0x6e9   :  { %s7339_s14 = scalar_lea.hbm %s9816_s9, 32 }
 0x6ea   :  { %p7340_p7 = scmp.ne.s32.totalorder %s9816_s9, %s7339_s14  ;;  %p7343_p8 = scmp.lt.u32.totalorder %s7339_s14, %s9816_s9 }
 0x6ec   :  { %p7345_p9 = pnand %p7343_p8, %p7340_p7 }
 0x6ee   :  { %7348 = shalt.err (!%p7345_p9)
}
 0x6ef   :  { %5923 = dma.vmem_to_hbm [thread:$0]  %s5921_s15, 32, %s9816_s9, [#allocation9]   ;;  %v6060_v38 = vld [vmem:[#allocation21] ss:$0 sm:$0xff] }
 0x6f0   :  { %s7405_s0 = smov [#allocation23]  }
 0x6f1   :  { %s5930_s25 = sshll.u32 %s7405_s0, 4  ;;  %s5931_s25 = int_to_ptr.vmem [resolvable:$true] %s5930_s25 }
 0x6f2   :  { %s7349_s26 = scalar_lea.vmem %s5931_s25, 32  ;;  %p7354_p11 = scmp.lt.s32.totalorder %s5931_s25, %s5931_s25 }
 0x6f3   :  { %p7350_p10 = scmp.ne.s32.totalorder %s5931_s25, %s7349_s26  ;;  %p7355_p12 = scmp.lt.s32.totalorder %s7349_s26, %s7349_s26 }
 0x6f5   :  { %p7356_p13 = por %p7355_p12, %p7354_p11 }
 0x6f7   :  { %p7357_p0 = pnand %p7356_p13, %p7350_p10 }
 0x7ba   :  { %v5909_v10 = vpop.f32.mrb[118].mxu0 }
 0x7bb   :  { %v5910_v32 = vadd.f32 %v6060_v38, %v5909_v10  ;;  %v6721_v30 = vpop.f32.mrb[119].mxu0 }
 0x7bd   :  { %5913 = vst [vmem:[#allocation23] sm:$0x3] %v5910_v32 }
 0x7be   :  { %7360 = shalt.err (!%p7357_p0)
}
 0x7bf   :  { %s7361_s30 = scalar_lea.hbm %s9817_s10, 32 }
 0x7c0   :  { %p7362_p1 = scmp.ne.s32.totalorder %s9817_s10, %s7361_s30  ;;  %p7365_p2 = scmp.lt.u32.totalorder %s7361_s30, %s9817_s10 }
 0x7c2   :  { %p7367_p3 = pnand %p7365_p2, %p7362_p1 }
 0x7c4   :  { %7370 = shalt.err (!%p7367_p3)
}
 0x7c5   :  { %5933 = dma.vmem_to_hbm [thread:$0]  %s5931_s25, 32, %s9817_s10, [#allocation24]  }
 0x7c6   :  { %7381 = dma.done.wait [#allocation9], 32  }
 0x7c7   :  { %7382 = vsyncadd [#allocation9], 4294967264 }
 0x7c8   :  { %7383 = dma.done.wait [#allocation24], 32  }
 0x7c9   :  { %7384 = vsyncadd [#allocation24], 4294967264 }
 0x7ca   :  { %5940 = vsyncpa [#allocation8], 1 }
 0x7cb   :  { %5941 = vsyncpa [#allocation11], 1 }
 0x7cc   :  { %5942 = vsyncpa [#allocation14], 1 }
 0x7cd   :  { %5943 = vsyncpa [#allocation17], 1 }
 0x7ce   :  { %5944 = vsyncpa [#allocation20], 1 }
 0x7cf   :  { %5945 = vsyncpa [#allocation9], 1 }
 0x7d0   :  { %5946 = vsyncpa [#allocation24], 1 }

</bundles_post_ra>
